<compile_context>
chip_gen: v7x
topology: tpu7x:2x2x1
jax: 0.10.0
libtpu: 0.0.40
codegen_flags: <defaults>
</compile_context>

<pallas_src>
import functools

import jax
import jax.numpy as jnp
from jax import lax
from jax.experimental import pallas as pl
from jax.experimental.pallas import tpu as pltpu


def _vmem_limit_bytes():
    """Generation-aware scoped-VMEM limit (v5e/v6e: 128 MiB phys, v7x: 64 MiB)."""
    try:
        cap = pltpu.get_tpu_info().vmem_capacity_bytes
    except Exception:  # query unavailable (e.g. interpret mode) -> safe default
        cap = 64 * 1024 * 1024
    return int(min(cap // 2, 64 * 1024 * 1024))


_VMEM_LIMIT = _vmem_limit_bytes()


# ----------------------------------------------------------------------------
# Fused Conv2d(3x3, pad=1) + MaxPool2d(2,2) + ReLU kernel (one batch element).
#   x_ref : (2, 2, Pp, Cin)     bf16  flattened phase planes of the padded img
#   w_ref : (3, 3, Cin, Coutp)  bf16  conv weights, (kh, kw, ci, co)
#   b_ref : (1, Coutp)          f32   bias (padded channels are zero)
#   o_ref : (Hh*Wp, Coutp)      bf16  pooled+ReLU rows; the last column of each
#                                     Wp-group is junk and is sliced off in JAX
# ----------------------------------------------------------------------------
def conv_pool_relu_kernel(x_ref, w_ref, b_ref, o_ref, *, hh, wp):
    m = hh * wp
    pooled = None
    for dh in range(2):              # pooling-window row offset
        for dw in range(2):          # pooling-window col offset
            acc = None
            for kh in range(3):      # conv tap row
                for kw in range(3):  # conv tap col
                    ah, qh = (dh + kh) % 2, (dh + kh) // 2
                    aw, qw = (dw + kw) % 2, (dw + kw) // 2
                    # Contiguous window of the flattened (ah, aw) phase plane.
                    lhs = x_ref[ah, aw, pl.ds(qh * wp + qw, m), :]
                    part = jnp.dot(lhs, w_ref[kh, kw, :, :],
                                   preferred_element_type=jnp.float32)
                    acc = part if acc is None else acc + part
            pooled = acc if pooled is None else jnp.maximum(pooled, acc)
    y = pooled + b_ref[...]          # bias identical across offsets -> hoisted
    o_ref[...] = jnp.maximum(y, 0.0).astype(o_ref.dtype)


# ----------------------------------------------------------------------------
# XLA-side layout glue (pure data movement, ~1x activation volume).
# ----------------------------------------------------------------------------
def _phase_split(x_nhwc):
    """(N, H, W, C) -> (N, 2, 2, (H//2 + 2)*(W//2 + 1), C).

    Plane (ah, aw), flat index i*(W//2+1)+j holds padded pixel (2i+ah, 2j+aw);
    one extra zero row is appended so shifted in-kernel windows never read OOB.
    """
    n, h, w, c = x_nhwc.shape
    hh, wh = h // 2, w // 2
    wp = wh + 1
    xp = jnp.pad(x_nhwc, ((0, 0), (1, 1), (1, 1), (0, 0)))
    xr = xp.reshape(n, hh + 1, 2, wp, 2, c)
    xr = jnp.transpose(xr, (0, 2, 4, 1, 3, 5))            # (N, 2, 2, hh+1, wp, C)
    xr = xr.reshape(n, 2, 2, (hh + 1) * wp, c)
    return jnp.pad(xr, ((0, 0), (0, 0), (0, 0), (0, wp), (0, 0)))


def conv_block(x_nhwc, w, b, cout_pad):
    """One block; output channels zero-padded to `cout_pad` (lane-dense)."""
    n, h, width, cin_x = x_nhwc.shape
    assert h % 2 == 0 and width % 2 == 0 and h >= 2 and width >= 2
    cout, cin_w = w.shape[0], w.shape[1]
    hh, wh = h // 2, width // 2
    wp = wh + 1
    m = hh * wp
    pp = (hh + 2) * wp

    xph = _phase_split(x_nhwc.astype(jnp.bfloat16))       # (N, 2, 2, pp, cin_x)

    # (Cout, Cin, 3, 3) -> (3, 3, cin_x, cout_pad); padded rows/cols are zero,
    # so carried (zero) input channels and padded output channels stay exact.
    wk = jnp.transpose(w, (2, 3, 1, 0))
    wk = jnp.pad(wk, ((0, 0), (0, 0), (0, cin_x - cin_w), (0, cout_pad - cout)))
    wk = wk.astype(jnp.bfloat16)
    bp = jnp.pad(b, (0, cout_pad - cout)).reshape(1, cout_pad).astype(jnp.float32)

    kernel = functools.partial(conv_pool_relu_kernel, hh=hh, wp=wp)

    out = pl.pallas_call(
        kernel,
        out_shape=jax.ShapeDtypeStruct((n, m, cout_pad), jnp.bfloat16),
        grid=(n,),
        in_specs=[
            pl.BlockSpec((None, 2, 2, pp, cin_x), lambda i: (i, 0, 0, 0, 0)),
            pl.BlockSpec((3, 3, cin_x, cout_pad), lambda i: (0, 0, 0, 0)),
            pl.BlockSpec((1, cout_pad), lambda i: (0, 0)),
        ],
        out_specs=pl.BlockSpec((None, m, cout_pad), lambda i: (i, 0, 0)),
        compiler_params=pltpu.CompilerParams(
            dimension_semantics=("parallel",),            # shard batch over TCs
            vmem_limit_bytes=_VMEM_LIMIT,
        ),
    )(xph, wk, bp)

    # Drop the per-row junk column; back to NHWC (fuses into next block's pad).
    return out.reshape(n, hh, wp, cout_pad)[:, :, :wh, :]


# ----------------------------------------------------------------------------
# Parameter init (deterministic, mimics PyTorch's default Conv2d init).
# ----------------------------------------------------------------------------
def init_params(key):
    dims = [(3, 32), (32, 64), (64, 128), (128, 256)]
    params = []
    for cin, cout in dims:
        key, kw_, kb_ = jax.random.split(key, 3)
        bound = 1.0 / (cin * 9) ** 0.5
        w = jax.random.uniform(kw_, (cout, cin, 3, 3), jnp.float32, -bound, bound)
        b = jax.random.uniform(kb_, (cout,), jnp.float32, -bound, bound)
        params.append((w, b))
    return params


@jax.jit
def diffusion_model_forward(batch_image_nchw, params):
    """(N, 3, H, W) f32 -> (N, 256, H/16, W/16) f32 via conv1..conv4."""
    x = jnp.transpose(batch_image_nchw, (0, 2, 3, 1))     # NCHW -> NHWC
    for w, b in params:
        cout = w.shape[0]
        cout_pad = ((cout + 127) // 128) * 128            # lane-dense channels
        x = conv_block(x, w, b, cout_pad)                 # bf16 activations
    x = x[..., : params[-1][0].shape[0]]                  # no-op for Cout=256
    return jnp.transpose(x, (0, 3, 1, 2)).astype(jnp.float32)  # NHWC -> NCHW


def _reference_forward(batch_image_nchw, params):
    """Pure-JAX f32 reference (XLA conv) for a tolerance check."""
    x = batch_image_nchw
    for w, b in params:
        x = lax.conv_general_dilated(
            x, w, window_strides=(1, 1), padding=((1, 1), (1, 1)),
            dimension_numbers=("NCHW", "OIHW", "NCHW"))
        x = x + b.reshape(1, -1, 1, 1)
        x = lax.reduce_window(x, -jnp.inf, lax.max,
                              (1, 1, 2, 2), (1, 1, 2, 2), "VALID")
        x = jnp.maximum(x, 0.0)
    return x


if __name__ == "__main__":
    key = jax.random.PRNGKey(0)
    kx, kp = jax.random.split(key)

    # Small deterministic input consistent with the module: N=2, C=3, 16x16.
    x = jax.random.normal(kx, (2, 3, 16, 16), dtype=jnp.float32)
    params = init_params(kp)

    out = jax.block_until_ready(diffusion_model_forward(x, params))

    assert out.shape == (2, 256, 1, 1), out.shape
    assert out.dtype == jnp.float32
    assert bool(jnp.all(out >= 0.0))            # ReLU output is non-negative

    # bf16 activations/weights drift slightly from the f32 reference.
    ref = jax.block_until_ready(_reference_forward(x, params))
    err = float(jnp.max(jnp.abs(out - ref)))
    assert err < 0.1, f"max |pallas - reference| = {err}"

    print("KERNEL_OK")
</pallas_src>

<mosaic_0001>
module attributes {stable_mosaic.version = 11 : i64} {
  func.func @conv_pool_relu_kernel(%arg0: i32, %arg1: memref<1x2x2x90x3xbf16, #tpu.memory_space<vmem>>, %arg2: memref<3x3x3x128xbf16, #tpu.memory_space<vmem>>, %arg3: memref<1x128xf32, #tpu.memory_space<vmem>>, %arg4: memref<1x72x128xbf16, #tpu.memory_space<vmem>>) attributes {dimension_semantics = [#tpu.dimension_semantics<parallel>], iteration_bounds = array<i64: 2>, scalar_prefetch = 0 : i64, scratch_operands = 0 : i64, tpu.core_type = #tpu.core_type<tc>, window_params = [{transform_indices = @transform_0, window_bounds = array<i64: 1, 2, 2, 90, 3>}, {pipeline_mode = #tpu.pipeline_mode<synchronous>, transform_indices = @transform_1, window_bounds = array<i64: 3, 3, 3, 128>}, {pipeline_mode = #tpu.pipeline_mode<synchronous>, transform_indices = @transform_2, window_bounds = array<i64: 1, 128>}, {transform_indices = @transform_3, window_bounds = array<i64: 1, 72, 128>}]} {
    %c0 = arith.constant 0 : index
    %c0_0 = arith.constant 0 : index
    %c0_1 = arith.constant 0 : index
    %c0_2 = arith.constant 0 : index
    %c0_3 = arith.constant 0 : index
    %0 = vector.load %arg1[%c0, %c0_0, %c0_1, %c0_2, %c0_3] : memref<1x2x2x90x3xbf16, #tpu.memory_space<vmem>>, vector<1x1x1x72x3xbf16>
    %1 = vector.shape_cast %0 : vector<1x1x1x72x3xbf16> to vector<72x3xbf16>
    %c0_4 = arith.constant 0 : index
    %c0_5 = arith.constant 0 : index
    %c0_6 = arith.constant 0 : index
    %c0_7 = arith.constant 0 : index
    %2 = vector.load %arg2[%c0_4, %c0_5, %c0_6, %c0_7] : memref<3x3x3x128xbf16, #tpu.memory_space<vmem>>, vector<1x1x3x128xbf16>
    %3 = vector.shape_cast %2 : vector<1x1x3x128xbf16> to vector<3x128xbf16>
    %cst = arith.constant dense<0.000000e+00> : vector<72x128xf32>
    %4 = tpu.matmul %1, %3, %cst {dimension_numbers = #tpu.dot_dimension_numbers<[1], [0], [0], [1], [0, 0, 1, 1], [], []>} : vector<72x3xbf16>, vector<3x128xbf16>, vector<72x128xf32> -> vector<72x128xf32>
    %c0_8 = arith.constant 0 : index
    %c0_9 = arith.constant 0 : index
    %c1 = arith.constant 1 : index
    %c0_10 = arith.constant 0 : index
    %c0_11 = arith.constant 0 : index
    %5 = vector.load %arg1[%c0_8, %c0_9, %c1, %c0_10, %c0_11] : memref<1x2x2x90x3xbf16, #tpu.memory_space<vmem>>, vector<1x1x1x72x3xbf16>
    %6 = vector.shape_cast %5 : vector<1x1x1x72x3xbf16> to vector<72x3xbf16>
    %c0_12 = arith.constant 0 : index
    %c1_13 = arith.constant 1 : index
    %c0_14 = arith.constant 0 : index
    %c0_15 = arith.constant 0 : index
    %7 = vector.load %arg2[%c0_12, %c1_13, %c0_14, %c0_15] : memref<3x3x3x128xbf16, #tpu.memory_space<vmem>>, vector<1x1x3x128xbf16>
    %8 = vector.shape_cast %7 : vector<1x1x3x128xbf16> to vector<3x128xbf16>
    %cst_16 = arith.constant dense<0.000000e+00> : vector<72x128xf32>
    %9 = tpu.matmul %6, %8, %cst_16 {dimension_numbers = #tpu.dot_dimension_numbers<[1], [0], [0], [1], [0, 0, 1, 1], [], []>} : vector<72x3xbf16>, vector<3x128xbf16>, vector<72x128xf32> -> vector<72x128xf32>
    %10 = arith.addf %4, %9 : vector<72x128xf32>
    %c0_17 = arith.constant 0 : index
    %c0_18 = arith.constant 0 : index
    %c0_19 = arith.constant 0 : index
    %c1_20 = arith.constant 1 : index
    %c0_21 = arith.constant 0 : index
    %11 = vector.load %arg1[%c0_17, %c0_18, %c0_19, %c1_20, %c0_21] : memref<1x2x2x90x3xbf16, #tpu.memory_space<vmem>>, vector<1x1x1x72x3xbf16>
    %12 = vector.shape_cast %11 : vector<1x1x1x72x3xbf16> to vector<72x3xbf16>
    %c0_22 = arith.constant 0 : index
    %c2 = arith.constant 2 : index
    %c0_23 = arith.constant 0 : index
    %c0_24 = arith.constant 0 : index
    %13 = vector.load %arg2[%c0_22, %c2, %c0_23, %c0_24] : memref<3x3x3x128xbf16, #tpu.memory_space<vmem>>, vector<1x1x3x128xbf16>
    %14 = vector.shape_cast %13 : vector<1x1x3x128xbf16> to vector<3x128xbf16>
    %cst_25 = arith.constant dense<0.000000e+00> : vector<72x128xf32>
    %15 = tpu.matmul %12, %14, %cst_25 {dimension_numbers = #tpu.dot_dimension_numbers<[1], [0], [0], [1], [0, 0, 1, 1], [], []>} : vector<72x3xbf16>, vector<3x128xbf16>, vector<72x128xf32> -> vector<72x128xf32>
    %16 = arith.addf %10, %15 : vector<72x128xf32>
    %c0_26 = arith.constant 0 : index
    %c1_27 = arith.constant 1 : index
    %c0_28 = arith.constant 0 : index
    %c0_29 = arith.constant 0 : index
    %c0_30 = arith.constant 0 : index
    %17 = vector.load %arg1[%c0_26, %c1_27, %c0_28, %c0_29, %c0_30] : memref<1x2x2x90x3xbf16, #tpu.memory_space<vmem>>, vector<1x1x1x72x3xbf16>
    %18 = vector.shape_cast %17 : vector<1x1x1x72x3xbf16> to vector<72x3xbf16>
    %c1_31 = arith.constant 1 : index
    %c0_32 = arith.constant 0 : index
    %c0_33 = arith.constant 0 : index
    %c0_34 = arith.constant 0 : index
    %19 = vector.load %arg2[%c1_31, %c0_32, %c0_33, %c0_34] : memref<3x3x3x128xbf16, #tpu.memory_space<vmem>>, vector<1x1x3x128xbf16>
    %20 = vector.shape_cast %19 : vector<1x1x3x128xbf16> to vector<3x128xbf16>
    %cst_35 = arith.constant dense<0.000000e+00> : vector<72x128xf32>
    %21 = tpu.matmul %18, %20, %cst_35 {dimension_numbers = #tpu.dot_dimension_numbers<[1], [0], [0], [1], [0, 0, 1, 1], [], []>} : vector<72x3xbf16>, vector<3x128xbf16>, vector<72x128xf32> -> vector<72x128xf32>
    %22 = arith.addf %16, %21 : vector<72x128xf32>
    %c0_36 = arith.constant 0 : index
    %c1_37 = arith.constant 1 : index
    %c1_38 = arith.constant 1 : index
    %c0_39 = arith.constant 0 : index
    %c0_40 = arith.constant 0 : index
    %23 = vector.load %arg1[%c0_36, %c1_37, %c1_38, %c0_39, %c0_40] : memref<1x2x2x90x3xbf16, #tpu.memory_space<vmem>>, vector<1x1x1x72x3xbf16>
    %24 = vector.shape_cast %23 : vector<1x1x1x72x3xbf16> to vector<72x3xbf16>
    %c1_41 = arith.constant 1 : index
    %c1_42 = arith.constant 1 : index
    %c0_43 = arith.constant 0 : index
    %c0_44 = arith.constant 0 : index
    %25 = vector.load %arg2[%c1_41, %c1_42, %c0_43, %c0_44] : memref<3x3x3x128xbf16, #tpu.memory_space<vmem>>, vector<1x1x3x128xbf16>
    %26 = vector.shape_cast %25 : vector<1x1x3x128xbf16> to vector<3x128xbf16>
    %cst_45 = arith.constant dense<0.000000e+00> : vector<72x128xf32>
    %27 = tpu.matmul %24, %26, %cst_45 {dimension_numbers = #tpu.dot_dimension_numbers<[1], [0], [0], [1], [0, 0, 1, 1], [], []>} : vector<72x3xbf16>, vector<3x128xbf16>, vector<72x128xf32> -> vector<72x128xf32>
    %28 = arith.addf %22, %27 : vector<72x128xf32>
    %c0_46 = arith.constant 0 : index
    %c1_47 = arith.constant 1 : index
    %c0_48 = arith.constant 0 : index
    %c1_49 = arith.constant 1 : index
    %c0_50 = arith.constant 0 : index
    %29 = vector.load %arg1[%c0_46, %c1_47, %c0_48, %c1_49, %c0_50] : memref<1x2x2x90x3xbf16, #tpu.memory_space<vmem>>, vector<1x1x1x72x3xbf16>
    %30 = vector.shape_cast %29 : vector<1x1x1x72x3xbf16> to vector<72x3xbf16>
    %c1_51 = arith.constant 1 : index
    %c2_52 = arith.constant 2 : index
    %c0_53 = arith.constant 0 : index
    %c0_54 = arith.constant 0 : index
    %31 = vector.load %arg2[%c1_51, %c2_52, %c0_53, %c0_54] : memref<3x3x3x128xbf16, #tpu.memory_space<vmem>>, vector<1x1x3x128xbf16>
    %32 = vector.shape_cast %31 : vector<1x1x3x128xbf16> to vector<3x128xbf16>
    %cst_55 = arith.constant dense<0.000000e+00> : vector<72x128xf32>
    %33 = tpu.matmul %30, %32, %cst_55 {dimension_numbers = #tpu.dot_dimension_numbers<[1], [0], [0], [1], [0, 0, 1, 1], [], []>} : vector<72x3xbf16>, vector<3x128xbf16>, vector<72x128xf32> -> vector<72x128xf32>
    %34 = arith.addf %28, %33 : vector<72x128xf32>
    %c0_56 = arith.constant 0 : index
    %c0_57 = arith.constant 0 : index
    %c0_58 = arith.constant 0 : index
    %c9 = arith.constant 9 : index
    %c0_59 = arith.constant 0 : index
    %35 = vector.load %arg1[%c0_56, %c0_57, %c0_58, %c9, %c0_59] : memref<1x2x2x90x3xbf16, #tpu.memory_space<vmem>>, vector<1x1x1x72x3xbf16>
    %36 = vector.shape_cast %35 : vector<1x1x1x72x3xbf16> to vector<72x3xbf16>
    %c2_60 = arith.constant 2 : index
    %c0_61 = arith.constant 0 : index
    %c0_62 = arith.constant 0 : index
    %c0_63 = arith.constant 0 : index
    %37 = vector.load %arg2[%c2_60, %c0_61, %c0_62, %c0_63] : memref<3x3x3x128xbf16, #tpu.memory_space<vmem>>, vector<1x1x3x128xbf16>
    %38 = vector.shape_cast %37 : vector<1x1x3x128xbf16> to vector<3x128xbf16>
    %cst_64 = arith.constant dense<0.000000e+00> : vector<72x128xf32>
    %39 = tpu.matmul %36, %38, %cst_64 {dimension_numbers = #tpu.dot_dimension_numbers<[1], [0], [0], [1], [0, 0, 1, 1], [], []>} : vector<72x3xbf16>, vector<3x128xbf16>, vector<72x128xf32> -> vector<72x128xf32>
    %40 = arith.addf %34, %39 : vector<72x128xf32>
    %c0_65 = arith.constant 0 : index
    %c0_66 = arith.constant 0 : index
    %c1_67 = arith.constant 1 : index
    %c9_68 = arith.constant 9 : index
    %c0_69 = arith.constant 0 : index
    %41 = vector.load %arg1[%c0_65, %c0_66, %c1_67, %c9_68, %c0_69] : memref<1x2x2x90x3xbf16, #tpu.memory_space<vmem>>, vector<1x1x1x72x3xbf16>
    %42 = vector.shape_cast %41 : vector<1x1x1x72x3xbf16> to vector<72x3xbf16>
    %c2_70 = arith.constant 2 : index
    %c1_71 = arith.constant 1 : index
    %c0_72 = arith.constant 0 : index
    %c0_73 = arith.constant 0 : index
    %43 = vector.load %arg2[%c2_70, %c1_71, %c0_72, %c0_73] : memref<3x3x3x128xbf16, #tpu.memory_space<vmem>>, vector<1x1x3x128xbf16>
    %44 = vector.shape_cast %43 : vector<1x1x3x128xbf16> to vector<3x128xbf16>
    %cst_74 = arith.constant dense<0.000000e+00> : vector<72x128xf32>
    %45 = tpu.matmul %42, %44, %cst_74 {dimension_numbers = #tpu.dot_dimension_numbers<[1], [0], [0], [1], [0, 0, 1, 1], [], []>} : vector<72x3xbf16>, vector<3x128xbf16>, vector<72x128xf32> -> vector<72x128xf32>
    %46 = arith.addf %40, %45 : vector<72x128xf32>
    %c0_75 = arith.constant 0 : index
    %c0_76 = arith.constant 0 : index
    %c0_77 = arith.constant 0 : index
    %c10 = arith.constant 10 : index
    %c0_78 = arith.constant 0 : index
    %47 = vector.load %arg1[%c0_75, %c0_76, %c0_77, %c10, %c0_78] : memref<1x2x2x90x3xbf16, #tpu.memory_space<vmem>>, vector<1x1x1x72x3xbf16>
    %48 = vector.shape_cast %47 : vector<1x1x1x72x3xbf16> to vector<72x3xbf16>
    %c2_79 = arith.constant 2 : index
    %c2_80 = arith.constant 2 : index
    %c0_81 = arith.constant 0 : index
    %c0_82 = arith.constant 0 : index
    %49 = vector.load %arg2[%c2_79, %c2_80, %c0_81, %c0_82] : memref<3x3x3x128xbf16, #tpu.memory_space<vmem>>, vector<1x1x3x128xbf16>
    %50 = vector.shape_cast %49 : vector<1x1x3x128xbf16> to vector<3x128xbf16>
    %cst_83 = arith.constant dense<0.000000e+00> : vector<72x128xf32>
    %51 = tpu.matmul %48, %50, %cst_83 {dimension_numbers = #tpu.dot_dimension_numbers<[1], [0], [0], [1], [0, 0, 1, 1], [], []>} : vector<72x3xbf16>, vector<3x128xbf16>, vector<72x128xf32> -> vector<72x128xf32>
    %52 = arith.addf %46, %51 : vector<72x128xf32>
    %c0_84 = arith.constant 0 : index
    %c0_85 = arith.constant 0 : index
    %c1_86 = arith.constant 1 : index
    %c0_87 = arith.constant 0 : index
    %c0_88 = arith.constant 0 : index
    %53 = vector.load %arg1[%c0_84, %c0_85, %c1_86, %c0_87, %c0_88] : memref<1x2x2x90x3xbf16, #tpu.memory_space<vmem>>, vector<1x1x1x72x3xbf16>
    %54 = vector.shape_cast %53 : vector<1x1x1x72x3xbf16> to vector<72x3xbf16>
    %c0_89 = arith.constant 0 : index
    %c0_90 = arith.constant 0 : index
    %c0_91 = arith.constant 0 : index
    %c0_92 = arith.constant 0 : index
    %55 = vector.load %arg2[%c0_89, %c0_90, %c0_91, %c0_92] : memref<3x3x3x128xbf16, #tpu.memory_space<vmem>>, vector<1x1x3x128xbf16>
    %56 = vector.shape_cast %55 : vector<1x1x3x128xbf16> to vector<3x128xbf16>
    %cst_93 = arith.constant dense<0.000000e+00> : vector<72x128xf32>
    %57 = tpu.matmul %54, %56, %cst_93 {dimension_numbers = #tpu.dot_dimension_numbers<[1], [0], [0], [1], [0, 0, 1, 1], [], []>} : vector<72x3xbf16>, vector<3x128xbf16>, vector<72x128xf32> -> vector<72x128xf32>
    %c0_94 = arith.constant 0 : index
    %c0_95 = arith.constant 0 : index
    %c0_96 = arith.constant 0 : index
    %c1_97 = arith.constant 1 : index
    %c0_98 = arith.constant 0 : index
    %58 = vector.load %arg1[%c0_94, %c0_95, %c0_96, %c1_97, %c0_98] : memref<1x2x2x90x3xbf16, #tpu.memory_space<vmem>>, vector<1x1x1x72x3xbf16>
    %59 = vector.shape_cast %58 : vector<1x1x1x72x3xbf16> to vector<72x3xbf16>
    %c0_99 = arith.constant 0 : index
    %c1_100 = arith.constant 1 : index
    %c0_101 = arith.constant 0 : index
    %c0_102 = arith.constant 0 : index
    %60 = vector.load %arg2[%c0_99, %c1_100, %c0_101, %c0_102] : memref<3x3x3x128xbf16, #tpu.memory_space<vmem>>, vector<1x1x3x128xbf16>
    %61 = vector.shape_cast %60 : vector<1x1x3x128xbf16> to vector<3x128xbf16>
    %cst_103 = arith.constant dense<0.000000e+00> : vector<72x128xf32>
    %62 = tpu.matmul %59, %61, %cst_103 {dimension_numbers = #tpu.dot_dimension_numbers<[1], [0], [0], [1], [0, 0, 1, 1], [], []>} : vector<72x3xbf16>, vector<3x128xbf16>, vector<72x128xf32> -> vector<72x128xf32>
    %63 = arith.addf %57, %62 : vector<72x128xf32>
    %c0_104 = arith.constant 0 : index
    %c0_105 = arith.constant 0 : index
    %c1_106 = arith.constant 1 : index
    %c1_107 = arith.constant 1 : index
    %c0_108 = arith.constant 0 : index
    %64 = vector.load %arg1[%c0_104, %c0_105, %c1_106, %c1_107, %c0_108] : memref<1x2x2x90x3xbf16, #tpu.memory_space<vmem>>, vector<1x1x1x72x3xbf16>
    %65 = vector.shape_cast %64 : vector<1x1x1x72x3xbf16> to vector<72x3xbf16>
    %c0_109 = arith.constant 0 : index
    %c2_110 = arith.constant 2 : index
    %c0_111 = arith.constant 0 : index
    %c0_112 = arith.constant 0 : index
    %66 = vector.load %arg2[%c0_109, %c2_110, %c0_111, %c0_112] : memref<3x3x3x128xbf16, #tpu.memory_space<vmem>>, vector<1x1x3x128xbf16>
    %67 = vector.shape_cast %66 : vector<1x1x3x128xbf16> to vector<3x128xbf16>
    %cst_113 = arith.constant dense<0.000000e+00> : vector<72x128xf32>
    %68 = tpu.matmul %65, %67, %cst_113 {dimension_numbers = #tpu.dot_dimension_numbers<[1], [0], [0], [1], [0, 0, 1, 1], [], []>} : vector<72x3xbf16>, vector<3x128xbf16>, vector<72x128xf32> -> vector<72x128xf32>
    %69 = arith.addf %63, %68 : vector<72x128xf32>
    %c0_114 = arith.constant 0 : index
    %c1_115 = arith.constant 1 : index
    %c1_116 = arith.constant 1 : index
    %c0_117 = arith.constant 0 : index
    %c0_118 = arith.constant 0 : index
    %70 = vector.load %arg1[%c0_114, %c1_115, %c1_116, %c0_117, %c0_118] : memref<1x2x2x90x3xbf16, #tpu.memory_space<vmem>>, vector<1x1x1x72x3xbf16>
    %71 = vector.shape_cast %70 : vector<1x1x1x72x3xbf16> to vector<72x3xbf16>
    %c1_119 = arith.constant 1 : index
    %c0_120 = arith.constant 0 : index
    %c0_121 = arith.constant 0 : index
    %c0_122 = arith.constant 0 : index
    %72 = vector.load %arg2[%c1_119, %c0_120, %c0_121, %c0_122] : memref<3x3x3x128xbf16, #tpu.memory_space<vmem>>, vector<1x1x3x128xbf16>
    %73 = vector.shape_cast %72 : vector<1x1x3x128xbf16> to vector<3x128xbf16>
    %cst_123 = arith.constant dense<0.000000e+00> : vector<72x128xf32>
    %74 = tpu.matmul %71, %73, %cst_123 {dimension_numbers = #tpu.dot_dimension_numbers<[1], [0], [0], [1], [0, 0, 1, 1], [], []>} : vector<72x3xbf16>, vector<3x128xbf16>, vector<72x128xf32> -> vector<72x128xf32>
    %75 = arith.addf %69, %74 : vector<72x128xf32>
    %c0_124 = arith.constant 0 : index
    %c1_125 = arith.constant 1 : index
    %c0_126 = arith.constant 0 : index
    %c1_127 = arith.constant 1 : index
    %c0_128 = arith.constant 0 : index
    %76 = vector.load %arg1[%c0_124, %c1_125, %c0_126, %c1_127, %c0_128] : memref<1x2x2x90x3xbf16, #tpu.memory_space<vmem>>, vector<1x1x1x72x3xbf16>
    %77 = vector.shape_cast %76 : vector<1x1x1x72x3xbf16> to vector<72x3xbf16>
    %c1_129 = arith.constant 1 : index
    %c1_130 = arith.constant 1 : index
    %c0_131 = arith.constant 0 : index
    %c0_132 = arith.constant 0 : index
    %78 = vector.load %arg2[%c1_129, %c1_130, %c0_131, %c0_132] : memref<3x3x3x128xbf16, #tpu.memory_space<vmem>>, vector<1x1x3x128xbf16>
    %79 = vector.shape_cast %78 : vector<1x1x3x128xbf16> to vector<3x128xbf16>
    %cst_133 = arith.constant dense<0.000000e+00> : vector<72x128xf32>
    %80 = tpu.matmul %77, %79, %cst_133 {dimension_numbers = #tpu.dot_dimension_numbers<[1], [0], [0], [1], [0, 0, 1, 1], [], []>} : vector<72x3xbf16>, vector<3x128xbf16>, vector<72x128xf32> -> vector<72x128xf32>
    %81 = arith.addf %75, %80 : vector<72x128xf32>
    %c0_134 = arith.constant 0 : index
    %c1_135 = arith.constant 1 : index
    %c1_136 = arith.constant 1 : index
    %c1_137 = arith.constant 1 : index
    %c0_138 = arith.constant 0 : index
    %82 = vector.load %arg1[%c0_134, %c1_135, %c1_136, %c1_137, %c0_138] : memref<1x2x2x90x3xbf16, #tpu.memory_space<vmem>>, vector<1x1x1x72x3xbf16>
    %83 = vector.shape_cast %82 : vector<1x1x1x72x3xbf16> to vector<72x3xbf16>
    %c1_139 = arith.constant 1 : index
    %c2_140 = arith.constant 2 : index
    %c0_141 = arith.constant 0 : index
    %c0_142 = arith.constant 0 : index
    %84 = vector.load %arg2[%c1_139, %c2_140, %c0_141, %c0_142] : memref<3x3x3x128xbf16, #tpu.memory_space<vmem>>, vector<1x1x3x128xbf16>
    %85 = vector.shape_cast %84 : vector<1x1x3x128xbf16> to vector<3x128xbf16>
    %cst_143 = arith.constant dense<0.000000e+00> : vector<72x128xf32>
    %86 = tpu.matmul %83, %85, %cst_143 {dimension_numbers = #tpu.dot_dimension_numbers<[1], [0], [0], [1], [0, 0, 1, 1], [], []>} : vector<72x3xbf16>, vector<3x128xbf16>, vector<72x128xf32> -> vector<72x128xf32>
    %87 = arith.addf %81, %86 : vector<72x128xf32>
    %c0_144 = arith.constant 0 : index
    %c0_145 = arith.constant 0 : index
    %c1_146 = arith.constant 1 : index
    %c9_147 = arith.constant 9 : index
    %c0_148 = arith.constant 0 : index
    %88 = vector.load %arg1[%c0_144, %c0_145, %c1_146, %c9_147, %c0_148] : memref<1x2x2x90x3xbf16, #tpu.memory_space<vmem>>, vector<1x1x1x72x3xbf16>
    %89 = vector.shape_cast %88 : vector<1x1x1x72x3xbf16> to vector<72x3xbf16>
    %c2_149 = arith.constant 2 : index
    %c0_150 = arith.constant 0 : index
    %c0_151 = arith.constant 0 : index
    %c0_152 = arith.constant 0 : index
    %90 = vector.load %arg2[%c2_149, %c0_150, %c0_151, %c0_152] : memref<3x3x3x128xbf16, #tpu.memory_space<vmem>>, vector<1x1x3x128xbf16>
    %91 = vector.shape_cast %90 : vector<1x1x3x128xbf16> to vector<3x128xbf16>
    %cst_153 = arith.constant dense<0.000000e+00> : vector<72x128xf32>
    %92 = tpu.matmul %89, %91, %cst_153 {dimension_numbers = #tpu.dot_dimension_numbers<[1], [0], [0], [1], [0, 0, 1, 1], [], []>} : vector<72x3xbf16>, vector<3x128xbf16>, vector<72x128xf32> -> vector<72x128xf32>
    %93 = arith.addf %87, %92 : vector<72x128xf32>
    %c0_154 = arith.constant 0 : index
    %c0_155 = arith.constant 0 : index
    %c0_156 = arith.constant 0 : index
    %c10_157 = arith.constant 10 : index
    %c0_158 = arith.constant 0 : index
    %94 = vector.load %arg1[%c0_154, %c0_155, %c0_156, %c10_157, %c0_158] : memref<1x2x2x90x3xbf16, #tpu.memory_space<vmem>>, vector<1x1x1x72x3xbf16>
    %95 = vector.shape_cast %94 : vector<1x1x1x72x3xbf16> to vector<72x3xbf16>
    %c2_159 = arith.constant 2 : index
    %c1_160 = arith.constant 1 : index
    %c0_161 = arith.constant 0 : index
    %c0_162 = arith.constant 0 : index
    %96 = vector.load %arg2[%c2_159, %c1_160, %c0_161, %c0_162] : memref<3x3x3x128xbf16, #tpu.memory_space<vmem>>, vector<1x1x3x128xbf16>
    %97 = vector.shape_cast %96 : vector<1x1x3x128xbf16> to vector<3x128xbf16>
    %cst_163 = arith.constant dense<0.000000e+00> : vector<72x128xf32>
    %98 = tpu.matmul %95, %97, %cst_163 {dimension_numbers = #tpu.dot_dimension_numbers<[1], [0], [0], [1], [0, 0, 1, 1], [], []>} : vector<72x3xbf16>, vector<3x128xbf16>, vector<72x128xf32> -> vector<72x128xf32>
    %99 = arith.addf %93, %98 : vector<72x128xf32>
    %c0_164 = arith.constant 0 : index
    %c0_165 = arith.constant 0 : index
    %c1_166 = arith.constant 1 : index
    %c10_167 = arith.constant 10 : index
    %c0_168 = arith.constant 0 : index
    %100 = vector.load %arg1[%c0_164, %c0_165, %c1_166, %c10_167, %c0_168] : memref<1x2x2x90x3xbf16, #tpu.memory_space<vmem>>, vector<1x1x1x72x3xbf16>
    %101 = vector.shape_cast %100 : vector<1x1x1x72x3xbf16> to vector<72x3xbf16>
    %c2_169 = arith.constant 2 : index
    %c2_170 = arith.constant 2 : index
    %c0_171 = arith.constant 0 : index
    %c0_172 = arith.constant 0 : index
    %102 = vector.load %arg2[%c2_169, %c2_170, %c0_171, %c0_172] : memref<3x3x3x128xbf16, #tpu.memory_space<vmem>>, vector<1x1x3x128xbf16>
    %103 = vector.shape_cast %102 : vector<1x1x3x128xbf16> to vector<3x128xbf16>
    %cst_173 = arith.constant dense<0.000000e+00> : vector<72x128xf32>
    %104 = tpu.matmul %101, %103, %cst_173 {dimension_numbers = #tpu.dot_dimension_numbers<[1], [0], [0], [1], [0, 0, 1, 1], [], []>} : vector<72x3xbf16>, vector<3x128xbf16>, vector<72x128xf32> -> vector<72x128xf32>
    %105 = arith.addf %99, %104 : vector<72x128xf32>
    %106 = arith.maximumf %52, %105 : vector<72x128xf32>
    %c0_174 = arith.constant 0 : index
    %c1_175 = arith.constant 1 : index
    %c0_176 = arith.constant 0 : index
    %c0_177 = arith.constant 0 : index
    %c0_178 = arith.constant 0 : index
    %107 = vector.load %arg1[%c0_174, %c1_175, %c0_176, %c0_177, %c0_178] : memref<1x2x2x90x3xbf16, #tpu.memory_space<vmem>>, vector<1x1x1x72x3xbf16>
    %108 = vector.shape_cast %107 : vector<1x1x1x72x3xbf16> to vector<72x3xbf16>
    %c0_179 = arith.constant 0 : index
    %c0_180 = arith.constant 0 : index
    %c0_181 = arith.constant 0 : index
    %c0_182 = arith.constant 0 : index
    %109 = vector.load %arg2[%c0_179, %c0_180, %c0_181, %c0_182] : memref<3x3x3x128xbf16, #tpu.memory_space<vmem>>, vector<1x1x3x128xbf16>
    %110 = vector.shape_cast %109 : vector<1x1x3x128xbf16> to vector<3x128xbf16>
    %cst_183 = arith.constant dense<0.000000e+00> : vector<72x128xf32>
    %111 = tpu.matmul %108, %110, %cst_183 {dimension_numbers = #tpu.dot_dimension_numbers<[1], [0], [0], [1], [0, 0, 1, 1], [], []>} : vector<72x3xbf16>, vector<3x128xbf16>, vector<72x128xf32> -> vector<72x128xf32>
    %c0_184 = arith.constant 0 : index
    %c1_185 = arith.constant 1 : index
    %c1_186 = arith.constant 1 : index
    %c0_187 = arith.constant 0 : index
    %c0_188 = arith.constant 0 : index
    %112 = vector.load %arg1[%c0_184, %c1_185, %c1_186, %c0_187, %c0_188] : memref<1x2x2x90x3xbf16, #tpu.memory_space<vmem>>, vector<1x1x1x72x3xbf16>
    %113 = vector.shape_cast %112 : vector<1x1x1x72x3xbf16> to vector<72x3xbf16>
    %c0_189 = arith.constant 0 : index
    %c1_190 = arith.constant 1 : index
    %c0_191 = arith.constant 0 : index
    %c0_192 = arith.constant 0 : index
    %114 = vector.load %arg2[%c0_189, %c1_190, %c0_191, %c0_192] : memref<3x3x3x128xbf16, #tpu.memory_space<vmem>>, vector<1x1x3x128xbf16>
    %115 = vector.shape_cast %114 : vector<1x1x3x128xbf16> to vector<3x128xbf16>
    %cst_193 = arith.constant dense<0.000000e+00> : vector<72x128xf32>
    %116 = tpu.matmul %113, %115, %cst_193 {dimension_numbers = #tpu.dot_dimension_numbers<[1], [0], [0], [1], [0, 0, 1, 1], [], []>} : vector<72x3xbf16>, vector<3x128xbf16>, vector<72x128xf32> -> vector<72x128xf32>
    %117 = arith.addf %111, %116 : vector<72x128xf32>
    %c0_194 = arith.constant 0 : index
    %c1_195 = arith.constant 1 : index
    %c0_196 = arith.constant 0 : index
    %c1_197 = arith.constant 1 : index
    %c0_198 = arith.constant 0 : index
    %118 = vector.load %arg1[%c0_194, %c1_195, %c0_196, %c1_197, %c0_198] : memref<1x2x2x90x3xbf16, #tpu.memory_space<vmem>>, vector<1x1x1x72x3xbf16>
    %119 = vector.shape_cast %118 : vector<1x1x1x72x3xbf16> to vector<72x3xbf16>
    %c0_199 = arith.constant 0 : index
    %c2_200 = arith.constant 2 : index
    %c0_201 = arith.constant 0 : index
    %c0_202 = arith.constant 0 : index
    %120 = vector.load %arg2[%c0_199, %c2_200, %c0_201, %c0_202] : memref<3x3x3x128xbf16, #tpu.memory_space<vmem>>, vector<1x1x3x128xbf16>
    %121 = vector.shape_cast %120 : vector<1x1x3x128xbf16> to vector<3x128xbf16>
    %cst_203 = arith.constant dense<0.000000e+00> : vector<72x128xf32>
    %122 = tpu.matmul %119, %121, %cst_203 {dimension_numbers = #tpu.dot_dimension_numbers<[1], [0], [0], [1], [0, 0, 1, 1], [], []>} : vector<72x3xbf16>, vector<3x128xbf16>, vector<72x128xf32> -> vector<72x128xf32>
    %123 = arith.addf %117, %122 : vector<72x128xf32>
    %c0_204 = arith.constant 0 : index
    %c0_205 = arith.constant 0 : index
    %c0_206 = arith.constant 0 : index
    %c9_207 = arith.constant 9 : index
    %c0_208 = arith.constant 0 : index
    %124 = vector.load %arg1[%c0_204, %c0_205, %c0_206, %c9_207, %c0_208] : memref<1x2x2x90x3xbf16, #tpu.memory_space<vmem>>, vector<1x1x1x72x3xbf16>
    %125 = vector.shape_cast %124 : vector<1x1x1x72x3xbf16> to vector<72x3xbf16>
    %c1_209 = arith.constant 1 : index
    %c0_210 = arith.constant 0 : index
    %c0_211 = arith.constant 0 : index
    %c0_212 = arith.constant 0 : index
    %126 = vector.load %arg2[%c1_209, %c0_210, %c0_211, %c0_212] : memref<3x3x3x128xbf16, #tpu.memory_space<vmem>>, vector<1x1x3x128xbf16>
    %127 = vector.shape_cast %126 : vector<1x1x3x128xbf16> to vector<3x128xbf16>
    %cst_213 = arith.constant dense<0.000000e+00> : vector<72x128xf32>
    %128 = tpu.matmul %125, %127, %cst_213 {dimension_numbers = #tpu.dot_dimension_numbers<[1], [0], [0], [1], [0, 0, 1, 1], [], []>} : vector<72x3xbf16>, vector<3x128xbf16>, vector<72x128xf32> -> vector<72x128xf32>
    %129 = arith.addf %123, %128 : vector<72x128xf32>
    %c0_214 = arith.constant 0 : index
    %c0_215 = arith.constant 0 : index
    %c1_216 = arith.constant 1 : index
    %c9_217 = arith.constant 9 : index
    %c0_218 = arith.constant 0 : index
    %130 = vector.load %arg1[%c0_214, %c0_215, %c1_216, %c9_217, %c0_218] : memref<1x2x2x90x3xbf16, #tpu.memory_space<vmem>>, vector<1x1x1x72x3xbf16>
    %131 = vector.shape_cast %130 : vector<1x1x1x72x3xbf16> to vector<72x3xbf16>
    %c1_219 = arith.constant 1 : index
    %c1_220 = arith.constant 1 : index
    %c0_221 = arith.constant 0 : index
    %c0_222 = arith.constant 0 : index
    %132 = vector.load %arg2[%c1_219, %c1_220, %c0_221, %c0_222] : memref<3x3x3x128xbf16, #tpu.memory_space<vmem>>, vector<1x1x3x128xbf16>
    %133 = vector.shape_cast %132 : vector<1x1x3x128xbf16> to vector<3x128xbf16>
    %cst_223 = arith.constant dense<0.000000e+00> : vector<72x128xf32>
    %134 = tpu.matmul %131, %133, %cst_223 {dimension_numbers = #tpu.dot_dimension_numbers<[1], [0], [0], [1], [0, 0, 1, 1], [], []>} : vector<72x3xbf16>, vector<3x128xbf16>, vector<72x128xf32> -> vector<72x128xf32>
    %135 = arith.addf %129, %134 : vector<72x128xf32>
    %c0_224 = arith.constant 0 : index
    %c0_225 = arith.constant 0 : index
    %c0_226 = arith.constant 0 : index
    %c10_227 = arith.constant 10 : index
    %c0_228 = arith.constant 0 : index
    %136 = vector.load %arg1[%c0_224, %c0_225, %c0_226, %c10_227, %c0_228] : memref<1x2x2x90x3xbf16, #tpu.memory_space<vmem>>, vector<1x1x1x72x3xbf16>
    %137 = vector.shape_cast %136 : vector<1x1x1x72x3xbf16> to vector<72x3xbf16>
    %c1_229 = arith.constant 1 : index
    %c2_230 = arith.constant 2 : index
    %c0_231 = arith.constant 0 : index
    %c0_232 = arith.constant 0 : index
    %138 = vector.load %arg2[%c1_229, %c2_230, %c0_231, %c0_232] : memref<3x3x3x128xbf16, #tpu.memory_space<vmem>>, vector<1x1x3x128xbf16>
    %139 = vector.shape_cast %138 : vector<1x1x3x128xbf16> to vector<3x128xbf16>
    %cst_233 = arith.constant dense<0.000000e+00> : vector<72x128xf32>
    %140 = tpu.matmul %137, %139, %cst_233 {dimension_numbers = #tpu.dot_dimension_numbers<[1], [0], [0], [1], [0, 0, 1, 1], [], []>} : vector<72x3xbf16>, vector<3x128xbf16>, vector<72x128xf32> -> vector<72x128xf32>
    %141 = arith.addf %135, %140 : vector<72x128xf32>
    %c0_234 = arith.constant 0 : index
    %c1_235 = arith.constant 1 : index
    %c0_236 = arith.constant 0 : index
    %c9_237 = arith.constant 9 : index
    %c0_238 = arith.constant 0 : index
    %142 = vector.load %arg1[%c0_234, %c1_235, %c0_236, %c9_237, %c0_238] : memref<1x2x2x90x3xbf16, #tpu.memory_space<vmem>>, vector<1x1x1x72x3xbf16>
    %143 = vector.shape_cast %142 : vector<1x1x1x72x3xbf16> to vector<72x3xbf16>
    %c2_239 = arith.constant 2 : index
    %c0_240 = arith.constant 0 : index
    %c0_241 = arith.constant 0 : index
    %c0_242 = arith.constant 0 : index
    %144 = vector.load %arg2[%c2_239, %c0_240, %c0_241, %c0_242] : memref<3x3x3x128xbf16, #tpu.memory_space<vmem>>, vector<1x1x3x128xbf16>
    %145 = vector.shape_cast %144 : vector<1x1x3x128xbf16> to vector<3x128xbf16>
    %cst_243 = arith.constant dense<0.000000e+00> : vector<72x128xf32>
    %146 = tpu.matmul %143, %145, %cst_243 {dimension_numbers = #tpu.dot_dimension_numbers<[1], [0], [0], [1], [0, 0, 1, 1], [], []>} : vector<72x3xbf16>, vector<3x128xbf16>, vector<72x128xf32> -> vector<72x128xf32>
    %147 = arith.addf %141, %146 : vector<72x128xf32>
    %c0_244 = arith.constant 0 : index
    %c1_245 = arith.constant 1 : index
    %c1_246 = arith.constant 1 : index
    %c9_247 = arith.constant 9 : index
    %c0_248 = arith.constant 0 : index
    %148 = vector.load %arg1[%c0_244, %c1_245, %c1_246, %c9_247, %c0_248] : memref<1x2x2x90x3xbf16, #tpu.memory_space<vmem>>, vector<1x1x1x72x3xbf16>
    %149 = vector.shape_cast %148 : vector<1x1x1x72x3xbf16> to vector<72x3xbf16>
    %c2_249 = arith.constant 2 : index
    %c1_250 = arith.constant 1 : index
    %c0_251 = arith.constant 0 : index
    %c0_252 = arith.constant 0 : index
    %150 = vector.load %arg2[%c2_249, %c1_250, %c0_251, %c0_252] : memref<3x3x3x128xbf16, #tpu.memory_space<vmem>>, vector<1x1x3x128xbf16>
    %151 = vector.shape_cast %150 : vector<1x1x3x128xbf16> to vector<3x128xbf16>
    %cst_253 = arith.constant dense<0.000000e+00> : vector<72x128xf32>
    %152 = tpu.matmul %149, %151, %cst_253 {dimension_numbers = #tpu.dot_dimension_numbers<[1], [0], [0], [1], [0, 0, 1, 1], [], []>} : vector<72x3xbf16>, vector<3x128xbf16>, vector<72x128xf32> -> vector<72x128xf32>
    %153 = arith.addf %147, %152 : vector<72x128xf32>
    %c0_254 = arith.constant 0 : index
    %c1_255 = arith.constant 1 : index
    %c0_256 = arith.constant 0 : index
    %c10_257 = arith.constant 10 : index
    %c0_258 = arith.constant 0 : index
    %154 = vector.load %arg1[%c0_254, %c1_255, %c0_256, %c10_257, %c0_258] : memref<1x2x2x90x3xbf16, #tpu.memory_space<vmem>>, vector<1x1x1x72x3xbf16>
    %155 = vector.shape_cast %154 : vector<1x1x1x72x3xbf16> to vector<72x3xbf16>
    %c2_259 = arith.constant 2 : index
    %c2_260 = arith.constant 2 : index
    %c0_261 = arith.constant 0 : index
    %c0_262 = arith.constant 0 : index
    %156 = vector.load %arg2[%c2_259, %c2_260, %c0_261, %c0_262] : memref<3x3x3x128xbf16, #tpu.memory_space<vmem>>, vector<1x1x3x128xbf16>
    %157 = vector.shape_cast %156 : vector<1x1x3x128xbf16> to vector<3x128xbf16>
    %cst_263 = arith.constant dense<0.000000e+00> : vector<72x128xf32>
    %158 = tpu.matmul %155, %157, %cst_263 {dimension_numbers = #tpu.dot_dimension_numbers<[1], [0], [0], [1], [0, 0, 1, 1], [], []>} : vector<72x3xbf16>, vector<3x128xbf16>, vector<72x128xf32> -> vector<72x128xf32>
    %159 = arith.addf %153, %158 : vector<72x128xf32>
    %160 = arith.maximumf %106, %159 : vector<72x128xf32>
    %c0_264 = arith.constant 0 : index
    %c1_265 = arith.constant 1 : index
    %c1_266 = arith.constant 1 : index
    %c0_267 = arith.constant 0 : index
    %c0_268 = arith.constant 0 : index
    %161 = vector.load %arg1[%c0_264, %c1_265, %c1_266, %c0_267, %c0_268] : memref<1x2x2x90x3xbf16, #tpu.memory_space<vmem>>, vector<1x1x1x72x3xbf16>
    %162 = vector.shape_cast %161 : vector<1x1x1x72x3xbf16> to vector<72x3xbf16>
    %c0_269 = arith.constant 0 : index
    %c0_270 = arith.constant 0 : index
    %c0_271 = arith.constant 0 : index
    %c0_272 = arith.constant 0 : index
    %163 = vector.load %arg2[%c0_269, %c0_270, %c0_271, %c0_272] : memref<3x3x3x128xbf16, #tpu.memory_space<vmem>>, vector<1x1x3x128xbf16>
    %164 = vector.shape_cast %163 : vector<1x1x3x128xbf16> to vector<3x128xbf16>
    %cst_273 = arith.constant dense<0.000000e+00> : vector<72x128xf32>
    %165 = tpu.matmul %162, %164, %cst_273 {dimension_numbers = #tpu.dot_dimension_numbers<[1], [0], [0], [1], [0, 0, 1, 1], [], []>} : vector<72x3xbf16>, vector<3x128xbf16>, vector<72x128xf32> -> vector<72x128xf32>
    %c0_274 = arith.constant 0 : index
    %c1_275 = arith.constant 1 : index
    %c0_276 = arith.constant 0 : index
    %c1_277 = arith.constant 1 : index
    %c0_278 = arith.constant 0 : index
    %166 = vector.load %arg1[%c0_274, %c1_275, %c0_276, %c1_277, %c0_278] : memref<1x2x2x90x3xbf16, #tpu.memory_space<vmem>>, vector<1x1x1x72x3xbf16>
    %167 = vector.shape_cast %166 : vector<1x1x1x72x3xbf16> to vector<72x3xbf16>
    %c0_279 = arith.constant 0 : index
    %c1_280 = arith.constant 1 : index
    %c0_281 = arith.constant 0 : index
    %c0_282 = arith.constant 0 : index
    %168 = vector.load %arg2[%c0_279, %c1_280, %c0_281, %c0_282] : memref<3x3x3x128xbf16, #tpu.memory_space<vmem>>, vector<1x1x3x128xbf16>
    %169 = vector.shape_cast %168 : vector<1x1x3x128xbf16> to vector<3x128xbf16>
    %cst_283 = arith.constant dense<0.000000e+00> : vector<72x128xf32>
    %170 = tpu.matmul %167, %169, %cst_283 {dimension_numbers = #tpu.dot_dimension_numbers<[1], [0], [0], [1], [0, 0, 1, 1], [], []>} : vector<72x3xbf16>, vector<3x128xbf16>, vector<72x128xf32> -> vector<72x128xf32>
    %171 = arith.addf %165, %170 : vector<72x128xf32>
    %c0_284 = arith.constant 0 : index
    %c1_285 = arith.constant 1 : index
    %c1_286 = arith.constant 1 : index
    %c1_287 = arith.constant 1 : index
    %c0_288 = arith.constant 0 : index
    %172 = vector.load %arg1[%c0_284, %c1_285, %c1_286, %c1_287, %c0_288] : memref<1x2x2x90x3xbf16, #tpu.memory_space<vmem>>, vector<1x1x1x72x3xbf16>
    %173 = vector.shape_cast %172 : vector<1x1x1x72x3xbf16> to vector<72x3xbf16>
    %c0_289 = arith.constant 0 : index
    %c2_290 = arith.constant 2 : index
    %c0_291 = arith.constant 0 : index
    %c0_292 = arith.constant 0 : index
    %174 = vector.load %arg2[%c0_289, %c2_290, %c0_291, %c0_292] : memref<3x3x3x128xbf16, #tpu.memory_space<vmem>>, vector<1x1x3x128xbf16>
    %175 = vector.shape_cast %174 : vector<1x1x3x128xbf16> to vector<3x128xbf16>
    %cst_293 = arith.constant dense<0.000000e+00> : vector<72x128xf32>
    %176 = tpu.matmul %173, %175, %cst_293 {dimension_numbers = #tpu.dot_dimension_numbers<[1], [0], [0], [1], [0, 0, 1, 1], [], []>} : vector<72x3xbf16>, vector<3x128xbf16>, vector<72x128xf32> -> vector<72x128xf32>
    %177 = arith.addf %171, %176 : vector<72x128xf32>
    %c0_294 = arith.constant 0 : index
    %c0_295 = arith.constant 0 : index
    %c1_296 = arith.constant 1 : index
    %c9_297 = arith.constant 9 : index
    %c0_298 = arith.constant 0 : index
    %178 = vector.load %arg1[%c0_294, %c0_295, %c1_296, %c9_297, %c0_298] : memref<1x2x2x90x3xbf16, #tpu.memory_space<vmem>>, vector<1x1x1x72x3xbf16>
    %179 = vector.shape_cast %178 : vector<1x1x1x72x3xbf16> to vector<72x3xbf16>
    %c1_299 = arith.constant 1 : index
    %c0_300 = arith.constant 0 : index
    %c0_301 = arith.constant 0 : index
    %c0_302 = arith.constant 0 : index
    %180 = vector.load %arg2[%c1_299, %c0_300, %c0_301, %c0_302] : memref<3x3x3x128xbf16, #tpu.memory_space<vmem>>, vector<1x1x3x128xbf16>
    %181 = vector.shape_cast %180 : vector<1x1x3x128xbf16> to vector<3x128xbf16>
    %cst_303 = arith.constant dense<0.000000e+00> : vector<72x128xf32>
    %182 = tpu.matmul %179, %181, %cst_303 {dimension_numbers = #tpu.dot_dimension_numbers<[1], [0], [0], [1], [0, 0, 1, 1], [], []>} : vector<72x3xbf16>, vector<3x128xbf16>, vector<72x128xf32> -> vector<72x128xf32>
    %183 = arith.addf %177, %182 : vector<72x128xf32>
    %c0_304 = arith.constant 0 : index
    %c0_305 = arith.constant 0 : index
    %c0_306 = arith.constant 0 : index
    %c10_307 = arith.constant 10 : index
    %c0_308 = arith.constant 0 : index
    %184 = vector.load %arg1[%c0_304, %c0_305, %c0_306, %c10_307, %c0_308] : memref<1x2x2x90x3xbf16, #tpu.memory_space<vmem>>, vector<1x1x1x72x3xbf16>
    %185 = vector.shape_cast %184 : vector<1x1x1x72x3xbf16> to vector<72x3xbf16>
    %c1_309 = arith.constant 1 : index
    %c1_310 = arith.constant 1 : index
    %c0_311 = arith.constant 0 : index
    %c0_312 = arith.constant 0 : index
    %186 = vector.load %arg2[%c1_309, %c1_310, %c0_311, %c0_312] : memref<3x3x3x128xbf16, #tpu.memory_space<vmem>>, vector<1x1x3x128xbf16>
    %187 = vector.shape_cast %186 : vector<1x1x3x128xbf16> to vector<3x128xbf16>
    %cst_313 = arith.constant dense<0.000000e+00> : vector<72x128xf32>
    %188 = tpu.matmul %185, %187, %cst_313 {dimension_numbers = #tpu.dot_dimension_numbers<[1], [0], [0], [1], [0, 0, 1, 1], [], []>} : vector<72x3xbf16>, vector<3x128xbf16>, vector<72x128xf32> -> vector<72x128xf32>
    %189 = arith.addf %183, %188 : vector<72x128xf32>
    %c0_314 = arith.constant 0 : index
    %c0_315 = arith.constant 0 : index
    %c1_316 = arith.constant 1 : index
    %c10_317 = arith.constant 10 : index
    %c0_318 = arith.constant 0 : index
    %190 = vector.load %arg1[%c0_314, %c0_315, %c1_316, %c10_317, %c0_318] : memref<1x2x2x90x3xbf16, #tpu.memory_space<vmem>>, vector<1x1x1x72x3xbf16>
    %191 = vector.shape_cast %190 : vector<1x1x1x72x3xbf16> to vector<72x3xbf16>
    %c1_319 = arith.constant 1 : index
    %c2_320 = arith.constant 2 : index
    %c0_321 = arith.constant 0 : index
    %c0_322 = arith.constant 0 : index
    %192 = vector.load %arg2[%c1_319, %c2_320, %c0_321, %c0_322] : memref<3x3x3x128xbf16, #tpu.memory_space<vmem>>, vector<1x1x3x128xbf16>
    %193 = vector.shape_cast %192 : vector<1x1x3x128xbf16> to vector<3x128xbf16>
    %cst_323 = arith.constant dense<0.000000e+00> : vector<72x128xf32>
    %194 = tpu.matmul %191, %193, %cst_323 {dimension_numbers = #tpu.dot_dimension_numbers<[1], [0], [0], [1], [0, 0, 1, 1], [], []>} : vector<72x3xbf16>, vector<3x128xbf16>, vector<72x128xf32> -> vector<72x128xf32>
    %195 = arith.addf %189, %194 : vector<72x128xf32>
    %c0_324 = arith.constant 0 : index
    %c1_325 = arith.constant 1 : index
    %c1_326 = arith.constant 1 : index
    %c9_327 = arith.constant 9 : index
    %c0_328 = arith.constant 0 : index
    %196 = vector.load %arg1[%c0_324, %c1_325, %c1_326, %c9_327, %c0_328] : memref<1x2x2x90x3xbf16, #tpu.memory_space<vmem>>, vector<1x1x1x72x3xbf16>
    %197 = vector.shape_cast %196 : vector<1x1x1x72x3xbf16> to vector<72x3xbf16>
    %c2_329 = arith.constant 2 : index
    %c0_330 = arith.constant 0 : index
    %c0_331 = arith.constant 0 : index
    %c0_332 = arith.constant 0 : index
    %198 = vector.load %arg2[%c2_329, %c0_330, %c0_331, %c0_332] : memref<3x3x3x128xbf16, #tpu.memory_space<vmem>>, vector<1x1x3x128xbf16>
    %199 = vector.shape_cast %198 : vector<1x1x3x128xbf16> to vector<3x128xbf16>
    %cst_333 = arith.constant dense<0.000000e+00> : vector<72x128xf32>
    %200 = tpu.matmul %197, %199, %cst_333 {dimension_numbers = #tpu.dot_dimension_numbers<[1], [0], [0], [1], [0, 0, 1, 1], [], []>} : vector<72x3xbf16>, vector<3x128xbf16>, vector<72x128xf32> -> vector<72x128xf32>
    %201 = arith.addf %195, %200 : vector<72x128xf32>
    %c0_334 = arith.constant 0 : index
    %c1_335 = arith.constant 1 : index
    %c0_336 = arith.constant 0 : index
    %c10_337 = arith.constant 10 : index
    %c0_338 = arith.constant 0 : index
    %202 = vector.load %arg1[%c0_334, %c1_335, %c0_336, %c10_337, %c0_338] : memref<1x2x2x90x3xbf16, #tpu.memory_space<vmem>>, vector<1x1x1x72x3xbf16>
    %203 = vector.shape_cast %202 : vector<1x1x1x72x3xbf16> to vector<72x3xbf16>
    %c2_339 = arith.constant 2 : index
    %c1_340 = arith.constant 1 : index
    %c0_341 = arith.constant 0 : index
    %c0_342 = arith.constant 0 : index
    %204 = vector.load %arg2[%c2_339, %c1_340, %c0_341, %c0_342] : memref<3x3x3x128xbf16, #tpu.memory_space<vmem>>, vector<1x1x3x128xbf16>
    %205 = vector.shape_cast %204 : vector<1x1x3x128xbf16> to vector<3x128xbf16>
    %cst_343 = arith.constant dense<0.000000e+00> : vector<72x128xf32>
    %206 = tpu.matmul %203, %205, %cst_343 {dimension_numbers = #tpu.dot_dimension_numbers<[1], [0], [0], [1], [0, 0, 1, 1], [], []>} : vector<72x3xbf16>, vector<3x128xbf16>, vector<72x128xf32> -> vector<72x128xf32>
    %207 = arith.addf %201, %206 : vector<72x128xf32>
    %c0_344 = arith.constant 0 : index
    %c1_345 = arith.constant 1 : index
    %c1_346 = arith.constant 1 : index
    %c10_347 = arith.constant 10 : index
    %c0_348 = arith.constant 0 : index
    %208 = vector.load %arg1[%c0_344, %c1_345, %c1_346, %c10_347, %c0_348] : memref<1x2x2x90x3xbf16, #tpu.memory_space<vmem>>, vector<1x1x1x72x3xbf16>
    %209 = vector.shape_cast %208 : vector<1x1x1x72x3xbf16> to vector<72x3xbf16>
    %c2_349 = arith.constant 2 : index
    %c2_350 = arith.constant 2 : index
    %c0_351 = arith.constant 0 : index
    %c0_352 = arith.constant 0 : index
    %210 = vector.load %arg2[%c2_349, %c2_350, %c0_351, %c0_352] : memref<3x3x3x128xbf16, #tpu.memory_space<vmem>>, vector<1x1x3x128xbf16>
    %211 = vector.shape_cast %210 : vector<1x1x3x128xbf16> to vector<3x128xbf16>
    %cst_353 = arith.constant dense<0.000000e+00> : vector<72x128xf32>
    %212 = tpu.matmul %209, %211, %cst_353 {dimension_numbers = #tpu.dot_dimension_numbers<[1], [0], [0], [1], [0, 0, 1, 1], [], []>} : vector<72x3xbf16>, vector<3x128xbf16>, vector<72x128xf32> -> vector<72x128xf32>
    %213 = arith.addf %207, %212 : vector<72x128xf32>
    %214 = arith.maximumf %160, %213 : vector<72x128xf32>
    %c0_354 = arith.constant 0 : index
    %c0_355 = arith.constant 0 : index
    %215 = vector.load %arg3[%c0_354, %c0_355] : memref<1x128xf32, #tpu.memory_space<vmem>>, vector<1x128xf32>
    %216 = vector.broadcast %215 : vector<1x128xf32> to vector<72x128xf32>
    %217 = arith.addf %214, %216 : vector<72x128xf32>
    %cst_356 = arith.constant 0.000000e+00 : f32
    %218 = vector.broadcast %cst_356 : f32 to vector<72x128xf32>
    %219 = arith.maximumf %217, %218 : vector<72x128xf32>
    %220 = arith.truncf %219 : vector<72x128xf32> to vector<72x128xbf16>
    %c0_357 = arith.constant 0 : index
    %c0_358 = arith.constant 0 : index
    %c0_359 = arith.constant 0 : index
    %221 = vector.load %arg4[%c0_357, %c0_358, %c0_359] : memref<1x72x128xbf16, #tpu.memory_space<vmem>>, vector<1x72x128xbf16>
    %222 = vector.shape_cast %221 : vector<1x72x128xbf16> to vector<72x128xbf16>
    %223 = vector.shape_cast %220 : vector<72x128xbf16> to vector<1x72x128xbf16>
    tpu.vector_store %arg4[%c0_357, %c0_358, %c0_359], %223 {strides = array<i32>} : memref<1x72x128xbf16, #tpu.memory_space<vmem>>, vector<1x72x128xbf16>,
    return
  }
  func.func @transform_0(%arg0: i32) -> (i32, i32, i32, i32, i32) {
    %c0_i32 = arith.constant 0 : i32
    %c0_i32_0 = arith.constant 0 : i32
    %c0_i32_1 = arith.constant 0 : i32
    %c0_i32_2 = arith.constant 0 : i32
    %c0_i32_3 = arith.constant 0 : i32
    return %arg0, %c0_i32, %c0_i32_0, %c0_i32_1, %c0_i32_2 : i32, i32, i32, i32, i32
  }
  func.func @transform_1(%arg0: i32) -> (i32, i32, i32, i32) {
    %c0_i32 = arith.constant 0 : i32
    %c0_i32_0 = arith.constant 0 : i32
    %c0_i32_1 = arith.constant 0 : i32
    %c0_i32_2 = arith.constant 0 : i32
    %c0_i32_3 = arith.constant 0 : i32
    return %c0_i32, %c0_i32_0, %c0_i32_1, %c0_i32_2 : i32, i32, i32, i32
  }
  func.func @transform_2(%arg0: i32) -> (i32, i32) {
    %c0_i32 = arith.constant 0 : i32
    %c0_i32_0 = arith.constant 0 : i32
    %c0_i32_1 = arith.constant 0 : i32
    return %c0_i32, %c0_i32_0 : i32, i32
  }
  func.func @transform_3(%arg0: i32) -> (i32, i32, i32) {
    %c0_i32 = arith.constant 0 : i32
    %c0_i32_0 = arith.constant 0 : i32
    %c0_i32_1 = arith.constant 0 : i32
    return %arg0, %c0_i32, %c0_i32_0 : i32, i32, i32
  }
}

module attributes {stable_mosaic.version = 11 : i64} {
  func.func @conv_pool_relu_kernel(%arg0: i32, %arg1: memref<1x2x2x30x128xbf16, #tpu.memory_space<vmem>>, %arg2: memref<3x3x128x128xbf16, #tpu.memory_space<vmem>>, %arg3: memref<1x128xf32, #tpu.memory_space<vmem>>, %arg4: memref<1x20x128xbf16, #tpu.memory_space<vmem>>) attributes {dimension_semantics = [#tpu.dimension_semantics<parallel>], iteration_bounds = array<i64: 2>, scalar_prefetch = 0 : i64, scratch_operands = 0 : i64, tpu.core_type = #tpu.core_type<tc>, window_params = [{transform_indices = @transform_0, window_bounds = array<i64: 1, 2, 2, 30, 128>}, {pipeline_mode = #tpu.pipeline_mode<synchronous>, transform_indices = @transform_1, window_bounds = array<i64: 3, 3, 128, 128>}, {pipeline_mode = #tpu.pipeline_mode<synchronous>, transform_indices = @transform_2, window_bounds = array<i64: 1, 128>}, {transform_indices = @transform_3, window_bounds = array<i64: 1, 20, 128>}]} {
    %c0 = arith.constant 0 : index
    %c0_0 = arith.constant 0 : index
    %c0_1 = arith.constant 0 : index
    %c0_2 = arith.constant 0 : index
    %c0_3 = arith.constant 0 : index
    %0 = vector.load %arg1[%c0, %c0_0, %c0_1, %c0_2, %c0_3] : memref<1x2x2x30x128xbf16, #tpu.memory_space<vmem>>, vector<1x1x1x20x128xbf16>
    %1 = vector.shape_cast %0 : vector<1x1x1x20x128xbf16> to vector<20x128xbf16>
    %c0_4 = arith.constant 0 : index
    %c0_5 = arith.constant 0 : index
    %c0_6 = arith.constant 0 : index
    %c0_7 = arith.constant 0 : index
    %2 = vector.load %arg2[%c0_4, %c0_5, %c0_6, %c0_7] : memref<3x3x128x128xbf16, #tpu.memory_space<vmem>>, vector<1x1x128x128xbf16>
    %3 = vector.shape_cast %2 : vector<1x1x128x128xbf16> to vector<128x128xbf16>
    %cst = arith.constant dense<0.000000e+00> : vector<20x128xf32>
    %4 = tpu.matmul %1, %3, %cst {dimension_numbers = #tpu.dot_dimension_numbers<[1], [0], [0], [1], [0, 0, 1, 1], [], []>} : vector<20x128xbf16>, vector<128x128xbf16>, vector<20x128xf32> -> vector<20x128xf32>
    %c0_8 = arith.constant 0 : index
    %c0_9 = arith.constant 0 : index
    %c1 = arith.constant 1 : index
    %c0_10 = arith.constant 0 : index
    %c0_11 = arith.constant 0 : index
    %5 = vector.load %arg1[%c0_8, %c0_9, %c1, %c0_10, %c0_11] : memref<1x2x2x30x128xbf16, #tpu.memory_space<vmem>>, vector<1x1x1x20x128xbf16>
    %6 = vector.shape_cast %5 : vector<1x1x1x20x128xbf16> to vector<20x128xbf16>
    %c0_12 = arith.constant 0 : index
    %c1_13 = arith.constant 1 : index
    %c0_14 = arith.constant 0 : index
    %c0_15 = arith.constant 0 : index
    %7 = vector.load %arg2[%c0_12, %c1_13, %c0_14, %c0_15] : memref<3x3x128x128xbf16, #tpu.memory_space<vmem>>, vector<1x1x128x128xbf16>
    %8 = vector.shape_cast %7 : vector<1x1x128x128xbf16> to vector<128x128xbf16>
    %cst_16 = arith.constant dense<0.000000e+00> : vector<20x128xf32>
    %9 = tpu.matmul %6, %8, %cst_16 {dimension_numbers = #tpu.dot_dimension_numbers<[1], [0], [0], [1], [0, 0, 1, 1], [], []>} : vector<20x128xbf16>, vector<128x128xbf16>, vector<20x128xf32> -> vector<20x128xf32>
    %10 = arith.addf %4, %9 : vector<20x128xf32>
    %c0_17 = arith.constant 0 : index
    %c0_18 = arith.constant 0 : index
    %c0_19 = arith.constant 0 : index
    %c1_20 = arith.constant 1 : index
    %c0_21 = arith.constant 0 : index
    %11 = vector.load %arg1[%c0_17, %c0_18, %c0_19, %c1_20, %c0_21] : memref<1x2x2x30x128xbf16, #tpu.memory_space<vmem>>, vector<1x1x1x20x128xbf16>
    %12 = vector.shape_cast %11 : vector<1x1x1x20x128xbf16> to vector<20x128xbf16>
    %c0_22 = arith.constant 0 : index
    %c2 = arith.constant 2 : index
    %c0_23 = arith.constant 0 : index
    %c0_24 = arith.constant 0 : index
    %13 = vector.load %arg2[%c0_22, %c2, %c0_23, %c0_24] : memref<3x3x128x128xbf16, #tpu.memory_space<vmem>>, vector<1x1x128x128xbf16>
    %14 = vector.shape_cast %13 : vector<1x1x128x128xbf16> to vector<128x128xbf16>
    %cst_25 = arith.constant dense<0.000000e+00> : vector<20x128xf32>
    %15 = tpu.matmul %12, %14, %cst_25 {dimension_numbers = #tpu.dot_dimension_numbers<[1], [0], [0], [1], [0, 0, 1, 1], [], []>} : vector<20x128xbf16>, vector<128x128xbf16>, vector<20x128xf32> -> vector<20x128xf32>
    %16 = arith.addf %10, %15 : vector<20x128xf32>
    %c0_26 = arith.constant 0 : index
    %c1_27 = arith.constant 1 : index
    %c0_28 = arith.constant 0 : index
    %c0_29 = arith.constant 0 : index
    %c0_30 = arith.constant 0 : index
    %17 = vector.load %arg1[%c0_26, %c1_27, %c0_28, %c0_29, %c0_30] : memref<1x2x2x30x128xbf16, #tpu.memory_space<vmem>>, vector<1x1x1x20x128xbf16>
    %18 = vector.shape_cast %17 : vector<1x1x1x20x128xbf16> to vector<20x128xbf16>
    %c1_31 = arith.constant 1 : index
    %c0_32 = arith.constant 0 : index
    %c0_33 = arith.constant 0 : index
    %c0_34 = arith.constant 0 : index
    %19 = vector.load %arg2[%c1_31, %c0_32, %c0_33, %c0_34] : memref<3x3x128x128xbf16, #tpu.memory_space<vmem>>, vector<1x1x128x128xbf16>
    %20 = vector.shape_cast %19 : vector<1x1x128x128xbf16> to vector<128x128xbf16>
    %cst_35 = arith.constant dense<0.000000e+00> : vector<20x128xf32>
    %21 = tpu.matmul %18, %20, %cst_35 {dimension_numbers = #tpu.dot_dimension_numbers<[1], [0], [0], [1], [0, 0, 1, 1], [], []>} : vector<20x128xbf16>, vector<128x128xbf16>, vector<20x128xf32> -> vector<20x128xf32>
    %22 = arith.addf %16, %21 : vector<20x128xf32>
    %c0_36 = arith.constant 0 : index
    %c1_37 = arith.constant 1 : index
    %c1_38 = arith.constant 1 : index
    %c0_39 = arith.constant 0 : index
    %c0_40 = arith.constant 0 : index
    %23 = vector.load %arg1[%c0_36, %c1_37, %c1_38, %c0_39, %c0_40] : memref<1x2x2x30x128xbf16, #tpu.memory_space<vmem>>, vector<1x1x1x20x128xbf16>
    %24 = vector.shape_cast %23 : vector<1x1x1x20x128xbf16> to vector<20x128xbf16>
    %c1_41 = arith.constant 1 : index
    %c1_42 = arith.constant 1 : index
    %c0_43 = arith.constant 0 : index
    %c0_44 = arith.constant 0 : index
    %25 = vector.load %arg2[%c1_41, %c1_42, %c0_43, %c0_44] : memref<3x3x128x128xbf16, #tpu.memory_space<vmem>>, vector<1x1x128x128xbf16>
    %26 = vector.shape_cast %25 : vector<1x1x128x128xbf16> to vector<128x128xbf16>
    %cst_45 = arith.constant dense<0.000000e+00> : vector<20x128xf32>
    %27 = tpu.matmul %24, %26, %cst_45 {dimension_numbers = #tpu.dot_dimension_numbers<[1], [0], [0], [1], [0, 0, 1, 1], [], []>} : vector<20x128xbf16>, vector<128x128xbf16>, vector<20x128xf32> -> vector<20x128xf32>
    %28 = arith.addf %22, %27 : vector<20x128xf32>
    %c0_46 = arith.constant 0 : index
    %c1_47 = arith.constant 1 : index
    %c0_48 = arith.constant 0 : index
    %c1_49 = arith.constant 1 : index
    %c0_50 = arith.constant 0 : index
    %29 = vector.load %arg1[%c0_46, %c1_47, %c0_48, %c1_49, %c0_50] : memref<1x2x2x30x128xbf16, #tpu.memory_space<vmem>>, vector<1x1x1x20x128xbf16>
    %30 = vector.shape_cast %29 : vector<1x1x1x20x128xbf16> to vector<20x128xbf16>
    %c1_51 = arith.constant 1 : index
    %c2_52 = arith.constant 2 : index
    %c0_53 = arith.constant 0 : index
    %c0_54 = arith.constant 0 : index
    %31 = vector.load %arg2[%c1_51, %c2_52, %c0_53, %c0_54] : memref<3x3x128x128xbf16, #tpu.memory_space<vmem>>, vector<1x1x128x128xbf16>
    %32 = vector.shape_cast %31 : vector<1x1x128x128xbf16> to vector<128x128xbf16>
    %cst_55 = arith.constant dense<0.000000e+00> : vector<20x128xf32>
    %33 = tpu.matmul %30, %32, %cst_55 {dimension_numbers = #tpu.dot_dimension_numbers<[1], [0], [0], [1], [0, 0, 1, 1], [], []>} : vector<20x128xbf16>, vector<128x128xbf16>, vector<20x128xf32> -> vector<20x128xf32>
    %34 = arith.addf %28, %33 : vector<20x128xf32>
    %c0_56 = arith.constant 0 : index
    %c0_57 = arith.constant 0 : index
    %c0_58 = arith.constant 0 : index
    %c5 = arith.constant 5 : index
    %c0_59 = arith.constant 0 : index
    %35 = vector.load %arg1[%c0_56, %c0_57, %c0_58, %c5, %c0_59] : memref<1x2x2x30x128xbf16, #tpu.memory_space<vmem>>, vector<1x1x1x20x128xbf16>
    %36 = vector.shape_cast %35 : vector<1x1x1x20x128xbf16> to vector<20x128xbf16>
    %c2_60 = arith.constant 2 : index
    %c0_61 = arith.constant 0 : index
    %c0_62 = arith.constant 0 : index
    %c0_63 = arith.constant 0 : index
    %37 = vector.load %arg2[%c2_60, %c0_61, %c0_62, %c0_63] : memref<3x3x128x128xbf16, #tpu.memory_space<vmem>>, vector<1x1x128x128xbf16>
    %38 = vector.shape_cast %37 : vector<1x1x128x128xbf16> to vector<128x128xbf16>
    %cst_64 = arith.constant dense<0.000000e+00> : vector<20x128xf32>
    %39 = tpu.matmul %36, %38, %cst_64 {dimension_numbers = #tpu.dot_dimension_numbers<[1], [0], [0], [1], [0, 0, 1, 1], [], []>} : vector<20x128xbf16>, vector<128x128xbf16>, vector<20x128xf32> -> vector<20x128xf32>
    %40 = arith.addf %34, %39 : vector<20x128xf32>
    %c0_65 = arith.constant 0 : index
    %c0_66 = arith.constant 0 : index
    %c1_67 = arith.constant 1 : index
    %c5_68 = arith.constant 5 : index
    %c0_69 = arith.constant 0 : index
    %41 = vector.load %arg1[%c0_65, %c0_66, %c1_67, %c5_68, %c0_69] : memref<1x2x2x30x128xbf16, #tpu.memory_space<vmem>>, vector<1x1x1x20x128xbf16>
    %42 = vector.shape_cast %41 : vector<1x1x1x20x128xbf16> to vector<20x128xbf16>
    %c2_70 = arith.constant 2 : index
    %c1_71 = arith.constant 1 : index
    %c0_72 = arith.constant 0 : index
    %c0_73 = arith.constant 0 : index
    %43 = vector.load %arg2[%c2_70, %c1_71, %c0_72, %c0_73] : memref<3x3x128x128xbf16, #tpu.memory_space<vmem>>, vector<1x1x128x128xbf16>
    %44 = vector.shape_cast %43 : vector<1x1x128x128xbf16> to vector<128x128xbf16>
    %cst_74 = arith.constant dense<0.000000e+00> : vector<20x128xf32>
    %45 = tpu.matmul %42, %44, %cst_74 {dimension_numbers = #tpu.dot_dimension_numbers<[1], [0], [0], [1], [0, 0, 1, 1], [], []>} : vector<20x128xbf16>, vector<128x128xbf16>, vector<20x128xf32> -> vector<20x128xf32>
    %46 = arith.addf %40, %45 : vector<20x128xf32>
    %c0_75 = arith.constant 0 : index
    %c0_76 = arith.constant 0 : index
    %c0_77 = arith.constant 0 : index
    %c6 = arith.constant 6 : index
    %c0_78 = arith.constant 0 : index
    %47 = vector.load %arg1[%c0_75, %c0_76, %c0_77, %c6, %c0_78] : memref<1x2x2x30x128xbf16, #tpu.memory_space<vmem>>, vector<1x1x1x20x128xbf16>
    %48 = vector.shape_cast %47 : vector<1x1x1x20x128xbf16> to vector<20x128xbf16>
    %c2_79 = arith.constant 2 : index
    %c2_80 = arith.constant 2 : index
    %c0_81 = arith.constant 0 : index
    %c0_82 = arith.constant 0 : index
    %49 = vector.load %arg2[%c2_79, %c2_80, %c0_81, %c0_82] : memref<3x3x128x128xbf16, #tpu.memory_space<vmem>>, vector<1x1x128x128xbf16>
    %50 = vector.shape_cast %49 : vector<1x1x128x128xbf16> to vector<128x128xbf16>
    %cst_83 = arith.constant dense<0.000000e+00> : vector<20x128xf32>
    %51 = tpu.matmul %48, %50, %cst_83 {dimension_numbers = #tpu.dot_dimension_numbers<[1], [0], [0], [1], [0, 0, 1, 1], [], []>} : vector<20x128xbf16>, vector<128x128xbf16>, vector<20x128xf32> -> vector<20x128xf32>
    %52 = arith.addf %46, %51 : vector<20x128xf32>
    %c0_84 = arith.constant 0 : index
    %c0_85 = arith.constant 0 : index
    %c1_86 = arith.constant 1 : index
    %c0_87 = arith.constant 0 : index
    %c0_88 = arith.constant 0 : index
    %53 = vector.load %arg1[%c0_84, %c0_85, %c1_86, %c0_87, %c0_88] : memref<1x2x2x30x128xbf16, #tpu.memory_space<vmem>>, vector<1x1x1x20x128xbf16>
    %54 = vector.shape_cast %53 : vector<1x1x1x20x128xbf16> to vector<20x128xbf16>
    %c0_89 = arith.constant 0 : index
    %c0_90 = arith.constant 0 : index
    %c0_91 = arith.constant 0 : index
    %c0_92 = arith.constant 0 : index
    %55 = vector.load %arg2[%c0_89, %c0_90, %c0_91, %c0_92] : memref<3x3x128x128xbf16, #tpu.memory_space<vmem>>, vector<1x1x128x128xbf16>
    %56 = vector.shape_cast %55 : vector<1x1x128x128xbf16> to vector<128x128xbf16>
    %cst_93 = arith.constant dense<0.000000e+00> : vector<20x128xf32>
    %57 = tpu.matmul %54, %56, %cst_93 {dimension_numbers = #tpu.dot_dimension_numbers<[1], [0], [0], [1], [0, 0, 1, 1], [], []>} : vector<20x128xbf16>, vector<128x128xbf16>, vector<20x128xf32> -> vector<20x128xf32>
    %c0_94 = arith.constant 0 : index
    %c0_95 = arith.constant 0 : index
    %c0_96 = arith.constant 0 : index
    %c1_97 = arith.constant 1 : index
    %c0_98 = arith.constant 0 : index
    %58 = vector.load %arg1[%c0_94, %c0_95, %c0_96, %c1_97, %c0_98] : memref<1x2x2x30x128xbf16, #tpu.memory_space<vmem>>, vector<1x1x1x20x128xbf16>
    %59 = vector.shape_cast %58 : vector<1x1x1x20x128xbf16> to vector<20x128xbf16>
    %c0_99 = arith.constant 0 : index
    %c1_100 = arith.constant 1 : index
    %c0_101 = arith.constant 0 : index
    %c0_102 = arith.constant 0 : index
    %60 = vector.load %arg2[%c0_99, %c1_100, %c0_101, %c0_102] : memref<3x3x128x128xbf16, #tpu.memory_space<vmem>>, vector<1x1x128x128xbf16>
    %61 = vector.shape_cast %60 : vector<1x1x128x128xbf16> to vector<128x128xbf16>
    %cst_103 = arith.constant dense<0.000000e+00> : vector<20x128xf32>
    %62 = tpu.matmul %59, %61, %cst_103 {dimension_numbers = #tpu.dot_dimension_numbers<[1], [0], [0], [1], [0, 0, 1, 1], [], []>} : vector<20x128xbf16>, vector<128x128xbf16>, vector<20x128xf32> -> vector<20x128xf32>
    %63 = arith.addf %57, %62 : vector<20x128xf32>
    %c0_104 = arith.constant 0 : index
    %c0_105 = arith.constant 0 : index
    %c1_106 = arith.constant 1 : index
    %c1_107 = arith.constant 1 : index
    %c0_108 = arith.constant 0 : index
    %64 = vector.load %arg1[%c0_104, %c0_105, %c1_106, %c1_107, %c0_108] : memref<1x2x2x30x128xbf16, #tpu.memory_space<vmem>>, vector<1x1x1x20x128xbf16>
    %65 = vector.shape_cast %64 : vector<1x1x1x20x128xbf16> to vector<20x128xbf16>
    %c0_109 = arith.constant 0 : index
    %c2_110 = arith.constant 2 : index
    %c0_111 = arith.constant 0 : index
    %c0_112 = arith.constant 0 : index
    %66 = vector.load %arg2[%c0_109, %c2_110, %c0_111, %c0_112] : memref<3x3x128x128xbf16, #tpu.memory_space<vmem>>, vector<1x1x128x128xbf16>
    %67 = vector.shape_cast %66 : vector<1x1x128x128xbf16> to vector<128x128xbf16>
    %cst_113 = arith.constant dense<0.000000e+00> : vector<20x128xf32>
    %68 = tpu.matmul %65, %67, %cst_113 {dimension_numbers = #tpu.dot_dimension_numbers<[1], [0], [0], [1], [0, 0, 1, 1], [], []>} : vector<20x128xbf16>, vector<128x128xbf16>, vector<20x128xf32> -> vector<20x128xf32>
    %69 = arith.addf %63, %68 : vector<20x128xf32>
    %c0_114 = arith.constant 0 : index
    %c1_115 = arith.constant 1 : index
    %c1_116 = arith.constant 1 : index
    %c0_117 = arith.constant 0 : index
    %c0_118 = arith.constant 0 : index
    %70 = vector.load %arg1[%c0_114, %c1_115, %c1_116, %c0_117, %c0_118] : memref<1x2x2x30x128xbf16, #tpu.memory_space<vmem>>, vector<1x1x1x20x128xbf16>
    %71 = vector.shape_cast %70 : vector<1x1x1x20x128xbf16> to vector<20x128xbf16>
    %c1_119 = arith.constant 1 : index
    %c0_120 = arith.constant 0 : index
    %c0_121 = arith.constant 0 : index
    %c0_122 = arith.constant 0 : index
    %72 = vector.load %arg2[%c1_119, %c0_120, %c0_121, %c0_122] : memref<3x3x128x128xbf16, #tpu.memory_space<vmem>>, vector<1x1x128x128xbf16>
    %73 = vector.shape_cast %72 : vector<1x1x128x128xbf16> to vector<128x128xbf16>
    %cst_123 = arith.constant dense<0.000000e+00> : vector<20x128xf32>
    %74 = tpu.matmul %71, %73, %cst_123 {dimension_numbers = #tpu.dot_dimension_numbers<[1], [0], [0], [1], [0, 0, 1, 1], [], []>} : vector<20x128xbf16>, vector<128x128xbf16>, vector<20x128xf32> -> vector<20x128xf32>
    %75 = arith.addf %69, %74 : vector<20x128xf32>
    %c0_124 = arith.constant 0 : index
    %c1_125 = arith.constant 1 : index
    %c0_126 = arith.constant 0 : index
    %c1_127 = arith.constant 1 : index
    %c0_128 = arith.constant 0 : index
    %76 = vector.load %arg1[%c0_124, %c1_125, %c0_126, %c1_127, %c0_128] : memref<1x2x2x30x128xbf16, #tpu.memory_space<vmem>>, vector<1x1x1x20x128xbf16>
    %77 = vector.shape_cast %76 : vector<1x1x1x20x128xbf16> to vector<20x128xbf16>
    %c1_129 = arith.constant 1 : index
    %c1_130 = arith.constant 1 : index
    %c0_131 = arith.constant 0 : index
    %c0_132 = arith.constant 0 : index
    %78 = vector.load %arg2[%c1_129, %c1_130, %c0_131, %c0_132] : memref<3x3x128x128xbf16, #tpu.memory_space<vmem>>, vector<1x1x128x128xbf16>
    %79 = vector.shape_cast %78 : vector<1x1x128x128xbf16> to vector<128x128xbf16>
    %cst_133 = arith.constant dense<0.000000e+00> : vector<20x128xf32>
    %80 = tpu.matmul %77, %79, %cst_133 {dimension_numbers = #tpu.dot_dimension_numbers<[1], [0], [0], [1], [0, 0, 1, 1], [], []>} : vector<20x128xbf16>, vector<128x128xbf16>, vector<20x128xf32> -> vector<20x128xf32>
    %81 = arith.addf %75, %80 : vector<20x128xf32>
    %c0_134 = arith.constant 0 : index
    %c1_135 = arith.constant 1 : index
    %c1_136 = arith.constant 1 : index
    %c1_137 = arith.constant 1 : index
    %c0_138 = arith.constant 0 : index
    %82 = vector.load %arg1[%c0_134, %c1_135, %c1_136, %c1_137, %c0_138] : memref<1x2x2x30x128xbf16, #tpu.memory_space<vmem>>, vector<1x1x1x20x128xbf16>
    %83 = vector.shape_cast %82 : vector<1x1x1x20x128xbf16> to vector<20x128xbf16>
    %c1_139 = arith.constant 1 : index
    %c2_140 = arith.constant 2 : index
    %c0_141 = arith.constant 0 : index
    %c0_142 = arith.constant 0 : index
    %84 = vector.load %arg2[%c1_139, %c2_140, %c0_141, %c0_142] : memref<3x3x128x128xbf16, #tpu.memory_space<vmem>>, vector<1x1x128x128xbf16>
    %85 = vector.shape_cast %84 : vector<1x1x128x128xbf16> to vector<128x128xbf16>
    %cst_143 = arith.constant dense<0.000000e+00> : vector<20x128xf32>
    %86 = tpu.matmul %83, %85, %cst_143 {dimension_numbers = #tpu.dot_dimension_numbers<[1], [0], [0], [1], [0, 0, 1, 1], [], []>} : vector<20x128xbf16>, vector<128x128xbf16>, vector<20x128xf32> -> vector<20x128xf32>
    %87 = arith.addf %81, %86 : vector<20x128xf32>
    %c0_144 = arith.constant 0 : index
    %c0_145 = arith.constant 0 : index
    %c1_146 = arith.constant 1 : index
    %c5_147 = arith.constant 5 : index
    %c0_148 = arith.constant 0 : index
    %88 = vector.load %arg1[%c0_144, %c0_145, %c1_146, %c5_147, %c0_148] : memref<1x2x2x30x128xbf16, #tpu.memory_space<vmem>>, vector<1x1x1x20x128xbf16>
    %89 = vector.shape_cast %88 : vector<1x1x1x20x128xbf16> to vector<20x128xbf16>
    %c2_149 = arith.constant 2 : index
    %c0_150 = arith.constant 0 : index
    %c0_151 = arith.constant 0 : index
    %c0_152 = arith.constant 0 : index
    %90 = vector.load %arg2[%c2_149, %c0_150, %c0_151, %c0_152] : memref<3x3x128x128xbf16, #tpu.memory_space<vmem>>, vector<1x1x128x128xbf16>
    %91 = vector.shape_cast %90 : vector<1x1x128x128xbf16> to vector<128x128xbf16>
    %cst_153 = arith.constant dense<0.000000e+00> : vector<20x128xf32>
    %92 = tpu.matmul %89, %91, %cst_153 {dimension_numbers = #tpu.dot_dimension_numbers<[1], [0], [0], [1], [0, 0, 1, 1], [], []>} : vector<20x128xbf16>, vector<128x128xbf16>, vector<20x128xf32> -> vector<20x128xf32>
    %93 = arith.addf %87, %92 : vector<20x128xf32>
    %c0_154 = arith.constant 0 : index
    %c0_155 = arith.constant 0 : index
    %c0_156 = arith.constant 0 : index
    %c6_157 = arith.constant 6 : index
    %c0_158 = arith.constant 0 : index
    %94 = vector.load %arg1[%c0_154, %c0_155, %c0_156, %c6_157, %c0_158] : memref<1x2x2x30x128xbf16, #tpu.memory_space<vmem>>, vector<1x1x1x20x128xbf16>
    %95 = vector.shape_cast %94 : vector<1x1x1x20x128xbf16> to vector<20x128xbf16>
    %c2_159 = arith.constant 2 : index
    %c1_160 = arith.constant 1 : index
    %c0_161 = arith.constant 0 : index
    %c0_162 = arith.constant 0 : index
    %96 = vector.load %arg2[%c2_159, %c1_160, %c0_161, %c0_162] : memref<3x3x128x128xbf16, #tpu.memory_space<vmem>>, vector<1x1x128x128xbf16>
    %97 = vector.shape_cast %96 : vector<1x1x128x128xbf16> to vector<128x128xbf16>
    %cst_163 = arith.constant dense<0.000000e+00> : vector<20x128xf32>
    %98 = tpu.matmul %95, %97, %cst_163 {dimension_numbers = #tpu.dot_dimension_numbers<[1], [0], [0], [1], [0, 0, 1, 1], [], []>} : vector<20x128xbf16>, vector<128x128xbf16>, vector<20x128xf32> -> vector<20x128xf32>
    %99 = arith.addf %93, %98 : vector<20x128xf32>
    %c0_164 = arith.constant 0 : index
    %c0_165 = arith.constant 0 : index
    %c1_166 = arith.constant 1 : index
    %c6_167 = arith.constant 6 : index
    %c0_168 = arith.constant 0 : index
    %100 = vector.load %arg1[%c0_164, %c0_165, %c1_166, %c6_167, %c0_168] : memref<1x2x2x30x128xbf16, #tpu.memory_space<vmem>>, vector<1x1x1x20x128xbf16>
    %101 = vector.shape_cast %100 : vector<1x1x1x20x128xbf16> to vector<20x128xbf16>
    %c2_169 = arith.constant 2 : index
    %c2_170 = arith.constant 2 : index
    %c0_171 = arith.constant 0 : index
    %c0_172 = arith.constant 0 : index
    %102 = vector.load %arg2[%c2_169, %c2_170, %c0_171, %c0_172] : memref<3x3x128x128xbf16, #tpu.memory_space<vmem>>, vector<1x1x128x128xbf16>
    %103 = vector.shape_cast %102 : vector<1x1x128x128xbf16> to vector<128x128xbf16>
    %cst_173 = arith.constant dense<0.000000e+00> : vector<20x128xf32>
    %104 = tpu.matmul %101, %103, %cst_173 {dimension_numbers = #tpu.dot_dimension_numbers<[1], [0], [0], [1], [0, 0, 1, 1], [], []>} : vector<20x128xbf16>, vector<128x128xbf16>, vector<20x128xf32> -> vector<20x128xf32>
    %105 = arith.addf %99, %104 : vector<20x128xf32>
    %106 = arith.maximumf %52, %105 : vector<20x128xf32>
    %c0_174 = arith.constant 0 : index
    %c1_175 = arith.constant 1 : index
    %c0_176 = arith.constant 0 : index
    %c0_177 = arith.constant 0 : index
    %c0_178 = arith.constant 0 : index
    %107 = vector.load %arg1[%c0_174, %c1_175, %c0_176, %c0_177, %c0_178] : memref<1x2x2x30x128xbf16, #tpu.memory_space<vmem>>, vector<1x1x1x20x128xbf16>
    %108 = vector.shape_cast %107 : vector<1x1x1x20x128xbf16> to vector<20x128xbf16>
    %c0_179 = arith.constant 0 : index
    %c0_180 = arith.constant 0 : index
    %c0_181 = arith.constant 0 : index
    %c0_182 = arith.constant 0 : index
    %109 = vector.load %arg2[%c0_179, %c0_180, %c0_181, %c0_182] : memref<3x3x128x128xbf16, #tpu.memory_space<vmem>>, vector<1x1x128x128xbf16>
    %110 = vector.shape_cast %109 : vector<1x1x128x128xbf16> to vector<128x128xbf16>
    %cst_183 = arith.constant dense<0.000000e+00> : vector<20x128xf32>
    %111 = tpu.matmul %108, %110, %cst_183 {dimension_numbers = #tpu.dot_dimension_numbers<[1], [0], [0], [1], [0, 0, 1, 1], [], []>} : vector<20x128xbf16>, vector<128x128xbf16>, vector<20x128xf32> -> vector<20x128xf32>
    %c0_184 = arith.constant 0 : index
    %c1_185 = arith.constant 1 : index
    %c1_186 = arith.constant 1 : index
    %c0_187 = arith.constant 0 : index
    %c0_188 = arith.constant 0 : index
    %112 = vector.load %arg1[%c0_184, %c1_185, %c1_186, %c0_187, %c0_188] : memref<1x2x2x30x128xbf16, #tpu.memory_space<vmem>>, vector<1x1x1x20x128xbf16>
    %113 = vector.shape_cast %112 : vector<1x1x1x20x128xbf16> to vector<20x128xbf16>
    %c0_189 = arith.constant 0 : index
    %c1_190 = arith.constant 1 : index
    %c0_191 = arith.constant 0 : index
    %c0_192 = arith.constant 0 : index
    %114 = vector.load %arg2[%c0_189, %c1_190, %c0_191, %c0_192] : memref<3x3x128x128xbf16, #tpu.memory_space<vmem>>, vector<1x1x128x128xbf16>
    %115 = vector.shape_cast %114 : vector<1x1x128x128xbf16> to vector<128x128xbf16>
    %cst_193 = arith.constant dense<0.000000e+00> : vector<20x128xf32>
    %116 = tpu.matmul %113, %115, %cst_193 {dimension_numbers = #tpu.dot_dimension_numbers<[1], [0], [0], [1], [0, 0, 1, 1], [], []>} : vector<20x128xbf16>, vector<128x128xbf16>, vector<20x128xf32> -> vector<20x128xf32>
    %117 = arith.addf %111, %116 : vector<20x128xf32>
    %c0_194 = arith.constant 0 : index
    %c1_195 = arith.constant 1 : index
    %c0_196 = arith.constant 0 : index
    %c1_197 = arith.constant 1 : index
    %c0_198 = arith.constant 0 : index
    %118 = vector.load %arg1[%c0_194, %c1_195, %c0_196, %c1_197, %c0_198] : memref<1x2x2x30x128xbf16, #tpu.memory_space<vmem>>, vector<1x1x1x20x128xbf16>
    %119 = vector.shape_cast %118 : vector<1x1x1x20x128xbf16> to vector<20x128xbf16>
    %c0_199 = arith.constant 0 : index
    %c2_200 = arith.constant 2 : index
    %c0_201 = arith.constant 0 : index
    %c0_202 = arith.constant 0 : index
    %120 = vector.load %arg2[%c0_199, %c2_200, %c0_201, %c0_202] : memref<3x3x128x128xbf16, #tpu.memory_space<vmem>>, vector<1x1x128x128xbf16>
    %121 = vector.shape_cast %120 : vector<1x1x128x128xbf16> to vector<128x128xbf16>
    %cst_203 = arith.constant dense<0.000000e+00> : vector<20x128xf32>
    %122 = tpu.matmul %119, %121, %cst_203 {dimension_numbers = #tpu.dot_dimension_numbers<[1], [0], [0], [1], [0, 0, 1, 1], [], []>} : vector<20x128xbf16>, vector<128x128xbf16>, vector<20x128xf32> -> vector<20x128xf32>
    %123 = arith.addf %117, %122 : vector<20x128xf32>
    %c0_204 = arith.constant 0 : index
    %c0_205 = arith.constant 0 : index
    %c0_206 = arith.constant 0 : index
    %c5_207 = arith.constant 5 : index
    %c0_208 = arith.constant 0 : index
    %124 = vector.load %arg1[%c0_204, %c0_205, %c0_206, %c5_207, %c0_208] : memref<1x2x2x30x128xbf16, #tpu.memory_space<vmem>>, vector<1x1x1x20x128xbf16>
    %125 = vector.shape_cast %124 : vector<1x1x1x20x128xbf16> to vector<20x128xbf16>
    %c1_209 = arith.constant 1 : index
    %c0_210 = arith.constant 0 : index
    %c0_211 = arith.constant 0 : index
    %c0_212 = arith.constant 0 : index
    %126 = vector.load %arg2[%c1_209, %c0_210, %c0_211, %c0_212] : memref<3x3x128x128xbf16, #tpu.memory_space<vmem>>, vector<1x1x128x128xbf16>
    %127 = vector.shape_cast %126 : vector<1x1x128x128xbf16> to vector<128x128xbf16>
    %cst_213 = arith.constant dense<0.000000e+00> : vector<20x128xf32>
    %128 = tpu.matmul %125, %127, %cst_213 {dimension_numbers = #tpu.dot_dimension_numbers<[1], [0], [0], [1], [0, 0, 1, 1], [], []>} : vector<20x128xbf16>, vector<128x128xbf16>, vector<20x128xf32> -> vector<20x128xf32>
    %129 = arith.addf %123, %128 : vector<20x128xf32>
    %c0_214 = arith.constant 0 : index
    %c0_215 = arith.constant 0 : index
    %c1_216 = arith.constant 1 : index
    %c5_217 = arith.constant 5 : index
    %c0_218 = arith.constant 0 : index
    %130 = vector.load %arg1[%c0_214, %c0_215, %c1_216, %c5_217, %c0_218] : memref<1x2x2x30x128xbf16, #tpu.memory_space<vmem>>, vector<1x1x1x20x128xbf16>
    %131 = vector.shape_cast %130 : vector<1x1x1x20x128xbf16> to vector<20x128xbf16>
    %c1_219 = arith.constant 1 : index
    %c1_220 = arith.constant 1 : index
    %c0_221 = arith.constant 0 : index
    %c0_222 = arith.constant 0 : index
    %132 = vector.load %arg2[%c1_219, %c1_220, %c0_221, %c0_222] : memref<3x3x128x128xbf16, #tpu.memory_space<vmem>>, vector<1x1x128x128xbf16>
    %133 = vector.shape_cast %132 : vector<1x1x128x128xbf16> to vector<128x128xbf16>
    %cst_223 = arith.constant dense<0.000000e+00> : vector<20x128xf32>
    %134 = tpu.matmul %131, %133, %cst_223 {dimension_numbers = #tpu.dot_dimension_numbers<[1], [0], [0], [1], [0, 0, 1, 1], [], []>} : vector<20x128xbf16>, vector<128x128xbf16>, vector<20x128xf32> -> vector<20x128xf32>
    %135 = arith.addf %129, %134 : vector<20x128xf32>
    %c0_224 = arith.constant 0 : index
    %c0_225 = arith.constant 0 : index
    %c0_226 = arith.constant 0 : index
    %c6_227 = arith.constant 6 : index
    %c0_228 = arith.constant 0 : index
    %136 = vector.load %arg1[%c0_224, %c0_225, %c0_226, %c6_227, %c0_228] : memref<1x2x2x30x128xbf16, #tpu.memory_space<vmem>>, vector<1x1x1x20x128xbf16>
    %137 = vector.shape_cast %136 : vector<1x1x1x20x128xbf16> to vector<20x128xbf16>
    %c1_229 = arith.constant 1 : index
    %c2_230 = arith.constant 2 : index
    %c0_231 = arith.constant 0 : index
    %c0_232 = arith.constant 0 : index
    %138 = vector.load %arg2[%c1_229, %c2_230, %c0_231, %c0_232] : memref<3x3x128x128xbf16, #tpu.memory_space<vmem>>, vector<1x1x128x128xbf16>
    %139 = vector.shape_cast %138 : vector<1x1x128x128xbf16> to vector<128x128xbf16>
    %cst_233 = arith.constant dense<0.000000e+00> : vector<20x128xf32>
    %140 = tpu.matmul %137, %139, %cst_233 {dimension_numbers = #tpu.dot_dimension_numbers<[1], [0], [0], [1], [0, 0, 1, 1], [], []>} : vector<20x128xbf16>, vector<128x128xbf16>, vector<20x128xf32> -> vector<20x128xf32>
    %141 = arith.addf %135, %140 : vector<20x128xf32>
    %c0_234 = arith.constant 0 : index
    %c1_235 = arith.constant 1 : index
    %c0_236 = arith.constant 0 : index
    %c5_237 = arith.constant 5 : index
    %c0_238 = arith.constant 0 : index
    %142 = vector.load %arg1[%c0_234, %c1_235, %c0_236, %c5_237, %c0_238] : memref<1x2x2x30x128xbf16, #tpu.memory_space<vmem>>, vector<1x1x1x20x128xbf16>
    %143 = vector.shape_cast %142 : vector<1x1x1x20x128xbf16> to vector<20x128xbf16>
    %c2_239 = arith.constant 2 : index
    %c0_240 = arith.constant 0 : index
    %c0_241 = arith.constant 0 : index
    %c0_242 = arith.constant 0 : index
    %144 = vector.load %arg2[%c2_239, %c0_240, %c0_241, %c0_242] : memref<3x3x128x128xbf16, #tpu.memory_space<vmem>>, vector<1x1x128x128xbf16>
    %145 = vector.shape_cast %144 : vector<1x1x128x128xbf16> to vector<128x128xbf16>
    %cst_243 = arith.constant dense<0.000000e+00> : vector<20x128xf32>
    %146 = tpu.matmul %143, %145, %cst_243 {dimension_numbers = #tpu.dot_dimension_numbers<[1], [0], [0], [1], [0, 0, 1, 1], [], []>} : vector<20x128xbf16>, vector<128x128xbf16>, vector<20x128xf32> -> vector<20x128xf32>
    %147 = arith.addf %141, %146 : vector<20x128xf32>
    %c0_244 = arith.constant 0 : index
    %c1_245 = arith.constant 1 : index
    %c1_246 = arith.constant 1 : index
    %c5_247 = arith.constant 5 : index
    %c0_248 = arith.constant 0 : index
    %148 = vector.load %arg1[%c0_244, %c1_245, %c1_246, %c5_247, %c0_248] : memref<1x2x2x30x128xbf16, #tpu.memory_space<vmem>>, vector<1x1x1x20x128xbf16>
    %149 = vector.shape_cast %148 : vector<1x1x1x20x128xbf16> to vector<20x128xbf16>
    %c2_249 = arith.constant 2 : index
    %c1_250 = arith.constant 1 : index
    %c0_251 = arith.constant 0 : index
    %c0_252 = arith.constant 0 : index
    %150 = vector.load %arg2[%c2_249, %c1_250, %c0_251, %c0_252] : memref<3x3x128x128xbf16, #tpu.memory_space<vmem>>, vector<1x1x128x128xbf16>
    %151 = vector.shape_cast %150 : vector<1x1x128x128xbf16> to vector<128x128xbf16>
    %cst_253 = arith.constant dense<0.000000e+00> : vector<20x128xf32>
    %152 = tpu.matmul %149, %151, %cst_253 {dimension_numbers = #tpu.dot_dimension_numbers<[1], [0], [0], [1], [0, 0, 1, 1], [], []>} : vector<20x128xbf16>, vector<128x128xbf16>, vector<20x128xf32> -> vector<20x128xf32>
    %153 = arith.addf %147, %152 : vector<20x128xf32>
    %c0_254 = arith.constant 0 : index
    %c1_255 = arith.constant 1 : index
    %c0_256 = arith.constant 0 : index
    %c6_257 = arith.constant 6 : index
    %c0_258 = arith.constant 0 : index
    %154 = vector.load %arg1[%c0_254, %c1_255, %c0_256, %c6_257, %c0_258] : memref<1x2x2x30x128xbf16, #tpu.memory_space<vmem>>, vector<1x1x1x20x128xbf16>
    %155 = vector.shape_cast %154 : vector<1x1x1x20x128xbf16> to vector<20x128xbf16>
    %c2_259 = arith.constant 2 : index
    %c2_260 = arith.constant 2 : index
    %c0_261 = arith.constant 0 : index
    %c0_262 = arith.constant 0 : index
    %156 = vector.load %arg2[%c2_259, %c2_260, %c0_261, %c0_262] : memref<3x3x128x128xbf16, #tpu.memory_space<vmem>>, vector<1x1x128x128xbf16>
    %157 = vector.shape_cast %156 : vector<1x1x128x128xbf16> to vector<128x128xbf16>
    %cst_263 = arith.constant dense<0.000000e+00> : vector<20x128xf32>
    %158 = tpu.matmul %155, %157, %cst_263 {dimension_numbers = #tpu.dot_dimension_numbers<[1], [0], [0], [1], [0, 0, 1, 1], [], []>} : vector<20x128xbf16>, vector<128x128xbf16>, vector<20x128xf32> -> vector<20x128xf32>
    %159 = arith.addf %153, %158 : vector<20x128xf32>
    %160 = arith.maximumf %106, %159 : vector<20x128xf32>
    %c0_264 = arith.constant 0 : index
    %c1_265 = arith.constant 1 : index
    %c1_266 = arith.constant 1 : index
    %c0_267 = arith.constant 0 : index
    %c0_268 = arith.constant 0 : index
    %161 = vector.load %arg1[%c0_264, %c1_265, %c1_266, %c0_267, %c0_268] : memref<1x2x2x30x128xbf16, #tpu.memory_space<vmem>>, vector<1x1x1x20x128xbf16>
    %162 = vector.shape_cast %161 : vector<1x1x1x20x128xbf16> to vector<20x128xbf16>
    %c0_269 = arith.constant 0 : index
    %c0_270 = arith.constant 0 : index
    %c0_271 = arith.constant 0 : index
    %c0_272 = arith.constant 0 : index
    %163 = vector.load %arg2[%c0_269, %c0_270, %c0_271, %c0_272] : memref<3x3x128x128xbf16, #tpu.memory_space<vmem>>, vector<1x1x128x128xbf16>
    %164 = vector.shape_cast %163 : vector<1x1x128x128xbf16> to vector<128x128xbf16>
    %cst_273 = arith.constant dense<0.000000e+00> : vector<20x128xf32>
    %165 = tpu.matmul %162, %164, %cst_273 {dimension_numbers = #tpu.dot_dimension_numbers<[1], [0], [0], [1], [0, 0, 1, 1], [], []>} : vector<20x128xbf16>, vector<128x128xbf16>, vector<20x128xf32> -> vector<20x128xf32>
    %c0_274 = arith.constant 0 : index
    %c1_275 = arith.constant 1 : index
    %c0_276 = arith.constant 0 : index
    %c1_277 = arith.constant 1 : index
    %c0_278 = arith.constant 0 : index
    %166 = vector.load %arg1[%c0_274, %c1_275, %c0_276, %c1_277, %c0_278] : memref<1x2x2x30x128xbf16, #tpu.memory_space<vmem>>, vector<1x1x1x20x128xbf16>
    %167 = vector.shape_cast %166 : vector<1x1x1x20x128xbf16> to vector<20x128xbf16>
    %c0_279 = arith.constant 0 : index
    %c1_280 = arith.constant 1 : index
    %c0_281 = arith.constant 0 : index
    %c0_282 = arith.constant 0 : index
    %168 = vector.load %arg2[%c0_279, %c1_280, %c0_281, %c0_282] : memref<3x3x128x128xbf16, #tpu.memory_space<vmem>>, vector<1x1x128x128xbf16>
    %169 = vector.shape_cast %168 : vector<1x1x128x128xbf16> to vector<128x128xbf16>
    %cst_283 = arith.constant dense<0.000000e+00> : vector<20x128xf32>
    %170 = tpu.matmul %167, %169, %cst_283 {dimension_numbers = #tpu.dot_dimension_numbers<[1], [0], [0], [1], [0, 0, 1, 1], [], []>} : vector<20x128xbf16>, vector<128x128xbf16>, vector<20x128xf32> -> vector<20x128xf32>
    %171 = arith.addf %165, %170 : vector<20x128xf32>
    %c0_284 = arith.constant 0 : index
    %c1_285 = arith.constant 1 : index
    %c1_286 = arith.constant 1 : index
    %c1_287 = arith.constant 1 : index
    %c0_288 = arith.constant 0 : index
    %172 = vector.load %arg1[%c0_284, %c1_285, %c1_286, %c1_287, %c0_288] : memref<1x2x2x30x128xbf16, #tpu.memory_space<vmem>>, vector<1x1x1x20x128xbf16>
    %173 = vector.shape_cast %172 : vector<1x1x1x20x128xbf16> to vector<20x128xbf16>
    %c0_289 = arith.constant 0 : index
    %c2_290 = arith.constant 2 : index
    %c0_291 = arith.constant 0 : index
    %c0_292 = arith.constant 0 : index
    %174 = vector.load %arg2[%c0_289, %c2_290, %c0_291, %c0_292] : memref<3x3x128x128xbf16, #tpu.memory_space<vmem>>, vector<1x1x128x128xbf16>
    %175 = vector.shape_cast %174 : vector<1x1x128x128xbf16> to vector<128x128xbf16>
    %cst_293 = arith.constant dense<0.000000e+00> : vector<20x128xf32>
    %176 = tpu.matmul %173, %175, %cst_293 {dimension_numbers = #tpu.dot_dimension_numbers<[1], [0], [0], [1], [0, 0, 1, 1], [], []>} : vector<20x128xbf16>, vector<128x128xbf16>, vector<20x128xf32> -> vector<20x128xf32>
    %177 = arith.addf %171, %176 : vector<20x128xf32>
    %c0_294 = arith.constant 0 : index
    %c0_295 = arith.constant 0 : index
    %c1_296 = arith.constant 1 : index
    %c5_297 = arith.constant 5 : index
    %c0_298 = arith.constant 0 : index
    %178 = vector.load %arg1[%c0_294, %c0_295, %c1_296, %c5_297, %c0_298] : memref<1x2x2x30x128xbf16, #tpu.memory_space<vmem>>, vector<1x1x1x20x128xbf16>
    %179 = vector.shape_cast %178 : vector<1x1x1x20x128xbf16> to vector<20x128xbf16>
    %c1_299 = arith.constant 1 : index
    %c0_300 = arith.constant 0 : index
    %c0_301 = arith.constant 0 : index
    %c0_302 = arith.constant 0 : index
    %180 = vector.load %arg2[%c1_299, %c0_300, %c0_301, %c0_302] : memref<3x3x128x128xbf16, #tpu.memory_space<vmem>>, vector<1x1x128x128xbf16>
    %181 = vector.shape_cast %180 : vector<1x1x128x128xbf16> to vector<128x128xbf16>
    %cst_303 = arith.constant dense<0.000000e+00> : vector<20x128xf32>
    %182 = tpu.matmul %179, %181, %cst_303 {dimension_numbers = #tpu.dot_dimension_numbers<[1], [0], [0], [1], [0, 0, 1, 1], [], []>} : vector<20x128xbf16>, vector<128x128xbf16>, vector<20x128xf32> -> vector<20x128xf32>
    %183 = arith.addf %177, %182 : vector<20x128xf32>
    %c0_304 = arith.constant 0 : index
    %c0_305 = arith.constant 0 : index
    %c0_306 = arith.constant 0 : index
    %c6_307 = arith.constant 6 : index
    %c0_308 = arith.constant 0 : index
    %184 = vector.load %arg1[%c0_304, %c0_305, %c0_306, %c6_307, %c0_308] : memref<1x2x2x30x128xbf16, #tpu.memory_space<vmem>>, vector<1x1x1x20x128xbf16>
    %185 = vector.shape_cast %184 : vector<1x1x1x20x128xbf16> to vector<20x128xbf16>
    %c1_309 = arith.constant 1 : index
    %c1_310 = arith.constant 1 : index
    %c0_311 = arith.constant 0 : index
    %c0_312 = arith.constant 0 : index
    %186 = vector.load %arg2[%c1_309, %c1_310, %c0_311, %c0_312] : memref<3x3x128x128xbf16, #tpu.memory_space<vmem>>, vector<1x1x128x128xbf16>
    %187 = vector.shape_cast %186 : vector<1x1x128x128xbf16> to vector<128x128xbf16>
    %cst_313 = arith.constant dense<0.000000e+00> : vector<20x128xf32>
    %188 = tpu.matmul %185, %187, %cst_313 {dimension_numbers = #tpu.dot_dimension_numbers<[1], [0], [0], [1], [0, 0, 1, 1], [], []>} : vector<20x128xbf16>, vector<128x128xbf16>, vector<20x128xf32> -> vector<20x128xf32>
    %189 = arith.addf %183, %188 : vector<20x128xf32>
    %c0_314 = arith.constant 0 : index
    %c0_315 = arith.constant 0 : index
    %c1_316 = arith.constant 1 : index
    %c6_317 = arith.constant 6 : index
    %c0_318 = arith.constant 0 : index
    %190 = vector.load %arg1[%c0_314, %c0_315, %c1_316, %c6_317, %c0_318] : memref<1x2x2x30x128xbf16, #tpu.memory_space<vmem>>, vector<1x1x1x20x128xbf16>
    %191 = vector.shape_cast %190 : vector<1x1x1x20x128xbf16> to vector<20x128xbf16>
    %c1_319 = arith.constant 1 : index
    %c2_320 = arith.constant 2 : index
    %c0_321 = arith.constant 0 : index
    %c0_322 = arith.constant 0 : index
    %192 = vector.load %arg2[%c1_319, %c2_320, %c0_321, %c0_322] : memref<3x3x128x128xbf16, #tpu.memory_space<vmem>>, vector<1x1x128x128xbf16>
    %193 = vector.shape_cast %192 : vector<1x1x128x128xbf16> to vector<128x128xbf16>
    %cst_323 = arith.constant dense<0.000000e+00> : vector<20x128xf32>
    %194 = tpu.matmul %191, %193, %cst_323 {dimension_numbers = #tpu.dot_dimension_numbers<[1], [0], [0], [1], [0, 0, 1, 1], [], []>} : vector<20x128xbf16>, vector<128x128xbf16>, vector<20x128xf32> -> vector<20x128xf32>
    %195 = arith.addf %189, %194 : vector<20x128xf32>
    %c0_324 = arith.constant 0 : index
    %c1_325 = arith.constant 1 : index
    %c1_326 = arith.constant 1 : index
    %c5_327 = arith.constant 5 : index
    %c0_328 = arith.constant 0 : index
    %196 = vector.load %arg1[%c0_324, %c1_325, %c1_326, %c5_327, %c0_328] : memref<1x2x2x30x128xbf16, #tpu.memory_space<vmem>>, vector<1x1x1x20x128xbf16>
    %197 = vector.shape_cast %196 : vector<1x1x1x20x128xbf16> to vector<20x128xbf16>
    %c2_329 = arith.constant 2 : index
    %c0_330 = arith.constant 0 : index
    %c0_331 = arith.constant 0 : index
    %c0_332 = arith.constant 0 : index
    %198 = vector.load %arg2[%c2_329, %c0_330, %c0_331, %c0_332] : memref<3x3x128x128xbf16, #tpu.memory_space<vmem>>, vector<1x1x128x128xbf16>
    %199 = vector.shape_cast %198 : vector<1x1x128x128xbf16> to vector<128x128xbf16>
    %cst_333 = arith.constant dense<0.000000e+00> : vector<20x128xf32>
    %200 = tpu.matmul %197, %199, %cst_333 {dimension_numbers = #tpu.dot_dimension_numbers<[1], [0], [0], [1], [0, 0, 1, 1], [], []>} : vector<20x128xbf16>, vector<128x128xbf16>, vector<20x128xf32> -> vector<20x128xf32>
    %201 = arith.addf %195, %200 : vector<20x128xf32>
    %c0_334 = arith.constant 0 : index
    %c1_335 = arith.constant 1 : index
    %c0_336 = arith.constant 0 : index
    %c6_337 = arith.constant 6 : index
    %c0_338 = arith.constant 0 : index
    %202 = vector.load %arg1[%c0_334, %c1_335, %c0_336, %c6_337, %c0_338] : memref<1x2x2x30x128xbf16, #tpu.memory_space<vmem>>, vector<1x1x1x20x128xbf16>
    %203 = vector.shape_cast %202 : vector<1x1x1x20x128xbf16> to vector<20x128xbf16>
    %c2_339 = arith.constant 2 : index
    %c1_340 = arith.constant 1 : index
    %c0_341 = arith.constant 0 : index
    %c0_342 = arith.constant 0 : index
    %204 = vector.load %arg2[%c2_339, %c1_340, %c0_341, %c0_342] : memref<3x3x128x128xbf16, #tpu.memory_space<vmem>>, vector<1x1x128x128xbf16>
    %205 = vector.shape_cast %204 : vector<1x1x128x128xbf16> to vector<128x128xbf16>
    %cst_343 = arith.constant dense<0.000000e+00> : vector<20x128xf32>
    %206 = tpu.matmul %203, %205, %cst_343 {dimension_numbers = #tpu.dot_dimension_numbers<[1], [0], [0], [1], [0, 0, 1, 1], [], []>} : vector<20x128xbf16>, vector<128x128xbf16>, vector<20x128xf32> -> vector<20x128xf32>
    %207 = arith.addf %201, %206 : vector<20x128xf32>
    %c0_344 = arith.constant 0 : index
    %c1_345 = arith.constant 1 : index
    %c1_346 = arith.constant 1 : index
    %c6_347 = arith.constant 6 : index
    %c0_348 = arith.constant 0 : index
    %208 = vector.load %arg1[%c0_344, %c1_345, %c1_346, %c6_347, %c0_348] : memref<1x2x2x30x128xbf16, #tpu.memory_space<vmem>>, vector<1x1x1x20x128xbf16>
    %209 = vector.shape_cast %208 : vector<1x1x1x20x128xbf16> to vector<20x128xbf16>
    %c2_349 = arith.constant 2 : index
    %c2_350 = arith.constant 2 : index
    %c0_351 = arith.constant 0 : index
    %c0_352 = arith.constant 0 : index
    %210 = vector.load %arg2[%c2_349, %c2_350, %c0_351, %c0_352] : memref<3x3x128x128xbf16, #tpu.memory_space<vmem>>, vector<1x1x128x128xbf16>
    %211 = vector.shape_cast %210 : vector<1x1x128x128xbf16> to vector<128x128xbf16>
    %cst_353 = arith.constant dense<0.000000e+00> : vector<20x128xf32>
    %212 = tpu.matmul %209, %211, %cst_353 {dimension_numbers = #tpu.dot_dimension_numbers<[1], [0], [0], [1], [0, 0, 1, 1], [], []>} : vector<20x128xbf16>, vector<128x128xbf16>, vector<20x128xf32> -> vector<20x128xf32>
    %213 = arith.addf %207, %212 : vector<20x128xf32>
    %214 = arith.maximumf %160, %213 : vector<20x128xf32>
    %c0_354 = arith.constant 0 : index
    %c0_355 = arith.constant 0 : index
    %215 = vector.load %arg3[%c0_354, %c0_355] : memref<1x128xf32, #tpu.memory_space<vmem>>, vector<1x128xf32>
    %216 = vector.broadcast %215 : vector<1x128xf32> to vector<20x128xf32>
    %217 = arith.addf %214, %216 : vector<20x128xf32>
    %cst_356 = arith.constant 0.000000e+00 : f32
    %218 = vector.broadcast %cst_356 : f32 to vector<20x128xf32>
    %219 = arith.maximumf %217, %218 : vector<20x128xf32>
    %220 = arith.truncf %219 : vector<20x128xf32> to vector<20x128xbf16>
    %c0_357 = arith.constant 0 : index
    %c0_358 = arith.constant 0 : index
    %c0_359 = arith.constant 0 : index
    %221 = vector.load %arg4[%c0_357, %c0_358, %c0_359] : memref<1x20x128xbf16, #tpu.memory_space<vmem>>, vector<1x20x128xbf16>
    %222 = vector.shape_cast %221 : vector<1x20x128xbf16> to vector<20x128xbf16>
    %223 = vector.shape_cast %220 : vector<20x128xbf16> to vector<1x20x128xbf16>
    tpu.vector_store %arg4[%c0_357, %c0_358, %c0_359], %223 {strides = array<i32>} : memref<1x20x128xbf16, #tpu.memory_space<vmem>>, vector<1x20x128xbf16>,
    return
  }
  func.func @transform_0(%arg0: i32) -> (i32, i32, i32, i32, i32) {
    %c0_i32 = arith.constant 0 : i32
    %c0_i32_0 = arith.constant 0 : i32
    %c0_i32_1 = arith.constant 0 : i32
    %c0_i32_2 = arith.constant 0 : i32
    %c0_i32_3 = arith.constant 0 : i32
    return %arg0, %c0_i32, %c0_i32_0, %c0_i32_1, %c0_i32_2 : i32, i32, i32, i32, i32
  }
  func.func @transform_1(%arg0: i32) -> (i32, i32, i32, i32) {
    %c0_i32 = arith.constant 0 : i32
    %c0_i32_0 = arith.constant 0 : i32
    %c0_i32_1 = arith.constant 0 : i32
    %c0_i32_2 = arith.constant 0 : i32
    %c0_i32_3 = arith.constant 0 : i32
    return %c0_i32, %c0_i32_0, %c0_i32_1, %c0_i32_2 : i32, i32, i32, i32
  }
  func.func @transform_2(%arg0: i32) -> (i32, i32) {
    %c0_i32 = arith.constant 0 : i32
    %c0_i32_0 = arith.constant 0 : i32
    %c0_i32_1 = arith.constant 0 : i32
    return %c0_i32, %c0_i32_0 : i32, i32
  }
  func.func @transform_3(%arg0: i32) -> (i32, i32, i32) {
    %c0_i32 = arith.constant 0 : i32
    %c0_i32_0 = arith.constant 0 : i32
    %c0_i32_1 = arith.constant 0 : i32
    return %arg0, %c0_i32, %c0_i32_0 : i32, i32, i32
  }
}

module attributes {stable_mosaic.version = 11 : i64} {
  func.func @conv_pool_relu_kernel(%arg0: i32, %arg1: memref<1x2x2x12x128xbf16, #tpu.memory_space<vmem>>, %arg2: memref<3x3x128x128xbf16, #tpu.memory_space<vmem>>, %arg3: memref<1x128xf32, #tpu.memory_space<vmem>>, %arg4: memref<1x6x128xbf16, #tpu.memory_space<vmem>>) attributes {dimension_semantics = [#tpu.dimension_semantics<parallel>], iteration_bounds = array<i64: 2>, scalar_prefetch = 0 : i64, scratch_operands = 0 : i64, tpu.core_type = #tpu.core_type<tc>, window_params = [{transform_indices = @transform_0, window_bounds = array<i64: 1, 2, 2, 12, 128>}, {pipeline_mode = #tpu.pipeline_mode<synchronous>, transform_indices = @transform_1, window_bounds = array<i64: 3, 3, 128, 128>}, {pipeline_mode = #tpu.pipeline_mode<synchronous>, transform_indices = @transform_2, window_bounds = array<i64: 1, 128>}, {transform_indices = @transform_3, window_bounds = array<i64: 1, 6, 128>}]} {
    %c0 = arith.constant 0 : index
    %c0_0 = arith.constant 0 : index
    %c0_1 = arith.constant 0 : index
    %c0_2 = arith.constant 0 : index
    %c0_3 = arith.constant 0 : index
    %0 = vector.load %arg1[%c0, %c0_0, %c0_1, %c0_2, %c0_3] : memref<1x2x2x12x128xbf16, #tpu.memory_space<vmem>>, vector<1x1x1x6x128xbf16>
    %1 = vector.shape_cast %0 : vector<1x1x1x6x128xbf16> to vector<6x128xbf16>
    %c0_4 = arith.constant 0 : index
    %c0_5 = arith.constant 0 : index
    %c0_6 = arith.constant 0 : index
    %c0_7 = arith.constant 0 : index
    %2 = vector.load %arg2[%c0_4, %c0_5, %c0_6, %c0_7] : memref<3x3x128x128xbf16, #tpu.memory_space<vmem>>, vector<1x1x128x128xbf16>
    %3 = vector.shape_cast %2 : vector<1x1x128x128xbf16> to vector<128x128xbf16>
    %cst = arith.constant dense<0.000000e+00> : vector<6x128xf32>
    %4 = tpu.matmul %1, %3, %cst {dimension_numbers = #tpu.dot_dimension_numbers<[1], [0], [0], [1], [0, 0, 1, 1], [], []>} : vector<6x128xbf16>, vector<128x128xbf16>, vector<6x128xf32> -> vector<6x128xf32>
    %c0_8 = arith.constant 0 : index
    %c0_9 = arith.constant 0 : index
    %c1 = arith.constant 1 : index
    %c0_10 = arith.constant 0 : index
    %c0_11 = arith.constant 0 : index
    %5 = vector.load %arg1[%c0_8, %c0_9, %c1, %c0_10, %c0_11] : memref<1x2x2x12x128xbf16, #tpu.memory_space<vmem>>, vector<1x1x1x6x128xbf16>
    %6 = vector.shape_cast %5 : vector<1x1x1x6x128xbf16> to vector<6x128xbf16>
    %c0_12 = arith.constant 0 : index
    %c1_13 = arith.constant 1 : index
    %c0_14 = arith.constant 0 : index
    %c0_15 = arith.constant 0 : index
    %7 = vector.load %arg2[%c0_12, %c1_13, %c0_14, %c0_15] : memref<3x3x128x128xbf16, #tpu.memory_space<vmem>>, vector<1x1x128x128xbf16>
    %8 = vector.shape_cast %7 : vector<1x1x128x128xbf16> to vector<128x128xbf16>
    %cst_16 = arith.constant dense<0.000000e+00> : vector<6x128xf32>
    %9 = tpu.matmul %6, %8, %cst_16 {dimension_numbers = #tpu.dot_dimension_numbers<[1], [0], [0], [1], [0, 0, 1, 1], [], []>} : vector<6x128xbf16>, vector<128x128xbf16>, vector<6x128xf32> -> vector<6x128xf32>
    %10 = arith.addf %4, %9 : vector<6x128xf32>
    %c0_17 = arith.constant 0 : index
    %c0_18 = arith.constant 0 : index
    %c0_19 = arith.constant 0 : index
    %c1_20 = arith.constant 1 : index
    %c0_21 = arith.constant 0 : index
    %11 = vector.load %arg1[%c0_17, %c0_18, %c0_19, %c1_20, %c0_21] : memref<1x2x2x12x128xbf16, #tpu.memory_space<vmem>>, vector<1x1x1x6x128xbf16>
    %12 = vector.shape_cast %11 : vector<1x1x1x6x128xbf16> to vector<6x128xbf16>
    %c0_22 = arith.constant 0 : index
    %c2 = arith.constant 2 : index
    %c0_23 = arith.constant 0 : index
    %c0_24 = arith.constant 0 : index
    %13 = vector.load %arg2[%c0_22, %c2, %c0_23, %c0_24] : memref<3x3x128x128xbf16, #tpu.memory_space<vmem>>, vector<1x1x128x128xbf16>
    %14 = vector.shape_cast %13 : vector<1x1x128x128xbf16> to vector<128x128xbf16>
    %cst_25 = arith.constant dense<0.000000e+00> : vector<6x128xf32>
    %15 = tpu.matmul %12, %14, %cst_25 {dimension_numbers = #tpu.dot_dimension_numbers<[1], [0], [0], [1], [0, 0, 1, 1], [], []>} : vector<6x128xbf16>, vector<128x128xbf16>, vector<6x128xf32> -> vector<6x128xf32>
    %16 = arith.addf %10, %15 : vector<6x128xf32>
    %c0_26 = arith.constant 0 : index
    %c1_27 = arith.constant 1 : index
    %c0_28 = arith.constant 0 : index
    %c0_29 = arith.constant 0 : index
    %c0_30 = arith.constant 0 : index
    %17 = vector.load %arg1[%c0_26, %c1_27, %c0_28, %c0_29, %c0_30] : memref<1x2x2x12x128xbf16, #tpu.memory_space<vmem>>, vector<1x1x1x6x128xbf16>
    %18 = vector.shape_cast %17 : vector<1x1x1x6x128xbf16> to vector<6x128xbf16>
    %c1_31 = arith.constant 1 : index
    %c0_32 = arith.constant 0 : index
    %c0_33 = arith.constant 0 : index
    %c0_34 = arith.constant 0 : index
    %19 = vector.load %arg2[%c1_31, %c0_32, %c0_33, %c0_34] : memref<3x3x128x128xbf16, #tpu.memory_space<vmem>>, vector<1x1x128x128xbf16>
    %20 = vector.shape_cast %19 : vector<1x1x128x128xbf16> to vector<128x128xbf16>
    %cst_35 = arith.constant dense<0.000000e+00> : vector<6x128xf32>
    %21 = tpu.matmul %18, %20, %cst_35 {dimension_numbers = #tpu.dot_dimension_numbers<[1], [0], [0], [1], [0, 0, 1, 1], [], []>} : vector<6x128xbf16>, vector<128x128xbf16>, vector<6x128xf32> -> vector<6x128xf32>
    %22 = arith.addf %16, %21 : vector<6x128xf32>
    %c0_36 = arith.constant 0 : index
    %c1_37 = arith.constant 1 : index
    %c1_38 = arith.constant 1 : index
    %c0_39 = arith.constant 0 : index
    %c0_40 = arith.constant 0 : index
    %23 = vector.load %arg1[%c0_36, %c1_37, %c1_38, %c0_39, %c0_40] : memref<1x2x2x12x128xbf16, #tpu.memory_space<vmem>>, vector<1x1x1x6x128xbf16>
    %24 = vector.shape_cast %23 : vector<1x1x1x6x128xbf16> to vector<6x128xbf16>
    %c1_41 = arith.constant 1 : index
    %c1_42 = arith.constant 1 : index
    %c0_43 = arith.constant 0 : index
    %c0_44 = arith.constant 0 : index
    %25 = vector.load %arg2[%c1_41, %c1_42, %c0_43, %c0_44] : memref<3x3x128x128xbf16, #tpu.memory_space<vmem>>, vector<1x1x128x128xbf16>
    %26 = vector.shape_cast %25 : vector<1x1x128x128xbf16> to vector<128x128xbf16>
    %cst_45 = arith.constant dense<0.000000e+00> : vector<6x128xf32>
    %27 = tpu.matmul %24, %26, %cst_45 {dimension_numbers = #tpu.dot_dimension_numbers<[1], [0], [0], [1], [0, 0, 1, 1], [], []>} : vector<6x128xbf16>, vector<128x128xbf16>, vector<6x128xf32> -> vector<6x128xf32>
    %28 = arith.addf %22, %27 : vector<6x128xf32>
    %c0_46 = arith.constant 0 : index
    %c1_47 = arith.constant 1 : index
    %c0_48 = arith.constant 0 : index
    %c1_49 = arith.constant 1 : index
    %c0_50 = arith.constant 0 : index
    %29 = vector.load %arg1[%c0_46, %c1_47, %c0_48, %c1_49, %c0_50] : memref<1x2x2x12x128xbf16, #tpu.memory_space<vmem>>, vector<1x1x1x6x128xbf16>
    %30 = vector.shape_cast %29 : vector<1x1x1x6x128xbf16> to vector<6x128xbf16>
    %c1_51 = arith.constant 1 : index
    %c2_52 = arith.constant 2 : index
    %c0_53 = arith.constant 0 : index
    %c0_54 = arith.constant 0 : index
    %31 = vector.load %arg2[%c1_51, %c2_52, %c0_53, %c0_54] : memref<3x3x128x128xbf16, #tpu.memory_space<vmem>>, vector<1x1x128x128xbf16>
    %32 = vector.shape_cast %31 : vector<1x1x128x128xbf16> to vector<128x128xbf16>
    %cst_55 = arith.constant dense<0.000000e+00> : vector<6x128xf32>
    %33 = tpu.matmul %30, %32, %cst_55 {dimension_numbers = #tpu.dot_dimension_numbers<[1], [0], [0], [1], [0, 0, 1, 1], [], []>} : vector<6x128xbf16>, vector<128x128xbf16>, vector<6x128xf32> -> vector<6x128xf32>
    %34 = arith.addf %28, %33 : vector<6x128xf32>
    %c0_56 = arith.constant 0 : index
    %c0_57 = arith.constant 0 : index
    %c0_58 = arith.constant 0 : index
    %c3 = arith.constant 3 : index
    %c0_59 = arith.constant 0 : index
    %35 = vector.load %arg1[%c0_56, %c0_57, %c0_58, %c3, %c0_59] : memref<1x2x2x12x128xbf16, #tpu.memory_space<vmem>>, vector<1x1x1x6x128xbf16>
    %36 = vector.shape_cast %35 : vector<1x1x1x6x128xbf16> to vector<6x128xbf16>
    %c2_60 = arith.constant 2 : index
    %c0_61 = arith.constant 0 : index
    %c0_62 = arith.constant 0 : index
    %c0_63 = arith.constant 0 : index
    %37 = vector.load %arg2[%c2_60, %c0_61, %c0_62, %c0_63] : memref<3x3x128x128xbf16, #tpu.memory_space<vmem>>, vector<1x1x128x128xbf16>
    %38 = vector.shape_cast %37 : vector<1x1x128x128xbf16> to vector<128x128xbf16>
    %cst_64 = arith.constant dense<0.000000e+00> : vector<6x128xf32>
    %39 = tpu.matmul %36, %38, %cst_64 {dimension_numbers = #tpu.dot_dimension_numbers<[1], [0], [0], [1], [0, 0, 1, 1], [], []>} : vector<6x128xbf16>, vector<128x128xbf16>, vector<6x128xf32> -> vector<6x128xf32>
    %40 = arith.addf %34, %39 : vector<6x128xf32>
    %c0_65 = arith.constant 0 : index
    %c0_66 = arith.constant 0 : index
    %c1_67 = arith.constant 1 : index
    %c3_68 = arith.constant 3 : index
    %c0_69 = arith.constant 0 : index
    %41 = vector.load %arg1[%c0_65, %c0_66, %c1_67, %c3_68, %c0_69] : memref<1x2x2x12x128xbf16, #tpu.memory_space<vmem>>, vector<1x1x1x6x128xbf16>
    %42 = vector.shape_cast %41 : vector<1x1x1x6x128xbf16> to vector<6x128xbf16>
    %c2_70 = arith.constant 2 : index
    %c1_71 = arith.constant 1 : index
    %c0_72 = arith.constant 0 : index
    %c0_73 = arith.constant 0 : index
    %43 = vector.load %arg2[%c2_70, %c1_71, %c0_72, %c0_73] : memref<3x3x128x128xbf16, #tpu.memory_space<vmem>>, vector<1x1x128x128xbf16>
    %44 = vector.shape_cast %43 : vector<1x1x128x128xbf16> to vector<128x128xbf16>
    %cst_74 = arith.constant dense<0.000000e+00> : vector<6x128xf32>
    %45 = tpu.matmul %42, %44, %cst_74 {dimension_numbers = #tpu.dot_dimension_numbers<[1], [0], [0], [1], [0, 0, 1, 1], [], []>} : vector<6x128xbf16>, vector<128x128xbf16>, vector<6x128xf32> -> vector<6x128xf32>
    %46 = arith.addf %40, %45 : vector<6x128xf32>
    %c0_75 = arith.constant 0 : index
    %c0_76 = arith.constant 0 : index
    %c0_77 = arith.constant 0 : index
    %c4 = arith.constant 4 : index
    %c0_78 = arith.constant 0 : index
    %47 = vector.load %arg1[%c0_75, %c0_76, %c0_77, %c4, %c0_78] : memref<1x2x2x12x128xbf16, #tpu.memory_space<vmem>>, vector<1x1x1x6x128xbf16>
    %48 = vector.shape_cast %47 : vector<1x1x1x6x128xbf16> to vector<6x128xbf16>
    %c2_79 = arith.constant 2 : index
    %c2_80 = arith.constant 2 : index
    %c0_81 = arith.constant 0 : index
    %c0_82 = arith.constant 0 : index
    %49 = vector.load %arg2[%c2_79, %c2_80, %c0_81, %c0_82] : memref<3x3x128x128xbf16, #tpu.memory_space<vmem>>, vector<1x1x128x128xbf16>
    %50 = vector.shape_cast %49 : vector<1x1x128x128xbf16> to vector<128x128xbf16>
    %cst_83 = arith.constant dense<0.000000e+00> : vector<6x128xf32>
    %51 = tpu.matmul %48, %50, %cst_83 {dimension_numbers = #tpu.dot_dimension_numbers<[1], [0], [0], [1], [0, 0, 1, 1], [], []>} : vector<6x128xbf16>, vector<128x128xbf16>, vector<6x128xf32> -> vector<6x128xf32>
    %52 = arith.addf %46, %51 : vector<6x128xf32>
    %c0_84 = arith.constant 0 : index
    %c0_85 = arith.constant 0 : index
    %c1_86 = arith.constant 1 : index
    %c0_87 = arith.constant 0 : index
    %c0_88 = arith.constant 0 : index
    %53 = vector.load %arg1[%c0_84, %c0_85, %c1_86, %c0_87, %c0_88] : memref<1x2x2x12x128xbf16, #tpu.memory_space<vmem>>, vector<1x1x1x6x128xbf16>
    %54 = vector.shape_cast %53 : vector<1x1x1x6x128xbf16> to vector<6x128xbf16>
    %c0_89 = arith.constant 0 : index
    %c0_90 = arith.constant 0 : index
    %c0_91 = arith.constant 0 : index
    %c0_92 = arith.constant 0 : index
    %55 = vector.load %arg2[%c0_89, %c0_90, %c0_91, %c0_92] : memref<3x3x128x128xbf16, #tpu.memory_space<vmem>>, vector<1x1x128x128xbf16>
    %56 = vector.shape_cast %55 : vector<1x1x128x128xbf16> to vector<128x128xbf16>
    %cst_93 = arith.constant dense<0.000000e+00> : vector<6x128xf32>
    %57 = tpu.matmul %54, %56, %cst_93 {dimension_numbers = #tpu.dot_dimension_numbers<[1], [0], [0], [1], [0, 0, 1, 1], [], []>} : vector<6x128xbf16>, vector<128x128xbf16>, vector<6x128xf32> -> vector<6x128xf32>
    %c0_94 = arith.constant 0 : index
    %c0_95 = arith.constant 0 : index
    %c0_96 = arith.constant 0 : index
    %c1_97 = arith.constant 1 : index
    %c0_98 = arith.constant 0 : index
    %58 = vector.load %arg1[%c0_94, %c0_95, %c0_96, %c1_97, %c0_98] : memref<1x2x2x12x128xbf16, #tpu.memory_space<vmem>>, vector<1x1x1x6x128xbf16>
    %59 = vector.shape_cast %58 : vector<1x1x1x6x128xbf16> to vector<6x128xbf16>
    %c0_99 = arith.constant 0 : index
    %c1_100 = arith.constant 1 : index
    %c0_101 = arith.constant 0 : index
    %c0_102 = arith.constant 0 : index
    %60 = vector.load %arg2[%c0_99, %c1_100, %c0_101, %c0_102] : memref<3x3x128x128xbf16, #tpu.memory_space<vmem>>, vector<1x1x128x128xbf16>
    %61 = vector.shape_cast %60 : vector<1x1x128x128xbf16> to vector<128x128xbf16>
    %cst_103 = arith.constant dense<0.000000e+00> : vector<6x128xf32>
    %62 = tpu.matmul %59, %61, %cst_103 {dimension_numbers = #tpu.dot_dimension_numbers<[1], [0], [0], [1], [0, 0, 1, 1], [], []>} : vector<6x128xbf16>, vector<128x128xbf16>, vector<6x128xf32> -> vector<6x128xf32>
    %63 = arith.addf %57, %62 : vector<6x128xf32>
    %c0_104 = arith.constant 0 : index
    %c0_105 = arith.constant 0 : index
    %c1_106 = arith.constant 1 : index
    %c1_107 = arith.constant 1 : index
    %c0_108 = arith.constant 0 : index
    %64 = vector.load %arg1[%c0_104, %c0_105, %c1_106, %c1_107, %c0_108] : memref<1x2x2x12x128xbf16, #tpu.memory_space<vmem>>, vector<1x1x1x6x128xbf16>
    %65 = vector.shape_cast %64 : vector<1x1x1x6x128xbf16> to vector<6x128xbf16>
    %c0_109 = arith.constant 0 : index
    %c2_110 = arith.constant 2 : index
    %c0_111 = arith.constant 0 : index
    %c0_112 = arith.constant 0 : index
    %66 = vector.load %arg2[%c0_109, %c2_110, %c0_111, %c0_112] : memref<3x3x128x128xbf16, #tpu.memory_space<vmem>>, vector<1x1x128x128xbf16>
    %67 = vector.shape_cast %66 : vector<1x1x128x128xbf16> to vector<128x128xbf16>
    %cst_113 = arith.constant dense<0.000000e+00> : vector<6x128xf32>
    %68 = tpu.matmul %65, %67, %cst_113 {dimension_numbers = #tpu.dot_dimension_numbers<[1], [0], [0], [1], [0, 0, 1, 1], [], []>} : vector<6x128xbf16>, vector<128x128xbf16>, vector<6x128xf32> -> vector<6x128xf32>
    %69 = arith.addf %63, %68 : vector<6x128xf32>
    %c0_114 = arith.constant 0 : index
    %c1_115 = arith.constant 1 : index
    %c1_116 = arith.constant 1 : index
    %c0_117 = arith.constant 0 : index
    %c0_118 = arith.constant 0 : index
    %70 = vector.load %arg1[%c0_114, %c1_115, %c1_116, %c0_117, %c0_118] : memref<1x2x2x12x128xbf16, #tpu.memory_space<vmem>>, vector<1x1x1x6x128xbf16>
    %71 = vector.shape_cast %70 : vector<1x1x1x6x128xbf16> to vector<6x128xbf16>
    %c1_119 = arith.constant 1 : index
    %c0_120 = arith.constant 0 : index
    %c0_121 = arith.constant 0 : index
    %c0_122 = arith.constant 0 : index
    %72 = vector.load %arg2[%c1_119, %c0_120, %c0_121, %c0_122] : memref<3x3x128x128xbf16, #tpu.memory_space<vmem>>, vector<1x1x128x128xbf16>
    %73 = vector.shape_cast %72 : vector<1x1x128x128xbf16> to vector<128x128xbf16>
    %cst_123 = arith.constant dense<0.000000e+00> : vector<6x128xf32>
    %74 = tpu.matmul %71, %73, %cst_123 {dimension_numbers = #tpu.dot_dimension_numbers<[1], [0], [0], [1], [0, 0, 1, 1], [], []>} : vector<6x128xbf16>, vector<128x128xbf16>, vector<6x128xf32> -> vector<6x128xf32>
    %75 = arith.addf %69, %74 : vector<6x128xf32>
    %c0_124 = arith.constant 0 : index
    %c1_125 = arith.constant 1 : index
    %c0_126 = arith.constant 0 : index
    %c1_127 = arith.constant 1 : index
    %c0_128 = arith.constant 0 : index
    %76 = vector.load %arg1[%c0_124, %c1_125, %c0_126, %c1_127, %c0_128] : memref<1x2x2x12x128xbf16, #tpu.memory_space<vmem>>, vector<1x1x1x6x128xbf16>
    %77 = vector.shape_cast %76 : vector<1x1x1x6x128xbf16> to vector<6x128xbf16>
    %c1_129 = arith.constant 1 : index
    %c1_130 = arith.constant 1 : index
    %c0_131 = arith.constant 0 : index
    %c0_132 = arith.constant 0 : index
    %78 = vector.load %arg2[%c1_129, %c1_130, %c0_131, %c0_132] : memref<3x3x128x128xbf16, #tpu.memory_space<vmem>>, vector<1x1x128x128xbf16>
    %79 = vector.shape_cast %78 : vector<1x1x128x128xbf16> to vector<128x128xbf16>
    %cst_133 = arith.constant dense<0.000000e+00> : vector<6x128xf32>
    %80 = tpu.matmul %77, %79, %cst_133 {dimension_numbers = #tpu.dot_dimension_numbers<[1], [0], [0], [1], [0, 0, 1, 1], [], []>} : vector<6x128xbf16>, vector<128x128xbf16>, vector<6x128xf32> -> vector<6x128xf32>
    %81 = arith.addf %75, %80 : vector<6x128xf32>
    %c0_134 = arith.constant 0 : index
    %c1_135 = arith.constant 1 : index
    %c1_136 = arith.constant 1 : index
    %c1_137 = arith.constant 1 : index
    %c0_138 = arith.constant 0 : index
    %82 = vector.load %arg1[%c0_134, %c1_135, %c1_136, %c1_137, %c0_138] : memref<1x2x2x12x128xbf16, #tpu.memory_space<vmem>>, vector<1x1x1x6x128xbf16>
    %83 = vector.shape_cast %82 : vector<1x1x1x6x128xbf16> to vector<6x128xbf16>
    %c1_139 = arith.constant 1 : index
    %c2_140 = arith.constant 2 : index
    %c0_141 = arith.constant 0 : index
    %c0_142 = arith.constant 0 : index
    %84 = vector.load %arg2[%c1_139, %c2_140, %c0_141, %c0_142] : memref<3x3x128x128xbf16, #tpu.memory_space<vmem>>, vector<1x1x128x128xbf16>
    %85 = vector.shape_cast %84 : vector<1x1x128x128xbf16> to vector<128x128xbf16>
    %cst_143 = arith.constant dense<0.000000e+00> : vector<6x128xf32>
    %86 = tpu.matmul %83, %85, %cst_143 {dimension_numbers = #tpu.dot_dimension_numbers<[1], [0], [0], [1], [0, 0, 1, 1], [], []>} : vector<6x128xbf16>, vector<128x128xbf16>, vector<6x128xf32> -> vector<6x128xf32>
    %87 = arith.addf %81, %86 : vector<6x128xf32>
    %c0_144 = arith.constant 0 : index
    %c0_145 = arith.constant 0 : index
    %c1_146 = arith.constant 1 : index
    %c3_147 = arith.constant 3 : index
    %c0_148 = arith.constant 0 : index
    %88 = vector.load %arg1[%c0_144, %c0_145, %c1_146, %c3_147, %c0_148] : memref<1x2x2x12x128xbf16, #tpu.memory_space<vmem>>, vector<1x1x1x6x128xbf16>
    %89 = vector.shape_cast %88 : vector<1x1x1x6x128xbf16> to vector<6x128xbf16>
    %c2_149 = arith.constant 2 : index
    %c0_150 = arith.constant 0 : index
    %c0_151 = arith.constant 0 : index
    %c0_152 = arith.constant 0 : index
    %90 = vector.load %arg2[%c2_149, %c0_150, %c0_151, %c0_152] : memref<3x3x128x128xbf16, #tpu.memory_space<vmem>>, vector<1x1x128x128xbf16>
    %91 = vector.shape_cast %90 : vector<1x1x128x128xbf16> to vector<128x128xbf16>
    %cst_153 = arith.constant dense<0.000000e+00> : vector<6x128xf32>
    %92 = tpu.matmul %89, %91, %cst_153 {dimension_numbers = #tpu.dot_dimension_numbers<[1], [0], [0], [1], [0, 0, 1, 1], [], []>} : vector<6x128xbf16>, vector<128x128xbf16>, vector<6x128xf32> -> vector<6x128xf32>
    %93 = arith.addf %87, %92 : vector<6x128xf32>
    %c0_154 = arith.constant 0 : index
    %c0_155 = arith.constant 0 : index
    %c0_156 = arith.constant 0 : index
    %c4_157 = arith.constant 4 : index
    %c0_158 = arith.constant 0 : index
    %94 = vector.load %arg1[%c0_154, %c0_155, %c0_156, %c4_157, %c0_158] : memref<1x2x2x12x128xbf16, #tpu.memory_space<vmem>>, vector<1x1x1x6x128xbf16>
    %95 = vector.shape_cast %94 : vector<1x1x1x6x128xbf16> to vector<6x128xbf16>
    %c2_159 = arith.constant 2 : index
    %c1_160 = arith.constant 1 : index
    %c0_161 = arith.constant 0 : index
    %c0_162 = arith.constant 0 : index
    %96 = vector.load %arg2[%c2_159, %c1_160, %c0_161, %c0_162] : memref<3x3x128x128xbf16, #tpu.memory_space<vmem>>, vector<1x1x128x128xbf16>
    %97 = vector.shape_cast %96 : vector<1x1x128x128xbf16> to vector<128x128xbf16>
    %cst_163 = arith.constant dense<0.000000e+00> : vector<6x128xf32>
    %98 = tpu.matmul %95, %97, %cst_163 {dimension_numbers = #tpu.dot_dimension_numbers<[1], [0], [0], [1], [0, 0, 1, 1], [], []>} : vector<6x128xbf16>, vector<128x128xbf16>, vector<6x128xf32> -> vector<6x128xf32>
    %99 = arith.addf %93, %98 : vector<6x128xf32>
    %c0_164 = arith.constant 0 : index
    %c0_165 = arith.constant 0 : index
    %c1_166 = arith.constant 1 : index
    %c4_167 = arith.constant 4 : index
    %c0_168 = arith.constant 0 : index
    %100 = vector.load %arg1[%c0_164, %c0_165, %c1_166, %c4_167, %c0_168] : memref<1x2x2x12x128xbf16, #tpu.memory_space<vmem>>, vector<1x1x1x6x128xbf16>
    %101 = vector.shape_cast %100 : vector<1x1x1x6x128xbf16> to vector<6x128xbf16>
    %c2_169 = arith.constant 2 : index
    %c2_170 = arith.constant 2 : index
    %c0_171 = arith.constant 0 : index
    %c0_172 = arith.constant 0 : index
    %102 = vector.load %arg2[%c2_169, %c2_170, %c0_171, %c0_172] : memref<3x3x128x128xbf16, #tpu.memory_space<vmem>>, vector<1x1x128x128xbf16>
    %103 = vector.shape_cast %102 : vector<1x1x128x128xbf16> to vector<128x128xbf16>
    %cst_173 = arith.constant dense<0.000000e+00> : vector<6x128xf32>
    %104 = tpu.matmul %101, %103, %cst_173 {dimension_numbers = #tpu.dot_dimension_numbers<[1], [0], [0], [1], [0, 0, 1, 1], [], []>} : vector<6x128xbf16>, vector<128x128xbf16>, vector<6x128xf32> -> vector<6x128xf32>
    %105 = arith.addf %99, %104 : vector<6x128xf32>
    %106 = arith.maximumf %52, %105 : vector<6x128xf32>
    %c0_174 = arith.constant 0 : index
    %c1_175 = arith.constant 1 : index
    %c0_176 = arith.constant 0 : index
    %c0_177 = arith.constant 0 : index
    %c0_178 = arith.constant 0 : index
    %107 = vector.load %arg1[%c0_174, %c1_175, %c0_176, %c0_177, %c0_178] : memref<1x2x2x12x128xbf16, #tpu.memory_space<vmem>>, vector<1x1x1x6x128xbf16>
    %108 = vector.shape_cast %107 : vector<1x1x1x6x128xbf16> to vector<6x128xbf16>
    %c0_179 = arith.constant 0 : index
    %c0_180 = arith.constant 0 : index
    %c0_181 = arith.constant 0 : index
    %c0_182 = arith.constant 0 : index
    %109 = vector.load %arg2[%c0_179, %c0_180, %c0_181, %c0_182] : memref<3x3x128x128xbf16, #tpu.memory_space<vmem>>, vector<1x1x128x128xbf16>
    %110 = vector.shape_cast %109 : vector<1x1x128x128xbf16> to vector<128x128xbf16>
    %cst_183 = arith.constant dense<0.000000e+00> : vector<6x128xf32>
    %111 = tpu.matmul %108, %110, %cst_183 {dimension_numbers = #tpu.dot_dimension_numbers<[1], [0], [0], [1], [0, 0, 1, 1], [], []>} : vector<6x128xbf16>, vector<128x128xbf16>, vector<6x128xf32> -> vector<6x128xf32>
    %c0_184 = arith.constant 0 : index
    %c1_185 = arith.constant 1 : index
    %c1_186 = arith.constant 1 : index
    %c0_187 = arith.constant 0 : index
    %c0_188 = arith.constant 0 : index
    %112 = vector.load %arg1[%c0_184, %c1_185, %c1_186, %c0_187, %c0_188] : memref<1x2x2x12x128xbf16, #tpu.memory_space<vmem>>, vector<1x1x1x6x128xbf16>
    %113 = vector.shape_cast %112 : vector<1x1x1x6x128xbf16> to vector<6x128xbf16>
    %c0_189 = arith.constant 0 : index
    %c1_190 = arith.constant 1 : index
    %c0_191 = arith.constant 0 : index
    %c0_192 = arith.constant 0 : index
    %114 = vector.load %arg2[%c0_189, %c1_190, %c0_191, %c0_192] : memref<3x3x128x128xbf16, #tpu.memory_space<vmem>>, vector<1x1x128x128xbf16>
    %115 = vector.shape_cast %114 : vector<1x1x128x128xbf16> to vector<128x128xbf16>
    %cst_193 = arith.constant dense<0.000000e+00> : vector<6x128xf32>
    %116 = tpu.matmul %113, %115, %cst_193 {dimension_numbers = #tpu.dot_dimension_numbers<[1], [0], [0], [1], [0, 0, 1, 1], [], []>} : vector<6x128xbf16>, vector<128x128xbf16>, vector<6x128xf32> -> vector<6x128xf32>
    %117 = arith.addf %111, %116 : vector<6x128xf32>
    %c0_194 = arith.constant 0 : index
    %c1_195 = arith.constant 1 : index
    %c0_196 = arith.constant 0 : index
    %c1_197 = arith.constant 1 : index
    %c0_198 = arith.constant 0 : index
    %118 = vector.load %arg1[%c0_194, %c1_195, %c0_196, %c1_197, %c0_198] : memref<1x2x2x12x128xbf16, #tpu.memory_space<vmem>>, vector<1x1x1x6x128xbf16>
    %119 = vector.shape_cast %118 : vector<1x1x1x6x128xbf16> to vector<6x128xbf16>
    %c0_199 = arith.constant 0 : index
    %c2_200 = arith.constant 2 : index
    %c0_201 = arith.constant 0 : index
    %c0_202 = arith.constant 0 : index
    %120 = vector.load %arg2[%c0_199, %c2_200, %c0_201, %c0_202] : memref<3x3x128x128xbf16, #tpu.memory_space<vmem>>, vector<1x1x128x128xbf16>
    %121 = vector.shape_cast %120 : vector<1x1x128x128xbf16> to vector<128x128xbf16>
    %cst_203 = arith.constant dense<0.000000e+00> : vector<6x128xf32>
    %122 = tpu.matmul %119, %121, %cst_203 {dimension_numbers = #tpu.dot_dimension_numbers<[1], [0], [0], [1], [0, 0, 1, 1], [], []>} : vector<6x128xbf16>, vector<128x128xbf16>, vector<6x128xf32> -> vector<6x128xf32>
    %123 = arith.addf %117, %122 : vector<6x128xf32>
    %c0_204 = arith.constant 0 : index
    %c0_205 = arith.constant 0 : index
    %c0_206 = arith.constant 0 : index
    %c3_207 = arith.constant 3 : index
    %c0_208 = arith.constant 0 : index
    %124 = vector.load %arg1[%c0_204, %c0_205, %c0_206, %c3_207, %c0_208] : memref<1x2x2x12x128xbf16, #tpu.memory_space<vmem>>, vector<1x1x1x6x128xbf16>
    %125 = vector.shape_cast %124 : vector<1x1x1x6x128xbf16> to vector<6x128xbf16>
    %c1_209 = arith.constant 1 : index
    %c0_210 = arith.constant 0 : index
    %c0_211 = arith.constant 0 : index
    %c0_212 = arith.constant 0 : index
    %126 = vector.load %arg2[%c1_209, %c0_210, %c0_211, %c0_212] : memref<3x3x128x128xbf16, #tpu.memory_space<vmem>>, vector<1x1x128x128xbf16>
    %127 = vector.shape_cast %126 : vector<1x1x128x128xbf16> to vector<128x128xbf16>
    %cst_213 = arith.constant dense<0.000000e+00> : vector<6x128xf32>
    %128 = tpu.matmul %125, %127, %cst_213 {dimension_numbers = #tpu.dot_dimension_numbers<[1], [0], [0], [1], [0, 0, 1, 1], [], []>} : vector<6x128xbf16>, vector<128x128xbf16>, vector<6x128xf32> -> vector<6x128xf32>
    %129 = arith.addf %123, %128 : vector<6x128xf32>
    %c0_214 = arith.constant 0 : index
    %c0_215 = arith.constant 0 : index
    %c1_216 = arith.constant 1 : index
    %c3_217 = arith.constant 3 : index
    %c0_218 = arith.constant 0 : index
    %130 = vector.load %arg1[%c0_214, %c0_215, %c1_216, %c3_217, %c0_218] : memref<1x2x2x12x128xbf16, #tpu.memory_space<vmem>>, vector<1x1x1x6x128xbf16>
    %131 = vector.shape_cast %130 : vector<1x1x1x6x128xbf16> to vector<6x128xbf16>
    %c1_219 = arith.constant 1 : index
    %c1_220 = arith.constant 1 : index
    %c0_221 = arith.constant 0 : index
    %c0_222 = arith.constant 0 : index
    %132 = vector.load %arg2[%c1_219, %c1_220, %c0_221, %c0_222] : memref<3x3x128x128xbf16, #tpu.memory_space<vmem>>, vector<1x1x128x128xbf16>
    %133 = vector.shape_cast %132 : vector<1x1x128x128xbf16> to vector<128x128xbf16>
    %cst_223 = arith.constant dense<0.000000e+00> : vector<6x128xf32>
    %134 = tpu.matmul %131, %133, %cst_223 {dimension_numbers = #tpu.dot_dimension_numbers<[1], [0], [0], [1], [0, 0, 1, 1], [], []>} : vector<6x128xbf16>, vector<128x128xbf16>, vector<6x128xf32> -> vector<6x128xf32>
    %135 = arith.addf %129, %134 : vector<6x128xf32>
    %c0_224 = arith.constant 0 : index
    %c0_225 = arith.constant 0 : index
    %c0_226 = arith.constant 0 : index
    %c4_227 = arith.constant 4 : index
    %c0_228 = arith.constant 0 : index
    %136 = vector.load %arg1[%c0_224, %c0_225, %c0_226, %c4_227, %c0_228] : memref<1x2x2x12x128xbf16, #tpu.memory_space<vmem>>, vector<1x1x1x6x128xbf16>
    %137 = vector.shape_cast %136 : vector<1x1x1x6x128xbf16> to vector<6x128xbf16>
    %c1_229 = arith.constant 1 : index
    %c2_230 = arith.constant 2 : index
    %c0_231 = arith.constant 0 : index
    %c0_232 = arith.constant 0 : index
    %138 = vector.load %arg2[%c1_229, %c2_230, %c0_231, %c0_232] : memref<3x3x128x128xbf16, #tpu.memory_space<vmem>>, vector<1x1x128x128xbf16>
    %139 = vector.shape_cast %138 : vector<1x1x128x128xbf16> to vector<128x128xbf16>
    %cst_233 = arith.constant dense<0.000000e+00> : vector<6x128xf32>
    %140 = tpu.matmul %137, %139, %cst_233 {dimension_numbers = #tpu.dot_dimension_numbers<[1], [0], [0], [1], [0, 0, 1, 1], [], []>} : vector<6x128xbf16>, vector<128x128xbf16>, vector<6x128xf32> -> vector<6x128xf32>
    %141 = arith.addf %135, %140 : vector<6x128xf32>
    %c0_234 = arith.constant 0 : index
    %c1_235 = arith.constant 1 : index
    %c0_236 = arith.constant 0 : index
    %c3_237 = arith.constant 3 : index
    %c0_238 = arith.constant 0 : index
    %142 = vector.load %arg1[%c0_234, %c1_235, %c0_236, %c3_237, %c0_238] : memref<1x2x2x12x128xbf16, #tpu.memory_space<vmem>>, vector<1x1x1x6x128xbf16>
    %143 = vector.shape_cast %142 : vector<1x1x1x6x128xbf16> to vector<6x128xbf16>
    %c2_239 = arith.constant 2 : index
    %c0_240 = arith.constant 0 : index
    %c0_241 = arith.constant 0 : index
    %c0_242 = arith.constant 0 : index
    %144 = vector.load %arg2[%c2_239, %c0_240, %c0_241, %c0_242] : memref<3x3x128x128xbf16, #tpu.memory_space<vmem>>, vector<1x1x128x128xbf16>
    %145 = vector.shape_cast %144 : vector<1x1x128x128xbf16> to vector<128x128xbf16>
    %cst_243 = arith.constant dense<0.000000e+00> : vector<6x128xf32>
    %146 = tpu.matmul %143, %145, %cst_243 {dimension_numbers = #tpu.dot_dimension_numbers<[1], [0], [0], [1], [0, 0, 1, 1], [], []>} : vector<6x128xbf16>, vector<128x128xbf16>, vector<6x128xf32> -> vector<6x128xf32>
    %147 = arith.addf %141, %146 : vector<6x128xf32>
    %c0_244 = arith.constant 0 : index
    %c1_245 = arith.constant 1 : index
    %c1_246 = arith.constant 1 : index
    %c3_247 = arith.constant 3 : index
    %c0_248 = arith.constant 0 : index
    %148 = vector.load %arg1[%c0_244, %c1_245, %c1_246, %c3_247, %c0_248] : memref<1x2x2x12x128xbf16, #tpu.memory_space<vmem>>, vector<1x1x1x6x128xbf16>
    %149 = vector.shape_cast %148 : vector<1x1x1x6x128xbf16> to vector<6x128xbf16>
    %c2_249 = arith.constant 2 : index
    %c1_250 = arith.constant 1 : index
    %c0_251 = arith.constant 0 : index
    %c0_252 = arith.constant 0 : index
    %150 = vector.load %arg2[%c2_249, %c1_250, %c0_251, %c0_252] : memref<3x3x128x128xbf16, #tpu.memory_space<vmem>>, vector<1x1x128x128xbf16>
    %151 = vector.shape_cast %150 : vector<1x1x128x128xbf16> to vector<128x128xbf16>
    %cst_253 = arith.constant dense<0.000000e+00> : vector<6x128xf32>
    %152 = tpu.matmul %149, %151, %cst_253 {dimension_numbers = #tpu.dot_dimension_numbers<[1], [0], [0], [1], [0, 0, 1, 1], [], []>} : vector<6x128xbf16>, vector<128x128xbf16>, vector<6x128xf32> -> vector<6x128xf32>
    %153 = arith.addf %147, %152 : vector<6x128xf32>
    %c0_254 = arith.constant 0 : index
    %c1_255 = arith.constant 1 : index
    %c0_256 = arith.constant 0 : index
    %c4_257 = arith.constant 4 : index
    %c0_258 = arith.constant 0 : index
    %154 = vector.load %arg1[%c0_254, %c1_255, %c0_256, %c4_257, %c0_258] : memref<1x2x2x12x128xbf16, #tpu.memory_space<vmem>>, vector<1x1x1x6x128xbf16>
    %155 = vector.shape_cast %154 : vector<1x1x1x6x128xbf16> to vector<6x128xbf16>
    %c2_259 = arith.constant 2 : index
    %c2_260 = arith.constant 2 : index
    %c0_261 = arith.constant 0 : index
    %c0_262 = arith.constant 0 : index
    %156 = vector.load %arg2[%c2_259, %c2_260, %c0_261, %c0_262] : memref<3x3x128x128xbf16, #tpu.memory_space<vmem>>, vector<1x1x128x128xbf16>
    %157 = vector.shape_cast %156 : vector<1x1x128x128xbf16> to vector<128x128xbf16>
    %cst_263 = arith.constant dense<0.000000e+00> : vector<6x128xf32>
    %158 = tpu.matmul %155, %157, %cst_263 {dimension_numbers = #tpu.dot_dimension_numbers<[1], [0], [0], [1], [0, 0, 1, 1], [], []>} : vector<6x128xbf16>, vector<128x128xbf16>, vector<6x128xf32> -> vector<6x128xf32>
    %159 = arith.addf %153, %158 : vector<6x128xf32>
    %160 = arith.maximumf %106, %159 : vector<6x128xf32>
    %c0_264 = arith.constant 0 : index
    %c1_265 = arith.constant 1 : index
    %c1_266 = arith.constant 1 : index
    %c0_267 = arith.constant 0 : index
    %c0_268 = arith.constant 0 : index
    %161 = vector.load %arg1[%c0_264, %c1_265, %c1_266, %c0_267, %c0_268] : memref<1x2x2x12x128xbf16, #tpu.memory_space<vmem>>, vector<1x1x1x6x128xbf16>
    %162 = vector.shape_cast %161 : vector<1x1x1x6x128xbf16> to vector<6x128xbf16>
    %c0_269 = arith.constant 0 : index
    %c0_270 = arith.constant 0 : index
    %c0_271 = arith.constant 0 : index
    %c0_272 = arith.constant 0 : index
    %163 = vector.load %arg2[%c0_269, %c0_270, %c0_271, %c0_272] : memref<3x3x128x128xbf16, #tpu.memory_space<vmem>>, vector<1x1x128x128xbf16>
    %164 = vector.shape_cast %163 : vector<1x1x128x128xbf16> to vector<128x128xbf16>
    %cst_273 = arith.constant dense<0.000000e+00> : vector<6x128xf32>
    %165 = tpu.matmul %162, %164, %cst_273 {dimension_numbers = #tpu.dot_dimension_numbers<[1], [0], [0], [1], [0, 0, 1, 1], [], []>} : vector<6x128xbf16>, vector<128x128xbf16>, vector<6x128xf32> -> vector<6x128xf32>
    %c0_274 = arith.constant 0 : index
    %c1_275 = arith.constant 1 : index
    %c0_276 = arith.constant 0 : index
    %c1_277 = arith.constant 1 : index
    %c0_278 = arith.constant 0 : index
    %166 = vector.load %arg1[%c0_274, %c1_275, %c0_276, %c1_277, %c0_278] : memref<1x2x2x12x128xbf16, #tpu.memory_space<vmem>>, vector<1x1x1x6x128xbf16>
    %167 = vector.shape_cast %166 : vector<1x1x1x6x128xbf16> to vector<6x128xbf16>
    %c0_279 = arith.constant 0 : index
    %c1_280 = arith.constant 1 : index
    %c0_281 = arith.constant 0 : index
    %c0_282 = arith.constant 0 : index
    %168 = vector.load %arg2[%c0_279, %c1_280, %c0_281, %c0_282] : memref<3x3x128x128xbf16, #tpu.memory_space<vmem>>, vector<1x1x128x128xbf16>
    %169 = vector.shape_cast %168 : vector<1x1x128x128xbf16> to vector<128x128xbf16>
    %cst_283 = arith.constant dense<0.000000e+00> : vector<6x128xf32>
    %170 = tpu.matmul %167, %169, %cst_283 {dimension_numbers = #tpu.dot_dimension_numbers<[1], [0], [0], [1], [0, 0, 1, 1], [], []>} : vector<6x128xbf16>, vector<128x128xbf16>, vector<6x128xf32> -> vector<6x128xf32>
    %171 = arith.addf %165, %170 : vector<6x128xf32>
    %c0_284 = arith.constant 0 : index
    %c1_285 = arith.constant 1 : index
    %c1_286 = arith.constant 1 : index
    %c1_287 = arith.constant 1 : index
    %c0_288 = arith.constant 0 : index
    %172 = vector.load %arg1[%c0_284, %c1_285, %c1_286, %c1_287, %c0_288] : memref<1x2x2x12x128xbf16, #tpu.memory_space<vmem>>, vector<1x1x1x6x128xbf16>
    %173 = vector.shape_cast %172 : vector<1x1x1x6x128xbf16> to vector<6x128xbf16>
    %c0_289 = arith.constant 0 : index
    %c2_290 = arith.constant 2 : index
    %c0_291 = arith.constant 0 : index
    %c0_292 = arith.constant 0 : index
    %174 = vector.load %arg2[%c0_289, %c2_290, %c0_291, %c0_292] : memref<3x3x128x128xbf16, #tpu.memory_space<vmem>>, vector<1x1x128x128xbf16>
    %175 = vector.shape_cast %174 : vector<1x1x128x128xbf16> to vector<128x128xbf16>
    %cst_293 = arith.constant dense<0.000000e+00> : vector<6x128xf32>
    %176 = tpu.matmul %173, %175, %cst_293 {dimension_numbers = #tpu.dot_dimension_numbers<[1], [0], [0], [1], [0, 0, 1, 1], [], []>} : vector<6x128xbf16>, vector<128x128xbf16>, vector<6x128xf32> -> vector<6x128xf32>
    %177 = arith.addf %171, %176 : vector<6x128xf32>
    %c0_294 = arith.constant 0 : index
    %c0_295 = arith.constant 0 : index
    %c1_296 = arith.constant 1 : index
    %c3_297 = arith.constant 3 : index
    %c0_298 = arith.constant 0 : index
    %178 = vector.load %arg1[%c0_294, %c0_295, %c1_296, %c3_297, %c0_298] : memref<1x2x2x12x128xbf16, #tpu.memory_space<vmem>>, vector<1x1x1x6x128xbf16>
    %179 = vector.shape_cast %178 : vector<1x1x1x6x128xbf16> to vector<6x128xbf16>
    %c1_299 = arith.constant 1 : index
    %c0_300 = arith.constant 0 : index
    %c0_301 = arith.constant 0 : index
    %c0_302 = arith.constant 0 : index
    %180 = vector.load %arg2[%c1_299, %c0_300, %c0_301, %c0_302] : memref<3x3x128x128xbf16, #tpu.memory_space<vmem>>, vector<1x1x128x128xbf16>
    %181 = vector.shape_cast %180 : vector<1x1x128x128xbf16> to vector<128x128xbf16>
    %cst_303 = arith.constant dense<0.000000e+00> : vector<6x128xf32>
    %182 = tpu.matmul %179, %181, %cst_303 {dimension_numbers = #tpu.dot_dimension_numbers<[1], [0], [0], [1], [0, 0, 1, 1], [], []>} : vector<6x128xbf16>, vector<128x128xbf16>, vector<6x128xf32> -> vector<6x128xf32>
    %183 = arith.addf %177, %182 : vector<6x128xf32>
    %c0_304 = arith.constant 0 : index
    %c0_305 = arith.constant 0 : index
    %c0_306 = arith.constant 0 : index
    %c4_307 = arith.constant 4 : index
    %c0_308 = arith.constant 0 : index
    %184 = vector.load %arg1[%c0_304, %c0_305, %c0_306, %c4_307, %c0_308] : memref<1x2x2x12x128xbf16, #tpu.memory_space<vmem>>, vector<1x1x1x6x128xbf16>
    %185 = vector.shape_cast %184 : vector<1x1x1x6x128xbf16> to vector<6x128xbf16>
    %c1_309 = arith.constant 1 : index
    %c1_310 = arith.constant 1 : index
    %c0_311 = arith.constant 0 : index
    %c0_312 = arith.constant 0 : index
    %186 = vector.load %arg2[%c1_309, %c1_310, %c0_311, %c0_312] : memref<3x3x128x128xbf16, #tpu.memory_space<vmem>>, vector<1x1x128x128xbf16>
    %187 = vector.shape_cast %186 : vector<1x1x128x128xbf16> to vector<128x128xbf16>
    %cst_313 = arith.constant dense<0.000000e+00> : vector<6x128xf32>
    %188 = tpu.matmul %185, %187, %cst_313 {dimension_numbers = #tpu.dot_dimension_numbers<[1], [0], [0], [1], [0, 0, 1, 1], [], []>} : vector<6x128xbf16>, vector<128x128xbf16>, vector<6x128xf32> -> vector<6x128xf32>
    %189 = arith.addf %183, %188 : vector<6x128xf32>
    %c0_314 = arith.constant 0 : index
    %c0_315 = arith.constant 0 : index
    %c1_316 = arith.constant 1 : index
    %c4_317 = arith.constant 4 : index
    %c0_318 = arith.constant 0 : index
    %190 = vector.load %arg1[%c0_314, %c0_315, %c1_316, %c4_317, %c0_318] : memref<1x2x2x12x128xbf16, #tpu.memory_space<vmem>>, vector<1x1x1x6x128xbf16>
    %191 = vector.shape_cast %190 : vector<1x1x1x6x128xbf16> to vector<6x128xbf16>
    %c1_319 = arith.constant 1 : index
    %c2_320 = arith.constant 2 : index
    %c0_321 = arith.constant 0 : index
    %c0_322 = arith.constant 0 : index
    %192 = vector.load %arg2[%c1_319, %c2_320, %c0_321, %c0_322] : memref<3x3x128x128xbf16, #tpu.memory_space<vmem>>, vector<1x1x128x128xbf16>
    %193 = vector.shape_cast %192 : vector<1x1x128x128xbf16> to vector<128x128xbf16>
    %cst_323 = arith.constant dense<0.000000e+00> : vector<6x128xf32>
    %194 = tpu.matmul %191, %193, %cst_323 {dimension_numbers = #tpu.dot_dimension_numbers<[1], [0], [0], [1], [0, 0, 1, 1], [], []>} : vector<6x128xbf16>, vector<128x128xbf16>, vector<6x128xf32> -> vector<6x128xf32>
    %195 = arith.addf %189, %194 : vector<6x128xf32>
    %c0_324 = arith.constant 0 : index
    %c1_325 = arith.constant 1 : index
    %c1_326 = arith.constant 1 : index
    %c3_327 = arith.constant 3 : index
    %c0_328 = arith.constant 0 : index
    %196 = vector.load %arg1[%c0_324, %c1_325, %c1_326, %c3_327, %c0_328] : memref<1x2x2x12x128xbf16, #tpu.memory_space<vmem>>, vector<1x1x1x6x128xbf16>
    %197 = vector.shape_cast %196 : vector<1x1x1x6x128xbf16> to vector<6x128xbf16>
    %c2_329 = arith.constant 2 : index
    %c0_330 = arith.constant 0 : index
    %c0_331 = arith.constant 0 : index
    %c0_332 = arith.constant 0 : index
    %198 = vector.load %arg2[%c2_329, %c0_330, %c0_331, %c0_332] : memref<3x3x128x128xbf16, #tpu.memory_space<vmem>>, vector<1x1x128x128xbf16>
    %199 = vector.shape_cast %198 : vector<1x1x128x128xbf16> to vector<128x128xbf16>
    %cst_333 = arith.constant dense<0.000000e+00> : vector<6x128xf32>
    %200 = tpu.matmul %197, %199, %cst_333 {dimension_numbers = #tpu.dot_dimension_numbers<[1], [0], [0], [1], [0, 0, 1, 1], [], []>} : vector<6x128xbf16>, vector<128x128xbf16>, vector<6x128xf32> -> vector<6x128xf32>
    %201 = arith.addf %195, %200 : vector<6x128xf32>
    %c0_334 = arith.constant 0 : index
    %c1_335 = arith.constant 1 : index
    %c0_336 = arith.constant 0 : index
    %c4_337 = arith.constant 4 : index
    %c0_338 = arith.constant 0 : index
    %202 = vector.load %arg1[%c0_334, %c1_335, %c0_336, %c4_337, %c0_338] : memref<1x2x2x12x128xbf16, #tpu.memory_space<vmem>>, vector<1x1x1x6x128xbf16>
    %203 = vector.shape_cast %202 : vector<1x1x1x6x128xbf16> to vector<6x128xbf16>
    %c2_339 = arith.constant 2 : index
    %c1_340 = arith.constant 1 : index
    %c0_341 = arith.constant 0 : index
    %c0_342 = arith.constant 0 : index
    %204 = vector.load %arg2[%c2_339, %c1_340, %c0_341, %c0_342] : memref<3x3x128x128xbf16, #tpu.memory_space<vmem>>, vector<1x1x128x128xbf16>
    %205 = vector.shape_cast %204 : vector<1x1x128x128xbf16> to vector<128x128xbf16>
    %cst_343 = arith.constant dense<0.000000e+00> : vector<6x128xf32>
    %206 = tpu.matmul %203, %205, %cst_343 {dimension_numbers = #tpu.dot_dimension_numbers<[1], [0], [0], [1], [0, 0, 1, 1], [], []>} : vector<6x128xbf16>, vector<128x128xbf16>, vector<6x128xf32> -> vector<6x128xf32>
    %207 = arith.addf %201, %206 : vector<6x128xf32>
    %c0_344 = arith.constant 0 : index
    %c1_345 = arith.constant 1 : index
    %c1_346 = arith.constant 1 : index
    %c4_347 = arith.constant 4 : index
    %c0_348 = arith.constant 0 : index
    %208 = vector.load %arg1[%c0_344, %c1_345, %c1_346, %c4_347, %c0_348] : memref<1x2x2x12x128xbf16, #tpu.memory_space<vmem>>, vector<1x1x1x6x128xbf16>
    %209 = vector.shape_cast %208 : vector<1x1x1x6x128xbf16> to vector<6x128xbf16>
    %c2_349 = arith.constant 2 : index
    %c2_350 = arith.constant 2 : index
    %c0_351 = arith.constant 0 : index
    %c0_352 = arith.constant 0 : index
    %210 = vector.load %arg2[%c2_349, %c2_350, %c0_351, %c0_352] : memref<3x3x128x128xbf16, #tpu.memory_space<vmem>>, vector<1x1x128x128xbf16>
    %211 = vector.shape_cast %210 : vector<1x1x128x128xbf16> to vector<128x128xbf16>
    %cst_353 = arith.constant dense<0.000000e+00> : vector<6x128xf32>
    %212 = tpu.matmul %209, %211, %cst_353 {dimension_numbers = #tpu.dot_dimension_numbers<[1], [0], [0], [1], [0, 0, 1, 1], [], []>} : vector<6x128xbf16>, vector<128x128xbf16>, vector<6x128xf32> -> vector<6x128xf32>
    %213 = arith.addf %207, %212 : vector<6x128xf32>
    %214 = arith.maximumf %160, %213 : vector<6x128xf32>
    %c0_354 = arith.constant 0 : index
    %c0_355 = arith.constant 0 : index
    %215 = vector.load %arg3[%c0_354, %c0_355] : memref<1x128xf32, #tpu.memory_space<vmem>>, vector<1x128xf32>
    %216 = vector.broadcast %215 : vector<1x128xf32> to vector<6x128xf32>
    %217 = arith.addf %214, %216 : vector<6x128xf32>
    %cst_356 = arith.constant 0.000000e+00 : f32
    %218 = vector.broadcast %cst_356 : f32 to vector<6x128xf32>
    %219 = arith.maximumf %217, %218 : vector<6x128xf32>
    %220 = arith.truncf %219 : vector<6x128xf32> to vector<6x128xbf16>
    %c0_357 = arith.constant 0 : index
    %c0_358 = arith.constant 0 : index
    %c0_359 = arith.constant 0 : index
    %221 = vector.load %arg4[%c0_357, %c0_358, %c0_359] : memref<1x6x128xbf16, #tpu.memory_space<vmem>>, vector<1x6x128xbf16>
    %222 = vector.shape_cast %221 : vector<1x6x128xbf16> to vector<6x128xbf16>
    %223 = vector.shape_cast %220 : vector<6x128xbf16> to vector<1x6x128xbf16>
    tpu.vector_store %arg4[%c0_357, %c0_358, %c0_359], %223 {strides = array<i32>} : memref<1x6x128xbf16, #tpu.memory_space<vmem>>, vector<1x6x128xbf16>,
    return
  }
  func.func @transform_0(%arg0: i32) -> (i32, i32, i32, i32, i32) {
    %c0_i32 = arith.constant 0 : i32
    %c0_i32_0 = arith.constant 0 : i32
    %c0_i32_1 = arith.constant 0 : i32
    %c0_i32_2 = arith.constant 0 : i32
    %c0_i32_3 = arith.constant 0 : i32
    return %arg0, %c0_i32, %c0_i32_0, %c0_i32_1, %c0_i32_2 : i32, i32, i32, i32, i32
  }
  func.func @transform_1(%arg0: i32) -> (i32, i32, i32, i32) {
    %c0_i32 = arith.constant 0 : i32
    %c0_i32_0 = arith.constant 0 : i32
    %c0_i32_1 = arith.constant 0 : i32
    %c0_i32_2 = arith.constant 0 : i32
    %c0_i32_3 = arith.constant 0 : i32
    return %c0_i32, %c0_i32_0, %c0_i32_1, %c0_i32_2 : i32, i32, i32, i32
  }
  func.func @transform_2(%arg0: i32) -> (i32, i32) {
    %c0_i32 = arith.constant 0 : i32
    %c0_i32_0 = arith.constant 0 : i32
    %c0_i32_1 = arith.constant 0 : i32
    return %c0_i32, %c0_i32_0 : i32, i32
  }
  func.func @transform_3(%arg0: i32) -> (i32, i32, i32) {
    %c0_i32 = arith.constant 0 : i32
    %c0_i32_0 = arith.constant 0 : i32
    %c0_i32_1 = arith.constant 0 : i32
    return %arg0, %c0_i32, %c0_i32_0 : i32, i32, i32
  }
}

module attributes {stable_mosaic.version = 11 : i64} {
  func.func @conv_pool_relu_kernel(%arg0: i32, %arg1: memref<1x2x2x6x128xbf16, #tpu.memory_space<vmem>>, %arg2: memref<3x3x128x256xbf16, #tpu.memory_space<vmem>>, %arg3: memref<1x256xf32, #tpu.memory_space<vmem>>, %arg4: memref<1x2x256xbf16, #tpu.memory_space<vmem>>) attributes {dimension_semantics = [#tpu.dimension_semantics<parallel>], iteration_bounds = array<i64: 2>, scalar_prefetch = 0 : i64, scratch_operands = 0 : i64, tpu.core_type = #tpu.core_type<tc>, window_params = [{transform_indices = @transform_0, window_bounds = array<i64: 1, 2, 2, 6, 128>}, {pipeline_mode = #tpu.pipeline_mode<synchronous>, transform_indices = @transform_1, window_bounds = array<i64: 3, 3, 128, 256>}, {pipeline_mode = #tpu.pipeline_mode<synchronous>, transform_indices = @transform_2, window_bounds = array<i64: 1, 256>}, {transform_indices = @transform_3, window_bounds = array<i64: 1, 2, 256>}]} {
    %c0 = arith.constant 0 : index
    %c0_0 = arith.constant 0 : index
    %c0_1 = arith.constant 0 : index
    %c0_2 = arith.constant 0 : index
    %c0_3 = arith.constant 0 : index
    %0 = vector.load %arg1[%c0, %c0_0, %c0_1, %c0_2, %c0_3] : memref<1x2x2x6x128xbf16, #tpu.memory_space<vmem>>, vector<1x1x1x2x128xbf16>
    %1 = vector.shape_cast %0 : vector<1x1x1x2x128xbf16> to vector<2x128xbf16>
    %c0_4 = arith.constant 0 : index
    %c0_5 = arith.constant 0 : index
    %c0_6 = arith.constant 0 : index
    %c0_7 = arith.constant 0 : index
    %2 = vector.load %arg2[%c0_4, %c0_5, %c0_6, %c0_7] : memref<3x3x128x256xbf16, #tpu.memory_space<vmem>>, vector<1x1x128x256xbf16>
    %3 = vector.shape_cast %2 : vector<1x1x128x256xbf16> to vector<128x256xbf16>
    %cst = arith.constant dense<0.000000e+00> : vector<2x256xf32>
    %4 = tpu.matmul %1, %3, %cst {dimension_numbers = #tpu.dot_dimension_numbers<[1], [0], [0], [1], [0, 0, 1, 1], [], []>} : vector<2x128xbf16>, vector<128x256xbf16>, vector<2x256xf32> -> vector<2x256xf32>
    %c0_8 = arith.constant 0 : index
    %c0_9 = arith.constant 0 : index
    %c1 = arith.constant 1 : index
    %c0_10 = arith.constant 0 : index
    %c0_11 = arith.constant 0 : index
    %5 = vector.load %arg1[%c0_8, %c0_9, %c1, %c0_10, %c0_11] : memref<1x2x2x6x128xbf16, #tpu.memory_space<vmem>>, vector<1x1x1x2x128xbf16>
    %6 = vector.shape_cast %5 : vector<1x1x1x2x128xbf16> to vector<2x128xbf16>
    %c0_12 = arith.constant 0 : index
    %c1_13 = arith.constant 1 : index
    %c0_14 = arith.constant 0 : index
    %c0_15 = arith.constant 0 : index
    %7 = vector.load %arg2[%c0_12, %c1_13, %c0_14, %c0_15] : memref<3x3x128x256xbf16, #tpu.memory_space<vmem>>, vector<1x1x128x256xbf16>
    %8 = vector.shape_cast %7 : vector<1x1x128x256xbf16> to vector<128x256xbf16>
    %cst_16 = arith.constant dense<0.000000e+00> : vector<2x256xf32>
    %9 = tpu.matmul %6, %8, %cst_16 {dimension_numbers = #tpu.dot_dimension_numbers<[1], [0], [0], [1], [0, 0, 1, 1], [], []>} : vector<2x128xbf16>, vector<128x256xbf16>, vector<2x256xf32> -> vector<2x256xf32>
    %10 = arith.addf %4, %9 : vector<2x256xf32>
    %c0_17 = arith.constant 0 : index
    %c0_18 = arith.constant 0 : index
    %c0_19 = arith.constant 0 : index
    %c1_20 = arith.constant 1 : index
    %c0_21 = arith.constant 0 : index
    %11 = vector.load %arg1[%c0_17, %c0_18, %c0_19, %c1_20, %c0_21] : memref<1x2x2x6x128xbf16, #tpu.memory_space<vmem>>, vector<1x1x1x2x128xbf16>
    %12 = vector.shape_cast %11 : vector<1x1x1x2x128xbf16> to vector<2x128xbf16>
    %c0_22 = arith.constant 0 : index
    %c2 = arith.constant 2 : index
    %c0_23 = arith.constant 0 : index
    %c0_24 = arith.constant 0 : index
    %13 = vector.load %arg2[%c0_22, %c2, %c0_23, %c0_24] : memref<3x3x128x256xbf16, #tpu.memory_space<vmem>>, vector<1x1x128x256xbf16>
    %14 = vector.shape_cast %13 : vector<1x1x128x256xbf16> to vector<128x256xbf16>
    %cst_25 = arith.constant dense<0.000000e+00> : vector<2x256xf32>
    %15 = tpu.matmul %12, %14, %cst_25 {dimension_numbers = #tpu.dot_dimension_numbers<[1], [0], [0], [1], [0, 0, 1, 1], [], []>} : vector<2x128xbf16>, vector<128x256xbf16>, vector<2x256xf32> -> vector<2x256xf32>
    %16 = arith.addf %10, %15 : vector<2x256xf32>
    %c0_26 = arith.constant 0 : index
    %c1_27 = arith.constant 1 : index
    %c0_28 = arith.constant 0 : index
    %c0_29 = arith.constant 0 : index
    %c0_30 = arith.constant 0 : index
    %17 = vector.load %arg1[%c0_26, %c1_27, %c0_28, %c0_29, %c0_30] : memref<1x2x2x6x128xbf16, #tpu.memory_space<vmem>>, vector<1x1x1x2x128xbf16>
    %18 = vector.shape_cast %17 : vector<1x1x1x2x128xbf16> to vector<2x128xbf16>
    %c1_31 = arith.constant 1 : index
    %c0_32 = arith.constant 0 : index
    %c0_33 = arith.constant 0 : index
    %c0_34 = arith.constant 0 : index
    %19 = vector.load %arg2[%c1_31, %c0_32, %c0_33, %c0_34] : memref<3x3x128x256xbf16, #tpu.memory_space<vmem>>, vector<1x1x128x256xbf16>
    %20 = vector.shape_cast %19 : vector<1x1x128x256xbf16> to vector<128x256xbf16>
    %cst_35 = arith.constant dense<0.000000e+00> : vector<2x256xf32>
    %21 = tpu.matmul %18, %20, %cst_35 {dimension_numbers = #tpu.dot_dimension_numbers<[1], [0], [0], [1], [0, 0, 1, 1], [], []>} : vector<2x128xbf16>, vector<128x256xbf16>, vector<2x256xf32> -> vector<2x256xf32>
    %22 = arith.addf %16, %21 : vector<2x256xf32>
    %c0_36 = arith.constant 0 : index
    %c1_37 = arith.constant 1 : index
    %c1_38 = arith.constant 1 : index
    %c0_39 = arith.constant 0 : index
    %c0_40 = arith.constant 0 : index
    %23 = vector.load %arg1[%c0_36, %c1_37, %c1_38, %c0_39, %c0_40] : memref<1x2x2x6x128xbf16, #tpu.memory_space<vmem>>, vector<1x1x1x2x128xbf16>
    %24 = vector.shape_cast %23 : vector<1x1x1x2x128xbf16> to vector<2x128xbf16>
    %c1_41 = arith.constant 1 : index
    %c1_42 = arith.constant 1 : index
    %c0_43 = arith.constant 0 : index
    %c0_44 = arith.constant 0 : index
    %25 = vector.load %arg2[%c1_41, %c1_42, %c0_43, %c0_44] : memref<3x3x128x256xbf16, #tpu.memory_space<vmem>>, vector<1x1x128x256xbf16>
    %26 = vector.shape_cast %25 : vector<1x1x128x256xbf16> to vector<128x256xbf16>
    %cst_45 = arith.constant dense<0.000000e+00> : vector<2x256xf32>
    %27 = tpu.matmul %24, %26, %cst_45 {dimension_numbers = #tpu.dot_dimension_numbers<[1], [0], [0], [1], [0, 0, 1, 1], [], []>} : vector<2x128xbf16>, vector<128x256xbf16>, vector<2x256xf32> -> vector<2x256xf32>
    %28 = arith.addf %22, %27 : vector<2x256xf32>
    %c0_46 = arith.constant 0 : index
    %c1_47 = arith.constant 1 : index
    %c0_48 = arith.constant 0 : index
    %c1_49 = arith.constant 1 : index
    %c0_50 = arith.constant 0 : index
    %29 = vector.load %arg1[%c0_46, %c1_47, %c0_48, %c1_49, %c0_50] : memref<1x2x2x6x128xbf16, #tpu.memory_space<vmem>>, vector<1x1x1x2x128xbf16>
    %30 = vector.shape_cast %29 : vector<1x1x1x2x128xbf16> to vector<2x128xbf16>
    %c1_51 = arith.constant 1 : index
    %c2_52 = arith.constant 2 : index
    %c0_53 = arith.constant 0 : index
    %c0_54 = arith.constant 0 : index
    %31 = vector.load %arg2[%c1_51, %c2_52, %c0_53, %c0_54] : memref<3x3x128x256xbf16, #tpu.memory_space<vmem>>, vector<1x1x128x256xbf16>
    %32 = vector.shape_cast %31 : vector<1x1x128x256xbf16> to vector<128x256xbf16>
    %cst_55 = arith.constant dense<0.000000e+00> : vector<2x256xf32>
    %33 = tpu.matmul %30, %32, %cst_55 {dimension_numbers = #tpu.dot_dimension_numbers<[1], [0], [0], [1], [0, 0, 1, 1], [], []>} : vector<2x128xbf16>, vector<128x256xbf16>, vector<2x256xf32> -> vector<2x256xf32>
    %34 = arith.addf %28, %33 : vector<2x256xf32>
    %c0_56 = arith.constant 0 : index
    %c0_57 = arith.constant 0 : index
    %c0_58 = arith.constant 0 : index
    %c2_59 = arith.constant 2 : index
    %c0_60 = arith.constant 0 : index
    %35 = vector.load %arg1[%c0_56, %c0_57, %c0_58, %c2_59, %c0_60] : memref<1x2x2x6x128xbf16, #tpu.memory_space<vmem>>, vector<1x1x1x2x128xbf16>
    %36 = vector.shape_cast %35 : vector<1x1x1x2x128xbf16> to vector<2x128xbf16>
    %c2_61 = arith.constant 2 : index
    %c0_62 = arith.constant 0 : index
    %c0_63 = arith.constant 0 : index
    %c0_64 = arith.constant 0 : index
    %37 = vector.load %arg2[%c2_61, %c0_62, %c0_63, %c0_64] : memref<3x3x128x256xbf16, #tpu.memory_space<vmem>>, vector<1x1x128x256xbf16>
    %38 = vector.shape_cast %37 : vector<1x1x128x256xbf16> to vector<128x256xbf16>
    %cst_65 = arith.constant dense<0.000000e+00> : vector<2x256xf32>
    %39 = tpu.matmul %36, %38, %cst_65 {dimension_numbers = #tpu.dot_dimension_numbers<[1], [0], [0], [1], [0, 0, 1, 1], [], []>} : vector<2x128xbf16>, vector<128x256xbf16>, vector<2x256xf32> -> vector<2x256xf32>
    %40 = arith.addf %34, %39 : vector<2x256xf32>
    %c0_66 = arith.constant 0 : index
    %c0_67 = arith.constant 0 : index
    %c1_68 = arith.constant 1 : index
    %c2_69 = arith.constant 2 : index
    %c0_70 = arith.constant 0 : index
    %41 = vector.load %arg1[%c0_66, %c0_67, %c1_68, %c2_69, %c0_70] : memref<1x2x2x6x128xbf16, #tpu.memory_space<vmem>>, vector<1x1x1x2x128xbf16>
    %42 = vector.shape_cast %41 : vector<1x1x1x2x128xbf16> to vector<2x128xbf16>
    %c2_71 = arith.constant 2 : index
    %c1_72 = arith.constant 1 : index
    %c0_73 = arith.constant 0 : index
    %c0_74 = arith.constant 0 : index
    %43 = vector.load %arg2[%c2_71, %c1_72, %c0_73, %c0_74] : memref<3x3x128x256xbf16, #tpu.memory_space<vmem>>, vector<1x1x128x256xbf16>
    %44 = vector.shape_cast %43 : vector<1x1x128x256xbf16> to vector<128x256xbf16>
    %cst_75 = arith.constant dense<0.000000e+00> : vector<2x256xf32>
    %45 = tpu.matmul %42, %44, %cst_75 {dimension_numbers = #tpu.dot_dimension_numbers<[1], [0], [0], [1], [0, 0, 1, 1], [], []>} : vector<2x128xbf16>, vector<128x256xbf16>, vector<2x256xf32> -> vector<2x256xf32>
    %46 = arith.addf %40, %45 : vector<2x256xf32>
    %c0_76 = arith.constant 0 : index
    %c0_77 = arith.constant 0 : index
    %c0_78 = arith.constant 0 : index
    %c3 = arith.constant 3 : index
    %c0_79 = arith.constant 0 : index
    %47 = vector.load %arg1[%c0_76, %c0_77, %c0_78, %c3, %c0_79] : memref<1x2x2x6x128xbf16, #tpu.memory_space<vmem>>, vector<1x1x1x2x128xbf16>
    %48 = vector.shape_cast %47 : vector<1x1x1x2x128xbf16> to vector<2x128xbf16>
    %c2_80 = arith.constant 2 : index
    %c2_81 = arith.constant 2 : index
    %c0_82 = arith.constant 0 : index
    %c0_83 = arith.constant 0 : index
    %49 = vector.load %arg2[%c2_80, %c2_81, %c0_82, %c0_83] : memref<3x3x128x256xbf16, #tpu.memory_space<vmem>>, vector<1x1x128x256xbf16>
    %50 = vector.shape_cast %49 : vector<1x1x128x256xbf16> to vector<128x256xbf16>
    %cst_84 = arith.constant dense<0.000000e+00> : vector<2x256xf32>
    %51 = tpu.matmul %48, %50, %cst_84 {dimension_numbers = #tpu.dot_dimension_numbers<[1], [0], [0], [1], [0, 0, 1, 1], [], []>} : vector<2x128xbf16>, vector<128x256xbf16>, vector<2x256xf32> -> vector<2x256xf32>
    %52 = arith.addf %46, %51 : vector<2x256xf32>
    %c0_85 = arith.constant 0 : index
    %c0_86 = arith.constant 0 : index
    %c1_87 = arith.constant 1 : index
    %c0_88 = arith.constant 0 : index
    %c0_89 = arith.constant 0 : index
    %53 = vector.load %arg1[%c0_85, %c0_86, %c1_87, %c0_88, %c0_89] : memref<1x2x2x6x128xbf16, #tpu.memory_space<vmem>>, vector<1x1x1x2x128xbf16>
    %54 = vector.shape_cast %53 : vector<1x1x1x2x128xbf16> to vector<2x128xbf16>
    %c0_90 = arith.constant 0 : index
    %c0_91 = arith.constant 0 : index
    %c0_92 = arith.constant 0 : index
    %c0_93 = arith.constant 0 : index
    %55 = vector.load %arg2[%c0_90, %c0_91, %c0_92, %c0_93] : memref<3x3x128x256xbf16, #tpu.memory_space<vmem>>, vector<1x1x128x256xbf16>
    %56 = vector.shape_cast %55 : vector<1x1x128x256xbf16> to vector<128x256xbf16>
    %cst_94 = arith.constant dense<0.000000e+00> : vector<2x256xf32>
    %57 = tpu.matmul %54, %56, %cst_94 {dimension_numbers = #tpu.dot_dimension_numbers<[1], [0], [0], [1], [0, 0, 1, 1], [], []>} : vector<2x128xbf16>, vector<128x256xbf16>, vector<2x256xf32> -> vector<2x256xf32>
    %c0_95 = arith.constant 0 : index
    %c0_96 = arith.constant 0 : index
    %c0_97 = arith.constant 0 : index
    %c1_98 = arith.constant 1 : index
    %c0_99 = arith.constant 0 : index
    %58 = vector.load %arg1[%c0_95, %c0_96, %c0_97, %c1_98, %c0_99] : memref<1x2x2x6x128xbf16, #tpu.memory_space<vmem>>, vector<1x1x1x2x128xbf16>
    %59 = vector.shape_cast %58 : vector<1x1x1x2x128xbf16> to vector<2x128xbf16>
    %c0_100 = arith.constant 0 : index
    %c1_101 = arith.constant 1 : index
    %c0_102 = arith.constant 0 : index
    %c0_103 = arith.constant 0 : index
    %60 = vector.load %arg2[%c0_100, %c1_101, %c0_102, %c0_103] : memref<3x3x128x256xbf16, #tpu.memory_space<vmem>>, vector<1x1x128x256xbf16>
    %61 = vector.shape_cast %60 : vector<1x1x128x256xbf16> to vector<128x256xbf16>
    %cst_104 = arith.constant dense<0.000000e+00> : vector<2x256xf32>
    %62 = tpu.matmul %59, %61, %cst_104 {dimension_numbers = #tpu.dot_dimension_numbers<[1], [0], [0], [1], [0, 0, 1, 1], [], []>} : vector<2x128xbf16>, vector<128x256xbf16>, vector<2x256xf32> -> vector<2x256xf32>
    %63 = arith.addf %57, %62 : vector<2x256xf32>
    %c0_105 = arith.constant 0 : index
    %c0_106 = arith.constant 0 : index
    %c1_107 = arith.constant 1 : index
    %c1_108 = arith.constant 1 : index
    %c0_109 = arith.constant 0 : index
    %64 = vector.load %arg1[%c0_105, %c0_106, %c1_107, %c1_108, %c0_109] : memref<1x2x2x6x128xbf16, #tpu.memory_space<vmem>>, vector<1x1x1x2x128xbf16>
    %65 = vector.shape_cast %64 : vector<1x1x1x2x128xbf16> to vector<2x128xbf16>
    %c0_110 = arith.constant 0 : index
    %c2_111 = arith.constant 2 : index
    %c0_112 = arith.constant 0 : index
    %c0_113 = arith.constant 0 : index
    %66 = vector.load %arg2[%c0_110, %c2_111, %c0_112, %c0_113] : memref<3x3x128x256xbf16, #tpu.memory_space<vmem>>, vector<1x1x128x256xbf16>
    %67 = vector.shape_cast %66 : vector<1x1x128x256xbf16> to vector<128x256xbf16>
    %cst_114 = arith.constant dense<0.000000e+00> : vector<2x256xf32>
    %68 = tpu.matmul %65, %67, %cst_114 {dimension_numbers = #tpu.dot_dimension_numbers<[1], [0], [0], [1], [0, 0, 1, 1], [], []>} : vector<2x128xbf16>, vector<128x256xbf16>, vector<2x256xf32> -> vector<2x256xf32>
    %69 = arith.addf %63, %68 : vector<2x256xf32>
    %c0_115 = arith.constant 0 : index
    %c1_116 = arith.constant 1 : index
    %c1_117 = arith.constant 1 : index
    %c0_118 = arith.constant 0 : index
    %c0_119 = arith.constant 0 : index
    %70 = vector.load %arg1[%c0_115, %c1_116, %c1_117, %c0_118, %c0_119] : memref<1x2x2x6x128xbf16, #tpu.memory_space<vmem>>, vector<1x1x1x2x128xbf16>
    %71 = vector.shape_cast %70 : vector<1x1x1x2x128xbf16> to vector<2x128xbf16>
    %c1_120 = arith.constant 1 : index
    %c0_121 = arith.constant 0 : index
    %c0_122 = arith.constant 0 : index
    %c0_123 = arith.constant 0 : index
    %72 = vector.load %arg2[%c1_120, %c0_121, %c0_122, %c0_123] : memref<3x3x128x256xbf16, #tpu.memory_space<vmem>>, vector<1x1x128x256xbf16>
    %73 = vector.shape_cast %72 : vector<1x1x128x256xbf16> to vector<128x256xbf16>
    %cst_124 = arith.constant dense<0.000000e+00> : vector<2x256xf32>
    %74 = tpu.matmul %71, %73, %cst_124 {dimension_numbers = #tpu.dot_dimension_numbers<[1], [0], [0], [1], [0, 0, 1, 1], [], []>} : vector<2x128xbf16>, vector<128x256xbf16>, vector<2x256xf32> -> vector<2x256xf32>
    %75 = arith.addf %69, %74 : vector<2x256xf32>
    %c0_125 = arith.constant 0 : index
    %c1_126 = arith.constant 1 : index
    %c0_127 = arith.constant 0 : index
    %c1_128 = arith.constant 1 : index
    %c0_129 = arith.constant 0 : index
    %76 = vector.load %arg1[%c0_125, %c1_126, %c0_127, %c1_128, %c0_129] : memref<1x2x2x6x128xbf16, #tpu.memory_space<vmem>>, vector<1x1x1x2x128xbf16>
    %77 = vector.shape_cast %76 : vector<1x1x1x2x128xbf16> to vector<2x128xbf16>
    %c1_130 = arith.constant 1 : index
    %c1_131 = arith.constant 1 : index
    %c0_132 = arith.constant 0 : index
    %c0_133 = arith.constant 0 : index
    %78 = vector.load %arg2[%c1_130, %c1_131, %c0_132, %c0_133] : memref<3x3x128x256xbf16, #tpu.memory_space<vmem>>, vector<1x1x128x256xbf16>
    %79 = vector.shape_cast %78 : vector<1x1x128x256xbf16> to vector<128x256xbf16>
    %cst_134 = arith.constant dense<0.000000e+00> : vector<2x256xf32>
    %80 = tpu.matmul %77, %79, %cst_134 {dimension_numbers = #tpu.dot_dimension_numbers<[1], [0], [0], [1], [0, 0, 1, 1], [], []>} : vector<2x128xbf16>, vector<128x256xbf16>, vector<2x256xf32> -> vector<2x256xf32>
    %81 = arith.addf %75, %80 : vector<2x256xf32>
    %c0_135 = arith.constant 0 : index
    %c1_136 = arith.constant 1 : index
    %c1_137 = arith.constant 1 : index
    %c1_138 = arith.constant 1 : index
    %c0_139 = arith.constant 0 : index
    %82 = vector.load %arg1[%c0_135, %c1_136, %c1_137, %c1_138, %c0_139] : memref<1x2x2x6x128xbf16, #tpu.memory_space<vmem>>, vector<1x1x1x2x128xbf16>
    %83 = vector.shape_cast %82 : vector<1x1x1x2x128xbf16> to vector<2x128xbf16>
    %c1_140 = arith.constant 1 : index
    %c2_141 = arith.constant 2 : index
    %c0_142 = arith.constant 0 : index
    %c0_143 = arith.constant 0 : index
    %84 = vector.load %arg2[%c1_140, %c2_141, %c0_142, %c0_143] : memref<3x3x128x256xbf16, #tpu.memory_space<vmem>>, vector<1x1x128x256xbf16>
    %85 = vector.shape_cast %84 : vector<1x1x128x256xbf16> to vector<128x256xbf16>
    %cst_144 = arith.constant dense<0.000000e+00> : vector<2x256xf32>
    %86 = tpu.matmul %83, %85, %cst_144 {dimension_numbers = #tpu.dot_dimension_numbers<[1], [0], [0], [1], [0, 0, 1, 1], [], []>} : vector<2x128xbf16>, vector<128x256xbf16>, vector<2x256xf32> -> vector<2x256xf32>
    %87 = arith.addf %81, %86 : vector<2x256xf32>
    %c0_145 = arith.constant 0 : index
    %c0_146 = arith.constant 0 : index
    %c1_147 = arith.constant 1 : index
    %c2_148 = arith.constant 2 : index
    %c0_149 = arith.constant 0 : index
    %88 = vector.load %arg1[%c0_145, %c0_146, %c1_147, %c2_148, %c0_149] : memref<1x2x2x6x128xbf16, #tpu.memory_space<vmem>>, vector<1x1x1x2x128xbf16>
    %89 = vector.shape_cast %88 : vector<1x1x1x2x128xbf16> to vector<2x128xbf16>
    %c2_150 = arith.constant 2 : index
    %c0_151 = arith.constant 0 : index
    %c0_152 = arith.constant 0 : index
    %c0_153 = arith.constant 0 : index
    %90 = vector.load %arg2[%c2_150, %c0_151, %c0_152, %c0_153] : memref<3x3x128x256xbf16, #tpu.memory_space<vmem>>, vector<1x1x128x256xbf16>
    %91 = vector.shape_cast %90 : vector<1x1x128x256xbf16> to vector<128x256xbf16>
    %cst_154 = arith.constant dense<0.000000e+00> : vector<2x256xf32>
    %92 = tpu.matmul %89, %91, %cst_154 {dimension_numbers = #tpu.dot_dimension_numbers<[1], [0], [0], [1], [0, 0, 1, 1], [], []>} : vector<2x128xbf16>, vector<128x256xbf16>, vector<2x256xf32> -> vector<2x256xf32>
    %93 = arith.addf %87, %92 : vector<2x256xf32>
    %c0_155 = arith.constant 0 : index
    %c0_156 = arith.constant 0 : index
    %c0_157 = arith.constant 0 : index
    %c3_158 = arith.constant 3 : index
    %c0_159 = arith.constant 0 : index
    %94 = vector.load %arg1[%c0_155, %c0_156, %c0_157, %c3_158, %c0_159] : memref<1x2x2x6x128xbf16, #tpu.memory_space<vmem>>, vector<1x1x1x2x128xbf16>
    %95 = vector.shape_cast %94 : vector<1x1x1x2x128xbf16> to vector<2x128xbf16>
    %c2_160 = arith.constant 2 : index
    %c1_161 = arith.constant 1 : index
    %c0_162 = arith.constant 0 : index
    %c0_163 = arith.constant 0 : index
    %96 = vector.load %arg2[%c2_160, %c1_161, %c0_162, %c0_163] : memref<3x3x128x256xbf16, #tpu.memory_space<vmem>>, vector<1x1x128x256xbf16>
    %97 = vector.shape_cast %96 : vector<1x1x128x256xbf16> to vector<128x256xbf16>
    %cst_164 = arith.constant dense<0.000000e+00> : vector<2x256xf32>
    %98 = tpu.matmul %95, %97, %cst_164 {dimension_numbers = #tpu.dot_dimension_numbers<[1], [0], [0], [1], [0, 0, 1, 1], [], []>} : vector<2x128xbf16>, vector<128x256xbf16>, vector<2x256xf32> -> vector<2x256xf32>
    %99 = arith.addf %93, %98 : vector<2x256xf32>
    %c0_165 = arith.constant 0 : index
    %c0_166 = arith.constant 0 : index
    %c1_167 = arith.constant 1 : index
    %c3_168 = arith.constant 3 : index
    %c0_169 = arith.constant 0 : index
    %100 = vector.load %arg1[%c0_165, %c0_166, %c1_167, %c3_168, %c0_169] : memref<1x2x2x6x128xbf16, #tpu.memory_space<vmem>>, vector<1x1x1x2x128xbf16>
    %101 = vector.shape_cast %100 : vector<1x1x1x2x128xbf16> to vector<2x128xbf16>
    %c2_170 = arith.constant 2 : index
    %c2_171 = arith.constant 2 : index
    %c0_172 = arith.constant 0 : index
    %c0_173 = arith.constant 0 : index
    %102 = vector.load %arg2[%c2_170, %c2_171, %c0_172, %c0_173] : memref<3x3x128x256xbf16, #tpu.memory_space<vmem>>, vector<1x1x128x256xbf16>
    %103 = vector.shape_cast %102 : vector<1x1x128x256xbf16> to vector<128x256xbf16>
    %cst_174 = arith.constant dense<0.000000e+00> : vector<2x256xf32>
    %104 = tpu.matmul %101, %103, %cst_174 {dimension_numbers = #tpu.dot_dimension_numbers<[1], [0], [0], [1], [0, 0, 1, 1], [], []>} : vector<2x128xbf16>, vector<128x256xbf16>, vector<2x256xf32> -> vector<2x256xf32>
    %105 = arith.addf %99, %104 : vector<2x256xf32>
    %106 = arith.maximumf %52, %105 : vector<2x256xf32>
    %c0_175 = arith.constant 0 : index
    %c1_176 = arith.constant 1 : index
    %c0_177 = arith.constant 0 : index
    %c0_178 = arith.constant 0 : index
    %c0_179 = arith.constant 0 : index
    %107 = vector.load %arg1[%c0_175, %c1_176, %c0_177, %c0_178, %c0_179] : memref<1x2x2x6x128xbf16, #tpu.memory_space<vmem>>, vector<1x1x1x2x128xbf16>
    %108 = vector.shape_cast %107 : vector<1x1x1x2x128xbf16> to vector<2x128xbf16>
    %c0_180 = arith.constant 0 : index
    %c0_181 = arith.constant 0 : index
    %c0_182 = arith.constant 0 : index
    %c0_183 = arith.constant 0 : index
    %109 = vector.load %arg2[%c0_180, %c0_181, %c0_182, %c0_183] : memref<3x3x128x256xbf16, #tpu.memory_space<vmem>>, vector<1x1x128x256xbf16>
    %110 = vector.shape_cast %109 : vector<1x1x128x256xbf16> to vector<128x256xbf16>
    %cst_184 = arith.constant dense<0.000000e+00> : vector<2x256xf32>
    %111 = tpu.matmul %108, %110, %cst_184 {dimension_numbers = #tpu.dot_dimension_numbers<[1], [0], [0], [1], [0, 0, 1, 1], [], []>} : vector<2x128xbf16>, vector<128x256xbf16>, vector<2x256xf32> -> vector<2x256xf32>
    %c0_185 = arith.constant 0 : index
    %c1_186 = arith.constant 1 : index
    %c1_187 = arith.constant 1 : index
    %c0_188 = arith.constant 0 : index
    %c0_189 = arith.constant 0 : index
    %112 = vector.load %arg1[%c0_185, %c1_186, %c1_187, %c0_188, %c0_189] : memref<1x2x2x6x128xbf16, #tpu.memory_space<vmem>>, vector<1x1x1x2x128xbf16>
    %113 = vector.shape_cast %112 : vector<1x1x1x2x128xbf16> to vector<2x128xbf16>
    %c0_190 = arith.constant 0 : index
    %c1_191 = arith.constant 1 : index
    %c0_192 = arith.constant 0 : index
    %c0_193 = arith.constant 0 : index
    %114 = vector.load %arg2[%c0_190, %c1_191, %c0_192, %c0_193] : memref<3x3x128x256xbf16, #tpu.memory_space<vmem>>, vector<1x1x128x256xbf16>
    %115 = vector.shape_cast %114 : vector<1x1x128x256xbf16> to vector<128x256xbf16>
    %cst_194 = arith.constant dense<0.000000e+00> : vector<2x256xf32>
    %116 = tpu.matmul %113, %115, %cst_194 {dimension_numbers = #tpu.dot_dimension_numbers<[1], [0], [0], [1], [0, 0, 1, 1], [], []>} : vector<2x128xbf16>, vector<128x256xbf16>, vector<2x256xf32> -> vector<2x256xf32>
    %117 = arith.addf %111, %116 : vector<2x256xf32>
    %c0_195 = arith.constant 0 : index
    %c1_196 = arith.constant 1 : index
    %c0_197 = arith.constant 0 : index
    %c1_198 = arith.constant 1 : index
    %c0_199 = arith.constant 0 : index
    %118 = vector.load %arg1[%c0_195, %c1_196, %c0_197, %c1_198, %c0_199] : memref<1x2x2x6x128xbf16, #tpu.memory_space<vmem>>, vector<1x1x1x2x128xbf16>
    %119 = vector.shape_cast %118 : vector<1x1x1x2x128xbf16> to vector<2x128xbf16>
    %c0_200 = arith.constant 0 : index
    %c2_201 = arith.constant 2 : index
    %c0_202 = arith.constant 0 : index
    %c0_203 = arith.constant 0 : index
    %120 = vector.load %arg2[%c0_200, %c2_201, %c0_202, %c0_203] : memref<3x3x128x256xbf16, #tpu.memory_space<vmem>>, vector<1x1x128x256xbf16>
    %121 = vector.shape_cast %120 : vector<1x1x128x256xbf16> to vector<128x256xbf16>
    %cst_204 = arith.constant dense<0.000000e+00> : vector<2x256xf32>
    %122 = tpu.matmul %119, %121, %cst_204 {dimension_numbers = #tpu.dot_dimension_numbers<[1], [0], [0], [1], [0, 0, 1, 1], [], []>} : vector<2x128xbf16>, vector<128x256xbf16>, vector<2x256xf32> -> vector<2x256xf32>
    %123 = arith.addf %117, %122 : vector<2x256xf32>
    %c0_205 = arith.constant 0 : index
    %c0_206 = arith.constant 0 : index
    %c0_207 = arith.constant 0 : index
    %c2_208 = arith.constant 2 : index
    %c0_209 = arith.constant 0 : index
    %124 = vector.load %arg1[%c0_205, %c0_206, %c0_207, %c2_208, %c0_209] : memref<1x2x2x6x128xbf16, #tpu.memory_space<vmem>>, vector<1x1x1x2x128xbf16>
    %125 = vector.shape_cast %124 : vector<1x1x1x2x128xbf16> to vector<2x128xbf16>
    %c1_210 = arith.constant 1 : index
    %c0_211 = arith.constant 0 : index
    %c0_212 = arith.constant 0 : index
    %c0_213 = arith.constant 0 : index
    %126 = vector.load %arg2[%c1_210, %c0_211, %c0_212, %c0_213] : memref<3x3x128x256xbf16, #tpu.memory_space<vmem>>, vector<1x1x128x256xbf16>
    %127 = vector.shape_cast %126 : vector<1x1x128x256xbf16> to vector<128x256xbf16>
    %cst_214 = arith.constant dense<0.000000e+00> : vector<2x256xf32>
    %128 = tpu.matmul %125, %127, %cst_214 {dimension_numbers = #tpu.dot_dimension_numbers<[1], [0], [0], [1], [0, 0, 1, 1], [], []>} : vector<2x128xbf16>, vector<128x256xbf16>, vector<2x256xf32> -> vector<2x256xf32>
    %129 = arith.addf %123, %128 : vector<2x256xf32>
    %c0_215 = arith.constant 0 : index
    %c0_216 = arith.constant 0 : index
    %c1_217 = arith.constant 1 : index
    %c2_218 = arith.constant 2 : index
    %c0_219 = arith.constant 0 : index
    %130 = vector.load %arg1[%c0_215, %c0_216, %c1_217, %c2_218, %c0_219] : memref<1x2x2x6x128xbf16, #tpu.memory_space<vmem>>, vector<1x1x1x2x128xbf16>
    %131 = vector.shape_cast %130 : vector<1x1x1x2x128xbf16> to vector<2x128xbf16>
    %c1_220 = arith.constant 1 : index
    %c1_221 = arith.constant 1 : index
    %c0_222 = arith.constant 0 : index
    %c0_223 = arith.constant 0 : index
    %132 = vector.load %arg2[%c1_220, %c1_221, %c0_222, %c0_223] : memref<3x3x128x256xbf16, #tpu.memory_space<vmem>>, vector<1x1x128x256xbf16>
    %133 = vector.shape_cast %132 : vector<1x1x128x256xbf16> to vector<128x256xbf16>
    %cst_224 = arith.constant dense<0.000000e+00> : vector<2x256xf32>
    %134 = tpu.matmul %131, %133, %cst_224 {dimension_numbers = #tpu.dot_dimension_numbers<[1], [0], [0], [1], [0, 0, 1, 1], [], []>} : vector<2x128xbf16>, vector<128x256xbf16>, vector<2x256xf32> -> vector<2x256xf32>
    %135 = arith.addf %129, %134 : vector<2x256xf32>
    %c0_225 = arith.constant 0 : index
    %c0_226 = arith.constant 0 : index
    %c0_227 = arith.constant 0 : index
    %c3_228 = arith.constant 3 : index
    %c0_229 = arith.constant 0 : index
    %136 = vector.load %arg1[%c0_225, %c0_226, %c0_227, %c3_228, %c0_229] : memref<1x2x2x6x128xbf16, #tpu.memory_space<vmem>>, vector<1x1x1x2x128xbf16>
    %137 = vector.shape_cast %136 : vector<1x1x1x2x128xbf16> to vector<2x128xbf16>
    %c1_230 = arith.constant 1 : index
    %c2_231 = arith.constant 2 : index
    %c0_232 = arith.constant 0 : index
    %c0_233 = arith.constant 0 : index
    %138 = vector.load %arg2[%c1_230, %c2_231, %c0_232, %c0_233] : memref<3x3x128x256xbf16, #tpu.memory_space<vmem>>, vector<1x1x128x256xbf16>
    %139 = vector.shape_cast %138 : vector<1x1x128x256xbf16> to vector<128x256xbf16>
    %cst_234 = arith.constant dense<0.000000e+00> : vector<2x256xf32>
    %140 = tpu.matmul %137, %139, %cst_234 {dimension_numbers = #tpu.dot_dimension_numbers<[1], [0], [0], [1], [0, 0, 1, 1], [], []>} : vector<2x128xbf16>, vector<128x256xbf16>, vector<2x256xf32> -> vector<2x256xf32>
    %141 = arith.addf %135, %140 : vector<2x256xf32>
    %c0_235 = arith.constant 0 : index
    %c1_236 = arith.constant 1 : index
    %c0_237 = arith.constant 0 : index
    %c2_238 = arith.constant 2 : index
    %c0_239 = arith.constant 0 : index
    %142 = vector.load %arg1[%c0_235, %c1_236, %c0_237, %c2_238, %c0_239] : memref<1x2x2x6x128xbf16, #tpu.memory_space<vmem>>, vector<1x1x1x2x128xbf16>
    %143 = vector.shape_cast %142 : vector<1x1x1x2x128xbf16> to vector<2x128xbf16>
    %c2_240 = arith.constant 2 : index
    %c0_241 = arith.constant 0 : index
    %c0_242 = arith.constant 0 : index
    %c0_243 = arith.constant 0 : index
    %144 = vector.load %arg2[%c2_240, %c0_241, %c0_242, %c0_243] : memref<3x3x128x256xbf16, #tpu.memory_space<vmem>>, vector<1x1x128x256xbf16>
    %145 = vector.shape_cast %144 : vector<1x1x128x256xbf16> to vector<128x256xbf16>
    %cst_244 = arith.constant dense<0.000000e+00> : vector<2x256xf32>
    %146 = tpu.matmul %143, %145, %cst_244 {dimension_numbers = #tpu.dot_dimension_numbers<[1], [0], [0], [1], [0, 0, 1, 1], [], []>} : vector<2x128xbf16>, vector<128x256xbf16>, vector<2x256xf32> -> vector<2x256xf32>
    %147 = arith.addf %141, %146 : vector<2x256xf32>
    %c0_245 = arith.constant 0 : index
    %c1_246 = arith.constant 1 : index
    %c1_247 = arith.constant 1 : index
    %c2_248 = arith.constant 2 : index
    %c0_249 = arith.constant 0 : index
    %148 = vector.load %arg1[%c0_245, %c1_246, %c1_247, %c2_248, %c0_249] : memref<1x2x2x6x128xbf16, #tpu.memory_space<vmem>>, vector<1x1x1x2x128xbf16>
    %149 = vector.shape_cast %148 : vector<1x1x1x2x128xbf16> to vector<2x128xbf16>
    %c2_250 = arith.constant 2 : index
    %c1_251 = arith.constant 1 : index
    %c0_252 = arith.constant 0 : index
    %c0_253 = arith.constant 0 : index
    %150 = vector.load %arg2[%c2_250, %c1_251, %c0_252, %c0_253] : memref<3x3x128x256xbf16, #tpu.memory_space<vmem>>, vector<1x1x128x256xbf16>
    %151 = vector.shape_cast %150 : vector<1x1x128x256xbf16> to vector<128x256xbf16>
    %cst_254 = arith.constant dense<0.000000e+00> : vector<2x256xf32>
    %152 = tpu.matmul %149, %151, %cst_254 {dimension_numbers = #tpu.dot_dimension_numbers<[1], [0], [0], [1], [0, 0, 1, 1], [], []>} : vector<2x128xbf16>, vector<128x256xbf16>, vector<2x256xf32> -> vector<2x256xf32>
    %153 = arith.addf %147, %152 : vector<2x256xf32>
    %c0_255 = arith.constant 0 : index
    %c1_256 = arith.constant 1 : index
    %c0_257 = arith.constant 0 : index
    %c3_258 = arith.constant 3 : index
    %c0_259 = arith.constant 0 : index
    %154 = vector.load %arg1[%c0_255, %c1_256, %c0_257, %c3_258, %c0_259] : memref<1x2x2x6x128xbf16, #tpu.memory_space<vmem>>, vector<1x1x1x2x128xbf16>
    %155 = vector.shape_cast %154 : vector<1x1x1x2x128xbf16> to vector<2x128xbf16>
    %c2_260 = arith.constant 2 : index
    %c2_261 = arith.constant 2 : index
    %c0_262 = arith.constant 0 : index
    %c0_263 = arith.constant 0 : index
    %156 = vector.load %arg2[%c2_260, %c2_261, %c0_262, %c0_263] : memref<3x3x128x256xbf16, #tpu.memory_space<vmem>>, vector<1x1x128x256xbf16>
    %157 = vector.shape_cast %156 : vector<1x1x128x256xbf16> to vector<128x256xbf16>
    %cst_264 = arith.constant dense<0.000000e+00> : vector<2x256xf32>
    %158 = tpu.matmul %155, %157, %cst_264 {dimension_numbers = #tpu.dot_dimension_numbers<[1], [0], [0], [1], [0, 0, 1, 1], [], []>} : vector<2x128xbf16>, vector<128x256xbf16>, vector<2x256xf32> -> vector<2x256xf32>
    %159 = arith.addf %153, %158 : vector<2x256xf32>
    %160 = arith.maximumf %106, %159 : vector<2x256xf32>
    %c0_265 = arith.constant 0 : index
    %c1_266 = arith.constant 1 : index
    %c1_267 = arith.constant 1 : index
    %c0_268 = arith.constant 0 : index
    %c0_269 = arith.constant 0 : index
    %161 = vector.load %arg1[%c0_265, %c1_266, %c1_267, %c0_268, %c0_269] : memref<1x2x2x6x128xbf16, #tpu.memory_space<vmem>>, vector<1x1x1x2x128xbf16>
    %162 = vector.shape_cast %161 : vector<1x1x1x2x128xbf16> to vector<2x128xbf16>
    %c0_270 = arith.constant 0 : index
    %c0_271 = arith.constant 0 : index
    %c0_272 = arith.constant 0 : index
    %c0_273 = arith.constant 0 : index
    %163 = vector.load %arg2[%c0_270, %c0_271, %c0_272, %c0_273] : memref<3x3x128x256xbf16, #tpu.memory_space<vmem>>, vector<1x1x128x256xbf16>
    %164 = vector.shape_cast %163 : vector<1x1x128x256xbf16> to vector<128x256xbf16>
    %cst_274 = arith.constant dense<0.000000e+00> : vector<2x256xf32>
    %165 = tpu.matmul %162, %164, %cst_274 {dimension_numbers = #tpu.dot_dimension_numbers<[1], [0], [0], [1], [0, 0, 1, 1], [], []>} : vector<2x128xbf16>, vector<128x256xbf16>, vector<2x256xf32> -> vector<2x256xf32>
    %c0_275 = arith.constant 0 : index
    %c1_276 = arith.constant 1 : index
    %c0_277 = arith.constant 0 : index
    %c1_278 = arith.constant 1 : index
    %c0_279 = arith.constant 0 : index
    %166 = vector.load %arg1[%c0_275, %c1_276, %c0_277, %c1_278, %c0_279] : memref<1x2x2x6x128xbf16, #tpu.memory_space<vmem>>, vector<1x1x1x2x128xbf16>
    %167 = vector.shape_cast %166 : vector<1x1x1x2x128xbf16> to vector<2x128xbf16>
    %c0_280 = arith.constant 0 : index
    %c1_281 = arith.constant 1 : index
    %c0_282 = arith.constant 0 : index
    %c0_283 = arith.constant 0 : index
    %168 = vector.load %arg2[%c0_280, %c1_281, %c0_282, %c0_283] : memref<3x3x128x256xbf16, #tpu.memory_space<vmem>>, vector<1x1x128x256xbf16>
    %169 = vector.shape_cast %168 : vector<1x1x128x256xbf16> to vector<128x256xbf16>
    %cst_284 = arith.constant dense<0.000000e+00> : vector<2x256xf32>
    %170 = tpu.matmul %167, %169, %cst_284 {dimension_numbers = #tpu.dot_dimension_numbers<[1], [0], [0], [1], [0, 0, 1, 1], [], []>} : vector<2x128xbf16>, vector<128x256xbf16>, vector<2x256xf32> -> vector<2x256xf32>
    %171 = arith.addf %165, %170 : vector<2x256xf32>
    %c0_285 = arith.constant 0 : index
    %c1_286 = arith.constant 1 : index
    %c1_287 = arith.constant 1 : index
    %c1_288 = arith.constant 1 : index
    %c0_289 = arith.constant 0 : index
    %172 = vector.load %arg1[%c0_285, %c1_286, %c1_287, %c1_288, %c0_289] : memref<1x2x2x6x128xbf16, #tpu.memory_space<vmem>>, vector<1x1x1x2x128xbf16>
    %173 = vector.shape_cast %172 : vector<1x1x1x2x128xbf16> to vector<2x128xbf16>
    %c0_290 = arith.constant 0 : index
    %c2_291 = arith.constant 2 : index
    %c0_292 = arith.constant 0 : index
    %c0_293 = arith.constant 0 : index
    %174 = vector.load %arg2[%c0_290, %c2_291, %c0_292, %c0_293] : memref<3x3x128x256xbf16, #tpu.memory_space<vmem>>, vector<1x1x128x256xbf16>
    %175 = vector.shape_cast %174 : vector<1x1x128x256xbf16> to vector<128x256xbf16>
    %cst_294 = arith.constant dense<0.000000e+00> : vector<2x256xf32>
    %176 = tpu.matmul %173, %175, %cst_294 {dimension_numbers = #tpu.dot_dimension_numbers<[1], [0], [0], [1], [0, 0, 1, 1], [], []>} : vector<2x128xbf16>, vector<128x256xbf16>, vector<2x256xf32> -> vector<2x256xf32>
    %177 = arith.addf %171, %176 : vector<2x256xf32>
    %c0_295 = arith.constant 0 : index
    %c0_296 = arith.constant 0 : index
    %c1_297 = arith.constant 1 : index
    %c2_298 = arith.constant 2 : index
    %c0_299 = arith.constant 0 : index
    %178 = vector.load %arg1[%c0_295, %c0_296, %c1_297, %c2_298, %c0_299] : memref<1x2x2x6x128xbf16, #tpu.memory_space<vmem>>, vector<1x1x1x2x128xbf16>
    %179 = vector.shape_cast %178 : vector<1x1x1x2x128xbf16> to vector<2x128xbf16>
    %c1_300 = arith.constant 1 : index
    %c0_301 = arith.constant 0 : index
    %c0_302 = arith.constant 0 : index
    %c0_303 = arith.constant 0 : index
    %180 = vector.load %arg2[%c1_300, %c0_301, %c0_302, %c0_303] : memref<3x3x128x256xbf16, #tpu.memory_space<vmem>>, vector<1x1x128x256xbf16>
    %181 = vector.shape_cast %180 : vector<1x1x128x256xbf16> to vector<128x256xbf16>
    %cst_304 = arith.constant dense<0.000000e+00> : vector<2x256xf32>
    %182 = tpu.matmul %179, %181, %cst_304 {dimension_numbers = #tpu.dot_dimension_numbers<[1], [0], [0], [1], [0, 0, 1, 1], [], []>} : vector<2x128xbf16>, vector<128x256xbf16>, vector<2x256xf32> -> vector<2x256xf32>
    %183 = arith.addf %177, %182 : vector<2x256xf32>
    %c0_305 = arith.constant 0 : index
    %c0_306 = arith.constant 0 : index
    %c0_307 = arith.constant 0 : index
    %c3_308 = arith.constant 3 : index
    %c0_309 = arith.constant 0 : index
    %184 = vector.load %arg1[%c0_305, %c0_306, %c0_307, %c3_308, %c0_309] : memref<1x2x2x6x128xbf16, #tpu.memory_space<vmem>>, vector<1x1x1x2x128xbf16>
    %185 = vector.shape_cast %184 : vector<1x1x1x2x128xbf16> to vector<2x128xbf16>
    %c1_310 = arith.constant 1 : index
    %c1_311 = arith.constant 1 : index
    %c0_312 = arith.constant 0 : index
    %c0_313 = arith.constant 0 : index
    %186 = vector.load %arg2[%c1_310, %c1_311, %c0_312, %c0_313] : memref<3x3x128x256xbf16, #tpu.memory_space<vmem>>, vector<1x1x128x256xbf16>
    %187 = vector.shape_cast %186 : vector<1x1x128x256xbf16> to vector<128x256xbf16>
    %cst_314 = arith.constant dense<0.000000e+00> : vector<2x256xf32>
    %188 = tpu.matmul %185, %187, %cst_314 {dimension_numbers = #tpu.dot_dimension_numbers<[1], [0], [0], [1], [0, 0, 1, 1], [], []>} : vector<2x128xbf16>, vector<128x256xbf16>, vector<2x256xf32> -> vector<2x256xf32>
    %189 = arith.addf %183, %188 : vector<2x256xf32>
    %c0_315 = arith.constant 0 : index
    %c0_316 = arith.constant 0 : index
    %c1_317 = arith.constant 1 : index
    %c3_318 = arith.constant 3 : index
    %c0_319 = arith.constant 0 : index
    %190 = vector.load %arg1[%c0_315, %c0_316, %c1_317, %c3_318, %c0_319] : memref<1x2x2x6x128xbf16, #tpu.memory_space<vmem>>, vector<1x1x1x2x128xbf16>
    %191 = vector.shape_cast %190 : vector<1x1x1x2x128xbf16> to vector<2x128xbf16>
    %c1_320 = arith.constant 1 : index
    %c2_321 = arith.constant 2 : index
    %c0_322 = arith.constant 0 : index
    %c0_323 = arith.constant 0 : index
    %192 = vector.load %arg2[%c1_320, %c2_321, %c0_322, %c0_323] : memref<3x3x128x256xbf16, #tpu.memory_space<vmem>>, vector<1x1x128x256xbf16>
    %193 = vector.shape_cast %192 : vector<1x1x128x256xbf16> to vector<128x256xbf16>
    %cst_324 = arith.constant dense<0.000000e+00> : vector<2x256xf32>
    %194 = tpu.matmul %191, %193, %cst_324 {dimension_numbers = #tpu.dot_dimension_numbers<[1], [0], [0], [1], [0, 0, 1, 1], [], []>} : vector<2x128xbf16>, vector<128x256xbf16>, vector<2x256xf32> -> vector<2x256xf32>
    %195 = arith.addf %189, %194 : vector<2x256xf32>
    %c0_325 = arith.constant 0 : index
    %c1_326 = arith.constant 1 : index
    %c1_327 = arith.constant 1 : index
    %c2_328 = arith.constant 2 : index
    %c0_329 = arith.constant 0 : index
    %196 = vector.load %arg1[%c0_325, %c1_326, %c1_327, %c2_328, %c0_329] : memref<1x2x2x6x128xbf16, #tpu.memory_space<vmem>>, vector<1x1x1x2x128xbf16>
    %197 = vector.shape_cast %196 : vector<1x1x1x2x128xbf16> to vector<2x128xbf16>
    %c2_330 = arith.constant 2 : index
    %c0_331 = arith.constant 0 : index
    %c0_332 = arith.constant 0 : index
    %c0_333 = arith.constant 0 : index
    %198 = vector.load %arg2[%c2_330, %c0_331, %c0_332, %c0_333] : memref<3x3x128x256xbf16, #tpu.memory_space<vmem>>, vector<1x1x128x256xbf16>
    %199 = vector.shape_cast %198 : vector<1x1x128x256xbf16> to vector<128x256xbf16>
    %cst_334 = arith.constant dense<0.000000e+00> : vector<2x256xf32>
    %200 = tpu.matmul %197, %199, %cst_334 {dimension_numbers = #tpu.dot_dimension_numbers<[1], [0], [0], [1], [0, 0, 1, 1], [], []>} : vector<2x128xbf16>, vector<128x256xbf16>, vector<2x256xf32> -> vector<2x256xf32>
    %201 = arith.addf %195, %200 : vector<2x256xf32>
    %c0_335 = arith.constant 0 : index
    %c1_336 = arith.constant 1 : index
    %c0_337 = arith.constant 0 : index
    %c3_338 = arith.constant 3 : index
    %c0_339 = arith.constant 0 : index
    %202 = vector.load %arg1[%c0_335, %c1_336, %c0_337, %c3_338, %c0_339] : memref<1x2x2x6x128xbf16, #tpu.memory_space<vmem>>, vector<1x1x1x2x128xbf16>
    %203 = vector.shape_cast %202 : vector<1x1x1x2x128xbf16> to vector<2x128xbf16>
    %c2_340 = arith.constant 2 : index
    %c1_341 = arith.constant 1 : index
    %c0_342 = arith.constant 0 : index
    %c0_343 = arith.constant 0 : index
    %204 = vector.load %arg2[%c2_340, %c1_341, %c0_342, %c0_343] : memref<3x3x128x256xbf16, #tpu.memory_space<vmem>>, vector<1x1x128x256xbf16>
    %205 = vector.shape_cast %204 : vector<1x1x128x256xbf16> to vector<128x256xbf16>
    %cst_344 = arith.constant dense<0.000000e+00> : vector<2x256xf32>
    %206 = tpu.matmul %203, %205, %cst_344 {dimension_numbers = #tpu.dot_dimension_numbers<[1], [0], [0], [1], [0, 0, 1, 1], [], []>} : vector<2x128xbf16>, vector<128x256xbf16>, vector<2x256xf32> -> vector<2x256xf32>
    %207 = arith.addf %201, %206 : vector<2x256xf32>
    %c0_345 = arith.constant 0 : index
    %c1_346 = arith.constant 1 : index
    %c1_347 = arith.constant 1 : index
    %c3_348 = arith.constant 3 : index
    %c0_349 = arith.constant 0 : index
    %208 = vector.load %arg1[%c0_345, %c1_346, %c1_347, %c3_348, %c0_349] : memref<1x2x2x6x128xbf16, #tpu.memory_space<vmem>>, vector<1x1x1x2x128xbf16>
    %209 = vector.shape_cast %208 : vector<1x1x1x2x128xbf16> to vector<2x128xbf16>
    %c2_350 = arith.constant 2 : index
    %c2_351 = arith.constant 2 : index
    %c0_352 = arith.constant 0 : index
    %c0_353 = arith.constant 0 : index
    %210 = vector.load %arg2[%c2_350, %c2_351, %c0_352, %c0_353] : memref<3x3x128x256xbf16, #tpu.memory_space<vmem>>, vector<1x1x128x256xbf16>
    %211 = vector.shape_cast %210 : vector<1x1x128x256xbf16> to vector<128x256xbf16>
    %cst_354 = arith.constant dense<0.000000e+00> : vector<2x256xf32>
    %212 = tpu.matmul %209, %211, %cst_354 {dimension_numbers = #tpu.dot_dimension_numbers<[1], [0], [0], [1], [0, 0, 1, 1], [], []>} : vector<2x128xbf16>, vector<128x256xbf16>, vector<2x256xf32> -> vector<2x256xf32>
    %213 = arith.addf %207, %212 : vector<2x256xf32>
    %214 = arith.maximumf %160, %213 : vector<2x256xf32>
    %c0_355 = arith.constant 0 : index
    %c0_356 = arith.constant 0 : index
    %215 = vector.load %arg3[%c0_355, %c0_356] : memref<1x256xf32, #tpu.memory_space<vmem>>, vector<1x256xf32>
    %216 = vector.broadcast %215 : vector<1x256xf32> to vector<2x256xf32>
    %217 = arith.addf %214, %216 : vector<2x256xf32>
    %cst_357 = arith.constant 0.000000e+00 : f32
    %218 = vector.broadcast %cst_357 : f32 to vector<2x256xf32>
    %219 = arith.maximumf %217, %218 : vector<2x256xf32>
    %220 = arith.truncf %219 : vector<2x256xf32> to vector<2x256xbf16>
    %c0_358 = arith.constant 0 : index
    %c0_359 = arith.constant 0 : index
    %c0_360 = arith.constant 0 : index
    %221 = vector.load %arg4[%c0_358, %c0_359, %c0_360] : memref<1x2x256xbf16, #tpu.memory_space<vmem>>, vector<1x2x256xbf16>
    %222 = vector.shape_cast %221 : vector<1x2x256xbf16> to vector<2x256xbf16>
    %223 = vector.shape_cast %220 : vector<2x256xbf16> to vector<1x2x256xbf16>
    tpu.vector_store %arg4[%c0_358, %c0_359, %c0_360], %223 {strides = array<i32>} : memref<1x2x256xbf16, #tpu.memory_space<vmem>>, vector<1x2x256xbf16>,
    return
  }
  func.func @transform_0(%arg0: i32) -> (i32, i32, i32, i32, i32) {
    %c0_i32 = arith.constant 0 : i32
    %c0_i32_0 = arith.constant 0 : i32
    %c0_i32_1 = arith.constant 0 : i32
    %c0_i32_2 = arith.constant 0 : i32
    %c0_i32_3 = arith.constant 0 : i32
    return %arg0, %c0_i32, %c0_i32_0, %c0_i32_1, %c0_i32_2 : i32, i32, i32, i32, i32
  }
  func.func @transform_1(%arg0: i32) -> (i32, i32, i32, i32) {
    %c0_i32 = arith.constant 0 : i32
    %c0_i32_0 = arith.constant 0 : i32
    %c0_i32_1 = arith.constant 0 : i32
    %c0_i32_2 = arith.constant 0 : i32
    %c0_i32_3 = arith.constant 0 : i32
    return %c0_i32, %c0_i32_0, %c0_i32_1, %c0_i32_2 : i32, i32, i32, i32
  }
  func.func @transform_2(%arg0: i32) -> (i32, i32) {
    %c0_i32 = arith.constant 0 : i32
    %c0_i32_0 = arith.constant 0 : i32
    %c0_i32_1 = arith.constant 0 : i32
    return %c0_i32, %c0_i32_0 : i32, i32
  }
  func.func @transform_3(%arg0: i32) -> (i32, i32, i32) {
    %c0_i32 = arith.constant 0 : i32
    %c0_i32_0 = arith.constant 0 : i32
    %c0_i32_1 = arith.constant 0 : i32
    return %arg0, %c0_i32, %c0_i32_0 : i32, i32, i32
  }
}

</mosaic_0001>

<bundles_post_ra>
// kernel: diffusion_model_forward.5
= control target key start
LH: loop header
LB: loop body
LE: loop exit
PB: predicated region body
PF: predicated region fallthrough
CT: control target
= control target key end

     0   :  { %s4603_s12 = smov 0   ;;  %s5685_s0 = inlined_call_operand.vmem [shape: bf16[2,2,2,30,128], index: 0, kind: input, shape index: {}]   ;;  %s5686_s1 = inlined_call_operand.vmem [shape: bf16[3,3,128,128], index: 1, kind: input, shape index: {}]   ;;  %s5687_s2 = inlined_call_operand.vmem [shape: f32[1,128], index: 2, kind: input, shape index: {}]   ;;  %s5688_s3 = inlined_call_operand.vmem [shape: bf16[2,20,128], index: 3, kind: output, shape index: {}]  }
   0x1 LB: > { %s2971_s13 = sadd.s32 4294967295, %s4581_s12   ;;  %p2975_p0 = scmp.ge.s32.totalorder %s4581_s12, 1  ;;  %s4581_s12 = sphi %s4603_s12, %s13_s12  }
   0x2   : > { %p137_p1 = scmp.lt.s32.totalorder %s4581_s12, 3 }
   0x4   : > { %p138_p2 = pnand %p2975_p0, %p137_p1 }
   0x6   : > { %141 = sbr.rel (%p138_p2) target bundleno = 816 (0x330), region = 32 }
   0xd   : > { %v4462_v0 = vld [vmem:[%s5686_s1 + $0x40] sm:$0xff]   ;;  %p161_p3 = scmp.lt.s32.totalorder %s2971_s13, 1  ;;  %v4463_v1 = vld [vmem:[%s5686_s1 + $0x48] sm:$0xff]   ;;  %v4464_v2 = vld [vmem:[%s5686_s1 + $0x50] sm:$0xff]   ;;  %vm445_vm0 = vsmask.f32 7424 }
   0xe   : > { %3605 = vmatprep.subr.bf16.mxu0 %v4462_v0  ;;  %3785 = vmatprep.subr.bf16.mxu1 %v4462_v0  ;;  %v4465_v3 = vld [vmem:[%s5686_s1 + $0x58] sm:$0xff]   ;;  %v4466_v7 = vld [vmem:[%s5686_s1 + $0x60] sm:$0xff]   ;;  %v4467_v12 = vld [vmem:[%s5686_s1 + $0x68] sm:$0xff]   ;;  %vm990_vm1 = vsmask.f32 5376  ;;  %vm1279_vm2 = vcmask 1044480  }
   0xf   : > { %s5734_s13 = smov (!%p161_p3, %s2971_s13), 1  ;;  %3606 = vmatpush3.bf16.msra.mxu0 %v4462_v0  ;;  %3786 = vmatpush3.bf16.msra.mxu1 %v4462_v0  ;;  %v4468_v16 = vld [vmem:[%s5686_s1 + $0x70] sm:$0xff]   ;;  %v4469_v17 = vld [vmem:[%s5686_s1 + $0x78] sm:$0xff]   ;;  %v4471_v19 = vld [vmem:[%s5686_s1] sm:$0xff]  }
  0x10   : > { %3607 = vmatprep.subr.bf16.mxu0 %v4463_v1  ;;  %3787 = vmatprep.subr.bf16.mxu1 %v4463_v1  ;;  %s3236_s20 = sshll.u32 %s5734_s13, 6  ;;  %v4475_v22 = vld [vmem:[%s5686_s1 + $0x8] sm:$0xff]   ;;  %v4476_v23 = vld [vmem:[%s5686_s1 + $0x10] sm:$0xff]   ;;  %v4477_v24 = vld [vmem:[%s5686_s1 + $0x18] sm:$0xff]   ;;  %s4453_s29 = smul.u32 12, %s5734_s13 }
  0x11   : > { %s4629_s25 = scalar_lea.vmem %s5685_s0, %s3236_s20  ;;  %v4478_v25 = vld [vmem:[%s5686_s1 + $0x20] sm:$0xff]   ;;  %v4479_v26 = vld [vmem:[%s5686_s1 + $0x28] sm:$0xff]   ;;  %v4480_v28 = vld [vmem:[%s5686_s1 + $0x30] sm:$0xff]  }
  0x12   : > { %v4632_v4 = vld [vmem:[%s4629_s25 + $0x10] sm:$0xff]   ;;  %v4472_v5 = vld [vmem:[%s4629_s25] sm:$0xff]   ;;  %v4473_v6 = vld [vmem:[%s4629_s25 + $0x8] ss:$0 sps:$4 sm:$0x77]   ;;  %s170_s5 = scalar_lea.vmem %s5688_s3, %s4453_s29 }
  0x13   : > { %3608 = vmatpush3.bf16.msra.mxu0 %v4463_v1  ;;  %3788 = vmatpush3.bf16.msra.mxu1 %v4463_v1  ;;  %v447_v8 = vshrl.u32 %v4472_v5, 16  ;;  %v449_v9 = vshll.u32 %v4472_v5, 16  ;;  %v454_v10 = vshll.u32 %v4473_v6, 16  ;;  %v458_v18 = vshrl.u32 %v4473_v6, 16  ;;  %v4481_v30 = vld [vmem:[%s5686_s1 + $0x38] sm:$0xff]   ;;  %v4691_v34 = vld [vmem:[%s5686_s1 + $0x80] sm:$0xff]  }
  0x14   : > { %3609 = vmatprep.subr.bf16.mxu0 %v4464_v2  ;;  %3789 = vmatprep.subr.bf16.mxu1 %v4464_v2  ;;  %v4474_v20 = vld [vmem:[%s4629_s25 + $0x18] ss:$0 sps:$4 sm:$0x33]   ;;  %v1487_v27 = vshll.u32 %v4632_v4, 16  ;;  %v1485_v31 = vshrl.u32 %v4632_v4, 16  ;;  %v4697_v38 = vld [vmem:[%s5686_s1 + $0x88] sm:$0xff]  }
  0x15   : > { %3621 = vmatprep.mubr.bf16.mxu0 %v4632_v4  ;;  %v451_v11 = vrot.slane %v449_v9, 1  ;;  %v456_v13 = vrot.slane %v454_v10, 1  ;;  %v4681_v29 = vld [vmem:[%s4629_s25 + $0x18] ss:$0 sps:$4 sm:$0x77]   ;;  %v4707_v40 = vld [vmem:[%s5686_s1 + $0x90] sm:$0xff]  }
  0x16   : > { %v1489_v32 = vrot.slane %v1487_v27, 1  ;;  %v1492_v33 = vshll.u32 %v4681_v29, 16  ;;  %v4483_v35 = vld [vmem:[%s4629_s25 + $0x8] ss:$0 sps:$4 sm:$0x33]   ;;  %v4717_v41 = vld [vmem:[%s5686_s1 + $0x98] sm:$0xff]  }
  0x17   : > { %3610 = vmatpush3.bf16.msra.mxu0 %v4464_v2  ;;  %3790 = vmatpush3.bf16.msra.mxu1 %v4464_v2  ;;  %v452_v14 = vor.u32 %v451_v11, %v447_v8  ;;  %v4657_v21 = vor.u32 %v458_v18, %v456_v13  ;;  %v4726_v42 = vld [vmem:[%s5686_s1 + $0xa0] sm:$0xff]   ;;  %v4737_v43 = vld [vmem:[%s5686_s1 + $0xa8] sm:$0xff]   ;;  %v4746_v44 = vld [vmem:[%s5686_s1 + $0xb0] sm:$0xff]   ;;  %v1496_v46 = vshrl.u32 %v4681_v29, 16 }
  0x18   : > { %3611 = vmatprep.subr.bf16.mxu0 %v4465_v3  ;;  %3791 = vmatprep.subr.bf16.mxu1 %v4465_v3  ;;  %v1494_v36 = vrot.slane %v1492_v33, 1  ;;  %v1490_v37 = vor.u32 %v1489_v32, %v1485_v31  ;;  %v4755_v45 = vld [vmem:[%s5686_s1 + $0xb8] sm:$0xff]   ;;  %v4765_v47 = vld [vmem:[%s5686_s1 + $0xc0] sm:$0xff]   ;;  %v4774_v49 = vld [vmem:[%s5686_s1 + $0xc8] sm:$0xff]  }
  0x19   : > { %v4644_v15 = vsel %vm445_vm0, %v452_v14, %v456_v13  ;;  %v4777_v50 = vld [vmem:[%s4629_s25 + $0x20] sm:$0xff]   ;;  %v4780_v51 = vld [vmem:[%s4629_s25 + $0x30] sm:$0xff]   ;;  %v4801_v53 = vld [vmem:[%s5686_s1 + $0xd8] sm:$0xff]  }
  0x1a   : > { %3801 = vmatprep.mubr.bf16.mxu1 %v4644_v15  ;;  %v1495_v39 = vsel %vm445_vm0, %v1490_v37, %v1494_v36  ;;  %v1498_v48 = vor.u32 %v1496_v46, %v1494_v36  ;;  %v4790_v52 = vld [vmem:[%s5686_s1 + $0xd0] sm:$0xff]   ;;  %v4810_v54 = vld [vmem:[%s5686_s1 + $0xe0] sm:$0xff]   ;;  %v4819_v55 = vld [vmem:[%s5686_s1 + $0xe8] sm:$0xff]   ;;  %v846_v58 = vshll.u32 %v4777_v50, 16  ;;  %v844_v60 = vshrl.u32 %v4777_v50, 16 }
  0x1b   : > { %3612 = vmatpush3.bf16.msra.mxu0 %v4465_v3  ;;  %3792 = vmatpush3.bf16.msra.mxu1 %v4465_v3  ;;  %v4828_v56 = vld [vmem:[%s5686_s1 + $0xf0] sm:$0xff]   ;;  %v4831_v57 = vld [vmem:[%s4629_s25 + $0x28] ss:$0 sps:$4 sm:$0x77]   ;;  %v4841_v59 = vld [vmem:[%s5686_s1 + $0xf8] sm:$0xff]  }
  0x1c   : > { %3613 = vmatprep.subr.bf16.mxu0 %v4466_v7  ;;  %3793 = vmatprep.subr.bf16.mxu1 %v4466_v7  ;;  %v848_v61 = vrot.slane %v846_v58, 1  ;;  %v851_v62 = vshll.u32 %v4831_v57, 16  ;;  %v4852_v63 = vld [vmem:[%s5686_s1 + $0x100] sm:$0xff]   ;;  %v4855_v0 = vld [vmem:[%s4629_s25 + $0x28] ss:$0 sps:$4 sm:$0x33]  }
  0x1d   : > { %v4858_v1 = vld [vmem:[%s4629_s25 + $0x38] ss:$0 sps:$4 sm:$0x33]   ;;  %v4881_v6 = vld [vmem:[%s5686_s1 + $0x110] sm:$0xff]   ;;  %v4901_v8 = vld [vmem:[%s5686_s1 + $0x120] sm:$0xff]   ;;  %v855_v14 = vshrl.u32 %v4831_v57, 16 }
  0x1e   : > { %v849_v2 = vor.u32 %v848_v61, %v844_v60  ;;  %v853_v3 = vrot.slane %v851_v62, 1  ;;  %v4910_v9 = vld [vmem:[%s5686_s1 + $0x128] sm:$0xff]   ;;  %v4919_v10 = vld [vmem:[%s5686_s1 + $0x130] sm:$0xff]   ;;  %v4922_v11 = vld [vmem:[%s4629_s25 + $0x38] ss:$0 sps:$4 sm:$0x77]  }
  0x1f   : > { %3614 = vmatpush3.bf16.msra.mxu0 %v4466_v7  ;;  %3794 = vmatpush3.bf16.msra.mxu1 %v4466_v7  ;;  %v4892_v7 = vld [vmem:[%s5686_s1 + $0x118] sm:$0xff]   ;;  %v4944_v18 = vld [vmem:[%s5686_s1 + $0x140] sm:$0xff]   ;;  %v3153_v29 = vld [vmem:[%s4629_s25 + $0x10] sm:$0xc] }
  0x20   : > { %3615 = vmatprep.subr.bf16.mxu0 %v4467_v12  ;;  %3795 = vmatprep.subr.bf16.mxu1 %v4467_v12  ;;  %v4932_v13 = vld [vmem:[%s5686_s1 + $0x138] sm:$0xff]   ;;  %v959_v27 = vld [vmem:[%s4629_s25] sm:$0xc]  ;;  %v5009_v31 = vld [vmem:[%s5686_s1 + $0x168] sm:$0xff]  }
  0x21   : > { %v5013_v33 = vld [vmem:[%s4629_s25 + $0x8] sm:$0x1f]   ;;  %v5017_v36 = vld [vmem:[%s4629_s25 + $0x18] sm:$0x1f]   ;;  %v5026_v37 = vld [vmem:[%s5686_s1 + $0x170] sm:$0xff]  }
  0x22   : > { %v1003_v57 = vshll.u32 %v5013_v33, 16  ;;  %v1149_v61 = vshrl.u32 %v5017_v36, 16  ;;  %v1152_v62 = vshll.u32 %v5017_v36, 16 }
  0x23   : > { %3616 = vmatpush3.bf16.msra.mxu0 %v4467_v12  ;;  %3796 = vmatpush3.bf16.msra.mxu1 %v4467_v12  ;;  %v1661_v12 = vshll.u32 %v4780_v51, 16 }
  0x24   : > { %3617 = vmatprep.subr.bf16.mxu0 %v4468_v16  ;;  %3797 = vmatprep.subr.bf16.mxu1 %v4468_v16 }
  0x27   : > { %3618 = vmatpush3.bf16.msra.mxu0 %v4468_v16  ;;  %3798 = vmatpush3.bf16.msra.mxu1 %v4468_v16  ;;  %v1663_v16 = vrot.slane %v1661_v12, 1 }
  0x28   : > { %3619 = vmatprep.subr.bf16.mxu0 %v4469_v17  ;;  %3799 = vmatprep.subr.bf16.mxu1 %v4469_v17 }
  0x2b   : > { %3620 = vmatpush3.bf16.msra.mxu0 %v4469_v17  ;;  %3800 = vmatpush3.bf16.msra.mxu1 %v4469_v17  ;;  %v1666_v17 = vshll.u32 %v4922_v11, 16 }
  0x2c   : > { %3625 = vmatprep.subr.bf16.mxu0 %v4471_v19  ;;  %3805 = vmatprep.subr.bf16.mxu1 %v4471_v19 }
  0x2e   : > { %3622 = vmatmul.mubr.bf16.vlgmr.msra.gmra.mrb[0].mxu0 %v4474_v20  ;;  %3802 = vmatmul.mubr.bf16.vlgmr.msra.gmra.mrb[0].mxu1 %v4657_v21 }
  0x2f   : > { %3626 = vmatpush3.bf16.msra.mxu0 %v4471_v19  ;;  %3806 = vmatpush3.bf16.msra.mxu1 %v4471_v19  ;;  %v4946_v19 = vor.u32 %v855_v14, %v853_v3 }
  0x30   : > { %3627 = vmatprep.subr.bf16.mxu0 %v4475_v22  ;;  %3807 = vmatprep.subr.bf16.mxu1 %v4475_v22 }
  0x31   : > { %3641 = vmatprep.mubr.bf16.mxu0 %v4472_v5  ;;  %3821 = vmatprep.mubr.bf16.mxu1 %v4632_v4  ;;  %v4867_v4 = vld [vmem:[%s5686_s1 + $0x108] sm:$0xff]   ;;  %v4872_v5 = vsel %vm445_vm0, %v849_v2, %v853_v3  ;;  %v5039_v2 = vld [vmem:[%s5686_s1 + $0x178] sm:$0xff]   ;;  %v1670_v3 = vshrl.u32 %v4922_v11, 16  ;;  %v5049_v11 = vld [vmem:[%s5686_s1 + $0x180] sm:$0xff]  }
  0x33   : > { %3628 = vmatpush3.bf16.msra.mxu0 %v4475_v22  ;;  %3808 = vmatpush3.bf16.msra.mxu1 %v4475_v22  ;;  %v4957_v22 = vld [vmem:[%s5686_s1 + $0x148] sm:$0xff]  }
  0x34   : > { %3629 = vmatprep.subr.bf16.mxu0 %v4476_v23  ;;  %3809 = vmatprep.subr.bf16.mxu1 %v4476_v23 }
  0x37   : > { %3630 = vmatpush3.bf16.msra.mxu0 %v4476_v23  ;;  %3810 = vmatpush3.bf16.msra.mxu1 %v4476_v23 }
  0x38   : > { %3631 = vmatprep.subr.bf16.mxu0 %v4477_v24  ;;  %3811 = vmatprep.subr.bf16.mxu1 %v4477_v24 }
  0x3b   : > { %3632 = vmatpush3.bf16.msra.mxu0 %v4477_v24  ;;  %3812 = vmatpush3.bf16.msra.mxu1 %v4477_v24  ;;  %v4972_v24 = vld [vmem:[%s5686_s1 + $0x150] sm:$0xff]  }
  0x3c   : > { %3633 = vmatprep.subr.bf16.mxu0 %v4478_v25  ;;  %3813 = vmatprep.subr.bf16.mxu1 %v4478_v25 }
  0x3f   : > { %3634 = vmatpush3.bf16.msra.mxu0 %v4478_v25  ;;  %3814 = vmatpush3.bf16.msra.mxu1 %v4478_v25  ;;  %v4983_v25 = vld [vmem:[%s5686_s1 + $0x158] sm:$0xff]  }
  0x40   : > { %3635 = vmatprep.subr.bf16.mxu0 %v4479_v26  ;;  %3815 = vmatprep.subr.bf16.mxu1 %v4479_v26 }
  0x43   : > { %3636 = vmatpush3.bf16.msra.mxu0 %v4479_v26  ;;  %3816 = vmatpush3.bf16.msra.mxu1 %v4479_v26  ;;  %v4992_v26 = vld [vmem:[%s5686_s1 + $0x160] sm:$0xff]  }
  0x44   : > { %3637 = vmatprep.subr.bf16.mxu0 %v4480_v28  ;;  %3817 = vmatprep.subr.bf16.mxu1 %v4480_v28 }
  0x47   : > { %3638 = vmatpush3.bf16.msra.mxu0 %v4480_v28  ;;  %3818 = vmatpush3.bf16.msra.mxu1 %v4480_v28  ;;  %v4996_v28 = vld [vmem:[%s4629_s25 + $0x4] sm:$0xf] }
  0x48   : > { %3639 = vmatprep.subr.bf16.mxu0 %v4481_v30  ;;  %3819 = vmatprep.subr.bf16.mxu1 %v4481_v30  ;;  %v3143_v32 = vcombine.low %v959_v27, %v4996_v28  ;;  %v1151_v27 = vrot.slane %v1149_v61, 2  ;;  %v5095_v61 = vld [vmem:[%s5686_s1 + $0x198] sm:$0xff]  }
  0x4a   : > { %v995_v46 = vshll.u32 %v3143_v32, 16 }
  0x4b   : > { %3640 = vmatpush3.bf16.msra.mxu0 %v4481_v30  ;;  %3820 = vmatpush3.bf16.msra.mxu1 %v4481_v30  ;;  %v5002_v30 = vld [vmem:[%s4629_s25 + $0x14] sm:$0xf] }
  0x4c   : > { %3645 = vmatprep.subr.bf16.mxu0 %v4691_v34  ;;  %3825 = vmatprep.subr.bf16.mxu1 %v4691_v34  ;;  %v997_v14 = vrot.slane %v995_v46, 3 }
  0x4e   : > { %3642 = vmatmul.mubr.bf16.vlgmr.msra.gmra.mrb[0].mxu0 %v4483_v35  ;;  %3822 = vmatmul.mubr.bf16.vlgmr.msra.gmra.mrb[0].mxu1 %v4474_v20  ;;  %v3173_v35 = vcombine.low %v3153_v29, %v5002_v30  ;;  %v1154_v29 = vrot.slane %v1152_v62, 3  ;;  %v5104_v62 = vld [vmem:[%s5686_s1 + $0x1a0] sm:$0xff]  }
  0x4f   : > { %3646 = vmatpush3.bf16.msra.mxu0 %v4691_v34  ;;  %3826 = vmatpush3.bf16.msra.mxu1 %v4691_v34 }
  0x50   : > { %3647 = vmatprep.subr.bf16.mxu0 %v4697_v38  ;;  %3827 = vmatprep.subr.bf16.mxu1 %v4697_v38  ;;  %v1141_v58 = vshrl.u32 %v3173_v35, 16  ;;  %v1144_v60 = vshll.u32 %v3173_v35, 16 }
  0x51   : > { %3661 = vmatprep.mubr.bf16.mxu0 %v4644_v15  ;;  %3841 = vmatprep.mubr.bf16.mxu1 %v1495_v39  ;;  %v1659_v15 = vshrl.u32 %v4780_v51, 16  ;;  %v992_v39 = vshrl.u32 %v3143_v32, 16 }
  0x53   : > { %3648 = vmatpush3.bf16.msra.mxu0 %v4697_v38  ;;  %3828 = vmatpush3.bf16.msra.mxu1 %v4697_v38  ;;  %v1664_v20 = vor.u32 %v1663_v16, %v1659_v15  ;;  %v994_v12 = vrot.slane %v992_v39, 2  ;;  %v1005_v16 = vrot.slane %v1003_v57, 3 }
  0x54   : > { %3649 = vmatprep.subr.bf16.mxu0 %v4707_v40  ;;  %3829 = vmatprep.subr.bf16.mxu1 %v4707_v40 }
  0x55   : > { %v998_v35 = vor.u32 %v997_v14, %v994_v12  ;;  %v5122_v12 = vld [vmem:[%s5686_s1 + $0x1b0] sm:$0xff]   ;;  %v1258_v14 = vld [vmem:[%s4629_s25] sm:$0x8] }
  0x57   : > { %3650 = vmatpush3.bf16.msra.mxu0 %v4707_v40  ;;  %3830 = vmatpush3.bf16.msra.mxu1 %v4707_v40 }
  0x58   : > { %3651 = vmatprep.subr.bf16.mxu0 %v4717_v41  ;;  %3831 = vmatprep.subr.bf16.mxu1 %v4717_v41 }
  0x5b   : > { %3652 = vmatpush3.bf16.msra.mxu0 %v4717_v41  ;;  %3832 = vmatpush3.bf16.msra.mxu1 %v4717_v41 }
  0x5c   : > { %3653 = vmatprep.subr.bf16.mxu0 %v4726_v42  ;;  %3833 = vmatprep.subr.bf16.mxu1 %v4726_v42 }
  0x5f   : > { %3654 = vmatpush3.bf16.msra.mxu0 %v4726_v42  ;;  %3834 = vmatpush3.bf16.msra.mxu1 %v4726_v42 }
  0x60   : > { %3655 = vmatprep.subr.bf16.mxu0 %v4737_v43  ;;  %3835 = vmatprep.subr.bf16.mxu1 %v4737_v43 }
  0x63   : > { %3656 = vmatpush3.bf16.msra.mxu0 %v4737_v43  ;;  %3836 = vmatpush3.bf16.msra.mxu1 %v4737_v43 }
  0x64   : > { %3657 = vmatprep.subr.bf16.mxu0 %v4746_v44  ;;  %3837 = vmatprep.subr.bf16.mxu1 %v4746_v44 }
  0x67   : > { %3658 = vmatpush3.bf16.msra.mxu0 %v4746_v44  ;;  %3838 = vmatpush3.bf16.msra.mxu1 %v4746_v44 }
  0x68   : > { %3659 = vmatprep.subr.bf16.mxu0 %v4755_v45  ;;  %3839 = vmatprep.subr.bf16.mxu1 %v4755_v45 }
  0x6b   : > { %3660 = vmatpush3.bf16.msra.mxu0 %v4755_v45  ;;  %3840 = vmatpush3.bf16.msra.mxu1 %v4755_v45 }
  0x6c   : > { %3665 = vmatprep.subr.bf16.mxu0 %v4765_v47  ;;  %3845 = vmatprep.subr.bf16.mxu1 %v4765_v47 }
  0x6e   : > { %3662 = vmatmul.mubr.bf16.vlgmr.msra.gmra.mrb[0].mxu0 %v4657_v21  ;;  %3842 = vmatmul.mubr.bf16.vlgmr.msra.gmra.mrb[0].mxu1 %v1498_v48  ;;  %v4948_v21 = vrot.slane %v1666_v17, 1  ;;  %v1000_v48 = vshrl.u32 %v5013_v33, 16  ;;  %v1143_v17 = vrot.slane %v1141_v58, 2 }
  0x6f   : > { %3666 = vmatpush3.bf16.msra.mxu0 %v4765_v47  ;;  %3846 = vmatpush3.bf16.msra.mxu1 %v4765_v47 }
  0x70   : > { %3667 = vmatprep.subr.bf16.mxu0 %v4774_v49  ;;  %3847 = vmatprep.subr.bf16.mxu1 %v4774_v49  ;;  %v4963_v23 = vsel %vm445_vm0, %v1664_v20, %v4948_v21  ;;  %v1002_v15 = vrot.slane %v1000_v48, 2  ;;  %v1146_v20 = vrot.slane %v1144_v60, 3  ;;  %v5052_v32 = vor.u32 %v1670_v3, %v4948_v21  ;;  %v5065_v21 = vld [vmem:[%s5686_s1 + $0x188] sm:$0xff]   ;;  %v5084_v60 = vld [vmem:[%s5686_s1 + $0x190] sm:$0xff]  }
  0x71   : > { %3681 = vmatprep.mubr.bf16.mxu0 %v4777_v50  ;;  %3861 = vmatprep.mubr.bf16.mxu1 %v4780_v51  ;;  %v5056_v48 = vor.u32 %v1154_v29, %v1151_v27  ;;  %v5113_v3 = vld [vmem:[%s5686_s1 + $0x1a8] sm:$0xff]   ;;  %v5145_v27 = vrot.slane %v5013_v33, 3  ;;  %v5169_v29 = vld [vmem:[%s5686_s1 + $0x1d0] sm:$0xff]  }
  0x72   : > { %v5054_v39 = vor.u32 %v1005_v16, %v1002_v15  ;;  %v1147_v46 = vor.u32 %v1146_v20, %v1143_v17  ;;  %v5132_v15 = vld [vmem:[%s5686_s1 + $0x1b8] sm:$0xff]   ;;  %v3199_v16 = vcombine.low %v1258_v14, %v4996_v28  ;;  %v5142_v17 = vld [vmem:[%s5686_s1 + $0x1c0] sm:$0xff]   ;;  %v5154_v28 = vld [vmem:[%s5686_s1 + $0x1c8] sm:$0xff]   ;;  %5712 = vst [vmem:[#allocation3_spill] sm:$0xff] %v5169_v29 }
  0x73   : > { %3668 = vmatpush3.bf16.msra.mxu0 %v4774_v49  ;;  %3848 = vmatpush3.bf16.msra.mxu1 %v4774_v49  ;;  %5711 = vst [vmem:[#allocation2_spill] sm:$0xff] %v5154_v28  ;;  %v5198_v14 = vld [vmem:[%s5686_s1 + $0x1e8] sm:$0xff]  }
  0x74   : > { %3669 = vmatprep.subr.bf16.mxu0 %v4790_v52  ;;  %3849 = vmatprep.subr.bf16.mxu1 %v4790_v52  ;;  %v5071_v57 = vsel %vm990_vm1, %v998_v35, %v5054_v39  ;;  %v5075_v58 = vsel %vm990_vm1, %v1147_v46, %v5056_v48  ;;  %v1280_v20 = vrot.slane %v3199_v16, 3  ;;  %v5180_v35 = vld [vmem:[%s5686_s1 + $0x1d8] sm:$0xff]   ;;  %v5189_v46 = vld [vmem:[%s5686_s1 + $0x1e0] sm:$0xff]   ;;  %5715 = vst [vmem:[#allocation6_spill] sm:$0xff] %v5198_v14  ;;  %v5207_v16 = vld [vmem:[%s5686_s1 + $0x1f0] sm:$0xff]  }
  0x75   : > { %5713 = vst [vmem:[#allocation4_spill] sm:$0xff] %v5180_v35  ;;  %5714 = vst [vmem:[#allocation5_spill] sm:$0xff] %v5189_v46 }
  0x76   : > { %v5160_v33 = vsel %vm1279_vm2, %v1280_v20, %v5145_v27  ;;  %v3212_v20 = vld [vmem:[%s4629_s25 + $0x10] sm:$0x8] }
  0x77   : > { %3670 = vmatpush3.bf16.msra.mxu0 %v4790_v52  ;;  %3850 = vmatpush3.bf16.msra.mxu1 %v4790_v52 }
  0x78   : > { %3671 = vmatprep.subr.bf16.mxu0 %v4801_v53  ;;  %3851 = vmatprep.subr.bf16.mxu1 %v4801_v53 }
  0x7b   : > { %3672 = vmatpush3.bf16.msra.mxu0 %v4801_v53  ;;  %3852 = vmatpush3.bf16.msra.mxu1 %v4801_v53 }
  0x7c   : > { %3673 = vmatprep.subr.bf16.mxu0 %v4810_v54  ;;  %3853 = vmatprep.subr.bf16.mxu1 %v4810_v54 }
  0x7f   : > { %3674 = vmatpush3.bf16.msra.mxu0 %v4810_v54  ;;  %3854 = vmatpush3.bf16.msra.mxu1 %v4810_v54 }
  0x80   : > { %3675 = vmatprep.subr.bf16.mxu0 %v4819_v55  ;;  %3855 = vmatprep.subr.bf16.mxu1 %v4819_v55 }
  0x83   : > { %3676 = vmatpush3.bf16.msra.mxu0 %v4819_v55  ;;  %3856 = vmatpush3.bf16.msra.mxu1 %v4819_v55 }
  0x84   : > { %3677 = vmatprep.subr.bf16.mxu0 %v4828_v56  ;;  %3857 = vmatprep.subr.bf16.mxu1 %v4828_v56 }
  0x87   : > { %3678 = vmatpush3.bf16.msra.mxu0 %v4828_v56  ;;  %3858 = vmatpush3.bf16.msra.mxu1 %v4828_v56 }
  0x88   : > { %3679 = vmatprep.subr.bf16.mxu0 %v4841_v59  ;;  %3859 = vmatprep.subr.bf16.mxu1 %v4841_v59 }
  0x8b   : > { %3680 = vmatpush3.bf16.msra.mxu0 %v4841_v59  ;;  %3860 = vmatpush3.bf16.msra.mxu1 %v4841_v59 }
  0x8c   : > { %3685 = vmatprep.subr.bf16.mxu0 %v4852_v63  ;;  %3865 = vmatprep.subr.bf16.mxu1 %v4852_v63 }
  0x8e   : > { %3682 = vmatmul.mubr.bf16.vlgmr.msra.gmra.mrb[0].mxu0 %v4855_v0  ;;  %3862 = vmatmul.mubr.bf16.vlgmr.msra.gmra.mrb[0].mxu1 %v4858_v1 }
  0x8f   : > { %3686 = vmatpush3.bf16.msra.mxu0 %v4852_v63  ;;  %3866 = vmatpush3.bf16.msra.mxu1 %v4852_v63 }
  0x90   : > { %3687 = vmatprep.subr.bf16.mxu0 %v4867_v4  ;;  %3867 = vmatprep.subr.bf16.mxu1 %v4867_v4 }
  0x91   : > { %3701 = vmatprep.mubr.bf16.mxu0 %v4780_v51  ;;  %3881 = vmatprep.mubr.bf16.mxu1 %v4872_v5 }
  0x93   : > { %3688 = vmatpush3.bf16.msra.mxu0 %v4867_v4  ;;  %3868 = vmatpush3.bf16.msra.mxu1 %v4867_v4 }
  0x94   : > { %3689 = vmatprep.subr.bf16.mxu0 %v4881_v6  ;;  %3869 = vmatprep.subr.bf16.mxu1 %v4881_v6 }
  0x97   : > { %3690 = vmatpush3.bf16.msra.mxu0 %v4881_v6  ;;  %3870 = vmatpush3.bf16.msra.mxu1 %v4881_v6 }
  0x98   : > { %3691 = vmatprep.subr.bf16.mxu0 %v4892_v7  ;;  %3871 = vmatprep.subr.bf16.mxu1 %v4892_v7 }
  0x9b   : > { %3692 = vmatpush3.bf16.msra.mxu0 %v4892_v7  ;;  %3872 = vmatpush3.bf16.msra.mxu1 %v4892_v7 }
  0x9c   : > { %3693 = vmatprep.subr.bf16.mxu0 %v4901_v8  ;;  %3873 = vmatprep.subr.bf16.mxu1 %v4901_v8 }
  0x9f   : > { %3694 = vmatpush3.bf16.msra.mxu0 %v4901_v8  ;;  %3874 = vmatpush3.bf16.msra.mxu1 %v4901_v8 }
  0xa0   : > { %3695 = vmatprep.subr.bf16.mxu0 %v4910_v9  ;;  %3875 = vmatprep.subr.bf16.mxu1 %v4910_v9 }
  0xa3   : > { %3696 = vmatpush3.bf16.msra.mxu0 %v4910_v9  ;;  %3876 = vmatpush3.bf16.msra.mxu1 %v4910_v9 }
  0xa4   : > { %3697 = vmatprep.subr.bf16.mxu0 %v4919_v10  ;;  %3877 = vmatprep.subr.bf16.mxu1 %v4919_v10 }
  0xa7   : > { %3698 = vmatpush3.bf16.msra.mxu0 %v4919_v10  ;;  %3878 = vmatpush3.bf16.msra.mxu1 %v4919_v10 }
  0xa8   : > { %3699 = vmatprep.subr.bf16.mxu0 %v4932_v13  ;;  %3879 = vmatprep.subr.bf16.mxu1 %v4932_v13 }
  0xab   : > { %3700 = vmatpush3.bf16.msra.mxu0 %v4932_v13  ;;  %3880 = vmatpush3.bf16.msra.mxu1 %v4932_v13 }
  0xac   : > { %3705 = vmatprep.subr.bf16.mxu0 %v4944_v18  ;;  %3885 = vmatprep.subr.bf16.mxu1 %v4944_v18 }
  0xae   : > { %3702 = vmatmul.mubr.bf16.vlgmr.msra.gmra.mrb[0].mxu0 %v4858_v1  ;;  %3882 = vmatmul.mubr.bf16.vlgmr.msra.gmra.mrb[0].mxu1 %v4946_v19 }
  0xaf   : > { %3706 = vmatpush3.bf16.msra.mxu0 %v4944_v18  ;;  %3886 = vmatpush3.bf16.msra.mxu1 %v4944_v18 }
  0xb0   : > { %3707 = vmatprep.subr.bf16.mxu0 %v4957_v22  ;;  %3887 = vmatprep.subr.bf16.mxu1 %v4957_v22 }
  0xb1   : > { %3721 = vmatprep.mubr.bf16.mxu0 %v4872_v5  ;;  %3901 = vmatprep.mubr.bf16.mxu1 %v4963_v23 }
  0xb3   : > { %3708 = vmatpush3.bf16.msra.mxu0 %v4957_v22  ;;  %3888 = vmatpush3.bf16.msra.mxu1 %v4957_v22 }
  0xb4   : > { %3709 = vmatprep.subr.bf16.mxu0 %v4972_v24  ;;  %3889 = vmatprep.subr.bf16.mxu1 %v4972_v24 }
  0xb7   : > { %3710 = vmatpush3.bf16.msra.mxu0 %v4972_v24  ;;  %3890 = vmatpush3.bf16.msra.mxu1 %v4972_v24 }
  0xb8   : > { %3711 = vmatprep.subr.bf16.mxu0 %v4983_v25  ;;  %3891 = vmatprep.subr.bf16.mxu1 %v4983_v25 }
  0xbb   : > { %3712 = vmatpush3.bf16.msra.mxu0 %v4983_v25  ;;  %3892 = vmatpush3.bf16.msra.mxu1 %v4983_v25 }
  0xbc   : > { %3713 = vmatprep.subr.bf16.mxu0 %v4992_v26  ;;  %3893 = vmatprep.subr.bf16.mxu1 %v4992_v26 }
  0xbf   : > { %3714 = vmatpush3.bf16.msra.mxu0 %v4992_v26  ;;  %3894 = vmatpush3.bf16.msra.mxu1 %v4992_v26 }
  0xc0   : > { %3715 = vmatprep.subr.bf16.mxu0 %v5009_v31  ;;  %3895 = vmatprep.subr.bf16.mxu1 %v5009_v31 }
  0xc3   : > { %3716 = vmatpush3.bf16.msra.mxu0 %v5009_v31  ;;  %3896 = vmatpush3.bf16.msra.mxu1 %v5009_v31 }
  0xc4   : > { %3717 = vmatprep.subr.bf16.mxu0 %v5026_v37  ;;  %3897 = vmatprep.subr.bf16.mxu1 %v5026_v37 }
  0xc7   : > { %3718 = vmatpush3.bf16.msra.mxu0 %v5026_v37  ;;  %3898 = vmatpush3.bf16.msra.mxu1 %v5026_v37 }
  0xc8   : > { %3719 = vmatprep.subr.bf16.mxu0 %v5039_v2  ;;  %3899 = vmatprep.subr.bf16.mxu1 %v5039_v2 }
  0xcb   : > { %3720 = vmatpush3.bf16.msra.mxu0 %v5039_v2  ;;  %3900 = vmatpush3.bf16.msra.mxu1 %v5039_v2 }
  0xcc   : > { %3725 = vmatprep.subr.bf16.mxu0 %v5049_v11  ;;  %3905 = vmatprep.subr.bf16.mxu1 %v5049_v11 }
  0xce   : > { %3722 = vmatmul.mubr.bf16.vlgmr.msra.gmra.mrb[0].mxu0 %v4946_v19  ;;  %3902 = vmatmul.mubr.bf16.vlgmr.msra.gmra.mrb[0].mxu1 %v5052_v32 }
  0xcf   : > { %3726 = vmatpush3.bf16.msra.mxu0 %v5049_v11  ;;  %3906 = vmatpush3.bf16.msra.mxu1 %v5049_v11 }
  0xd0   : > { %3727 = vmatprep.subr.bf16.mxu0 %v5065_v21  ;;  %3907 = vmatprep.subr.bf16.mxu1 %v5065_v21 }
  0xd1   : > { %3741 = vmatprep.mubr.bf16.mxu0 %v5071_v57  ;;  %3921 = vmatprep.mubr.bf16.mxu1 %v5075_v58 }
  0xd3   : > { %3728 = vmatpush3.bf16.msra.mxu0 %v5065_v21  ;;  %3908 = vmatpush3.bf16.msra.mxu1 %v5065_v21 }
  0xd4   : > { %3729 = vmatprep.subr.bf16.mxu0 %v5084_v60  ;;  %3909 = vmatprep.subr.bf16.mxu1 %v5084_v60 }
  0xd7   : > { %3730 = vmatpush3.bf16.msra.mxu0 %v5084_v60  ;;  %3910 = vmatpush3.bf16.msra.mxu1 %v5084_v60 }
  0xd8   : > { %3731 = vmatprep.subr.bf16.mxu0 %v5095_v61  ;;  %3911 = vmatprep.subr.bf16.mxu1 %v5095_v61 }
  0xdb   : > { %3732 = vmatpush3.bf16.msra.mxu0 %v5095_v61  ;;  %3912 = vmatpush3.bf16.msra.mxu1 %v5095_v61 }
  0xdc   : > { %3733 = vmatprep.subr.bf16.mxu0 %v5104_v62  ;;  %3913 = vmatprep.subr.bf16.mxu1 %v5104_v62 }
  0xdf   : > { %3734 = vmatpush3.bf16.msra.mxu0 %v5104_v62  ;;  %3914 = vmatpush3.bf16.msra.mxu1 %v5104_v62 }
  0xe0   : > { %3735 = vmatprep.subr.bf16.mxu0 %v5113_v3  ;;  %3915 = vmatprep.subr.bf16.mxu1 %v5113_v3 }
  0xe3   : > { %3736 = vmatpush3.bf16.msra.mxu0 %v5113_v3  ;;  %3916 = vmatpush3.bf16.msra.mxu1 %v5113_v3 }
  0xe4   : > { %3737 = vmatprep.subr.bf16.mxu0 %v5122_v12  ;;  %3917 = vmatprep.subr.bf16.mxu1 %v5122_v12 }
  0xe7   : > { %3738 = vmatpush3.bf16.msra.mxu0 %v5122_v12  ;;  %3918 = vmatpush3.bf16.msra.mxu1 %v5122_v12 }
  0xe8   : > { %3739 = vmatprep.subr.bf16.mxu0 %v5132_v15  ;;  %3919 = vmatprep.subr.bf16.mxu1 %v5132_v15 }
  0xeb   : > { %3740 = vmatpush3.bf16.msra.mxu0 %v5132_v15  ;;  %3920 = vmatpush3.bf16.msra.mxu1 %v5132_v15 }
  0xec   : > { %3745 = vmatprep.subr.bf16.mxu0 %v5142_v17  ;;  %3925 = vmatprep.subr.bf16.mxu1 %v5142_v17 }
  0xee   : > { %3742 = vmatmul.mubr.bf16.vlgmr.msra.gmra.mrb[0].mxu0 %v5054_v39  ;;  %3922 = vmatmul.mubr.bf16.vlgmr.msra.gmra.mrb[0].mxu1 %v5056_v48 }
  0xef   : > { %3746 = vmatpush3.bf16.msra.mxu0 %v5142_v17  ;;  %3926 = vmatpush3.bf16.msra.mxu1 %v5142_v17 }
  0xf0   : > { %3747 = vmatprep.subr.bf16.mxu0 %v5154_v28  ;;  %3927 = vmatprep.subr.bf16.mxu1 %v5154_v28 }
  0xf1   : > { %3761 = vmatprep.mubr.bf16.mxu0 %v5075_v58  ;;  %3941 = vmatprep.mubr.bf16.mxu1 %v5160_v33 }
  0xf3   : > { %3748 = vmatpush3.bf16.msra.mxu0 %v5154_v28  ;;  %3928 = vmatpush3.bf16.msra.mxu1 %v5154_v28  ;;  %v5230_v28 = vrot.slane %v5017_v36, 3 }
  0xf4   : > { %3749 = vmatprep.subr.bf16.mxu0 %v5169_v29  ;;  %3929 = vmatprep.subr.bf16.mxu1 %v5169_v29 }
  0xf7   : > { %3750 = vmatpush3.bf16.msra.mxu0 %v5169_v29  ;;  %3930 = vmatpush3.bf16.msra.mxu1 %v5169_v29 }
  0xf8   : > { %3751 = vmatprep.subr.bf16.mxu0 %v5180_v35  ;;  %3931 = vmatprep.subr.bf16.mxu1 %v5180_v35 }
  0xfb   : > { %3752 = vmatpush3.bf16.msra.mxu0 %v5180_v35  ;;  %3932 = vmatpush3.bf16.msra.mxu1 %v5180_v35  ;;  %v3213_v35 = vcombine.low %v3212_v20, %v5002_v30  ;;  %v5239_v30 = vld [vmem:[%s5686_s1 + $0x208] sm:$0xff]   ;;  %v5274_v20 = vld [vmem:[%s5686_s1 + $0x220] sm:$0xff]  }
  0xfc   : > { %3753 = vmatprep.subr.bf16.mxu0 %v5189_v46  ;;  %3933 = vmatprep.subr.bf16.mxu1 %v5189_v46  ;;  %5718 = vst [vmem:[#allocation9_spill] sm:$0xff] %v5274_v20 }
  0xfd   : > { %v1832_v29 = vrot.slane %v3213_v35, 3  ;;  %v5254_v35 = vld [vmem:[%s5686_s1 + $0x210] sm:$0xff]  }
  0xfe   : > { %5716 = vst [vmem:[#allocation7_spill] sm:$0xff] %v5254_v35 }
  0xff   : > { %3754 = vmatpush3.bf16.msra.mxu0 %v5189_v46  ;;  %3934 = vmatpush3.bf16.msra.mxu1 %v5189_v46  ;;  %v5217_v46 = vld [vmem:[%s5686_s1 + $0x1f8] sm:$0xff]   ;;  %v5245_v36 = vsel %vm1279_vm2, %v1832_v29, %v5230_v28 }
 0x100   : > { %3755 = vmatprep.subr.bf16.mxu0 %v5198_v14  ;;  %3935 = vmatprep.subr.bf16.mxu1 %v5198_v14  ;;  %v5265_v29 = vld [vmem:[%s5686_s1 + $0x218] sm:$0xff]  }
 0x101   : > { %5717 = vst [vmem:[#allocation8_spill] sm:$0xff] %v5265_v29 }
 0x103   : > { %3756 = vmatpush3.bf16.msra.mxu0 %v5198_v14  ;;  %3936 = vmatpush3.bf16.msra.mxu1 %v5198_v14  ;;  %v5227_v14 = vld [vmem:[%s5686_s1 + $0x200] sm:$0xff]  }
 0x104   : > { %3757 = vmatprep.subr.bf16.mxu0 %v5207_v16  ;;  %3937 = vmatprep.subr.bf16.mxu1 %v5207_v16 }
 0x107   : > { %3758 = vmatpush3.bf16.msra.mxu0 %v5207_v16  ;;  %3938 = vmatpush3.bf16.msra.mxu1 %v5207_v16 }
 0x108   : > { %3759 = vmatprep.subr.bf16.mxu0 %v5217_v46  ;;  %3939 = vmatprep.subr.bf16.mxu1 %v5217_v46 }
 0x10b   : > { %3760 = vmatpush3.bf16.msra.mxu0 %v5217_v46  ;;  %3940 = vmatpush3.bf16.msra.mxu1 %v5217_v46 }
 0x10c   : > { %3765 = vmatprep.subr.bf16.mxu0 %v5227_v14  ;;  %3945 = vmatprep.subr.bf16.mxu1 %v5227_v14 }
 0x10e   : > { %3762 = vmatmul.mubr.bf16.vlgmr.msra.gmra.mrb[0].mxu0 %v5056_v48  ;;  %3942 = vmatmul.mubr.bf16.vlgmr.msra.gmra.mrb[0].mxu1 %v5145_v27 }
 0x10f   : > { %3766 = vmatpush3.bf16.msra.mxu0 %v5227_v14  ;;  %3946 = vmatpush3.bf16.msra.mxu1 %v5227_v14 }
 0x110   : > { %3767 = vmatprep.subr.bf16.mxu0 %v5239_v30  ;;  %3947 = vmatprep.subr.bf16.mxu1 %v5239_v30 }
 0x111   : > { %3781 = vmatprep.mubr.bf16.mxu0 %v5160_v33  ;;  %3961 = vmatprep.mubr.bf16.mxu1 %v5245_v36 }
 0x113   : > { %3768 = vmatpush3.bf16.msra.mxu0 %v5239_v30  ;;  %3948 = vmatpush3.bf16.msra.mxu1 %v5239_v30 }
 0x114   : > { %3769 = vmatprep.subr.bf16.mxu0 %v5254_v35  ;;  %3949 = vmatprep.subr.bf16.mxu1 %v5254_v35 }
 0x117   : > { %3770 = vmatpush3.bf16.msra.mxu0 %v5254_v35  ;;  %3950 = vmatpush3.bf16.msra.mxu1 %v5254_v35  ;;  %v5283_v35 = vld [vmem:[%s5686_s1 + $0x228] sm:$0xff]  }
 0x118   : > { %3771 = vmatprep.subr.bf16.mxu0 %v5265_v29  ;;  %3951 = vmatprep.subr.bf16.mxu1 %v5265_v29  ;;  %5719 = vst [vmem:[#allocation10_spill] sm:$0xff] %v5283_v35 }
 0x11b   : > { %3772 = vmatpush3.bf16.msra.mxu0 %v5265_v29  ;;  %3952 = vmatpush3.bf16.msra.mxu1 %v5265_v29  ;;  %v5292_v29 = vld [vmem:[%s5686_s1 + $0x230] sm:$0xff]  }
 0x11c   : > { %3773 = vmatprep.subr.bf16.mxu0 %v5274_v20  ;;  %3953 = vmatprep.subr.bf16.mxu1 %v5274_v20  ;;  %5720 = vst [vmem:[#allocation11_spill] sm:$0xff] %v5292_v29 }
 0x11f   : > { %3774 = vmatpush3.bf16.msra.mxu0 %v5274_v20  ;;  %3954 = vmatpush3.bf16.msra.mxu1 %v5274_v20  ;;  %v5301_v20 = vld [vmem:[%s5686_s1 + $0x238] sm:$0xff]  }
 0x120   : > { %3775 = vmatprep.subr.bf16.mxu0 %v5283_v35  ;;  %3955 = vmatprep.subr.bf16.mxu1 %v5283_v35  ;;  %5721 = vst [vmem:[#allocation12_spill] sm:$0xff] %v5301_v20 }
 0x123   : > { %3776 = vmatpush3.bf16.msra.mxu0 %v5283_v35  ;;  %3956 = vmatpush3.bf16.msra.mxu1 %v5283_v35  ;;  %v4558_v35 = vld [vmem:[%s5686_s1 + $0x40] sm:$0xff]  }
 0x124   : > { %3777 = vmatprep.subr.bf16.mxu0 %v5292_v29  ;;  %3957 = vmatprep.subr.bf16.mxu1 %v5292_v29 }
 0x127   : > { %3778 = vmatpush3.bf16.msra.mxu0 %v5292_v29  ;;  %3958 = vmatpush3.bf16.msra.mxu1 %v5292_v29  ;;  %v4559_v29 = vld [vmem:[%s5686_s1 + $0x48] sm:$0xff]  }
 0x128   : > { %3779 = vmatprep.subr.bf16.mxu0 %v5301_v20  ;;  %3959 = vmatprep.subr.bf16.mxu1 %v5301_v20 }
 0x12b   : > { %3780 = vmatpush3.bf16.msra.mxu0 %v5301_v20  ;;  %3960 = vmatpush3.bf16.msra.mxu1 %v5301_v20  ;;  %v4560_v20 = vld [vmem:[%s5686_s1 + $0x50] sm:$0xff]  }
 0x12c   : > { %3965 = vmatprep.subr.bf16.mxu0 %v4558_v35  ;;  %4145 = vmatprep.subr.bf16.mxu1 %v4558_v35 }
 0x12e   : > { %3782 = vmatmul.mubr.bf16.vlgmr.msra.gmra.mrb[0].mxu0 %v5145_v27  ;;  %3962 = vmatmul.mubr.bf16.vlgmr.msra.gmra.mrb[0].mxu1 %v5230_v28 }
 0x12f   : > { %3966 = vmatpush3.bf16.msra.mxu0 %v4558_v35  ;;  %4146 = vmatpush3.bf16.msra.mxu1 %v4558_v35  ;;  %v4561_v35 = vld [vmem:[%s5686_s1 + $0x58] sm:$0xff]  }
 0x130   : > { %3967 = vmatprep.subr.bf16.mxu0 %v4559_v29  ;;  %4147 = vmatprep.subr.bf16.mxu1 %v4559_v29 }
 0x131   : > { %3981 = vmatprep.mubr.bf16.mxu0 %v4780_v51  ;;  %4161 = vmatprep.mubr.bf16.mxu1 %v4872_v5 }
 0x133   : > { %3968 = vmatpush3.bf16.msra.mxu0 %v4559_v29  ;;  %4148 = vmatpush3.bf16.msra.mxu1 %v4559_v29  ;;  %v4562_v29 = vld [vmem:[%s5686_s1 + $0x60] sm:$0xff]  }
 0x134   : > { %3969 = vmatprep.subr.bf16.mxu0 %v4560_v20  ;;  %4149 = vmatprep.subr.bf16.mxu1 %v4560_v20 }
 0x137   : > { %3970 = vmatpush3.bf16.msra.mxu0 %v4560_v20  ;;  %4150 = vmatpush3.bf16.msra.mxu1 %v4560_v20  ;;  %v4563_v20 = vld [vmem:[%s5686_s1 + $0x68] sm:$0xff]  }
 0x138   : > { %3971 = vmatprep.subr.bf16.mxu0 %v4561_v35  ;;  %4151 = vmatprep.subr.bf16.mxu1 %v4561_v35 }
 0x13b   : > { %3972 = vmatpush3.bf16.msra.mxu0 %v4561_v35  ;;  %4152 = vmatpush3.bf16.msra.mxu1 %v4561_v35  ;;  %v4564_v35 = vld [vmem:[%s5686_s1 + $0x70] sm:$0xff]  }
 0x13c   : > { %3973 = vmatprep.subr.bf16.mxu0 %v4562_v29  ;;  %4153 = vmatprep.subr.bf16.mxu1 %v4562_v29 }
 0x13f   : > { %3974 = vmatpush3.bf16.msra.mxu0 %v4562_v29  ;;  %4154 = vmatpush3.bf16.msra.mxu1 %v4562_v29  ;;  %v4565_v29 = vld [vmem:[%s5686_s1 + $0x78] sm:$0xff]  }
 0x140   : > { %3975 = vmatprep.subr.bf16.mxu0 %v4563_v20  ;;  %4155 = vmatprep.subr.bf16.mxu1 %v4563_v20 }
 0x143   : > { %3976 = vmatpush3.bf16.msra.mxu0 %v4563_v20  ;;  %4156 = vmatpush3.bf16.msra.mxu1 %v4563_v20  ;;  %v4566_v20 = vld [vmem:[%s5686_s1] sm:$0xff]  }
 0x144   : > { %3977 = vmatprep.subr.bf16.mxu0 %v4564_v35  ;;  %4157 = vmatprep.subr.bf16.mxu1 %v4564_v35 }
 0x147   : > { %3978 = vmatpush3.bf16.msra.mxu0 %v4564_v35  ;;  %4158 = vmatpush3.bf16.msra.mxu1 %v4564_v35  ;;  %v4567_v35 = vld [vmem:[%s5686_s1 + $0x8] sm:$0xff]  }
 0x148   : > { %3979 = vmatprep.subr.bf16.mxu0 %v4565_v29  ;;  %4159 = vmatprep.subr.bf16.mxu1 %v4565_v29 }
 0x14b   : > { %3980 = vmatpush3.bf16.msra.mxu0 %v4565_v29  ;;  %4160 = vmatpush3.bf16.msra.mxu1 %v4565_v29  ;;  %v4568_v29 = vld [vmem:[%s5686_s1 + $0x10] sm:$0xff]  }
 0x14c   : > { %3985 = vmatprep.subr.bf16.mxu0 %v4566_v20  ;;  %4165 = vmatprep.subr.bf16.mxu1 %v4566_v20 }
 0x14e   : > { %3982 = vmatmul.mubr.bf16.vlgmr.msra.gmra.mrb[4].mxu0 %v4858_v1  ;;  %4162 = vmatmul.mubr.bf16.vlgmr.msra.gmra.mrb[4].mxu1 %v4946_v19 }
 0x14f   : > { %3986 = vmatpush3.bf16.msra.mxu0 %v4566_v20  ;;  %4166 = vmatpush3.bf16.msra.mxu1 %v4566_v20  ;;  %v4569_v20 = vld [vmem:[%s5686_s1 + $0x18] sm:$0xff]  }
 0x150   : > { %3987 = vmatprep.subr.bf16.mxu0 %v4567_v35  ;;  %4167 = vmatprep.subr.bf16.mxu1 %v4567_v35 }
 0x151   : > { %4001 = vmatprep.mubr.bf16.mxu0 %v4777_v50  ;;  %4181 = vmatprep.mubr.bf16.mxu1 %v4780_v51  ;;  %v4570_v50 = vld [vmem:[%s5686_s1 + $0x20] sm:$0xff]   ;;  %v4571_v51 = vld [vmem:[%s5686_s1 + $0x28] sm:$0xff]  }
 0x153   : > { %3988 = vmatpush3.bf16.msra.mxu0 %v4567_v35  ;;  %4168 = vmatpush3.bf16.msra.mxu1 %v4567_v35  ;;  %v4572_v35 = vld [vmem:[%s5686_s1 + $0x30] sm:$0xff]  }
 0x154   : > { %3989 = vmatprep.subr.bf16.mxu0 %v4568_v29  ;;  %4169 = vmatprep.subr.bf16.mxu1 %v4568_v29 }
 0x157   : > { %3990 = vmatpush3.bf16.msra.mxu0 %v4568_v29  ;;  %4170 = vmatpush3.bf16.msra.mxu1 %v4568_v29  ;;  %v4573_v29 = vld [vmem:[%s5686_s1 + $0x38] sm:$0xff]  }
 0x158   : > { %3991 = vmatprep.subr.bf16.mxu0 %v4569_v20  ;;  %4171 = vmatprep.subr.bf16.mxu1 %v4569_v20 }
 0x15b   : > { %3992 = vmatpush3.bf16.msra.mxu0 %v4569_v20  ;;  %4172 = vmatpush3.bf16.msra.mxu1 %v4569_v20  ;;  %v4574_v20 = vld [vmem:[%s5686_s1 + $0x80] sm:$0xff]  }
 0x15c   : > { %3993 = vmatprep.subr.bf16.mxu0 %v4570_v50  ;;  %4173 = vmatprep.subr.bf16.mxu1 %v4570_v50 }
 0x15f   : > { %3994 = vmatpush3.bf16.msra.mxu0 %v4570_v50  ;;  %4174 = vmatpush3.bf16.msra.mxu1 %v4570_v50  ;;  %v5728_v50 = vld [vmem:[#allocation8_spill] sm:$0xff] }
 0x160   : > { %3995 = vmatprep.subr.bf16.mxu0 %v4571_v51  ;;  %4175 = vmatprep.subr.bf16.mxu1 %v4571_v51 }
 0x163   : > { %3996 = vmatpush3.bf16.msra.mxu0 %v4571_v51  ;;  %4176 = vmatpush3.bf16.msra.mxu1 %v4571_v51  ;;  %v5731_v51 = vld [vmem:[#allocation11_spill] sm:$0xff] }
 0x164   : > { %3997 = vmatprep.subr.bf16.mxu0 %v4572_v35  ;;  %4177 = vmatprep.subr.bf16.mxu1 %v4572_v35 }
 0x167   : > { %3998 = vmatpush3.bf16.msra.mxu0 %v4572_v35  ;;  %4178 = vmatpush3.bf16.msra.mxu1 %v4572_v35  ;;  %v5732_v35 = vld [vmem:[#allocation12_spill] sm:$0xff] }
 0x168   : > { %3999 = vmatprep.subr.bf16.mxu0 %v4573_v29  ;;  %4179 = vmatprep.subr.bf16.mxu1 %v4573_v29 }
 0x16b   : > { %4000 = vmatpush3.bf16.msra.mxu0 %v4573_v29  ;;  %4180 = vmatpush3.bf16.msra.mxu1 %v4573_v29 }
 0x16c   : > { %4005 = vmatprep.subr.bf16.mxu0 %v4691_v34  ;;  %4185 = vmatprep.subr.bf16.mxu1 %v4691_v34  ;;  %v3214_v34 = vld [vmem:[%s4629_s25 + $0x20] sm:$0xc] }
 0x16e   : > { %4002 = vmatmul.mubr.bf16.vlgmr.msra.gmra.mrb[4].mxu0 %v4855_v0  ;;  %4182 = vmatmul.mubr.bf16.vlgmr.msra.gmra.mrb[4].mxu1 %v4858_v1 }
 0x16f   : > { %4006 = vmatpush3.bf16.msra.mxu0 %v4574_v20  ;;  %4186 = vmatpush3.bf16.msra.mxu1 %v4574_v20 }
 0x170   : > { %4007 = vmatprep.subr.bf16.mxu0 %v4697_v38  ;;  %4187 = vmatprep.subr.bf16.mxu1 %v4697_v38 }
 0x171   : > { %4021 = vmatprep.mubr.bf16.mxu0 %v4872_v5  ;;  %4201 = vmatprep.mubr.bf16.mxu1 %v4963_v23 }
 0x173   : > { %4008 = vmatpush3.bf16.msra.mxu0 %v4697_v38  ;;  %4188 = vmatpush3.bf16.msra.mxu1 %v4697_v38  ;;  %v5494_v38 = vld [vmem:[%s4629_s25 + $0x24] sm:$0xf] }
 0x174   : > { %4009 = vmatprep.subr.bf16.mxu0 %v4707_v40  ;;  %4189 = vmatprep.subr.bf16.mxu1 %v4707_v40 }
 0x177   : > { %4010 = vmatpush3.bf16.msra.mxu0 %v4707_v40  ;;  %4190 = vmatpush3.bf16.msra.mxu1 %v4707_v40  ;;  %v3220_v40 = vld [vmem:[%s4629_s25 + $0x30] sm:$0xc] }
 0x178   : > { %4011 = vmatprep.subr.bf16.mxu0 %v4717_v41  ;;  %4191 = vmatprep.subr.bf16.mxu1 %v4717_v41 }
 0x17b   : > { %4012 = vmatpush3.bf16.msra.mxu0 %v4717_v41  ;;  %4192 = vmatpush3.bf16.msra.mxu1 %v4717_v41  ;;  %v5500_v41 = vld [vmem:[%s4629_s25 + $0x34] sm:$0xf] }
 0x17c   : > { %4013 = vmatprep.subr.bf16.mxu0 %v4726_v42  ;;  %4193 = vmatprep.subr.bf16.mxu1 %v4726_v42 }
 0x17f   : > { %4014 = vmatpush3.bf16.msra.mxu0 %v4726_v42  ;;  %4194 = vmatpush3.bf16.msra.mxu1 %v4726_v42  ;;  %v3218_v42 = vcombine.low %v3214_v34, %v5494_v38 }
 0x180   : > { %4015 = vmatprep.subr.bf16.mxu0 %v4737_v43  ;;  %4195 = vmatprep.subr.bf16.mxu1 %v4737_v43 }
 0x183   : > { %4016 = vmatpush3.bf16.msra.mxu0 %v4737_v43  ;;  %4196 = vmatpush3.bf16.msra.mxu1 %v4737_v43  ;;  %v5506_v43 = vld [vmem:[%s4629_s25 + $0x28] sm:$0x1f]  }
 0x184   : > { %4017 = vmatprep.subr.bf16.mxu0 %v4746_v44  ;;  %4197 = vmatprep.subr.bf16.mxu1 %v4746_v44 }
 0x187   : > { %4018 = vmatpush3.bf16.msra.mxu0 %v4746_v44  ;;  %4198 = vmatpush3.bf16.msra.mxu1 %v4746_v44  ;;  %v3224_v44 = vcombine.low %v3220_v40, %v5500_v41 }
 0x188   : > { %4019 = vmatprep.subr.bf16.mxu0 %v4755_v45  ;;  %4199 = vmatprep.subr.bf16.mxu1 %v4755_v45 }
 0x18b   : > { %4020 = vmatpush3.bf16.msra.mxu0 %v4755_v45  ;;  %4200 = vmatpush3.bf16.msra.mxu1 %v4755_v45  ;;  %v5510_v45 = vld [vmem:[%s4629_s25 + $0x38] sm:$0x1f]  }
 0x18c   : > { %4025 = vmatprep.subr.bf16.mxu0 %v4765_v47  ;;  %4205 = vmatprep.subr.bf16.mxu1 %v4765_v47 }
 0x18e   : > { %4022 = vmatmul.mubr.bf16.vlgmr.msra.gmra.mrb[4].mxu0 %v4946_v19  ;;  %4202 = vmatmul.mubr.bf16.vlgmr.msra.gmra.mrb[4].mxu1 %v5052_v32  ;;  %v3226_v32 = vld [vmem:[%s4629_s25 + $0x20] sm:$0x8] }
 0x18f   : > { %4026 = vmatpush3.bf16.msra.mxu0 %v4765_v47  ;;  %4206 = vmatpush3.bf16.msra.mxu1 %v4765_v47  ;;  %v2206_v47 = vshrl.u32 %v3218_v42, 16 }
 0x190   : > { %4027 = vmatprep.subr.bf16.mxu0 %v4774_v49  ;;  %4207 = vmatprep.subr.bf16.mxu1 %v4774_v49 }
 0x191   : > { %4041 = vmatprep.mubr.bf16.mxu0 %v5071_v57  ;;  %4221 = vmatprep.mubr.bf16.mxu1 %v5075_v58  ;;  %v3227_v57 = vcombine.low %v3226_v32, %v5494_v38 }
 0x193   : > { %4028 = vmatpush3.bf16.msra.mxu0 %v4774_v49  ;;  %4208 = vmatpush3.bf16.msra.mxu1 %v4774_v49  ;;  %v2209_v49 = vshll.u32 %v3218_v42, 16 }
 0x194   : > { %4029 = vmatprep.subr.bf16.mxu0 %v4790_v52  ;;  %4209 = vmatprep.subr.bf16.mxu1 %v4790_v52 }
 0x195   : > { %v2211_v0 = vrot.slane %v2209_v49, 3 }
 0x197   : > { %4030 = vmatpush3.bf16.msra.mxu0 %v4790_v52  ;;  %4210 = vmatpush3.bf16.msra.mxu1 %v4790_v52  ;;  %v2214_v52 = vshrl.u32 %v5506_v43, 16 }
 0x198   : > { %4031 = vmatprep.subr.bf16.mxu0 %v4801_v53  ;;  %4211 = vmatprep.subr.bf16.mxu1 %v4801_v53 }
 0x199   : > { %v2216_v1 = vrot.slane %v2214_v52, 2 }
 0x19b   : > { %4032 = vmatpush3.bf16.msra.mxu0 %v4801_v53  ;;  %4212 = vmatpush3.bf16.msra.mxu1 %v4801_v53  ;;  %v2217_v53 = vshll.u32 %v5506_v43, 16 }
 0x19c   : > { %4033 = vmatprep.subr.bf16.mxu0 %v4810_v54  ;;  %4213 = vmatprep.subr.bf16.mxu1 %v4810_v54 }
 0x19f   : > { %4034 = vmatpush3.bf16.msra.mxu0 %v4810_v54  ;;  %4214 = vmatpush3.bf16.msra.mxu1 %v4810_v54  ;;  %v2290_v54 = vshrl.u32 %v3224_v44, 16 }
 0x1a0   : > { %4035 = vmatprep.subr.bf16.mxu0 %v4819_v55  ;;  %4215 = vmatprep.subr.bf16.mxu1 %v4819_v55 }
 0x1a1   : > { %v2292_v5 = vrot.slane %v2290_v54, 2 }
 0x1a3   : > { %4036 = vmatpush3.bf16.msra.mxu0 %v4819_v55  ;;  %4216 = vmatpush3.bf16.msra.mxu1 %v4819_v55  ;;  %v2293_v55 = vshll.u32 %v3224_v44, 16 }
 0x1a4   : > { %4037 = vmatprep.subr.bf16.mxu0 %v4828_v56  ;;  %4217 = vmatprep.subr.bf16.mxu1 %v4828_v56 }
 0x1a7   : > { %4038 = vmatpush3.bf16.msra.mxu0 %v4828_v56  ;;  %4218 = vmatpush3.bf16.msra.mxu1 %v4828_v56  ;;  %v2298_v56 = vshrl.u32 %v5510_v45, 16 }
 0x1a8   : > { %4039 = vmatprep.subr.bf16.mxu0 %v4841_v59  ;;  %4219 = vmatprep.subr.bf16.mxu1 %v4841_v59 }
 0x1ab   : > { %4040 = vmatpush3.bf16.msra.mxu0 %v4841_v59  ;;  %4220 = vmatpush3.bf16.msra.mxu1 %v4841_v59  ;;  %v2301_v59 = vshll.u32 %v5510_v45, 16 }
 0x1ac   : > { %4045 = vmatprep.subr.bf16.mxu0 %v4852_v63  ;;  %4225 = vmatprep.subr.bf16.mxu1 %v4852_v63 }
 0x1ae   : > { %4042 = vmatmul.mubr.bf16.vlgmr.msra.gmra.mrb[4].mxu0 %v5054_v39  ;;  %4222 = vmatmul.mubr.bf16.vlgmr.msra.gmra.mrb[4].mxu1 %v5056_v48 }
 0x1af   : > { %4046 = vmatpush3.bf16.msra.mxu0 %v4852_v63  ;;  %4226 = vmatpush3.bf16.msra.mxu1 %v4852_v63  ;;  %v2208_v63 = vrot.slane %v2206_v47, 2 }
 0x1b0   : > { %4047 = vmatprep.subr.bf16.mxu0 %v4867_v4  ;;  %4227 = vmatprep.subr.bf16.mxu1 %v4867_v4 }
 0x1b1   : > { %4061 = vmatprep.mubr.bf16.mxu0 %v5075_v58  ;;  %4241 = vmatprep.mubr.bf16.mxu1 %v5160_v33  ;;  %v2363_v58 = vrot.slane %v3227_v57, 3 }
 0x1b3   : > { %4048 = vmatpush3.bf16.msra.mxu0 %v4867_v4  ;;  %4228 = vmatpush3.bf16.msra.mxu1 %v4867_v4  ;;  %v2219_v4 = vrot.slane %v2217_v53, 3 }
 0x1b4   : > { %4049 = vmatprep.subr.bf16.mxu0 %v4881_v6  ;;  %4229 = vmatprep.subr.bf16.mxu1 %v4881_v6 }
 0x1b7   : > { %4050 = vmatpush3.bf16.msra.mxu0 %v4881_v6  ;;  %4230 = vmatpush3.bf16.msra.mxu1 %v4881_v6  ;;  %v2295_v6 = vrot.slane %v2293_v55, 3 }
 0x1b8   : > { %4051 = vmatprep.subr.bf16.mxu0 %v4892_v7  ;;  %4231 = vmatprep.subr.bf16.mxu1 %v4892_v7 }
 0x1bb   : > { %4052 = vmatpush3.bf16.msra.mxu0 %v4892_v7  ;;  %4232 = vmatpush3.bf16.msra.mxu1 %v4892_v7  ;;  %v2300_v7 = vrot.slane %v2298_v56, 2 }
 0x1bc   : > { %4053 = vmatprep.subr.bf16.mxu0 %v4901_v8  ;;  %4233 = vmatprep.subr.bf16.mxu1 %v4901_v8 }
 0x1bf   : > { %4054 = vmatpush3.bf16.msra.mxu0 %v4901_v8  ;;  %4234 = vmatpush3.bf16.msra.mxu1 %v4901_v8  ;;  %v2303_v8 = vrot.slane %v2301_v59, 3 }
 0x1c0   : > { %4055 = vmatprep.subr.bf16.mxu0 %v4910_v9  ;;  %4235 = vmatprep.subr.bf16.mxu1 %v4910_v9 }
 0x1c3   : > { %4056 = vmatpush3.bf16.msra.mxu0 %v4910_v9  ;;  %4236 = vmatpush3.bf16.msra.mxu1 %v4910_v9  ;;  %v2212_v9 = vor.u32 %v2211_v0, %v2208_v63 }
 0x1c4   : > { %4057 = vmatprep.subr.bf16.mxu0 %v4919_v10  ;;  %4237 = vmatprep.subr.bf16.mxu1 %v4919_v10 }
 0x1c7   : > { %4058 = vmatpush3.bf16.msra.mxu0 %v4919_v10  ;;  %4238 = vmatpush3.bf16.msra.mxu1 %v4919_v10  ;;  %v2220_v10 = vor.u32 %v2219_v4, %v2216_v1 }
 0x1c8   : > { %4059 = vmatprep.subr.bf16.mxu0 %v4932_v13  ;;  %4239 = vmatprep.subr.bf16.mxu1 %v4932_v13 }
 0x1c9   : > { %v2221_v19 = vsel %vm990_vm1, %v2212_v9, %v2220_v10 }
 0x1cb   : > { %4060 = vmatpush3.bf16.msra.mxu0 %v4932_v13  ;;  %4240 = vmatpush3.bf16.msra.mxu1 %v4932_v13  ;;  %v2296_v13 = vor.u32 %v2295_v6, %v2292_v5 }
 0x1cc   : > { %4065 = vmatprep.subr.bf16.mxu0 %v4944_v18  ;;  %4245 = vmatprep.subr.bf16.mxu1 %v4944_v18 }
 0x1ce   : > { %4062 = vmatmul.mubr.bf16.vlgmr.msra.gmra.mrb[4].mxu0 %v5056_v48  ;;  %4242 = vmatmul.mubr.bf16.vlgmr.msra.gmra.mrb[4].mxu1 %v5145_v27 }
 0x1cf   : > { %4066 = vmatpush3.bf16.msra.mxu0 %v4944_v18  ;;  %4246 = vmatpush3.bf16.msra.mxu1 %v4944_v18  ;;  %v5528_v18 = vor.u32 %v2303_v8, %v2300_v7 }
 0x1d0   : > { %4067 = vmatprep.subr.bf16.mxu0 %v4957_v22  ;;  %4247 = vmatprep.subr.bf16.mxu1 %v4957_v22 }
 0x1d1   : > { %4081 = vmatprep.mubr.bf16.mxu0 %v5160_v33  ;;  %4261 = vmatprep.mubr.bf16.mxu1 %v5245_v36  ;;  %v2829_v36 = vrot.slane %v5510_v45, 3 }
 0x1d3   : > { %4068 = vmatpush3.bf16.msra.mxu0 %v4957_v22  ;;  %4248 = vmatpush3.bf16.msra.mxu1 %v4957_v22  ;;  %v2305_v22 = vsel %vm990_vm1, %v2296_v13, %v5528_v18 }
 0x1d4   : > { %4069 = vmatprep.subr.bf16.mxu0 %v4972_v24  ;;  %4249 = vmatprep.subr.bf16.mxu1 %v4972_v24 }
 0x1d7   : > { %4070 = vmatpush3.bf16.msra.mxu0 %v4972_v24  ;;  %4250 = vmatpush3.bf16.msra.mxu1 %v4972_v24 }
 0x1d8   : > { %4071 = vmatprep.subr.bf16.mxu0 %v4983_v25  ;;  %4251 = vmatprep.subr.bf16.mxu1 %v4983_v25 }
 0x1db   : > { %4072 = vmatpush3.bf16.msra.mxu0 %v4983_v25  ;;  %4252 = vmatpush3.bf16.msra.mxu1 %v4983_v25 }
 0x1dc   : > { %4073 = vmatprep.subr.bf16.mxu0 %v4992_v26  ;;  %4253 = vmatprep.subr.bf16.mxu1 %v4992_v26 }
 0x1df   : > { %4074 = vmatpush3.bf16.msra.mxu0 %v4992_v26  ;;  %4254 = vmatpush3.bf16.msra.mxu1 %v4992_v26 }
 0x1e0   : > { %4075 = vmatprep.subr.bf16.mxu0 %v5009_v31  ;;  %4255 = vmatprep.subr.bf16.mxu1 %v5009_v31 }
 0x1e3   : > { %4076 = vmatpush3.bf16.msra.mxu0 %v5009_v31  ;;  %4256 = vmatpush3.bf16.msra.mxu1 %v5009_v31 }
 0x1e4   : > { %4077 = vmatprep.subr.bf16.mxu0 %v5026_v37  ;;  %4257 = vmatprep.subr.bf16.mxu1 %v5026_v37 }
 0x1e7   : > { %4078 = vmatpush3.bf16.msra.mxu0 %v5026_v37  ;;  %4258 = vmatpush3.bf16.msra.mxu1 %v5026_v37 }
 0x1e8   : > { %4079 = vmatprep.subr.bf16.mxu0 %v5039_v2  ;;  %4259 = vmatprep.subr.bf16.mxu1 %v5039_v2 }
 0x1eb   : > { %4080 = vmatpush3.bf16.msra.mxu0 %v5039_v2  ;;  %4260 = vmatpush3.bf16.msra.mxu1 %v5039_v2 }
 0x1ec   : > { %4085 = vmatprep.subr.bf16.mxu0 %v5049_v11  ;;  %4265 = vmatprep.subr.bf16.mxu1 %v5049_v11 }
 0x1ee   : > { %4082 = vmatmul.mubr.bf16.vlgmr.msra.gmra.mrb[4].mxu0 %v5145_v27  ;;  %4262 = vmatmul.mubr.bf16.vlgmr.msra.gmra.mrb[4].mxu1 %v5230_v28  ;;  %v3228_v27 = vld [vmem:[%s4629_s25 + $0x30] sm:$0x8] }
 0x1ef   : > { %4086 = vmatpush3.bf16.msra.mxu0 %v5049_v11  ;;  %4266 = vmatpush3.bf16.msra.mxu1 %v5049_v11  ;;  %v3229_v28 = vcombine.low %v3228_v27, %v5500_v41  ;;  %v3230_v41 = vld [vmem:[%s5687_s2] ss:$0 sm:$0xff] }
 0x1f0   : > { %4087 = vmatprep.subr.bf16.mxu0 %v5065_v21  ;;  %4267 = vmatprep.subr.bf16.mxu1 %v5065_v21 }
 0x1f1   : > { %4101 = vmatprep.mubr.bf16.mxu0 %v2221_v19  ;;  %4281 = vmatprep.mubr.bf16.mxu1 %v2305_v22  ;;  %v2828_v33 = vrot.slane %v3229_v28, 3 }
 0x1f3   : > { %4088 = vmatpush3.bf16.msra.mxu0 %v5065_v21  ;;  %4268 = vmatpush3.bf16.msra.mxu1 %v5065_v21 }
 0x1f4   : > { %4089 = vmatprep.subr.bf16.mxu0 %v5084_v60  ;;  %4269 = vmatprep.subr.bf16.mxu1 %v5084_v60 }
 0x1f7   : > { %4090 = vmatpush3.bf16.msra.mxu0 %v5084_v60  ;;  %4270 = vmatpush3.bf16.msra.mxu1 %v5084_v60  ;;  %v5588_v60 = vrot.slane %v5506_v43, 3 }
 0x1f8   : > { %4091 = vmatprep.subr.bf16.mxu0 %v5095_v61  ;;  %4271 = vmatprep.subr.bf16.mxu1 %v5095_v61 }
 0x1fb   : > { %4092 = vmatpush3.bf16.msra.mxu0 %v5095_v61  ;;  %4272 = vmatpush3.bf16.msra.mxu1 %v5095_v61  ;;  %v2365_v61 = vsel %vm1279_vm2, %v2363_v58, %v5588_v60 }
 0x1fc   : > { %4093 = vmatprep.subr.bf16.mxu0 %v5104_v62  ;;  %4273 = vmatprep.subr.bf16.mxu1 %v5104_v62 }
 0x1ff   : > { %4094 = vmatpush3.bf16.msra.mxu0 %v5104_v62  ;;  %4274 = vmatpush3.bf16.msra.mxu1 %v5104_v62  ;;  %v5722_v62 = vld [vmem:[#allocation2_spill] sm:$0xff] }
 0x200   : > { %4095 = vmatprep.subr.bf16.mxu0 %v5113_v3  ;;  %4275 = vmatprep.subr.bf16.mxu1 %v5113_v3 }
 0x201   : > { %v5559_v23 = vpop.f32.mrb[0].mxu0  ;;  %v5561_v24 = vpop.f32.mrb[0].mxu1 }
 0x202   : > { %v1890_v25 = vmax.f32 %v5559_v23, %v5561_v24  ;;  %v5565_v26 = vpop.f32.mrb[1].mxu0  ;;  %v5567_v31 = vpop.f32.mrb[1].mxu1 }
 0x203   : > { %v1888_v37 = vmax.f32 %v5565_v26, %v5567_v31  ;;  %v3784_v2 = vpop.f32.mrb[2].mxu0  ;;  %v3964_v11 = vpop.f32.mrb[2].mxu1  ;;  %4096 = vmatpush3.bf16.msra.mxu0 %v5113_v3  ;;  %4276 = vmatpush3.bf16.msra.mxu1 %v5113_v3  ;;  %v5723_v3 = vld [vmem:[#allocation3_spill] sm:$0xff] }
 0x204   : > { %v5574_v39 = vpop.f32.mrb[3].mxu0  ;;  %v5576_v48 = vpop.f32.mrb[3].mxu1  ;;  %4097 = vmatprep.subr.bf16.mxu0 %v5122_v12  ;;  %4277 = vmatprep.subr.bf16.mxu1 %v5122_v12 }
 0x205   : > { %v1889_v21 = vmax.f32 %v5574_v39, %v5576_v48 }
 0x207   : > { %4098 = vmatpush3.bf16.msra.mxu0 %v5122_v12  ;;  %4278 = vmatpush3.bf16.msra.mxu1 %v5122_v12  ;;  %v5724_v12 = vld [vmem:[#allocation4_spill] sm:$0xff] }
 0x208   : > { %4099 = vmatprep.subr.bf16.mxu0 %v5132_v15  ;;  %4279 = vmatprep.subr.bf16.mxu1 %v5132_v15 }
 0x20b   : > { %4100 = vmatpush3.bf16.msra.mxu0 %v5132_v15  ;;  %4280 = vmatpush3.bf16.msra.mxu1 %v5132_v15  ;;  %v5725_v15 = vld [vmem:[#allocation5_spill] sm:$0xff] }
 0x20c   : > { %4105 = vmatprep.subr.bf16.mxu0 %v5142_v17  ;;  %4285 = vmatprep.subr.bf16.mxu1 %v5142_v17 }
 0x20e   : > { %4102 = vmatmul.mubr.bf16.vlgmr.msra.gmra.mrb[4].mxu0 %v2220_v10  ;;  %4282 = vmatmul.mubr.bf16.vlgmr.msra.gmra.mrb[4].mxu1 %v5528_v18 }
 0x20f   : > { %4106 = vmatpush3.bf16.msra.mxu0 %v5142_v17  ;;  %4286 = vmatpush3.bf16.msra.mxu1 %v5142_v17  ;;  %v5726_v17 = vld [vmem:[#allocation6_spill] sm:$0xff] }
 0x210   : > { %4107 = vmatprep.subr.bf16.mxu0 %v5722_v62  ;;  %4287 = vmatprep.subr.bf16.mxu1 %v5722_v62 }
 0x211   : > { %4121 = vmatprep.mubr.bf16.mxu0 %v2305_v22  ;;  %4301 = vmatprep.mubr.bf16.mxu1 %v2365_v61 }
 0x213   : > { %4108 = vmatpush3.bf16.msra.mxu0 %v5722_v62  ;;  %4288 = vmatpush3.bf16.msra.mxu1 %v5722_v62 }
 0x214   : > { %4109 = vmatprep.subr.bf16.mxu0 %v5723_v3  ;;  %4289 = vmatprep.subr.bf16.mxu1 %v5723_v3 }
 0x217   : > { %4110 = vmatpush3.bf16.msra.mxu0 %v5723_v3  ;;  %4290 = vmatpush3.bf16.msra.mxu1 %v5723_v3 }
 0x218   : > { %4111 = vmatprep.subr.bf16.mxu0 %v5724_v12  ;;  %4291 = vmatprep.subr.bf16.mxu1 %v5724_v12 }
 0x21b   : > { %4112 = vmatpush3.bf16.msra.mxu0 %v5724_v12  ;;  %4292 = vmatpush3.bf16.msra.mxu1 %v5724_v12 }
 0x21c   : > { %4113 = vmatprep.subr.bf16.mxu0 %v5725_v15  ;;  %4293 = vmatprep.subr.bf16.mxu1 %v5725_v15 }
 0x21f   : > { %4114 = vmatpush3.bf16.msra.mxu0 %v5725_v15  ;;  %4294 = vmatpush3.bf16.msra.mxu1 %v5725_v15 }
 0x220   : > { %4115 = vmatprep.subr.bf16.mxu0 %v5726_v17  ;;  %4295 = vmatprep.subr.bf16.mxu1 %v5726_v17 }
 0x223   : > { %4116 = vmatpush3.bf16.msra.mxu0 %v5726_v17  ;;  %4296 = vmatpush3.bf16.msra.mxu1 %v5726_v17 }
 0x224   : > { %4117 = vmatprep.subr.bf16.mxu0 %v5207_v16  ;;  %4297 = vmatprep.subr.bf16.mxu1 %v5207_v16 }
 0x227   : > { %4118 = vmatpush3.bf16.msra.mxu0 %v5207_v16  ;;  %4298 = vmatpush3.bf16.msra.mxu1 %v5207_v16  ;;  %v2830_v16 = vsel %vm1279_vm2, %v2828_v33, %v2829_v36 }
 0x228   : > { %4119 = vmatprep.subr.bf16.mxu0 %v5217_v46  ;;  %4299 = vmatprep.subr.bf16.mxu1 %v5217_v46 }
 0x22b   : > { %4120 = vmatpush3.bf16.msra.mxu0 %v5217_v46  ;;  %4300 = vmatpush3.bf16.msra.mxu1 %v5217_v46  ;;  %v5727_v46 = vld [vmem:[#allocation7_spill] sm:$0xff] }
 0x22c   : > { %4125 = vmatprep.subr.bf16.mxu0 %v5227_v14  ;;  %4305 = vmatprep.subr.bf16.mxu1 %v5227_v14 }
 0x22e   : > { %4122 = vmatmul.mubr.bf16.vlgmr.msra.gmra.mrb[4].mxu0 %v5528_v18  ;;  %4302 = vmatmul.mubr.bf16.vlgmr.msra.gmra.mrb[4].mxu1 %v5588_v60 }
 0x22f   : > { %4126 = vmatpush3.bf16.msra.mxu0 %v5227_v14  ;;  %4306 = vmatpush3.bf16.msra.mxu1 %v5227_v14  ;;  %v5729_v14 = vld [vmem:[#allocation9_spill] sm:$0xff] }
 0x230   : > { %4127 = vmatprep.subr.bf16.mxu0 %v5239_v30  ;;  %4307 = vmatprep.subr.bf16.mxu1 %v5239_v30 }
 0x231   : > { %4141 = vmatprep.mubr.bf16.mxu0 %v2365_v61  ;;  %4321 = vmatprep.mubr.bf16.mxu1 %v2830_v16 }
 0x233   : > { %4128 = vmatpush3.bf16.msra.mxu0 %v5239_v30  ;;  %4308 = vmatpush3.bf16.msra.mxu1 %v5239_v30  ;;  %v5730_v30 = vld [vmem:[#allocation10_spill] sm:$0xff] }
 0x234   : > { %4129 = vmatprep.subr.bf16.mxu0 %v5727_v46  ;;  %4309 = vmatprep.subr.bf16.mxu1 %v5727_v46 }
 0x237   : > { %4130 = vmatpush3.bf16.msra.mxu0 %v5727_v46  ;;  %4310 = vmatpush3.bf16.msra.mxu1 %v5727_v46 }
 0x238   : > { %4131 = vmatprep.subr.bf16.mxu0 %v5728_v50  ;;  %4311 = vmatprep.subr.bf16.mxu1 %v5728_v50 }
 0x23b   : > { %4132 = vmatpush3.bf16.msra.mxu0 %v5728_v50  ;;  %4312 = vmatpush3.bf16.msra.mxu1 %v5728_v50 }
 0x23c   : > { %4133 = vmatprep.subr.bf16.mxu0 %v5729_v14  ;;  %4313 = vmatprep.subr.bf16.mxu1 %v5729_v14 }
 0x23f   : > { %4134 = vmatpush3.bf16.msra.mxu0 %v5729_v14  ;;  %4314 = vmatpush3.bf16.msra.mxu1 %v5729_v14 }
 0x240   : > { %4135 = vmatprep.subr.bf16.mxu0 %v5730_v30  ;;  %4315 = vmatprep.subr.bf16.mxu1 %v5730_v30 }
 0x243   : > { %4136 = vmatpush3.bf16.msra.mxu0 %v5730_v30  ;;  %4316 = vmatpush3.bf16.msra.mxu1 %v5730_v30 }
 0x244   : > { %4137 = vmatprep.subr.bf16.mxu0 %v5731_v51  ;;  %4317 = vmatprep.subr.bf16.mxu1 %v5731_v51 }
 0x247   : > { %4138 = vmatpush3.bf16.msra.mxu0 %v5731_v51  ;;  %4318 = vmatpush3.bf16.msra.mxu1 %v5731_v51 }
 0x248   : > { %4139 = vmatprep.subr.bf16.mxu0 %v5732_v35  ;;  %4319 = vmatprep.subr.bf16.mxu1 %v5732_v35 }
 0x24b   : > { %4140 = vmatpush3.bf16.msra.mxu0 %v5732_v35  ;;  %4320 = vmatpush3.bf16.msra.mxu1 %v5732_v35 }
 0x24e   : > { %4142 = vmatmul.mubr.bf16.vlgmr.msra.gmra.mrb[4].mxu0 %v5588_v60  ;;  %4322 = vmatmul.mubr.bf16.vlgmr.msra.gmra.mrb[4].mxu1 %v2829_v36 }
 0x321   : > { %v4143_v29 = vpop.f32.mrb[4].mxu0  ;;  %v4323_v20 = vpop.f32.mrb[4].mxu1 }
 0x322   : > { %v2421_v34 = vmax.f32 %v1890_v25, %v4143_v29  ;;  %v2402_v38 = vpop.f32.mrb[5].mxu0  ;;  %v2867_v40 = vpop.f32.mrb[5].mxu1 }
 0x323   : > { %v2419_v42 = vmax.f32 %v1888_v37, %v2402_v38  ;;  %v4144_v43 = vpop.f32.mrb[6].mxu0  ;;  %v4324_v44 = vpop.f32.mrb[6].mxu1 }
 0x324   : > { %v2886_v45 = vmax.f32 %v2421_v34, %v4323_v20  ;;  %v2405_v47 = vpop.f32.mrb[7].mxu0  ;;  %v2870_v49 = vpop.f32.mrb[7].mxu1 }
 0x325   : > { %v2884_v52 = vmax.f32 %v2419_v42, %v2867_v40  ;;  %v2420_v53 = vmax.f32 %v1889_v21, %v2405_v47 }
 0x326   : > { %v2896_v54 = vadd.f32 %v3230_v41, %v2886_v45 }
 0x327   : > { %v2894_v55 = vadd.f32 %v3230_v41, %v2884_v52  ;;  %v2885_v56 = vmax.f32 %v2420_v53, %v2870_v49 }
 0x328   : > { %v2899_v59 = vmax.f32 %v2896_v54, 0.0 }
 0x329   : > { %v2895_v63 = vadd.f32 %v3230_v41, %v2885_v56  ;;  %v2897_v1 = vmax.f32 %v2894_v55, 0.0 }
 0x32a   : > { %v3239_v0 = vpack.c.bf16 %v2899_v59, %v2899_v59 }
 0x32b   : > { %v2898_v4 = vmax.f32 %v2895_v63, 0.0 }
 0x32c   : > { %2915 = vst [vmem:[%s170_s5 + $0x8] sm:$0x3] %v3239_v0 }
 0x32d   : > { %v3243_v5 = vpack.c.bf16 %v2898_v4, %v2897_v1 }
 0x32f   : > { %3244 = vst [vmem:[%s170_s5] sm:$0xff] %v3243_v5  }
 0x330 PF: > { %s13_s12 = sadd.s32 1, %s4581_s12  }
 0x331   : > { %p10_p4 = scmp.ge.s32.totalorder %s13_s12, 4  }
 0x333   :  { %12 = sbr.rel (!%p10_p4) target bundleno = 1 (0x1), region = 73 }

// kernel: diffusion_model_forward.4
= control target key start
LH: loop header
LB: loop body
LE: loop exit
PB: predicated region body
PF: predicated region fallthrough
CT: control target
= control target key end

     0   :  { %s6384_s12 = smov 0   ;;  %s7615_s0 = inlined_call_operand.vmem [shape: bf16[2,2,2,90,3], index: 0, kind: input, shape index: {}]   ;;  %s7616_s1 = inlined_call_operand.vmem [shape: bf16[3,3,3,128], index: 1, kind: input, shape index: {}]   ;;  %s7617_s2 = inlined_call_operand.vmem [shape: f32[1,128], index: 2, kind: input, shape index: {}]   ;;  %s7618_s3 = inlined_call_operand.vmem [shape: bf16[2,72,128], index: 3, kind: output, shape index: {}]  }
   0x1 LB: > { %s4235_s13 = sadd.s32 4294967295, %s6359_s12   ;;  %p4239_p0 = scmp.ge.s32.totalorder %s6359_s12, 1  ;;  %s6359_s12 = sphi %s6384_s12, %s13_s12  }
   0x2   : > { %p137_p1 = scmp.lt.s32.totalorder %s6359_s12, 3 }
   0x4   : > { %p138_p2 = pnand %p4239_p0, %p137_p1 }
   0x5   : > { %v4251_v0 = vld [vmem:[%s7616_s1 + $0x2] sm:$0x3] (!%p138_p2)  ;;  %vm233_vm0 = vcmask (!%p138_p2), 1040384   ;;  %vm234_vm1 = vcmask (!%p138_p2), 1041408   ;;  %v6361_v1 = vmov (!%p138_p2), 0.0   ;;  %v6362_v2 = vmov (!%p138_p2), 65535  }
   0x6   : > { %141 = sbr.rel (%p138_p2) target bundleno = 958 (0x3be), region = 32  ;;  %4844 = vmatprep.subr.bf16.mxu0 (!%p138_p2), %v6361_v1  ;;  %v235_v3 = vsel (!%p138_p2), %vm233_vm0, 4294967295, %v6362_v2  ;;  %p161_p3 = scmp.lt.s32.totalorder (!%p138_p2), %s4235_s13, 1  ;;  %5042 = vmatprep.subr.bf16.mxu1 (!%p138_p2), %v6361_v1  ;;  %vm6363_vm2 = vmmov (!%p138_p2), 0   ;;  %v181_v6 = vld [vmem:[%s7616_s1] sm:$0x3] (!%p138_p2) }
   0x7   : > { %v6397_v4 = vsel (!%p138_p2), %vm234_vm1, %v235_v3, 0  ;;  %4846 = vmatprep.mubr.msk.bf16.mxu0 (!%p138_p2), %vm6363_vm2, %v6361_v1  ;;  %5044 = vmatprep.mubr.msk.bf16.mxu1 (!%p138_p2), %vm6363_vm2, %v6361_v1  ;;  %vm217_vm3 = vcmask (!%p138_p2), 23552   ;;  %vm462_vm4 = vsmask.f32 (!%p138_p2), 7424  ;;  %v4272_v41 = vld [vmem:[%s7616_s1 + $0x4] sm:$0x3] (!%p138_p2) }
   0x8   : > { %v6404_v5 = vand.u32 (!%p138_p2), %v4251_v0, %v6397_v4  ;;  %v6422_v7 = vand.u32 (!%p138_p2), %v6397_v4, %v181_v6  ;;  %v6491_v44 = vand.u32 (!%p138_p2), %v4272_v41, %v6397_v4  ;;  %v4292_v50 = vld [vmem:[%s7616_s1 + $0x6] sm:$0x3] (!%p138_p2)  ;;  %vm1400_vm5 = vcmask (!%p138_p2), 1046528  }
   0x9   : > { %v6539_v53 = vand.u32 (!%p138_p2), %v4292_v50, %v6397_v4 }
   0xa   : > { %4845 = vmatpush3.bf16.msra.mxu0 (!%p138_p2), %v6404_v5  ;;  %5043 = vmatpush3.bf16.msra.mxu1 (!%p138_p2), %v6404_v5 }
   0xb   : > { %4866 = vmatprep.subr.bf16.mxu0 (!%p138_p2), %v6361_v1  ;;  %5064 = vmatprep.subr.bf16.mxu1 (!%p138_p2), %v6361_v1 }
   0xd   : > { %s7620_s13 = smov (!%p161_p3, %s4235_s13), 1 }
   0xe   : > { %s6276_s18 = smul.u32 192, %s7620_s13 }
   0xf   : > { %s6277_s11 = smul.u32 36, %s7620_s13 }
  0x10   : > { %s6419_s21 = scalar_lea.vmem %s7615_s0, %s6276_s18 }
  0x11   : > { %v6425_v8 = vld [vmem:[%s6419_s21 + $0x30] sm:$0xff]   ;;  %v6290_v9 = vld [vmem:[%s6419_s21] sm:$0xff]   ;;  %v6291_v10 = vld [vmem:[%s6419_s21 + $0x8] sm:$0xff]   ;;  %s7583_s16 = scalar_lea.vmem %s7618_s3, %s6277_s11 }
  0x12   : > { %4847 = vmatmul.mubr.msk.bf16.vlgmr.msra.gmra.mrb[0].mxu0 %vm217_vm3, %v6425_v8  ;;  %v464_v11 = vshrl.u32 %v6290_v9, 16  ;;  %v466_v12 = vshll.u32 %v6290_v9, 16  ;;  %v471_v13 = vshll.u32 %v6291_v10, 16  ;;  %v6293_v14 = vld [vmem:[%s6419_s21 + $0x10] sm:$0xff]   ;;  %v6292_v17 = vld [vmem:[%s6419_s21 + $0x38] sm:$0xff]   ;;  %v475_v20 = vshrl.u32 %v6291_v10, 16 }
  0x13   : > { %4867 = vmatpush3.bf16.msra.mxu0 %v6422_v7  ;;  %4850 = vmatprep.mubr.msk.bf16.mxu0 %vm6363_vm2, %v6361_v1  ;;  %v479_v18 = vshll.u32 %v6293_v14, 16  ;;  %v6295_v23 = vld [vmem:[%s6419_s21 + $0x18] sm:$0xff]   ;;  %v6294_v25 = vld [vmem:[%s6419_s21 + $0x40] sm:$0xff]   ;;  %v483_v26 = vshrl.u32 %v6293_v14, 16  ;;  %v6296_v32 = vld [vmem:[%s6419_s21 + $0x48] sm:$0xff]  }
  0x14   : > { %4888 = vmatprep.subr.bf16.mxu0 %v6361_v1  ;;  %v468_v15 = vrot.slane %v466_v12, 1  ;;  %v473_v16 = vrot.slane %v471_v13, 1  ;;  %v487_v27 = vshll.u32 %v6295_v23, 16  ;;  %v6297_v31 = vld [vmem:[%s6419_s21 + $0x20] sm:$0x1f]   ;;  %v491_v34 = vshrl.u32 %v6295_v23, 16 }
  0x15   : > { %v481_v22 = vrot.slane %v479_v18, 1  ;;  %v495_v35 = vshll.u32 %v6297_v31, 16  ;;  %v6298_v38 = vld [vmem:[%s6419_s21 + $0x50] ss:$0 sps:$4 sm:$0xff]   ;;  %v499_v40 = vshrl.u32 %v6297_v31, 16  ;;  %v6299_v42 = vld [vmem:[%s6419_s21] sm:$0xff]  }
  0x16   : > { %v469_v19 = vor.u32 %v468_v15, %v464_v11  ;;  %v477_v24 = vor.u32 %v475_v20, %v473_v16  ;;  %v489_v30 = vrot.slane %v487_v27, 1  ;;  %v6300_v45 = vld [vmem:[%s6419_s21 + $0x8] sm:$0xff]   ;;  %v6301_v46 = vld [vmem:[%s6419_s21 + $0x10] sm:$0xff]   ;;  %v6302_v47 = vld [vmem:[%s6419_s21 + $0x18] sm:$0xff]  }
  0x17   : > { %v485_v29 = vor.u32 %v483_v26, %v481_v22  ;;  %v497_v37 = vrot.slane %v495_v35, 1  ;;  %v6303_v48 = vld [vmem:[%s6419_s21 + $0x20] ss:$0 sps:$4 sm:$0xff]   ;;  %v6304_v49 = vld [vmem:[%s6419_s21 + $0x30] sm:$0xff]   ;;  %v6305_v51 = vld [vmem:[%s6419_s21 + $0x38] sm:$0xff]  }
  0x18   : > { %v6438_v21 = vsel %vm462_vm4, %v469_v19, %v473_v16  ;;  %v6452_v28 = vsel %vm462_vm4, %v477_v24, %v481_v22  ;;  %v493_v36 = vor.u32 %v491_v34, %v489_v30  ;;  %v1691_v52 = vshll.u32 %v6304_v49, 16  ;;  %v6306_v59 = vld [vmem:[%s6419_s21 + $0x40] sm:$0xff]   ;;  %v6307_v2 = vld [vmem:[%s6419_s21 + $0x48] sm:$0xff]   ;;  %v6308_v11 = vld [vmem:[%s6419_s21 + $0x50] sm:$0x1f]  }
  0x19   : > { %5045 = vmatmul.mubr.msk.bf16.vlgmr.msra.gmra.mrb[0].mxu1 %vm217_vm3, %v6438_v21  ;;  %v6464_v33 = vsel %vm462_vm4, %v485_v29, %v489_v30  ;;  %v6488_v43 = vor.u32 %v499_v40, %v497_v37  ;;  %v1689_v54 = vshrl.u32 %v6304_v49, 16  ;;  %v1696_v56 = vshll.u32 %v6305_v51, 16  ;;  %v4312_v19 = vld [vmem:[%s7616_s1 + $0x8] sm:$0x3]  ;;  %v6591_v20 = vld [vmem:[%s6419_s21 + $0x60] sm:$0xff]   ;;  %v6609_v24 = vld [vmem:[%s6419_s21 + $0x90] sm:$0xff]  }
  0x1a   : > { %4851 = vmatmul.mubr.msk.bf16.gmra.mrb[4].mxu0 %vm217_vm3, %v6292_v17  ;;  %5065 = vmatpush3.bf16.msra.mxu1 %v6422_v7  ;;  %v6475_v39 = vsel %vm462_vm4, %v493_v36, %v497_v37  ;;  %v1693_v55 = vrot.slane %v1691_v52, 1  ;;  %v1700_v61 = vshrl.u32 %v6305_v51, 16  ;;  %v1704_v62 = vshll.u32 %v6306_v59, 16  ;;  %v6606_v23 = vld [vmem:[%s6419_s21 + $0x68] sm:$0xff]   ;;  %v6625_v26 = vld [vmem:[%s6419_s21 + $0x98] sm:$0xff]   ;;  %v6319_v31 = vld [vmem:[%s6419_s21 + $0x60] sm:$0xff]  }
  0x1b   : > { %4854 = vmatprep.mubr.msk.bf16.mxu0 %vm6363_vm2, %v6361_v1  ;;  %5048 = vmatprep.mubr.msk.bf16.mxu1 %vm6363_vm2, %v6361_v1  ;;  %v1698_v58 = vrot.slane %v1696_v56, 1  ;;  %v1708_v6 = vshrl.u32 %v6306_v59, 16  ;;  %v1716_v13 = vshrl.u32 %v6307_v2, 16  ;;  %v1720_v14 = vshll.u32 %v6308_v11, 16  ;;  %v6636_v27 = vld [vmem:[%s6419_s21 + $0x78] sm:$0xff]   ;;  %v6653_v30 = vld [vmem:[%s6419_s21 + $0xa8] sm:$0xff]  }
  0x1c   : > { %5086 = vmatprep.subr.bf16.mxu1 %v6361_v1  ;;  %v1694_v57 = vor.u32 %v1693_v55, %v1689_v54  ;;  %v1706_v0 = vrot.slane %v1704_v62, 1  ;;  %v1724_v18 = vshrl.u32 %v6308_v11, 16  ;;  %v6594_v22 = vand.u32 %v4312_v19, %v6397_v4  ;;  %v6650_v29 = vld [vmem:[%s6419_s21 + $0x80] ss:$0 sps:$4 sm:$0xff]   ;;  %v6669_v35 = vld [vmem:[%s6419_s21 + $0xb0] ss:$0 sps:$4 sm:$0xff]  }
  0x1d   : > { %v1702_v63 = vor.u32 %v1700_v61, %v1698_v58  ;;  %v1722_v16 = vrot.slane %v1720_v14, 1  ;;  %v909_v34 = vshll.u32 %v6319_v31, 16  ;;  %v907_v37 = vshrl.u32 %v6319_v31, 16  ;;  %v6322_v49 = vld [vmem:[%s6419_s21 + $0x78] sm:$0xff]   ;;  %v6323_v56 = vld [vmem:[%s6419_s21 + $0x80] sm:$0x1f]  }
  0x1e   : > { %v1699_v60 = vsel %vm462_vm4, %v1694_v57, %v1698_v58  ;;  %v1710_v9 = vor.u32 %v1708_v6, %v1706_v0  ;;  %v930_v52 = vshll.u32 %v6322_v49, 16  ;;  %v934_v58 = vshrl.u32 %v6322_v49, 16  ;;  %v6327_v19 = vld [vmem:[%s6419_s21 + $0xa8] sm:$0xff]  }
  0x1f   : > { %v1707_v3 = vsel %vm462_vm4, %v1702_v63, %v1706_v0  ;;  %v938_v59 = vshll.u32 %v6323_v56, 16  ;;  %v6324_v63 = vld [vmem:[%s6419_s21 + $0x90] sm:$0xff]   ;;  %v942_v0 = vshrl.u32 %v6323_v56, 16 }
  0x20   : > { %v932_v55 = vrot.slane %v930_v52, 1  ;;  %v2023_v6 = vshll.u32 %v6324_v63, 16 }
  0x21   : > { %5049 = vmatmul.mubr.msk.bf16.gmra.mrb[4].mxu1 %vm217_vm3, %v6452_v28  ;;  %v940_v61 = vrot.slane %v938_v59, 1 }
  0x22   : > { %4855 = vmatmul.mubr.msk.bf16.gmra.mrb[8].mxu0 %vm217_vm3, %v6294_v25  ;;  %5052 = vmatprep.mubr.msk.bf16.mxu1 %vm6363_vm2, %v6361_v1  ;;  %v2025_v11 = vrot.slane %v2023_v6, 1  ;;  %v4365_v6 = vld [vmem:[%s7616_s1 + $0xe] sm:$0x3] }
  0x23   : > { %4858 = vmatprep.mubr.msk.bf16.mxu0 %vm6363_vm2, %v6361_v1 }
  0x29   : > { %5053 = vmatmul.mubr.msk.bf16.gmra.mrb[8].mxu1 %vm217_vm3, %v6464_v33 }
  0x2a   : > { %4859 = vmatmul.mubr.msk.bf16.gmra.mrb[12].mxu0 %vm217_vm3, %v6296_v32  ;;  %5056 = vmatprep.mubr.msk.bf16.mxu1 %vm6363_vm2, %v6361_v1 }
  0x2b   : > { %4862 = vmatprep.mubr.msk.bf16.mxu0 %vm6363_vm2, %v6361_v1 }
  0x31   : > { %5057 = vmatmul.mubr.msk.bf16.gmra.mrb[12].mxu1 %vm217_vm3, %v6475_v39 }
  0x32   : > { %4863 = vmatmul.mubr.msk.bf16.gmra.mrb[16].mxu0 %vm217_vm3, %v6298_v38  ;;  %5060 = vmatprep.mubr.msk.bf16.mxu1 %vm6363_vm2, %v6361_v1 }
  0x33   : > { %4868 = vmatprep.mubr.msk.bf16.mxu0 %vm6363_vm2, %v6361_v1 }
  0x39   : > { %5061 = vmatmul.mubr.msk.bf16.gmra.mrb[16].mxu1 %vm217_vm3, %v6488_v43 }
  0x3a   : > { %4869 = vmatmul.mubr.msk.bf16.vlgmr.msra.gmra.mrb[0].mxu0 %vm217_vm3, %v6299_v42  ;;  %5066 = vmatprep.mubr.msk.bf16.mxu1 %vm6363_vm2, %v6361_v1  ;;  %v6321_v42 = vld [vmem:[%s6419_s21 + $0x70] sm:$0xff]  }
  0x3b   : > { %4889 = vmatpush3.bf16.msra.mxu0 %v6491_v44  ;;  %4872 = vmatprep.mubr.msk.bf16.mxu0 %vm6363_vm2, %v6361_v1  ;;  %v926_v51 = vshrl.u32 %v6321_v42, 16 }
  0x3c   : > { %4910 = vmatprep.subr.bf16.mxu0 %v6361_v1 }
  0x41   : > { %5067 = vmatmul.mubr.msk.bf16.vlgmr.msra.gmra.mrb[0].mxu1 %vm217_vm3, %v6425_v8  ;;  %v1712_v8 = vshll.u32 %v6307_v2, 16  ;;  %v4344_v2 = vld [vmem:[%s7616_s1 + $0xc] sm:$0x3] }
  0x42   : > { %4873 = vmatmul.mubr.msk.bf16.gmra.mrb[4].mxu0 %vm217_vm3, %v6300_v45  ;;  %5087 = vmatpush3.bf16.msra.mxu1 %v6491_v44 }
  0x43   : > { %4876 = vmatprep.mubr.msk.bf16.mxu0 %vm6363_vm2, %v6361_v1  ;;  %5070 = vmatprep.mubr.msk.bf16.mxu1 %vm6363_vm2, %v6361_v1  ;;  %v1714_v10 = vrot.slane %v1712_v8, 1  ;;  %v6738_v8 = vor.u32 %v942_v0, %v940_v61 }
  0x44   : > { %5108 = vmatprep.subr.bf16.mxu1 %v6361_v1 }
  0x45   : > { %v1715_v12 = vsel %vm462_vm4, %v1710_v9, %v1714_v10  ;;  %v1718_v15 = vor.u32 %v1716_v13, %v1714_v10  ;;  %v6741_v9 = vand.u32 %v4344_v2, %v6397_v4  ;;  %v2021_v10 = vshrl.u32 %v6324_v63, 16 }
  0x47   : > { %v2026_v13 = vor.u32 %v2025_v11, %v2021_v10  ;;  %v6823_v10 = vld [vmem:[%s6419_s21 + $0x3c] sm:$0xff]  }
  0x49   : > { %5071 = vmatmul.mubr.msk.bf16.gmra.mrb[4].mxu1 %vm217_vm3, %v6292_v17  ;;  %v1723_v17 = vsel %vm462_vm4, %v1718_v15, %v1722_v16  ;;  %v6326_v15 = vld [vmem:[%s6419_s21 + $0xa0] sm:$0xff]  }
  0x4a   : > { %4877 = vmatmul.mubr.msk.bf16.gmra.mrb[8].mxu0 %vm217_vm3, %v6301_v46  ;;  %5074 = vmatprep.mubr.msk.bf16.mxu1 %vm6363_vm2, %v6361_v1  ;;  %v922_v46 = vshll.u32 %v6321_v42, 16 }
  0x4b   : > { %4880 = vmatprep.mubr.msk.bf16.mxu0 %vm6363_vm2, %v6361_v1 }
  0x51   : > { %5075 = vmatmul.mubr.msk.bf16.gmra.mrb[8].mxu1 %vm217_vm3, %v6294_v25  ;;  %v6622_v25 = vld [vmem:[%s6419_s21 + $0x70] sm:$0xff]  }
  0x52   : > { %4881 = vmatmul.mubr.msk.bf16.gmra.mrb[12].mxu0 %vm217_vm3, %v6302_v47  ;;  %5078 = vmatprep.mubr.msk.bf16.mxu1 %vm6363_vm2, %v6361_v1 }
  0x53   : > { %4884 = vmatprep.mubr.msk.bf16.mxu0 %vm6363_vm2, %v6361_v1 }
  0x59   : > { %5079 = vmatmul.mubr.msk.bf16.gmra.mrb[12].mxu1 %vm217_vm3, %v6296_v32  ;;  %v4333_v32 = vld [vmem:[%s7616_s1 + $0xa] sm:$0x3] }
  0x5a   : > { %4885 = vmatmul.mubr.msk.bf16.gmra.mrb[16].mxu0 %vm217_vm3, %v6303_v48  ;;  %5082 = vmatprep.mubr.msk.bf16.mxu1 %vm6363_vm2, %v6361_v1  ;;  %v6672_v36 = vand.u32 %v4333_v32, %v6397_v4  ;;  %v924_v48 = vrot.slane %v922_v46, 1  ;;  %v2044_v32 = vshll.u32 %v6327_v19, 16  ;;  %v2048_v46 = vshrl.u32 %v6327_v19, 16 }
  0x5b   : > { %4890 = vmatprep.mubr.msk.bf16.mxu0 %vm6363_vm2, %v6361_v1 }
  0x5c   : > { %v928_v54 = vor.u32 %v926_v51, %v924_v48 }
  0x5e   : > { %v6712_v57 = vsel %vm462_vm4, %v928_v54, %v932_v55  ;;  %v4355_v54 = vld [vmem:[%s6419_s21 + $0x34] sm:$0xf] }
  0x61   : > { %5083 = vmatmul.mubr.msk.bf16.gmra.mrb[16].mxu1 %vm217_vm3, %v6298_v38  ;;  %v911_v38 = vrot.slane %v909_v34, 1  ;;  %v2040_v34 = vshrl.u32 %v6326_v15, 16 }
  0x62   : > { %4891 = vmatmul.mubr.msk.bf16.vlgmr.msra.gmra.mrb[0].mxu0 %vm217_vm3, %v6438_v21  ;;  %5088 = vmatprep.mubr.msk.bf16.mxu1 %vm6363_vm2, %v6361_v1  ;;  %v1726_v21 = vor.u32 %v1724_v18, %v1722_v16  ;;  %v2036_v18 = vshll.u32 %v6326_v15, 16 }
  0x63   : > { %4911 = vmatpush3.bf16.msra.mxu0 %v6539_v53  ;;  %4894 = vmatprep.mubr.msk.bf16.mxu0 %vm6363_vm2, %v6361_v1  ;;  %v912_v40 = vor.u32 %v911_v38, %v907_v37  ;;  %v2046_v37 = vrot.slane %v2044_v32, 1 }
  0x64   : > { %4932 = vmatprep.subr.bf16.mxu0 %v6361_v1  ;;  %v2038_v31 = vrot.slane %v2036_v18, 1 }
  0x65   : > { %v2050_v51 = vor.u32 %v2048_v46, %v2046_v37 }
  0x66   : > { %v2042_v38 = vor.u32 %v2040_v34, %v2038_v31  ;;  %v6842_v34 = vld [vmem:[%s6419_s21 + $0x1c] sm:$0xff]  }
  0x67   : > { %v1105_v46 = vshll.u32 %v6842_v34, 16 }
  0x69   : > { %5089 = vmatmul.mubr.msk.bf16.vlgmr.msra.gmra.mrb[0].mxu1 %vm217_vm3, %v1699_v60  ;;  %v936_v60 = vor.u32 %v934_v58, %v932_v55  ;;  %v6801_v55 = vld [vmem:[%s6419_s21 + $0x38] sm:$0xf] }
  0x6a   : > { %4895 = vmatmul.mubr.msk.bf16.gmra.mrb[4].mxu0 %vm217_vm3, %v6452_v28  ;;  %5109 = vmatpush3.bf16.msra.mxu1 %v6539_v53  ;;  %v6639_v28 = vld [vmem:[%s6419_s21 + $0xa0] sm:$0xff]  }
  0x6b   : > { %4898 = vmatprep.mubr.msk.bf16.mxu0 %vm6363_vm2, %v6361_v1  ;;  %5092 = vmatprep.mubr.msk.bf16.mxu1 %vm6363_vm2, %v6361_v1  ;;  %v6723_v62 = vsel %vm462_vm4, %v936_v60, %v940_v61  ;;  %v4366_v61 = vcombine.low %v4355_v54, %v6801_v55  ;;  %v1107_v54 = vrot.slane %v1105_v46, 1 }
  0x6c   : > { %5130 = vmatprep.subr.bf16.mxu1 %v6361_v1 }
  0x6d   : > { %v1259_v11 = vshll.u32 %v4366_v61, 16  ;;  %v1257_v18 = vshrl.u32 %v4366_v61, 16  ;;  %v6875_v61 = vld [vmem:[%s6419_s21 + $0x4c] sm:$0xff]  }
  0x6f   : > { %v1261_v19 = vrot.slane %v1259_v11, 1 }
  0x71   : > { %5093 = vmatmul.mubr.msk.bf16.gmra.mrb[4].mxu1 %vm217_vm3, %v1707_v3  ;;  %v6325_v3 = vld [vmem:[%s6419_s21 + $0x98] sm:$0xff]  }
  0x72   : > { %4899 = vmatmul.mubr.msk.bf16.gmra.mrb[8].mxu0 %vm217_vm3, %v6464_v33  ;;  %5096 = vmatprep.mubr.msk.bf16.mxu1 %vm6363_vm2, %v6361_v1  ;;  %v6320_v33 = vld [vmem:[%s6419_s21 + $0x68] sm:$0xff]  }
  0x73   : > { %4902 = vmatprep.mubr.msk.bf16.mxu0 %vm6363_vm2, %v6361_v1  ;;  %v918_v45 = vshrl.u32 %v6320_v33, 16 }
  0x79   : > { %5097 = vmatmul.mubr.msk.bf16.gmra.mrb[8].mxu1 %vm217_vm3, %v1715_v12  ;;  %v2028_v12 = vshll.u32 %v6325_v3, 16 }
  0x7a   : > { %4903 = vmatmul.mubr.msk.bf16.gmra.mrb[12].mxu0 %vm217_vm3, %v6475_v39  ;;  %5100 = vmatprep.mubr.msk.bf16.mxu1 %vm6363_vm2, %v6361_v1  ;;  %v914_v39 = vshll.u32 %v6320_v33, 16 }
  0x7b   : > { %4906 = vmatprep.mubr.msk.bf16.mxu0 %vm6363_vm2, %v6361_v1  ;;  %v2030_v14 = vrot.slane %v2028_v12, 1 }
  0x7c   : > { %v916_v41 = vrot.slane %v914_v39, 1  ;;  %v6328_v39 = vld [vmem:[%s6419_s21 + $0xb0] sm:$0x1f]  }
  0x7d   : > { %v6755_v16 = vsel %vm462_vm4, %v2026_v13, %v2030_v14  ;;  %v2056_v63 = vshrl.u32 %v6328_v39, 16 }
  0x7e   : > { %v920_v47 = vor.u32 %v918_v45, %v916_v41  ;;  %v6786_v45 = vsel %vm462_vm4, %v2042_v38, %v2046_v37  ;;  %v1262_v37 = vor.u32 %v1261_v19, %v1257_v18 }
  0x80   : > { %v6700_v50 = vsel %vm462_vm4, %v920_v47, %v924_v48  ;;  %v2052_v47 = vshll.u32 %v6328_v39, 16  ;;  %v6795_v48 = vld [vmem:[%s6419_s21 + $0xc] sm:$0xff]   ;;  %v6849_v39 = vld [vmem:[%s6419_s21 + $0x44] sm:$0xff]  }
  0x81   : > { %5101 = vmatmul.mubr.msk.bf16.gmra.mrb[12].mxu1 %vm217_vm3, %v1723_v17  ;;  %v2032_v17 = vshrl.u32 %v6325_v3, 16  ;;  %v1089_v59 = vshll.u32 %v6795_v48, 16  ;;  %v6815_v3 = vld [vmem:[%s6419_s21 + $0x14] sm:$0xff]   ;;  %v1093_v15 = vshrl.u32 %v6795_v48, 16  ;;  %v1276_v11 = vshrl.u32 %v6849_v39, 16 }
  0x82   : > { %4907 = vmatmul.mubr.msk.bf16.gmra.mrb[16].mxu0 %vm217_vm3, %v6488_v43  ;;  %5104 = vmatprep.mubr.msk.bf16.mxu1 %vm6363_vm2, %v6361_v1  ;;  %v6686_v43 = vsel %vm462_vm4, %v912_v40, %v916_v41  ;;  %v1044_v40 = vld [vmem:[%s6419_s21 + $0x4] sm:$0xf]  ;;  %v6782_v41 = vld [vmem:[%s6419_s21 + $0x8] sm:$0xf]  ;;  %v2054_v52 = vrot.slane %v2052_v47, 1 }
  0x83   : > { %4912 = vmatprep.mubr.msk.bf16.mxu0 %vm6363_vm2, %v6361_v1  ;;  %v4345_v42 = vcombine.low %v1044_v40, %v6782_v41  ;;  %v1091_v2 = vrot.slane %v1089_v59, 1 }
  0x84   : > { %v6805_v60 = vsel %vm462_vm4, %v2050_v51, %v2054_v52  ;;  %v6825_v12 = vor.u32 %v2056_v63, %v2054_v52  ;;  %v1272_v51 = vshll.u32 %v6849_v39, 16 }
  0x85   : > { %v1084_v49 = vshll.u32 %v4345_v42, 16  ;;  %v1082_v56 = vshrl.u32 %v4345_v42, 16  ;;  %v1101_v42 = vshrl.u32 %v6815_v3, 16 }
  0x86   : > { %v1274_v59 = vrot.slane %v1272_v51, 1 }
  0x87   : > { %v1086_v58 = vrot.slane %v1084_v49, 1  ;;  %v1268_v49 = vshrl.u32 %v6823_v10, 16 }
  0x88   : > { %v1278_v19 = vor.u32 %v1276_v11, %v1274_v59 }
  0x89   : > { %5105 = vmatmul.mubr.msk.bf16.gmra.mrb[16].mxu1 %vm217_vm3, %v1726_v21  ;;  %v2034_v21 = vor.u32 %v2032_v17, %v2030_v14  ;;  %v1087_v0 = vor.u32 %v1086_v58, %v1082_v56  ;;  %v6831_v14 = vand.u32 %v4365_v6, %v6397_v4  ;;  %v1097_v17 = vshll.u32 %v6815_v3, 16  ;;  %v6869_v56 = vld [vmem:[%s6419_s21 + $0x24] sm:$0x1f]  }
  0x8a   : > { %4913 = vmatmul.mubr.msk.bf16.vlgmr.msra.gmra.mrb[0].mxu0 %vm217_vm3, %v6591_v20  ;;  %5110 = vmatprep.mubr.msk.bf16.mxu1 %vm6363_vm2, %v6361_v1  ;;  %v1117_v46 = vshrl.u32 %v6869_v56, 16 }
  0x8b   : > { %4933 = vmatpush3.bf16.msra.mxu0 %v6594_v22  ;;  %4916 = vmatprep.mubr.msk.bf16.mxu0 %vm6363_vm2, %v6361_v1  ;;  %v6769_v33 = vsel %vm462_vm4, %v2034_v21, %v2038_v31  ;;  %v6828_v13 = vsel %vm462_vm4, %v1087_v0, %v1091_v2  ;;  %v1264_v21 = vshll.u32 %v6823_v10, 16  ;;  %v1095_v31 = vor.u32 %v1093_v15, %v1091_v2 }
  0x8c   : > { %4954 = vmatprep.subr.bf16.mxu0 %v6361_v1  ;;  %v1099_v32 = vrot.slane %v1097_v17, 1  ;;  %v1109_v0 = vshrl.u32 %v6842_v34, 16  ;;  %v1113_v2 = vshll.u32 %v6869_v56, 16  ;;  %v1280_v15 = vshll.u32 %v6875_v61, 16 }
  0x8d   : > { %v1266_v38 = vrot.slane %v1264_v21, 1 }
  0x8e   : > { %v6853_v40 = vsel %vm462_vm4, %v1095_v31, %v1099_v32  ;;  %v1103_v52 = vor.u32 %v1101_v42, %v1099_v32  ;;  %v1111_v17 = vor.u32 %v1109_v0, %v1107_v54  ;;  %v1115_v18 = vrot.slane %v1113_v2, 1  ;;  %v6897_v31 = vld [vmem:[%s6419_s21 + $0x54] sm:$0x1f]   ;;  %v1394_v0 = vld [vmem:[%s6419_s21 + $0x4] sm:$0xe] }
  0x8f   : > { %v6858_v47 = vsel %vm462_vm4, %v1262_v37, %v1266_v38  ;;  %v1270_v58 = vor.u32 %v1268_v49, %v1266_v38  ;;  %v1282_v21 = vrot.slane %v1280_v15, 1  ;;  %v1284_v38 = vshrl.u32 %v6875_v61, 16 }
  0x90   : > { %v6879_v63 = vsel %vm462_vm4, %v1103_v52, %v1107_v54  ;;  %v6900_v32 = vsel %vm462_vm4, %v1111_v17, %v1115_v18  ;;  %v1288_v42 = vshll.u32 %v6897_v31, 16  ;;  %v6916_v52 = vor.u32 %v1117_v46, %v1115_v18 }
  0x91   : > { %5111 = vmatmul.mubr.msk.bf16.vlgmr.msra.gmra.mrb[0].mxu1 %vm217_vm3, %v6609_v24  ;;  %v6884_v6 = vsel %vm462_vm4, %v1270_v58, %v1274_v59  ;;  %v6903_v37 = vsel %vm462_vm4, %v1278_v19, %v1282_v21  ;;  %v1286_v49 = vor.u32 %v1284_v38, %v1282_v21  ;;  %v1292_v58 = vshrl.u32 %v6897_v31, 16  ;;  %v4376_v59 = vld [vmem:[%s7616_s1 + $0x10] sm:$0x3]  ;;  %v4453_v38 = vld [vmem:[%s6419_s21 + $0x34] sm:$0xe] }
  0x92   : > { %4917 = vmatmul.mubr.msk.bf16.gmra.mrb[4].mxu0 %vm217_vm3, %v6606_v23  ;;  %5131 = vmatpush3.bf16.msra.mxu1 %v6594_v22  ;;  %v1290_v51 = vrot.slane %v1288_v42, 1  ;;  %v6937_v11 = vand.u32 %v4376_v59, %v6397_v4  ;;  %v4377_v15 = vcombine.low %v1394_v0, %v6782_v41  ;;  %v1402_v4 = vrot.slane %v6795_v48, 1 }
  0x93   : > { %4920 = vmatprep.mubr.msk.bf16.mxu0 %vm6363_vm2, %v6361_v1  ;;  %5114 = vmatprep.mubr.msk.bf16.mxu1 %vm6363_vm2, %v6361_v1  ;;  %v1404_v48 = vrot.slane %v6815_v3, 1  ;;  %v1406_v3 = vrot.slane %v6842_v34, 1  ;;  %v6989_v21 = vrot.slane %v6869_v56, 1  ;;  %v4454_v56 = vcombine.low %v4453_v38, %v6801_v55 }
  0x94   : > { %5152 = vmatprep.subr.bf16.mxu1 %v6361_v1  ;;  %v6919_v54 = vsel %vm462_vm4, %v1286_v49, %v1290_v51  ;;  %v6934_v2 = vor.u32 %v1292_v58, %v1290_v51  ;;  %v1401_v17 = vrot.slane %v4377_v15, 1  ;;  %v2322_v46 = vrot.slane %v6823_v10, 1 }
  0x95   : > { %v6966_v18 = vsel %vm1400_vm5, %v1402_v4, %v1404_v48  ;;  %v6978_v19 = vsel %vm1400_vm5, %v1404_v48, %v1406_v3  ;;  %v6993_v34 = vsel %vm1400_vm5, %v1406_v3, %v6989_v21  ;;  %v2321_v42 = vrot.slane %v4454_v56, 1 }
  0x96   : > { %v6952_v41 = vsel %vm1400_vm5, %v1401_v17, %v1402_v4  ;;  %v2324_v10 = vrot.slane %v6849_v39, 1  ;;  %v7054_v51 = vrot.slane %v6897_v31, 1 }
  0x97   : > { %v7017_v55 = vsel %vm1400_vm5, %v2321_v42, %v2322_v46 }
  0x98   : > { %v7031_v49 = vsel %vm1400_vm5, %v2322_v46, %v2324_v10  ;;  %v7372_v46 = vld [vmem:[%s6419_s21 + $0x68] sm:$0xf] }
  0x99   : > { %5115 = vmatmul.mubr.msk.bf16.gmra.mrb[4].mxu1 %vm217_vm3, %v6625_v26 }
  0x9a   : > { %4921 = vmatmul.mubr.msk.bf16.gmra.mrb[8].mxu0 %vm217_vm3, %v6622_v25  ;;  %5118 = vmatprep.mubr.msk.bf16.mxu1 %vm6363_vm2, %v6361_v1 }
  0x9b   : > { %4924 = vmatprep.mubr.msk.bf16.mxu0 %vm6363_vm2, %v6361_v1 }
  0xa1   : > { %5119 = vmatmul.mubr.msk.bf16.gmra.mrb[8].mxu1 %vm217_vm3, %v6639_v28 }
  0xa2   : > { %4925 = vmatmul.mubr.msk.bf16.gmra.mrb[12].mxu0 %vm217_vm3, %v6636_v27  ;;  %5122 = vmatprep.mubr.msk.bf16.mxu1 %vm6363_vm2, %v6361_v1 }
  0xa3   : > { %4928 = vmatprep.mubr.msk.bf16.mxu0 %vm6363_vm2, %v6361_v1 }
  0xa9   : > { %5123 = vmatmul.mubr.msk.bf16.gmra.mrb[12].mxu1 %vm217_vm3, %v6653_v30 }
  0xaa   : > { %4929 = vmatmul.mubr.msk.bf16.gmra.mrb[16].mxu0 %vm217_vm3, %v6650_v29  ;;  %5126 = vmatprep.mubr.msk.bf16.mxu1 %vm6363_vm2, %v6361_v1 }
  0xab   : > { %4934 = vmatprep.mubr.msk.bf16.mxu0 %vm6363_vm2, %v6361_v1 }
  0xb1   : > { %5127 = vmatmul.mubr.msk.bf16.gmra.mrb[16].mxu1 %vm217_vm3, %v6669_v35 }
  0xb2   : > { %4935 = vmatmul.mubr.msk.bf16.vlgmr.msra.gmra.mrb[0].mxu0 %vm217_vm3, %v6609_v24  ;;  %5132 = vmatprep.mubr.msk.bf16.mxu1 %vm6363_vm2, %v6361_v1 }
  0xb3   : > { %4955 = vmatpush3.bf16.msra.mxu0 %v6672_v36  ;;  %4938 = vmatprep.mubr.msk.bf16.mxu0 %vm6363_vm2, %v6361_v1 }
  0xb4   : > { %4976 = vmatprep.subr.bf16.mxu0 %v6361_v1 }
  0xb9   : > { %5133 = vmatmul.mubr.msk.bf16.vlgmr.msra.gmra.mrb[0].mxu1 %vm217_vm3, %v6686_v43 }
  0xba   : > { %4939 = vmatmul.mubr.msk.bf16.gmra.mrb[4].mxu0 %vm217_vm3, %v6625_v26  ;;  %5153 = vmatpush3.bf16.msra.mxu1 %v6672_v36 }
  0xbb   : > { %4942 = vmatprep.mubr.msk.bf16.mxu0 %vm6363_vm2, %v6361_v1  ;;  %5136 = vmatprep.mubr.msk.bf16.mxu1 %vm6363_vm2, %v6361_v1 }
  0xbc   : > { %5174 = vmatprep.subr.bf16.mxu1 %v6361_v1 }
  0xc1   : > { %5137 = vmatmul.mubr.msk.bf16.gmra.mrb[4].mxu1 %vm217_vm3, %v6700_v50 }
  0xc2   : > { %4943 = vmatmul.mubr.msk.bf16.gmra.mrb[8].mxu0 %vm217_vm3, %v6639_v28  ;;  %5140 = vmatprep.mubr.msk.bf16.mxu1 %vm6363_vm2, %v6361_v1 }
  0xc3   : > { %4946 = vmatprep.mubr.msk.bf16.mxu0 %vm6363_vm2, %v6361_v1 }
  0xc9   : > { %5141 = vmatmul.mubr.msk.bf16.gmra.mrb[8].mxu1 %vm217_vm3, %v6712_v57 }
  0xca   : > { %4947 = vmatmul.mubr.msk.bf16.gmra.mrb[12].mxu0 %vm217_vm3, %v6653_v30  ;;  %5144 = vmatprep.mubr.msk.bf16.mxu1 %vm6363_vm2, %v6361_v1 }
  0xcb   : > { %4950 = vmatprep.mubr.msk.bf16.mxu0 %vm6363_vm2, %v6361_v1 }
  0xd1   : > { %5145 = vmatmul.mubr.msk.bf16.gmra.mrb[12].mxu1 %vm217_vm3, %v6723_v62 }
  0xd2   : > { %4951 = vmatmul.mubr.msk.bf16.gmra.mrb[16].mxu0 %vm217_vm3, %v6669_v35  ;;  %5148 = vmatprep.mubr.msk.bf16.mxu1 %vm6363_vm2, %v6361_v1 }
  0xd3   : > { %4956 = vmatprep.mubr.msk.bf16.mxu0 %vm6363_vm2, %v6361_v1 }
  0xd9   : > { %5149 = vmatmul.mubr.msk.bf16.gmra.mrb[16].mxu1 %vm217_vm3, %v6738_v8 }
  0xda   : > { %4957 = vmatmul.mubr.msk.bf16.vlgmr.msra.gmra.mrb[0].mxu0 %vm217_vm3, %v6686_v43  ;;  %5154 = vmatprep.mubr.msk.bf16.mxu1 %vm6363_vm2, %v6361_v1 }
  0xdb   : > { %4977 = vmatpush3.bf16.msra.mxu0 %v6741_v9  ;;  %4960 = vmatprep.mubr.msk.bf16.mxu0 %vm6363_vm2, %v6361_v1 }
  0xdc   : > { %4998 = vmatprep.subr.bf16.mxu0 %v6361_v1 }
  0xe1   : > { %5155 = vmatmul.mubr.msk.bf16.vlgmr.msra.gmra.mrb[0].mxu1 %vm217_vm3, %v6755_v16 }
  0xe2   : > { %4961 = vmatmul.mubr.msk.bf16.gmra.mrb[4].mxu0 %vm217_vm3, %v6700_v50  ;;  %5175 = vmatpush3.bf16.msra.mxu1 %v6741_v9 }
  0xe3   : > { %4964 = vmatprep.mubr.msk.bf16.mxu0 %vm6363_vm2, %v6361_v1  ;;  %5158 = vmatprep.mubr.msk.bf16.mxu1 %vm6363_vm2, %v6361_v1 }
  0xe4   : > { %5196 = vmatprep.subr.bf16.mxu1 %v6361_v1 }
  0xe9   : > { %5159 = vmatmul.mubr.msk.bf16.gmra.mrb[4].mxu1 %vm217_vm3, %v6769_v33 }
  0xea   : > { %4965 = vmatmul.mubr.msk.bf16.gmra.mrb[8].mxu0 %vm217_vm3, %v6712_v57  ;;  %5162 = vmatprep.mubr.msk.bf16.mxu1 %vm6363_vm2, %v6361_v1 }
  0xeb   : > { %4968 = vmatprep.mubr.msk.bf16.mxu0 %vm6363_vm2, %v6361_v1 }
  0xf1   : > { %5163 = vmatmul.mubr.msk.bf16.gmra.mrb[8].mxu1 %vm217_vm3, %v6786_v45 }
  0xf2   : > { %4969 = vmatmul.mubr.msk.bf16.gmra.mrb[12].mxu0 %vm217_vm3, %v6723_v62  ;;  %5166 = vmatprep.mubr.msk.bf16.mxu1 %vm6363_vm2, %v6361_v1 }
  0xf3   : > { %4972 = vmatprep.mubr.msk.bf16.mxu0 %vm6363_vm2, %v6361_v1 }
  0xf9   : > { %5167 = vmatmul.mubr.msk.bf16.gmra.mrb[12].mxu1 %vm217_vm3, %v6805_v60 }
  0xfa   : > { %4973 = vmatmul.mubr.msk.bf16.gmra.mrb[16].mxu0 %vm217_vm3, %v6738_v8  ;;  %5170 = vmatprep.mubr.msk.bf16.mxu1 %vm6363_vm2, %v6361_v1 }
  0xfb   : > { %4978 = vmatprep.mubr.msk.bf16.mxu0 %vm6363_vm2, %v6361_v1 }
 0x101   : > { %5171 = vmatmul.mubr.msk.bf16.gmra.mrb[16].mxu1 %vm217_vm3, %v6825_v12 }
 0x102   : > { %4979 = vmatmul.mubr.msk.bf16.vlgmr.msra.gmra.mrb[0].mxu0 %vm217_vm3, %v6828_v13  ;;  %5176 = vmatprep.mubr.msk.bf16.mxu1 %vm6363_vm2, %v6361_v1 }
 0x103   : > { %4999 = vmatpush3.bf16.msra.mxu0 %v6831_v14  ;;  %4982 = vmatprep.mubr.msk.bf16.mxu0 %vm6363_vm2, %v6361_v1 }
 0x104   : > { %5020 = vmatprep.subr.bf16.mxu0 %v6361_v1 }
 0x109   : > { %5177 = vmatmul.mubr.msk.bf16.vlgmr.msra.gmra.mrb[0].mxu1 %vm217_vm3, %v6858_v47 }
 0x10a   : > { %4983 = vmatmul.mubr.msk.bf16.gmra.mrb[4].mxu0 %vm217_vm3, %v6853_v40  ;;  %5197 = vmatpush3.bf16.msra.mxu1 %v6831_v14 }
 0x10b   : > { %4986 = vmatprep.mubr.msk.bf16.mxu0 %vm6363_vm2, %v6361_v1  ;;  %5180 = vmatprep.mubr.msk.bf16.mxu1 %vm6363_vm2, %v6361_v1 }
 0x10c   : > { %5218 = vmatprep.subr.bf16.mxu1 %v6361_v1 }
 0x111   : > { %5181 = vmatmul.mubr.msk.bf16.gmra.mrb[4].mxu1 %vm217_vm3, %v6884_v6 }
 0x112   : > { %4987 = vmatmul.mubr.msk.bf16.gmra.mrb[8].mxu0 %vm217_vm3, %v6879_v63  ;;  %5184 = vmatprep.mubr.msk.bf16.mxu1 %vm6363_vm2, %v6361_v1 }
 0x113   : > { %4990 = vmatprep.mubr.msk.bf16.mxu0 %vm6363_vm2, %v6361_v1 }
 0x119   : > { %5185 = vmatmul.mubr.msk.bf16.gmra.mrb[8].mxu1 %vm217_vm3, %v6903_v37 }
 0x11a   : > { %4991 = vmatmul.mubr.msk.bf16.gmra.mrb[12].mxu0 %vm217_vm3, %v6900_v32  ;;  %5188 = vmatprep.mubr.msk.bf16.mxu1 %vm6363_vm2, %v6361_v1 }
 0x11b   : > { %4994 = vmatprep.mubr.msk.bf16.mxu0 %vm6363_vm2, %v6361_v1 }
 0x121   : > { %5189 = vmatmul.mubr.msk.bf16.gmra.mrb[12].mxu1 %vm217_vm3, %v6919_v54 }
 0x122   : > { %4995 = vmatmul.mubr.msk.bf16.gmra.mrb[16].mxu0 %vm217_vm3, %v6916_v52  ;;  %5192 = vmatprep.mubr.msk.bf16.mxu1 %vm6363_vm2, %v6361_v1 }
 0x123   : > { %5000 = vmatprep.mubr.msk.bf16.mxu0 %vm6363_vm2, %v6361_v1 }
 0x129   : > { %5193 = vmatmul.mubr.msk.bf16.gmra.mrb[16].mxu1 %vm217_vm3, %v6934_v2 }
 0x12a   : > { %5001 = vmatmul.mubr.msk.bf16.vlgmr.msra.gmra.mrb[0].mxu0 %vm217_vm3, %v6858_v47  ;;  %5198 = vmatprep.mubr.msk.bf16.mxu1 %vm6363_vm2, %v6361_v1 }
 0x12b   : > { %5021 = vmatpush3.bf16.msra.mxu0 %v6937_v11  ;;  %5004 = vmatprep.mubr.msk.bf16.mxu0 %vm6363_vm2, %v6361_v1 }
 0x12c   : > { %5240 = vmatprep.subr.bf16.mxu0 %v6361_v1 }
 0x131   : > { %5199 = vmatmul.mubr.msk.bf16.vlgmr.msra.gmra.mrb[0].mxu1 %vm217_vm3, %v6952_v41 }
 0x132   : > { %5005 = vmatmul.mubr.msk.bf16.gmra.mrb[4].mxu0 %vm217_vm3, %v6884_v6  ;;  %5219 = vmatpush3.bf16.msra.mxu1 %v6937_v11 }
 0x133   : > { %5008 = vmatprep.mubr.msk.bf16.mxu0 %vm6363_vm2, %v6361_v1  ;;  %5202 = vmatprep.mubr.msk.bf16.mxu1 %vm6363_vm2, %v6361_v1 }
 0x134   : > { %5438 = vmatprep.subr.bf16.mxu1 %v6361_v1 }
 0x139   : > { %5203 = vmatmul.mubr.msk.bf16.gmra.mrb[4].mxu1 %vm217_vm3, %v6966_v18 }
 0x13a   : > { %5009 = vmatmul.mubr.msk.bf16.gmra.mrb[8].mxu0 %vm217_vm3, %v6903_v37  ;;  %5206 = vmatprep.mubr.msk.bf16.mxu1 %vm6363_vm2, %v6361_v1 }
 0x13b   : > { %5012 = vmatprep.mubr.msk.bf16.mxu0 %vm6363_vm2, %v6361_v1 }
 0x141   : > { %5207 = vmatmul.mubr.msk.bf16.gmra.mrb[8].mxu1 %vm217_vm3, %v6978_v19 }
 0x142   : > { %5013 = vmatmul.mubr.msk.bf16.gmra.mrb[12].mxu0 %vm217_vm3, %v6919_v54  ;;  %5210 = vmatprep.mubr.msk.bf16.mxu1 %vm6363_vm2, %v6361_v1 }
 0x143   : > { %5016 = vmatprep.mubr.msk.bf16.mxu0 %vm6363_vm2, %v6361_v1 }
 0x149   : > { %5211 = vmatmul.mubr.msk.bf16.gmra.mrb[12].mxu1 %vm217_vm3, %v6993_v34 }
 0x14a   : > { %5017 = vmatmul.mubr.msk.bf16.gmra.mrb[16].mxu0 %vm217_vm3, %v6934_v2  ;;  %5214 = vmatprep.mubr.msk.bf16.mxu1 %vm6363_vm2, %v6361_v1 }
 0x14b   : > { %5022 = vmatprep.mubr.msk.bf16.mxu0 %vm6363_vm2, %v6361_v1 }
 0x151   : > { %5215 = vmatmul.mubr.msk.bf16.gmra.mrb[16].mxu1 %vm217_vm3, %v6989_v21 }
 0x152   : > { %5023 = vmatmul.mubr.msk.bf16.vlgmr.msra.gmra.mrb[0].mxu0 %vm217_vm3, %v6952_v41  ;;  %5220 = vmatprep.mubr.msk.bf16.mxu1 %vm6363_vm2, %v6361_v1 }
 0x153   : > { %5241 = vmatpush3.bf16.msra.mxu0 %v6404_v5  ;;  %5026 = vmatprep.mubr.msk.bf16.mxu0 %vm6363_vm2, %v6361_v1 }
 0x154   : > { %5262 = vmatprep.subr.bf16.mxu0 %v6361_v1 }
 0x159   : > { %5221 = vmatmul.mubr.msk.bf16.vlgmr.msra.gmra.mrb[0].mxu1 %vm217_vm3, %v7017_v55 }
 0x15a   : > { %5027 = vmatmul.mubr.msk.bf16.gmra.mrb[4].mxu0 %vm217_vm3, %v6966_v18  ;;  %5439 = vmatpush3.bf16.msra.mxu1 %v6404_v5  ;;  %v2326_v5 = vrot.slane %v6875_v61, 1 }
 0x15b   : > { %5030 = vmatprep.mubr.msk.bf16.mxu0 %vm6363_vm2, %v6361_v1  ;;  %5224 = vmatprep.mubr.msk.bf16.mxu1 %vm6363_vm2, %v6361_v1 }
 0x15c   : > { %5460 = vmatprep.subr.bf16.mxu1 %v6361_v1  ;;  %v7043_v39 = vsel %vm1400_vm5, %v2324_v10, %v2326_v5  ;;  %v7058_v61 = vsel %vm1400_vm5, %v2326_v5, %v7054_v51  ;;  %v7388_v5 = vld [vmem:[%s6419_s21 + $0x98] sm:$0xf] }
 0x161   : > { %5225 = vmatmul.mubr.msk.bf16.gmra.mrb[4].mxu1 %vm217_vm3, %v7031_v49 }
 0x162   : > { %5031 = vmatmul.mubr.msk.bf16.gmra.mrb[8].mxu0 %vm217_vm3, %v6978_v19  ;;  %5228 = vmatprep.mubr.msk.bf16.mxu1 %vm6363_vm2, %v6361_v1 }
 0x163   : > { %5034 = vmatprep.mubr.msk.bf16.mxu0 %vm6363_vm2, %v6361_v1 }
 0x169   : > { %5229 = vmatmul.mubr.msk.bf16.gmra.mrb[8].mxu1 %vm217_vm3, %v7043_v39 }
 0x16a   : > { %5035 = vmatmul.mubr.msk.bf16.gmra.mrb[12].mxu0 %vm217_vm3, %v6993_v34  ;;  %5232 = vmatprep.mubr.msk.bf16.mxu1 %vm6363_vm2, %v6361_v1 }
 0x16b   : > { %5038 = vmatprep.mubr.msk.bf16.mxu0 %vm6363_vm2, %v6361_v1 }
 0x171   : > { %5233 = vmatmul.mubr.msk.bf16.gmra.mrb[12].mxu1 %vm217_vm3, %v7058_v61 }
 0x172   : > { %5039 = vmatmul.mubr.msk.bf16.gmra.mrb[16].mxu0 %vm217_vm3, %v6989_v21  ;;  %5236 = vmatprep.mubr.msk.bf16.mxu1 %vm6363_vm2, %v6361_v1 }
 0x173   : > { %5242 = vmatprep.mubr.msk.bf16.mxu0 %vm6363_vm2, %v6361_v1 }
 0x179   : > { %5237 = vmatmul.mubr.msk.bf16.gmra.mrb[16].mxu1 %vm217_vm3, %v7054_v51 }
 0x17a   : > { %5243 = vmatmul.mubr.msk.bf16.vlgmr.msra.gmra.mrb[20].mxu0 %vm217_vm3, %v6609_v24  ;;  %5440 = vmatprep.mubr.msk.bf16.mxu1 %vm6363_vm2, %v6361_v1 }
 0x17b   : > { %5263 = vmatpush3.bf16.msra.mxu0 %v6422_v7  ;;  %5246 = vmatprep.mubr.msk.bf16.mxu0 %vm6363_vm2, %v6361_v1 }
 0x17c   : > { %5284 = vmatprep.subr.bf16.mxu0 %v6361_v1 }
 0x181   : > { %5441 = vmatmul.mubr.msk.bf16.vlgmr.msra.gmra.mrb[20].mxu1 %vm217_vm3, %v6686_v43 }
 0x182   : > { %5247 = vmatmul.mubr.msk.bf16.gmra.mrb[24].mxu0 %vm217_vm3, %v6625_v26  ;;  %5461 = vmatpush3.bf16.msra.mxu1 %v6422_v7 }
 0x183   : > { %5250 = vmatprep.mubr.msk.bf16.mxu0 %vm6363_vm2, %v6361_v1  ;;  %5444 = vmatprep.mubr.msk.bf16.mxu1 %vm6363_vm2, %v6361_v1 }
 0x184   : > { %5482 = vmatprep.subr.bf16.mxu1 %v6361_v1 }
 0x189   : > { %5445 = vmatmul.mubr.msk.bf16.gmra.mrb[24].mxu1 %vm217_vm3, %v6700_v50 }
 0x18a   : > { %5251 = vmatmul.mubr.msk.bf16.gmra.mrb[28].mxu0 %vm217_vm3, %v6639_v28  ;;  %5448 = vmatprep.mubr.msk.bf16.mxu1 %vm6363_vm2, %v6361_v1 }
 0x18b   : > { %5254 = vmatprep.mubr.msk.bf16.mxu0 %vm6363_vm2, %v6361_v1 }
 0x191   : > { %5449 = vmatmul.mubr.msk.bf16.gmra.mrb[28].mxu1 %vm217_vm3, %v6712_v57 }
 0x192   : > { %5255 = vmatmul.mubr.msk.bf16.gmra.mrb[32].mxu0 %vm217_vm3, %v6653_v30  ;;  %5452 = vmatprep.mubr.msk.bf16.mxu1 %vm6363_vm2, %v6361_v1 }
 0x193   : > { %5258 = vmatprep.mubr.msk.bf16.mxu0 %vm6363_vm2, %v6361_v1 }
 0x199   : > { %5453 = vmatmul.mubr.msk.bf16.gmra.mrb[32].mxu1 %vm217_vm3, %v6723_v62 }
 0x19a   : > { %5259 = vmatmul.mubr.msk.bf16.gmra.mrb[36].mxu0 %vm217_vm3, %v6669_v35  ;;  %5456 = vmatprep.mubr.msk.bf16.mxu1 %vm6363_vm2, %v6361_v1 }
 0x19b   : > { %5264 = vmatprep.mubr.msk.bf16.mxu0 %vm6363_vm2, %v6361_v1 }
 0x1a1   : > { %5457 = vmatmul.mubr.msk.bf16.gmra.mrb[36].mxu1 %vm217_vm3, %v6738_v8 }
 0x1a2   : > { %5265 = vmatmul.mubr.msk.bf16.vlgmr.msra.gmra.mrb[20].mxu0 %vm217_vm3, %v6591_v20  ;;  %5462 = vmatprep.mubr.msk.bf16.mxu1 %vm6363_vm2, %v6361_v1 }
 0x1a3   : > { %5285 = vmatpush3.bf16.msra.mxu0 %v6491_v44  ;;  %5268 = vmatprep.mubr.msk.bf16.mxu0 %vm6363_vm2, %v6361_v1 }
 0x1a4   : > { %5306 = vmatprep.subr.bf16.mxu0 %v6361_v1 }
 0x1a9   : > { %5463 = vmatmul.mubr.msk.bf16.vlgmr.msra.gmra.mrb[20].mxu1 %vm217_vm3, %v6609_v24 }
 0x1aa   : > { %5269 = vmatmul.mubr.msk.bf16.gmra.mrb[24].mxu0 %vm217_vm3, %v6606_v23  ;;  %5483 = vmatpush3.bf16.msra.mxu1 %v6491_v44 }
 0x1ab   : > { %5272 = vmatprep.mubr.msk.bf16.mxu0 %vm6363_vm2, %v6361_v1  ;;  %5466 = vmatprep.mubr.msk.bf16.mxu1 %vm6363_vm2, %v6361_v1 }
 0x1ac   : > { %5504 = vmatprep.subr.bf16.mxu1 %v6361_v1 }
 0x1b1   : > { %5467 = vmatmul.mubr.msk.bf16.gmra.mrb[24].mxu1 %vm217_vm3, %v6625_v26 }
 0x1b2   : > { %5273 = vmatmul.mubr.msk.bf16.gmra.mrb[28].mxu0 %vm217_vm3, %v6622_v25  ;;  %5470 = vmatprep.mubr.msk.bf16.mxu1 %vm6363_vm2, %v6361_v1 }
 0x1b3   : > { %5276 = vmatprep.mubr.msk.bf16.mxu0 %vm6363_vm2, %v6361_v1 }
 0x1b9   : > { %5471 = vmatmul.mubr.msk.bf16.gmra.mrb[28].mxu1 %vm217_vm3, %v6639_v28 }
 0x1ba   : > { %5277 = vmatmul.mubr.msk.bf16.gmra.mrb[32].mxu0 %vm217_vm3, %v6636_v27  ;;  %5474 = vmatprep.mubr.msk.bf16.mxu1 %vm6363_vm2, %v6361_v1 }
 0x1bb   : > { %5280 = vmatprep.mubr.msk.bf16.mxu0 %vm6363_vm2, %v6361_v1 }
 0x1c1   : > { %5475 = vmatmul.mubr.msk.bf16.gmra.mrb[32].mxu1 %vm217_vm3, %v6653_v30 }
 0x1c2   : > { %5281 = vmatmul.mubr.msk.bf16.gmra.mrb[36].mxu0 %vm217_vm3, %v6650_v29  ;;  %5478 = vmatprep.mubr.msk.bf16.mxu1 %vm6363_vm2, %v6361_v1 }
 0x1c3   : > { %5286 = vmatprep.mubr.msk.bf16.mxu0 %vm6363_vm2, %v6361_v1 }
 0x1c9   : > { %5479 = vmatmul.mubr.msk.bf16.gmra.mrb[36].mxu1 %vm217_vm3, %v6669_v35 }
 0x1ca   : > { %5287 = vmatmul.mubr.msk.bf16.vlgmr.msra.gmra.mrb[20].mxu0 %vm217_vm3, %v6686_v43  ;;  %5484 = vmatprep.mubr.msk.bf16.mxu1 %vm6363_vm2, %v6361_v1 }
 0x1cb   : > { %5307 = vmatpush3.bf16.msra.mxu0 %v6539_v53  ;;  %5290 = vmatprep.mubr.msk.bf16.mxu0 %vm6363_vm2, %v6361_v1 }
 0x1cc   : > { %5328 = vmatprep.subr.bf16.mxu0 %v6361_v1 }
 0x1d1   : > { %5485 = vmatmul.mubr.msk.bf16.vlgmr.msra.gmra.mrb[20].mxu1 %vm217_vm3, %v6755_v16 }
 0x1d2   : > { %5291 = vmatmul.mubr.msk.bf16.gmra.mrb[24].mxu0 %vm217_vm3, %v6700_v50  ;;  %5505 = vmatpush3.bf16.msra.mxu1 %v6539_v53 }
 0x1d3   : > { %5294 = vmatprep.mubr.msk.bf16.mxu0 %vm6363_vm2, %v6361_v1  ;;  %5488 = vmatprep.mubr.msk.bf16.mxu1 %vm6363_vm2, %v6361_v1 }
 0x1d4   : > { %5526 = vmatprep.subr.bf16.mxu1 %v6361_v1 }
 0x1d9   : > { %5489 = vmatmul.mubr.msk.bf16.gmra.mrb[24].mxu1 %vm217_vm3, %v6769_v33 }
 0x1da   : > { %5295 = vmatmul.mubr.msk.bf16.gmra.mrb[28].mxu0 %vm217_vm3, %v6712_v57  ;;  %5492 = vmatprep.mubr.msk.bf16.mxu1 %vm6363_vm2, %v6361_v1 }
 0x1db   : > { %5298 = vmatprep.mubr.msk.bf16.mxu0 %vm6363_vm2, %v6361_v1 }
 0x1e1   : > { %5493 = vmatmul.mubr.msk.bf16.gmra.mrb[28].mxu1 %vm217_vm3, %v6786_v45 }
 0x1e2   : > { %5299 = vmatmul.mubr.msk.bf16.gmra.mrb[32].mxu0 %vm217_vm3, %v6723_v62  ;;  %5496 = vmatprep.mubr.msk.bf16.mxu1 %vm6363_vm2, %v6361_v1 }
 0x1e3   : > { %5302 = vmatprep.mubr.msk.bf16.mxu0 %vm6363_vm2, %v6361_v1 }
 0x1e9   : > { %5497 = vmatmul.mubr.msk.bf16.gmra.mrb[32].mxu1 %vm217_vm3, %v6805_v60 }
 0x1ea   : > { %5303 = vmatmul.mubr.msk.bf16.gmra.mrb[36].mxu0 %vm217_vm3, %v6738_v8  ;;  %5500 = vmatprep.mubr.msk.bf16.mxu1 %vm6363_vm2, %v6361_v1 }
 0x1eb   : > { %5308 = vmatprep.mubr.msk.bf16.mxu0 %vm6363_vm2, %v6361_v1 }
 0x1f1   : > { %5501 = vmatmul.mubr.msk.bf16.gmra.mrb[36].mxu1 %vm217_vm3, %v6825_v12 }
 0x1f2   : > { %5309 = vmatmul.mubr.msk.bf16.vlgmr.msra.gmra.mrb[20].mxu0 %vm217_vm3, %v6828_v13  ;;  %5506 = vmatprep.mubr.msk.bf16.mxu1 %vm6363_vm2, %v6361_v1 }
 0x1f3   : > { %5329 = vmatpush3.bf16.msra.mxu0 %v6594_v22  ;;  %5312 = vmatprep.mubr.msk.bf16.mxu0 %vm6363_vm2, %v6361_v1 }
 0x1f4   : > { %5350 = vmatprep.subr.bf16.mxu0 %v6361_v1 }
 0x1f9   : > { %5507 = vmatmul.mubr.msk.bf16.vlgmr.msra.gmra.mrb[20].mxu1 %vm217_vm3, %v6858_v47 }
 0x1fa   : > { %5313 = vmatmul.mubr.msk.bf16.gmra.mrb[24].mxu0 %vm217_vm3, %v6853_v40  ;;  %5527 = vmatpush3.bf16.msra.mxu1 %v6594_v22 }
 0x1fb   : > { %5316 = vmatprep.mubr.msk.bf16.mxu0 %vm6363_vm2, %v6361_v1  ;;  %5510 = vmatprep.mubr.msk.bf16.mxu1 %vm6363_vm2, %v6361_v1 }
 0x1fc   : > { %5548 = vmatprep.subr.bf16.mxu1 %v6361_v1 }
 0x201   : > { %5511 = vmatmul.mubr.msk.bf16.gmra.mrb[24].mxu1 %vm217_vm3, %v6884_v6 }
 0x202   : > { %5317 = vmatmul.mubr.msk.bf16.gmra.mrb[28].mxu0 %vm217_vm3, %v6879_v63  ;;  %5514 = vmatprep.mubr.msk.bf16.mxu1 %vm6363_vm2, %v6361_v1 }
 0x203   : > { %5320 = vmatprep.mubr.msk.bf16.mxu0 %vm6363_vm2, %v6361_v1 }
 0x209   : > { %5515 = vmatmul.mubr.msk.bf16.gmra.mrb[28].mxu1 %vm217_vm3, %v6903_v37 }
 0x20a   : > { %5321 = vmatmul.mubr.msk.bf16.gmra.mrb[32].mxu0 %vm217_vm3, %v6900_v32  ;;  %5518 = vmatprep.mubr.msk.bf16.mxu1 %vm6363_vm2, %v6361_v1 }
 0x20b   : > { %5324 = vmatprep.mubr.msk.bf16.mxu0 %vm6363_vm2, %v6361_v1 }
 0x211   : > { %5519 = vmatmul.mubr.msk.bf16.gmra.mrb[32].mxu1 %vm217_vm3, %v6919_v54 }
 0x212   : > { %5325 = vmatmul.mubr.msk.bf16.gmra.mrb[36].mxu0 %vm217_vm3, %v6916_v52  ;;  %5522 = vmatprep.mubr.msk.bf16.mxu1 %vm6363_vm2, %v6361_v1 }
 0x213   : > { %5330 = vmatprep.mubr.msk.bf16.mxu0 %vm6363_vm2, %v6361_v1 }
 0x219   : > { %5523 = vmatmul.mubr.msk.bf16.gmra.mrb[36].mxu1 %vm217_vm3, %v6934_v2 }
 0x21a   : > { %5331 = vmatmul.mubr.msk.bf16.vlgmr.msra.gmra.mrb[20].mxu0 %vm217_vm3, %v6858_v47  ;;  %5528 = vmatprep.mubr.msk.bf16.mxu1 %vm6363_vm2, %v6361_v1 }
 0x21b   : > { %5351 = vmatpush3.bf16.msra.mxu0 %v6672_v36  ;;  %5334 = vmatprep.mubr.msk.bf16.mxu0 %vm6363_vm2, %v6361_v1 }
 0x21c   : > { %5372 = vmatprep.subr.bf16.mxu0 %v6361_v1 }
 0x221   : > { %5529 = vmatmul.mubr.msk.bf16.vlgmr.msra.gmra.mrb[20].mxu1 %vm217_vm3, %v6952_v41 }
 0x222   : > { %5335 = vmatmul.mubr.msk.bf16.gmra.mrb[24].mxu0 %vm217_vm3, %v6884_v6  ;;  %5549 = vmatpush3.bf16.msra.mxu1 %v6672_v36 }
 0x223   : > { %5338 = vmatprep.mubr.msk.bf16.mxu0 %vm6363_vm2, %v6361_v1  ;;  %5532 = vmatprep.mubr.msk.bf16.mxu1 %vm6363_vm2, %v6361_v1 }
 0x224   : > { %5570 = vmatprep.subr.bf16.mxu1 %v6361_v1 }
 0x225   : > { %v7263_v7 = vpop.f32.mrb[0].mxu0 }
 0x226   : > { %v5024_v44 = vpop.f32.mrb[1].mxu0 }
 0x227   : > { %v7266_v53 = vpop.f32.mrb[2].mxu0 }
 0x228   : > { %v5025_v20 = vpop.f32.mrb[3].mxu0 }
 0x229   : > { %5533 = vmatmul.mubr.msk.bf16.gmra.mrb[24].mxu1 %vm217_vm3, %v6966_v18 }
 0x22a   : > { %5339 = vmatmul.mubr.msk.bf16.gmra.mrb[28].mxu0 %vm217_vm3, %v6903_v37  ;;  %5536 = vmatprep.mubr.msk.bf16.mxu1 %vm6363_vm2, %v6361_v1 }
 0x22b   : > { %5342 = vmatprep.mubr.msk.bf16.mxu0 %vm6363_vm2, %v6361_v1 }
 0x22c   : > { %v7278_v23 = vpop.f32.mrb[0].mxu1 }
 0x22d   : > { %v7276_v22 = vpop.f32.mrb[4].mxu0  ;;  %v2426_v25 = vmax.f32 %v7263_v7, %v7278_v23  ;;  %v5222_v26 = vpop.f32.mrb[1].mxu1 }
 0x22e   : > { %v5028_v24 = vpop.f32.mrb[5].mxu0  ;;  %v7284_v28 = vpop.f32.mrb[2].mxu1 }
 0x22f   : > { %v7282_v27 = vpop.f32.mrb[6].mxu0  ;;  %v2427_v30 = vmax.f32 %v7266_v53, %v7284_v28  ;;  %v5223_v35 = vpop.f32.mrb[3].mxu1 }
 0x230   : > { %v5029_v29 = vpop.f32.mrb[7].mxu0  ;;  %v7404_v35 = vld [vmem:[%s6419_s21 + $0x9c] sm:$0xff]  }
 0x231   : > { %5537 = vmatmul.mubr.msk.bf16.gmra.mrb[28].mxu1 %vm217_vm3, %v6978_v19  ;;  %v7399_v29 = vld [vmem:[%s6419_s21 + $0x74] sm:$0xff]  }
 0x232   : > { %5343 = vmatmul.mubr.msk.bf16.gmra.mrb[32].mxu0 %vm217_vm3, %v6919_v54  ;;  %5540 = vmatprep.mubr.msk.bf16.mxu1 %vm6363_vm2, %v6361_v1 }
 0x233   : > { %5346 = vmatprep.mubr.msk.bf16.mxu0 %vm6363_vm2, %v6361_v1 }
 0x234   : > { %v7298_v43 = vpop.f32.mrb[4].mxu1 }
 0x235   : > { %v7296_v36 = vpop.f32.mrb[8].mxu0  ;;  %v2428_v57 = vmax.f32 %v7276_v22, %v7298_v43  ;;  %v5226_v62 = vpop.f32.mrb[5].mxu1 }
 0x236   : > { %v5032_v50 = vpop.f32.mrb[9].mxu0  ;;  %v7304_v16 = vpop.f32.mrb[6].mxu1 }
 0x237   : > { %v7302_v8 = vpop.f32.mrb[10].mxu0  ;;  %v2429_v45 = vmax.f32 %v7282_v27, %v7304_v16  ;;  %v5227_v60 = vpop.f32.mrb[7].mxu1 }
 0x238   : > { %v5033_v33 = vpop.f32.mrb[11].mxu0 }
 0x239   : > { %5541 = vmatmul.mubr.msk.bf16.gmra.mrb[32].mxu1 %vm217_vm3, %v6993_v34 }
 0x23a   : > { %5347 = vmatmul.mubr.msk.bf16.gmra.mrb[36].mxu0 %vm217_vm3, %v6934_v2  ;;  %5544 = vmatprep.mubr.msk.bf16.mxu1 %vm6363_vm2, %v6361_v1 }
 0x23b   : > { %5352 = vmatprep.mubr.msk.bf16.mxu0 %vm6363_vm2, %v6361_v1 }
 0x23c   : > { %v7318_v13 = vpop.f32.mrb[8].mxu1 }
 0x23d   : > { %v7316_v12 = vpop.f32.mrb[12].mxu0  ;;  %v2430_v47 = vmax.f32 %v7296_v36, %v7318_v13  ;;  %v5230_v63 = vpop.f32.mrb[9].mxu1 }
 0x23e   : > { %v5036_v40 = vpop.f32.mrb[13].mxu0  ;;  %v7324_v31 = vpop.f32.mrb[10].mxu1 }
 0x23f   : > { %v7322_v6 = vpop.f32.mrb[14].mxu0  ;;  %v2431_v37 = vmax.f32 %v7302_v8, %v7324_v31  ;;  %v5231_v52 = vpop.f32.mrb[11].mxu1  ;;  %v3116_v40 = vshll.u32 %v7404_v35, 16 }
 0x240   : > { %v5037_v32 = vpop.f32.mrb[15].mxu0  ;;  %v7415_v52 = vld [vmem:[%s6419_s21 + $0x7c] sm:$0xff]  }
 0x241   : > { %5545 = vmatmul.mubr.msk.bf16.gmra.mrb[36].mxu1 %vm217_vm3, %v6989_v21 }
 0x242   : > { %5353 = vmatmul.mubr.msk.bf16.vlgmr.msra.gmra.mrb[20].mxu0 %vm217_vm3, %v6952_v41  ;;  %5550 = vmatprep.mubr.msk.bf16.mxu1 %vm6363_vm2, %v6361_v1 }
 0x243   : > { %5373 = vmatpush3.bf16.msra.mxu0 %v6741_v9  ;;  %5356 = vmatprep.mubr.msk.bf16.mxu0 %vm6363_vm2, %v6361_v1 }
 0x244   : > { %5394 = vmatprep.subr.bf16.mxu0 %v6361_v1  ;;  %v7340_v58 = vpop.f32.mrb[12].mxu1 }
 0x245   : > { %v7337_v54 = vpop.f32.mrb[16].mxu0  ;;  %v2432_v0 = vmax.f32 %v7316_v12, %v7340_v58  ;;  %v5234_v2 = vpop.f32.mrb[13].mxu1 }
 0x246   : > { %v5040_v59 = vpop.f32.mrb[17].mxu0  ;;  %v7344_v17 = vpop.f32.mrb[14].mxu1  ;;  %v3118_v2 = vrot.slane %v3116_v40, 1 }
 0x247   : > { %v1497_v15 = vpop.f32.mrb[18].mxu0  ;;  %v2433_v41 = vmax.f32 %v7322_v6, %v7344_v17  ;;  %v5235_v48 = vpop.f32.mrb[15].mxu1 }
 0x248   : > { %v5041_v4 = vpop.f32.mrb[19].mxu0  ;;  %v7422_v15 = vld [vmem:[%s6419_s21 + $0xa4] sm:$0xff]   ;;  %v2962_v48 = vshll.u32 %v7415_v52, 16 }
 0x249   : > { %5551 = vmatmul.mubr.msk.bf16.vlgmr.msra.gmra.mrb[20].mxu1 %vm217_vm3, %v7017_v55  ;;  %v2958_v4 = vshrl.u32 %v7399_v29, 16 }
 0x24a   : > { %5357 = vmatmul.mubr.msk.bf16.gmra.mrb[24].mxu0 %vm217_vm3, %v6966_v18  ;;  %5571 = vmatpush3.bf16.msra.mxu1 %v6741_v9  ;;  %v4490_v9 = vld [vmem:[%s6419_s21 + $0x64] sm:$0xf] }
 0x24b   : > { %5360 = vmatprep.mubr.msk.bf16.mxu0 %vm6363_vm2, %v6361_v1  ;;  %5554 = vmatprep.mubr.msk.bf16.mxu1 %vm6363_vm2, %v6361_v1  ;;  %v4500_v55 = vcombine.low %v4490_v9, %v7372_v46 }
 0x24c   : > { %5592 = vmatprep.subr.bf16.mxu1 %v6361_v1  ;;  %v7358_v3 = vpop.f32.mrb[16].mxu1 }
 0x24d   : > { %v2434_v18 = vmax.f32 %v7337_v54, %v7358_v3  ;;  %v5238_v38 = vpop.f32.mrb[17].mxu1  ;;  %v2941_v10 = vshll.u32 %v4500_v55, 16  ;;  %v2939_v44 = vshrl.u32 %v4500_v55, 16  ;;  %v2964_v55 = vrot.slane %v2962_v48, 1 }
 0x24e   : > { %v2414_v56 = vpop.f32.mrb[18].mxu1 }
 0x24f   : > { %v5239_v42 = vpop.f32.mrb[19].mxu1  ;;  %v2943_v20 = vrot.slane %v2941_v10, 1  ;;  %v3120_v56 = vshrl.u32 %v7404_v35, 16  ;;  %v7436_v10 = vld [vmem:[%s6419_s21 + $0x84] sm:$0x1f]  }
 0x250   : > { %v3124_v42 = vshll.u32 %v7422_v15, 16 }
 0x251   : > { %5555 = vmatmul.mubr.msk.bf16.gmra.mrb[24].mxu1 %vm217_vm3, %v7031_v49  ;;  %v4510_v49 = vld [vmem:[%s6419_s21 + $0x94] sm:$0xf]  ;;  %v2944_v24 = vor.u32 %v2943_v20, %v2939_v44  ;;  %v7442_v20 = vld [vmem:[%s6419_s21 + $0xac] sm:$0xff]  }
 0x252   : > { %5361 = vmatmul.mubr.msk.bf16.gmra.mrb[28].mxu0 %vm217_vm3, %v6978_v19  ;;  %5558 = vmatprep.mubr.msk.bf16.mxu1 %vm6363_vm2, %v6361_v1  ;;  %v7382_v19 = vld [vmem:[%s6419_s21 + $0x6c] sm:$0xff]   ;;  %v3126_v44 = vrot.slane %v3124_v42, 1 }
 0x253   : > { %5364 = vmatprep.mubr.msk.bf16.mxu0 %vm6363_vm2, %v6361_v1 }
 0x259   : > { %5559 = vmatmul.mubr.msk.bf16.gmra.mrb[28].mxu1 %vm217_vm3, %v7043_v39  ;;  %v4520_v39 = vcombine.low %v4510_v49, %v7388_v5  ;;  %v3122_v49 = vor.u32 %v3120_v56, %v3118_v2 }
 0x25a   : > { %5365 = vmatmul.mubr.msk.bf16.gmra.mrb[32].mxu0 %vm217_vm3, %v6993_v34  ;;  %5562 = vmatprep.mubr.msk.bf16.mxu1 %vm6363_vm2, %v6361_v1  ;;  %v2946_v34 = vshll.u32 %v7382_v19, 16 }
 0x25b   : > { %5368 = vmatprep.mubr.msk.bf16.mxu0 %vm6363_vm2, %v6361_v1  ;;  %v3111_v50 = vshll.u32 %v4520_v39, 16  ;;  %v3109_v33 = vshrl.u32 %v4520_v39, 16  ;;  %v2966_v39 = vshrl.u32 %v7415_v52, 16 }
 0x25c   : > { %v2948_v26 = vrot.slane %v2946_v34, 1 }
 0x25d   : > { %v3113_v60 = vrot.slane %v3111_v50, 1  ;;  %v3132_v50 = vshll.u32 %v7442_v20, 16 }
 0x25e   : > { %v2949_v62 = vsel %vm462_vm4, %v2944_v24, %v2948_v26  ;;  %v2970_v24 = vshll.u32 %v7436_v10, 16 }
 0x25f   : > { %v3114_v59 = vor.u32 %v3113_v60, %v3109_v33  ;;  %v3134_v33 = vrot.slane %v3132_v50, 1  ;;  %v7458_v60 = vld [vmem:[%s6419_s21 + $0xb4] sm:$0x1f]  }
 0x260   : > { %v3144_v42 = vshrl.u32 %v7458_v60, 16 }
 0x261   : > { %5563 = vmatmul.mubr.msk.bf16.gmra.mrb[32].mxu1 %vm217_vm3, %v7058_v61  ;;  %v2954_v61 = vshll.u32 %v7399_v29, 16  ;;  %v3119_v38 = vsel %vm462_vm4, %v3114_v59, %v3118_v2  ;;  %v3140_v59 = vshll.u32 %v7458_v60, 16  ;;  %v2974_v2 = vshrl.u32 %v7436_v10, 16 }
 0x262   : > { %5369 = vmatmul.mubr.msk.bf16.gmra.mrb[36].mxu0 %vm217_vm3, %v6989_v21  ;;  %5566 = vmatprep.mubr.msk.bf16.mxu1 %vm6363_vm2, %v6361_v1  ;;  %v2950_v21 = vshrl.u32 %v7382_v19, 16 }
 0x263   : > { %5374 = vmatprep.mubr.msk.bf16.mxu0 %vm6363_vm2, %v6361_v1  ;;  %v2956_v32 = vrot.slane %v2954_v61, 1 }
 0x264   : > { %v2952_v63 = vor.u32 %v2950_v21, %v2948_v26  ;;  %v3127_v26 = vsel %vm462_vm4, %v3122_v49, %v3126_v44  ;;  %v2972_v21 = vrot.slane %v2970_v24, 1 }
 0x265   : > { %v2960_v9 = vor.u32 %v2958_v4, %v2956_v32  ;;  %v3142_v4 = vrot.slane %v3140_v59, 1 }
 0x266   : > { %v2976_v48 = vor.u32 %v2974_v2, %v2972_v21 }
 0x267   : > { %v2965_v34 = vsel %vm462_vm4, %v2960_v9, %v2964_v55  ;;  %v4530_v9 = vld [vmem:[%s6419_s21 + $0x64] sm:$0xe] }
 0x268   : > { %v4531_v49 = vcombine.low %v4530_v9, %v7372_v46  ;;  %v3250_v46 = vrot.slane %v7399_v29, 1  ;;  %v3254_v29 = vrot.slane %v7436_v10, 1 }
 0x269   : > { %5567 = vmatmul.mubr.msk.bf16.gmra.mrb[36].mxu1 %vm217_vm3, %v7054_v51  ;;  %v2957_v51 = vsel %vm462_vm4, %v2952_v63, %v2956_v32  ;;  %v3136_v32 = vshrl.u32 %v7442_v20, 16 }
 0x26a   : > { %5375 = vmatmul.mubr.msk.bf16.vlgmr.msra.gmra.mrb[20].mxu0 %vm217_vm3, %v2949_v62  ;;  %5572 = vmatprep.mubr.msk.bf16.mxu1 %vm6363_vm2, %v6361_v1  ;;  %v2968_v62 = vor.u32 %v2966_v39, %v2964_v55  ;;  %v3146_v55 = vor.u32 %v3144_v42, %v3142_v4 }
 0x26b   : > { %5395 = vmatpush3.bf16.msra.mxu0 %v6831_v14  ;;  %5378 = vmatprep.mubr.msk.bf16.mxu0 %vm6363_vm2, %v6361_v1 }
 0x26c   : > { %5416 = vmatprep.subr.bf16.mxu0 %v6361_v1  ;;  %v2973_v40 = vsel %vm462_vm4, %v2968_v62, %v2972_v21 }
 0x271   : > { %5573 = vmatmul.mubr.msk.bf16.vlgmr.msra.gmra.mrb[20].mxu1 %vm217_vm3, %v3119_v38 }
 0x272   : > { %5379 = vmatmul.mubr.msk.bf16.gmra.mrb[24].mxu0 %vm217_vm3, %v2957_v51  ;;  %5593 = vmatpush3.bf16.msra.mxu1 %v6831_v14  ;;  %v3128_v14 = vshrl.u32 %v7422_v15, 16  ;;  %v3138_v51 = vor.u32 %v3136_v32, %v3134_v33 }
 0x273   : > { %5382 = vmatprep.mubr.msk.bf16.mxu0 %vm6363_vm2, %v6361_v1  ;;  %5576 = vmatprep.mubr.msk.bf16.mxu1 %vm6363_vm2, %v6361_v1 }
 0x274   : > { %5614 = vmatprep.subr.bf16.mxu1 %v6361_v1  ;;  %v3130_v61 = vor.u32 %v3128_v14, %v3126_v44  ;;  %v3143_v56 = vsel %vm462_vm4, %v3138_v51, %v3142_v4  ;;  %v3247_v44 = vrot.slane %v4531_v49, 1  ;;  %v3996_v14 = vrot.slane %v7404_v35, 1 }
 0x275   : > { %v4000_v35 = vrot.slane %v7442_v20, 1 }
 0x276   : > { %v3135_v63 = vsel %vm462_vm4, %v3130_v61, %v3134_v33 }
 0x279   : > { %5577 = vmatmul.mubr.msk.bf16.gmra.mrb[24].mxu1 %vm217_vm3, %v3127_v26 }
 0x27a   : > { %5383 = vmatmul.mubr.msk.bf16.gmra.mrb[28].mxu0 %vm217_vm3, %v2965_v34  ;;  %5580 = vmatprep.mubr.msk.bf16.mxu1 %vm6363_vm2, %v6361_v1  ;;  %v3248_v34 = vrot.slane %v7382_v19, 1 }
 0x27b   : > { %5386 = vmatprep.mubr.msk.bf16.mxu0 %vm6363_vm2, %v6361_v1 }
 0x27c   : > { %v3249_v39 = vsel %vm1400_vm5, %v3247_v44, %v3248_v34 }
 0x281   : > { %5581 = vmatmul.mubr.msk.bf16.gmra.mrb[28].mxu1 %vm217_vm3, %v3135_v63 }
 0x282   : > { %5387 = vmatmul.mubr.msk.bf16.gmra.mrb[32].mxu0 %vm217_vm3, %v2973_v40  ;;  %5584 = vmatprep.mubr.msk.bf16.mxu1 %vm6363_vm2, %v6361_v1 }
 0x283   : > { %5390 = vmatprep.mubr.msk.bf16.mxu0 %vm6363_vm2, %v6361_v1 }
 0x289   : > { %5585 = vmatmul.mubr.msk.bf16.gmra.mrb[32].mxu1 %vm217_vm3, %v3143_v56 }
 0x28a   : > { %5391 = vmatmul.mubr.msk.bf16.gmra.mrb[36].mxu0 %vm217_vm3, %v2976_v48  ;;  %5588 = vmatprep.mubr.msk.bf16.mxu1 %vm6363_vm2, %v6361_v1 }
 0x28b   : > { %5396 = vmatprep.mubr.msk.bf16.mxu0 %vm6363_vm2, %v6361_v1 }
 0x291   : > { %5589 = vmatmul.mubr.msk.bf16.gmra.mrb[36].mxu1 %vm217_vm3, %v3146_v55 }
 0x292   : > { %5397 = vmatmul.mubr.msk.bf16.vlgmr.msra.gmra.mrb[20].mxu0 %vm217_vm3, %v3119_v38  ;;  %5594 = vmatprep.mubr.msk.bf16.mxu1 %vm6363_vm2, %v6361_v1  ;;  %v3251_v38 = vsel %vm1400_vm5, %v3248_v34, %v3250_v46 }
 0x293   : > { %5417 = vmatpush3.bf16.msra.mxu0 %v6937_v11  ;;  %5400 = vmatprep.mubr.msk.bf16.mxu0 %vm6363_vm2, %v6361_v1 }
 0x299   : > { %5595 = vmatmul.mubr.msk.bf16.vlgmr.msra.gmra.mrb[20].mxu1 %vm217_vm3, %v3249_v39 }
 0x29a   : > { %5401 = vmatmul.mubr.msk.bf16.gmra.mrb[24].mxu0 %vm217_vm3, %v3127_v26  ;;  %5615 = vmatpush3.bf16.msra.mxu1 %v6937_v11  ;;  %v3252_v11 = vrot.slane %v7415_v52, 1  ;;  %v4577_v52 = vld [vmem:[%s6419_s21 + $0x94] sm:$0xe] }
 0x29b   : > { %5404 = vmatprep.mubr.msk.bf16.mxu0 %vm6363_vm2, %v6361_v1  ;;  %5598 = vmatprep.mubr.msk.bf16.mxu1 %vm6363_vm2, %v6361_v1  ;;  %v4578_v26 = vcombine.low %v4577_v52, %v7388_v5  ;;  %v3998_v5 = vrot.slane %v7422_v15, 1  ;;  %v4002_v15 = vrot.slane %v7458_v60, 1 }
 0x29c   : > { %v3253_v19 = vsel %vm1400_vm5, %v3250_v46, %v3252_v11  ;;  %v3255_v24 = vsel %vm1400_vm5, %v3252_v11, %v3254_v29 }
 0x29d   : > { %v3995_v10 = vrot.slane %v4578_v26, 1  ;;  %v3999_v62 = vsel %vm1400_vm5, %v3996_v14, %v3998_v5  ;;  %v4001_v21 = vsel %vm1400_vm5, %v3998_v5, %v4000_v35  ;;  %v4003_v61 = vsel %vm1400_vm5, %v4000_v35, %v4002_v15 }
 0x29f   : > { %v3997_v50 = vsel %vm1400_vm5, %v3995_v10, %v3996_v14 }
 0x2a1   : > { %5599 = vmatmul.mubr.msk.bf16.gmra.mrb[24].mxu1 %vm217_vm3, %v3251_v38 }
 0x2a2   : > { %5405 = vmatmul.mubr.msk.bf16.gmra.mrb[28].mxu0 %vm217_vm3, %v3135_v63  ;;  %5602 = vmatprep.mubr.msk.bf16.mxu1 %vm6363_vm2, %v6361_v1 }
 0x2a3   : > { %5408 = vmatprep.mubr.msk.bf16.mxu0 %vm6363_vm2, %v6361_v1 }
 0x2a9   : > { %5603 = vmatmul.mubr.msk.bf16.gmra.mrb[28].mxu1 %vm217_vm3, %v3253_v19 }
 0x2aa   : > { %5409 = vmatmul.mubr.msk.bf16.gmra.mrb[32].mxu0 %vm217_vm3, %v3143_v56  ;;  %5606 = vmatprep.mubr.msk.bf16.mxu1 %vm6363_vm2, %v6361_v1 }
 0x2ab   : > { %5412 = vmatprep.mubr.msk.bf16.mxu0 %vm6363_vm2, %v6361_v1 }
 0x2b1   : > { %5607 = vmatmul.mubr.msk.bf16.gmra.mrb[32].mxu1 %vm217_vm3, %v3255_v24 }
 0x2b2   : > { %5413 = vmatmul.mubr.msk.bf16.gmra.mrb[36].mxu0 %vm217_vm3, %v3146_v55  ;;  %5610 = vmatprep.mubr.msk.bf16.mxu1 %vm6363_vm2, %v6361_v1 }
 0x2b3   : > { %5418 = vmatprep.mubr.msk.bf16.mxu0 %vm6363_vm2, %v6361_v1 }
 0x2b9   : > { %5611 = vmatmul.mubr.msk.bf16.gmra.mrb[36].mxu1 %vm217_vm3, %v3254_v29 }
 0x2ba   : > { %5419 = vmatmul.mubr.msk.bf16.vlgmr.msra.gmra.mrb[20].mxu0 %vm217_vm3, %v3249_v39  ;;  %5616 = vmatprep.mubr.msk.bf16.mxu1 %vm6363_vm2, %v6361_v1 }
 0x2bb   : > { %5422 = vmatprep.mubr.msk.bf16.mxu0 %vm6363_vm2, %v6361_v1 }
 0x2c1   : > { %5617 = vmatmul.mubr.msk.bf16.vlgmr.msra.gmra.mrb[20].mxu1 %vm217_vm3, %v3997_v50 }
 0x2c2   : > { %5423 = vmatmul.mubr.msk.bf16.gmra.mrb[24].mxu0 %vm217_vm3, %v3251_v38  ;;  %5620 = vmatprep.mubr.msk.bf16.mxu1 %vm6363_vm2, %v6361_v1 }
 0x2c3   : > { %5426 = vmatprep.mubr.msk.bf16.mxu0 %vm6363_vm2, %v6361_v1 }
 0x2c9   : > { %5621 = vmatmul.mubr.msk.bf16.gmra.mrb[24].mxu1 %vm217_vm3, %v3999_v62 }
 0x2ca   : > { %5427 = vmatmul.mubr.msk.bf16.gmra.mrb[28].mxu0 %vm217_vm3, %v3253_v19  ;;  %5624 = vmatprep.mubr.msk.bf16.mxu1 %vm6363_vm2, %v6361_v1 }
 0x2cb   : > { %5430 = vmatprep.mubr.msk.bf16.mxu0 %vm6363_vm2, %v6361_v1 }
 0x2d1   : > { %5625 = vmatmul.mubr.msk.bf16.gmra.mrb[28].mxu1 %vm217_vm3, %v4001_v21 }
 0x2d2   : > { %5431 = vmatmul.mubr.msk.bf16.gmra.mrb[32].mxu0 %vm217_vm3, %v3255_v24  ;;  %5628 = vmatprep.mubr.msk.bf16.mxu1 %vm6363_vm2, %v6361_v1 }
 0x2d3   : > { %5434 = vmatprep.mubr.msk.bf16.mxu0 %vm6363_vm2, %v6361_v1 }
 0x2d9   : > { %5629 = vmatmul.mubr.msk.bf16.gmra.mrb[32].mxu1 %vm217_vm3, %v4003_v61 }
 0x2da   : > { %5435 = vmatmul.mubr.msk.bf16.gmra.mrb[36].mxu0 %vm217_vm3, %v3254_v29  ;;  %5632 = vmatprep.mubr.msk.bf16.mxu1 %vm6363_vm2, %v6361_v1  ;;  %v7569_v1 = vld [vmem:[%s7617_s2] ss:$0 sm:$0xff] }
 0x2e1   : > { %5633 = vmatmul.mubr.msk.bf16.gmra.mrb[36].mxu1 %vm217_vm3, %v4002_v15 }
 0x38d   : > { %v3305_v20 = vpop.f32.mrb[20].mxu0 }
 0x38e   : > { %v3352_v33 = vmax.f32 %v2426_v25, %v3305_v20  ;;  %v5420_v40 = vpop.f32.mrb[21].mxu0 }
 0x38f   : > { %v3308_v63 = vpop.f32.mrb[22].mxu0 }
 0x390   : > { %v3353_v60 = vmax.f32 %v2427_v30, %v3308_v63  ;;  %v5421_v32 = vpop.f32.mrb[23].mxu0 }
 0x394   : > { %v4053_v2 = vpop.f32.mrb[20].mxu1 }
 0x395   : > { %v3313_v59 = vpop.f32.mrb[24].mxu0  ;;  %v4100_v25 = vmax.f32 %v3352_v33, %v4053_v2  ;;  %v5618_v51 = vpop.f32.mrb[21].mxu1 }
 0x396   : > { %v3354_v7 = vmax.f32 %v2428_v57, %v3313_v59  ;;  %v5424_v23 = vpop.f32.mrb[25].mxu0  ;;  %v4056_v48 = vpop.f32.mrb[22].mxu1 }
 0x397   : > { %v3316_v4 = vpop.f32.mrb[26].mxu0  ;;  %v4116_v30 = vadd.f32 %v7569_v1, %v4100_v25  ;;  %v4101_v56 = vmax.f32 %v3353_v60, %v4056_v48  ;;  %v5619_v42 = vpop.f32.mrb[23].mxu1 }
 0x398   : > { %v3355_v53 = vmax.f32 %v2429_v45, %v3316_v4  ;;  %v5425_v28 = vpop.f32.mrb[27].mxu0 }
 0x399   : > { %v4117_v9 = vadd.f32 %v7569_v1, %v4101_v56  ;;  %v4125_v55 = vmax.f32 %v4116_v30, 0.0 }
 0x39b   : > { %v4126_v22 = vmax.f32 %v4117_v9, 0.0 }
 0x39c   : > { %v4061_v57 = vpop.f32.mrb[24].mxu1 }
 0x39d   : > { %v3321_v43 = vpop.f32.mrb[28].mxu0  ;;  %v4608_v45 = vpack.c.bf16 %v4126_v22, %v4125_v55  ;;  %v4102_v49 = vmax.f32 %v3354_v7, %v4061_v57  ;;  %v5622_v44 = vpop.f32.mrb[25].mxu1 }
 0x39e   : > { %v3356_v27 = vmax.f32 %v2430_v47, %v3321_v43  ;;  %v5428_v16 = vpop.f32.mrb[29].mxu0  ;;  %v4064_v39 = vpop.f32.mrb[26].mxu1 }
 0x39f   : > { %v3324_v34 = vpop.f32.mrb[30].mxu0  ;;  %4609 = vst [vmem:[%s7583_s16] sm:$0xff] %v4608_v45   ;;  %v4118_v11 = vadd.f32 %v7569_v1, %v4102_v49  ;;  %v4103_v19 = vmax.f32 %v3355_v53, %v4064_v39  ;;  %v5623_v29 = vpop.f32.mrb[27].mxu1 }
 0x3a0   : > { %v3357_v46 = vmax.f32 %v2431_v37, %v3324_v34  ;;  %v5429_v38 = vpop.f32.mrb[31].mxu0 }
 0x3a1   : > { %v4119_v36 = vadd.f32 %v7569_v1, %v4103_v19  ;;  %v4127_v13 = vmax.f32 %v4118_v11, 0.0 }
 0x3a3   : > { %v4128_v47 = vmax.f32 %v4119_v36, 0.0 }
 0x3a4   : > { %v4069_v52 = vpop.f32.mrb[28].mxu1 }
 0x3a5   : > { %v3329_v24 = vpop.f32.mrb[32].mxu0  ;;  %v4613_v8 = vpack.c.bf16 %v4128_v47, %v4127_v13  ;;  %v4104_v31 = vmax.f32 %v3356_v27, %v4069_v52  ;;  %v5626_v37 = vpop.f32.mrb[29].mxu1 }
 0x3a6   : > { %v3358_v26 = vmax.f32 %v2432_v0, %v3329_v24  ;;  %v5432_v10 = vpop.f32.mrb[33].mxu0  ;;  %v4072_v50 = vpop.f32.mrb[30].mxu1 }
 0x3a7   : > { %v3332_v14 = vpop.f32.mrb[34].mxu0  ;;  %4625 = vst [vmem:[%s7583_s16 + $0x8] sm:$0xff] %v4613_v8   ;;  %v4120_v35 = vadd.f32 %v7569_v1, %v4104_v31  ;;  %v4105_v21 = vmax.f32 %v3357_v46, %v4072_v50  ;;  %v5627_v15 = vpop.f32.mrb[31].mxu1 }
 0x3a8   : > { %v3359_v5 = vmax.f32 %v2433_v41, %v3332_v14  ;;  %v5433_v62 = vpop.f32.mrb[35].mxu0 }
 0x3a9   : > { %v4121_v12 = vadd.f32 %v7569_v1, %v4105_v21  ;;  %v4129_v58 = vmax.f32 %v4120_v35, 0.0 }
 0x3ab   : > { %v4130_v0 = vmax.f32 %v4121_v12, 0.0 }
 0x3ac   : > { %v4077_v20 = vpop.f32.mrb[32].mxu1 }
 0x3ad   : > { %v3337_v61 = vpop.f32.mrb[36].mxu0  ;;  %v4618_v6 = vpack.c.bf16 %v4130_v0, %v4129_v58  ;;  %v4106_v17 = vmax.f32 %v3358_v26, %v4077_v20  ;;  %v5630_v41 = vpop.f32.mrb[33].mxu1 }
 0x3ae   : > { %v3360_v33 = vmax.f32 %v2434_v18, %v3337_v61  ;;  %v5436_v40 = vpop.f32.mrb[37].mxu0  ;;  %v4080_v60 = vpop.f32.mrb[34].mxu1 }
 0x3af   : > { %v3340_v63 = vpop.f32.mrb[38].mxu0  ;;  %4626 = vst [vmem:[%s7583_s16 + $0x10] sm:$0xff] %v4618_v6   ;;  %v4122_v59 = vadd.f32 %v7569_v1, %v4106_v17  ;;  %v4107_v2 = vmax.f32 %v3359_v5, %v4080_v60  ;;  %v5631_v7 = vpop.f32.mrb[35].mxu1 }
 0x3b0   : > { %v5437_v32 = vpop.f32.mrb[39].mxu0 }
 0x3b1   : > { %v4123_v23 = vadd.f32 %v7569_v1, %v4107_v2  ;;  %v4131_v25 = vmax.f32 %v4122_v59, 0.0 }
 0x3b3   : > { %v4132_v51 = vmax.f32 %v4123_v23, 0.0 }
 0x3b4   : > { %v4085_v54 = vpop.f32.mrb[36].mxu1 }
 0x3b5   : > { %v4623_v3 = vpack.c.bf16 %v4132_v51, %v4131_v25  ;;  %v4108_v18 = vmax.f32 %v3360_v33, %v4085_v54  ;;  %v5634_v4 = vpop.f32.mrb[37].mxu1 }
 0x3b6   : > { %v4088_v48 = vpop.f32.mrb[38].mxu1 }
 0x3b7   : > { %4627 = vst [vmem:[%s7583_s16 + $0x18] sm:$0xff] %v4623_v3   ;;  %v4124_v53 = vadd.f32 %v7569_v1, %v4108_v18  ;;  %v5635_v28 = vpop.f32.mrb[39].mxu1 }
 0x3b9   : > { %v4133_v30 = vmax.f32 %v4124_v53, 0.0 }
 0x3bb   : > { %v4604_v56 = vpack.c.bf16 %v4133_v30, %v4133_v30 }
 0x3bd   : > { %4179 = vst [vmem:[%s7583_s16 + $0x20] sm:$0xf] %v4604_v56 }
 0x3be PF: > { %s13_s12 = sadd.s32 1, %s6359_s12  }
 0x3bf   : > { %p10_p4 = scmp.ge.s32.totalorder %s13_s12, 4  }
 0x3c1   :  { %12 = sbr.rel (!%p10_p4) target bundleno = 1 (0x1), region = 73 }

// kernel: diffusion_model_forward.6
= control target key start
LH: loop header
LB: loop body
LE: loop exit
PB: predicated region body
PF: predicated region fallthrough
CT: control target
= control target key end

     0   :  { %s3977_s12 = smov 0   ;;  %s5070_s0 = inlined_call_operand.vmem [shape: bf16[2,2,2,12,128], index: 0, kind: input, shape index: {}]   ;;  %s5071_s1 = inlined_call_operand.vmem [shape: bf16[3,3,128,128], index: 1, kind: input, shape index: {}]   ;;  %s5072_s2 = inlined_call_operand.vmem [shape: f32[1,128], index: 2, kind: input, shape index: {}]   ;;  %s5073_s3 = inlined_call_operand.vmem [shape: bf16[2,6,128], index: 3, kind: output, shape index: {}]  }
   0x1 LB: > { %s2432_s13 = sadd.s32 4294967295, %s3953_s12   ;;  %p2436_p0 = scmp.ge.s32.totalorder %s3953_s12, 1  ;;  %s3953_s12 = sphi %s3977_s12, %s13_s12  }
   0x2   : > { %p137_p1 = scmp.lt.s32.totalorder %s3953_s12, 3 }
   0x4   : > { %p138_p2 = pnand %p2436_p0, %p137_p1 }
   0x6   : > { %141 = sbr.rel (%p138_p2) target bundleno = 813 (0x32d), region = 32 }
   0xd   : > { %v3853_v0 = vld [vmem:[%s5071_s1 + $0x40] sm:$0xff]   ;;  %v3955_v1 = vmov 0.0   ;;  %v3854_v2 = vld [vmem:[%s5071_s1 + $0x48] sm:$0xff]   ;;  %p160_p3 = scmp.lt.s32.totalorder %s2432_s13, 1  ;;  %vm3956_vm0 = vmmov 0   ;;  %v3855_v3 = vld [vmem:[%s5071_s1 + $0x50] sm:$0xff]  }
   0xe   : > { %2995 = vmatprep.subr.bf16.mxu0 %v3955_v1  ;;  %3175 = vmatprep.subr.bf16.mxu1 %v3955_v1  ;;  %v3856_v4 = vld [vmem:[%s5071_s1 + $0x58] sm:$0xff]   ;;  %v3857_v5 = vld [vmem:[%s5071_s1 + $0x60] sm:$0xff]   ;;  %v3858_v7 = vld [vmem:[%s5071_s1 + $0x68] sm:$0xff]  }
   0xf   : > { %2996 = vmatpush3.bf16.msra.mxu0 %v3853_v0  ;;  %3176 = vmatpush3.bf16.msra.mxu1 %v3853_v0  ;;  %s5115_s13 = smov (!%p160_p3, %s2432_s13), 1  ;;  %v3859_v9 = vld [vmem:[%s5071_s1 + $0x70] sm:$0xff]   ;;  %v3860_v12 = vld [vmem:[%s5071_s1 + $0x78] sm:$0xff]   ;;  %v3861_v14 = vld [vmem:[%s5071_s1] sm:$0xff]  }
  0x10   : > { %2997 = vmatprep.subr.bf16.mxu0 %v3955_v1  ;;  %3177 = vmatprep.subr.bf16.mxu1 %v3955_v1  ;;  %s2670_s20 = sshll.u32 %s5115_s13, 5  ;;  %v3863_v16 = vld [vmem:[%s5071_s1 + $0x8] sm:$0xff]   ;;  %v4059_v17 = vld [vmem:[%s5071_s1 + $0x10] sm:$0xff]   ;;  %v4068_v18 = vld [vmem:[%s5071_s1 + $0x18] sm:$0xff]   ;;  %s2439_s14 = sshll.u32 %s5115_s13, 2 }
  0x11   : > { %3011 = vmatprep.mubr.msk.bf16.mxu0 %vm3956_vm0, %v3955_v1  ;;  %3191 = vmatprep.mubr.msk.bf16.mxu1 %vm3956_vm0, %v3955_v1  ;;  %s4010_s23 = scalar_lea.vmem %s5070_s0, %s2670_s20  ;;  %v4077_v19 = vld [vmem:[%s5071_s1 + $0x20] sm:$0xff]   ;;  %v4084_v20 = vld [vmem:[%s5071_s1 + $0x28] sm:$0xff]   ;;  %v4093_v21 = vld [vmem:[%s5071_s1 + $0x30] sm:$0xff]   ;;  %s168_s17 = scalar_lea.vmem %s5073_s3, %s2439_s14 }
  0x12   : > { %v3862_v6 = vld [vmem:[%s4010_s23] ss:$0 sps:$4 sm:$0xff]   ;;  %v2440_v13 = vld [vmem:[%s4010_s23 + $0x8] sm:$0x7]  ;;  %v4104_v22 = vld [vmem:[%s5071_s1 + $0x38] sm:$0xff]  }
  0x13   : > { %2998 = vmatpush3.bf16.msra.mxu0 %v3854_v2  ;;  %3178 = vmatpush3.bf16.msra.mxu1 %v3854_v2  ;;  %v406_v8 = vshll.u32 %v3862_v6, 16  ;;  %v404_v10 = vshrl.u32 %v3862_v6, 16  ;;  %v170_v23 = vld [vmem:[%s4010_s23] sm:$0x7]  ;;  %v4121_v25 = vld [vmem:[%s5071_s1 + $0x88] sm:$0xff]   ;;  %v4136_v26 = vld [vmem:[%s5071_s1 + $0x90] sm:$0xff]  }
  0x14   : > { %2999 = vmatprep.subr.bf16.mxu0 %v3955_v1  ;;  %3179 = vmatprep.subr.bf16.mxu1 %v3955_v1  ;;  %v4114_v24 = vld [vmem:[%s5071_s1 + $0x80] sm:$0xff]   ;;  %v4145_v27 = vld [vmem:[%s5071_s1 + $0x98] sm:$0xff]   ;;  %v3879_v29 = vld [vmem:[%s4010_s23 + $0x8] ss:$0 sps:$4 sm:$0xff]  }
  0x15   : > { %v408_v11 = vrot.slane %v406_v8, 1  ;;  %v4154_v28 = vld [vmem:[%s5071_s1 + $0xa0] sm:$0xff]   ;;  %v4164_v30 = vld [vmem:[%s5071_s1 + $0xa8] sm:$0xff]   ;;  %v1277_v31 = vshll.u32 %v3879_v29, 16  ;;  %v4173_v32 = vld [vmem:[%s5071_s1 + $0xb0] sm:$0xff]   ;;  %v1275_v33 = vshrl.u32 %v3879_v29, 16 }
  0x16   : > { %v4182_v35 = vld [vmem:[%s5071_s1 + $0xb8] sm:$0xff]   ;;  %v4191_v37 = vld [vmem:[%s5071_s1 + $0xc0] sm:$0xff]   ;;  %v4201_v38 = vld [vmem:[%s5071_s1 + $0xc8] sm:$0xff]  }
  0x17   : > { %3000 = vmatpush3.bf16.msra.mxu0 %v3855_v3  ;;  %3180 = vmatpush3.bf16.msra.mxu1 %v3855_v3  ;;  %v4042_v15 = vor.u32 %v408_v11, %v404_v10  ;;  %v1279_v34 = vrot.slane %v1277_v31, 1  ;;  %v4214_v39 = vld [vmem:[%s5071_s1 + $0xd0] sm:$0xff]   ;;  %v4223_v40 = vld [vmem:[%s5071_s1 + $0xd8] sm:$0xff]   ;;  %v4232_v41 = vld [vmem:[%s5071_s1 + $0xe0] sm:$0xff]  }
  0x18   : > { %3001 = vmatprep.subr.bf16.mxu0 %v3955_v1  ;;  %3181 = vmatprep.subr.bf16.mxu1 %v3955_v1  ;;  %v4241_v42 = vld [vmem:[%s5071_s1 + $0xe8] sm:$0xff]   ;;  %v4250_v43 = vld [vmem:[%s5071_s1 + $0xf0] sm:$0xff]   ;;  %v4259_v44 = vld [vmem:[%s5071_s1 + $0xf8] sm:$0xff]  }
  0x19   : > { %v1280_v36 = vor.u32 %v1279_v34, %v1275_v33  ;;  %v4266_v45 = vld [vmem:[%s4010_s23 + $0x10] sm:$0x7]  ;;  %v4271_v46 = vld [vmem:[%s5071_s1 + $0x100] sm:$0xff]   ;;  %v4274_v47 = vld [vmem:[%s4010_s23 + $0x18] sm:$0x7] }
  0x1a   : > { %v4285_v48 = vld [vmem:[%s5071_s1 + $0x108] sm:$0xff]   ;;  %v4298_v49 = vld [vmem:[%s5071_s1 + $0x110] sm:$0xff]   ;;  %v4307_v50 = vld [vmem:[%s5071_s1 + $0x118] sm:$0xff]  }
  0x1b   : > { %3002 = vmatpush3.bf16.msra.mxu0 %v3856_v4  ;;  %3182 = vmatpush3.bf16.msra.mxu1 %v3856_v4  ;;  %v4316_v51 = vld [vmem:[%s5071_s1 + $0x120] sm:$0xff]   ;;  %v3896_v52 = vld [vmem:[%s4010_s23 + $0x10] ss:$0 sps:$4 sm:$0xff]   ;;  %v4326_v53 = vld [vmem:[%s5071_s1 + $0x128] sm:$0xff]  }
  0x1c   : > { %3003 = vmatprep.subr.bf16.mxu0 %v3955_v1  ;;  %3183 = vmatprep.subr.bf16.mxu1 %v3955_v1  ;;  %v740_v54 = vshll.u32 %v3896_v52, 16  ;;  %v4335_v55 = vld [vmem:[%s5071_s1 + $0x130] sm:$0xff]   ;;  %v738_v56 = vshrl.u32 %v3896_v52, 16  ;;  %v4344_v58 = vld [vmem:[%s5071_s1 + $0x138] sm:$0xff]   ;;  %v4355_v60 = vld [vmem:[%s5071_s1 + $0x140] sm:$0xff]  }
  0x1d   : > { %v4366_v61 = vld [vmem:[%s5071_s1 + $0x148] sm:$0xff]   ;;  %v4379_v62 = vld [vmem:[%s5071_s1 + $0x150] sm:$0xff]   ;;  %v4388_v63 = vld [vmem:[%s5071_s1 + $0x158] sm:$0xff]  }
  0x1e   : > { %v742_v57 = vrot.slane %v740_v54, 1  ;;  %v4397_v0 = vld [vmem:[%s5071_s1 + $0x160] sm:$0xff]   ;;  %v3905_v2 = vld [vmem:[%s4010_s23 + $0x18] ss:$0 sps:$4 sm:$0xff]   ;;  %v4407_v3 = vld [vmem:[%s5071_s1 + $0x168] sm:$0xff]  }
  0x1f   : > { %3004 = vmatpush3.bf16.msra.mxu0 %v3857_v5  ;;  %3184 = vmatpush3.bf16.msra.mxu1 %v3857_v5  ;;  %v1412_v4 = vshll.u32 %v3905_v2, 16  ;;  %v4416_v5 = vld [vmem:[%s5071_s1 + $0x170] sm:$0xff]   ;;  %v1410_v6 = vshrl.u32 %v3905_v2, 16  ;;  %v4425_v8 = vld [vmem:[%s5071_s1 + $0x178] sm:$0xff]   ;;  %v4436_v10 = vld [vmem:[%s5071_s1 + $0x180] sm:$0xff]  }
  0x20   : > { %3005 = vmatprep.subr.bf16.mxu0 %v3955_v1  ;;  %3185 = vmatprep.subr.bf16.mxu1 %v3955_v1  ;;  %v4348_v59 = vor.u32 %v742_v57, %v738_v56  ;;  %v4447_v11 = vld [vmem:[%s5071_s1 + $0x188] sm:$0xff]   ;;  %v4506_v57 = vld [vmem:[%s5071_s1 + $0x1b0] sm:$0xff]  }
  0x21   : > { %v4486_v29 = vld [vmem:[%s4010_s23 + $0xc] sm:$0x1] }
  0x22   : > { %v4497_v34 = vld [vmem:[%s5071_s1 + $0x1a8] sm:$0xff]  }
  0x23   : > { %3006 = vmatpush3.bf16.msra.mxu0 %v3858_v7  ;;  %3186 = vmatpush3.bf16.msra.mxu1 %v3858_v7  ;;  %v1414_v7 = vrot.slane %v1412_v4, 1 }
  0x24   : > { %3007 = vmatprep.subr.bf16.mxu0 %v3955_v1  ;;  %3187 = vmatprep.subr.bf16.mxu1 %v3955_v1 }
  0x27   : > { %3008 = vmatpush3.bf16.msra.mxu0 %v3859_v9  ;;  %3188 = vmatpush3.bf16.msra.mxu1 %v3859_v9  ;;  %v4429_v9 = vor.u32 %v1414_v7, %v1410_v6 }
  0x28   : > { %3009 = vmatprep.subr.bf16.mxu0 %v3955_v1  ;;  %3189 = vmatprep.subr.bf16.mxu1 %v3955_v1 }
  0x2b   : > { %3010 = vmatpush3.bf16.msra.mxu0 %v3860_v12  ;;  %3190 = vmatpush3.bf16.msra.mxu1 %v3860_v12  ;;  %v4460_v12 = vld [vmem:[%s5071_s1 + $0x190] sm:$0xff]  }
  0x2c   : > { %3015 = vmatprep.subr.bf16.mxu0 %v3955_v1  ;;  %3195 = vmatprep.subr.bf16.mxu1 %v3955_v1 }
  0x2e   : > { %3012 = vmatmul.mubr.bf16.vlgmr.msra.gmra.mrb[0].mxu0 %v2440_v13  ;;  %3192 = vmatmul.mubr.bf16.vlgmr.msra.gmra.mrb[0].mxu1 %v4042_v15 }
  0x2f   : > { %3016 = vmatpush3.bf16.msra.mxu0 %v3861_v14  ;;  %3196 = vmatpush3.bf16.msra.mxu1 %v3861_v14  ;;  %v4476_v14 = vld [vmem:[%s5071_s1 + $0x1a0] sm:$0xff]  }
  0x30   : > { %3017 = vmatprep.subr.bf16.mxu0 %v3955_v1  ;;  %3197 = vmatprep.subr.bf16.mxu1 %v3955_v1 }
  0x31   : > { %3031 = vmatprep.mubr.msk.bf16.mxu0 %vm3956_vm0, %v3955_v1  ;;  %3211 = vmatprep.mubr.msk.bf16.mxu1 %vm3956_vm0, %v3955_v1 }
  0x33   : > { %3018 = vmatpush3.bf16.msra.mxu0 %v3863_v16  ;;  %3198 = vmatpush3.bf16.msra.mxu1 %v3863_v16  ;;  %v4482_v16 = vld [vmem:[%s4010_s23 + $0x4] sm:$0x1] }
  0x34   : > { %3019 = vmatprep.subr.bf16.mxu0 %v3955_v1  ;;  %3199 = vmatprep.subr.bf16.mxu1 %v3955_v1 }
  0x37   : > { %3020 = vmatpush3.bf16.msra.mxu0 %v4059_v17  ;;  %3200 = vmatpush3.bf16.msra.mxu1 %v4059_v17 }
  0x38   : > { %3021 = vmatprep.subr.bf16.mxu0 %v3955_v1  ;;  %3201 = vmatprep.subr.bf16.mxu1 %v3955_v1 }
  0x3b   : > { %3022 = vmatpush3.bf16.msra.mxu0 %v4068_v18  ;;  %3202 = vmatpush3.bf16.msra.mxu1 %v4068_v18 }
  0x3c   : > { %3023 = vmatprep.subr.bf16.mxu0 %v3955_v1  ;;  %3203 = vmatprep.subr.bf16.mxu1 %v3955_v1 }
  0x3f   : > { %3024 = vmatpush3.bf16.msra.mxu0 %v4077_v19  ;;  %3204 = vmatpush3.bf16.msra.mxu1 %v4077_v19 }
  0x40   : > { %3025 = vmatprep.subr.bf16.mxu0 %v3955_v1  ;;  %3205 = vmatprep.subr.bf16.mxu1 %v3955_v1 }
  0x43   : > { %3026 = vmatpush3.bf16.msra.mxu0 %v4084_v20  ;;  %3206 = vmatpush3.bf16.msra.mxu1 %v4084_v20 }
  0x44   : > { %3027 = vmatprep.subr.bf16.mxu0 %v3955_v1  ;;  %3207 = vmatprep.subr.bf16.mxu1 %v3955_v1 }
  0x47   : > { %3028 = vmatpush3.bf16.msra.mxu0 %v4093_v21  ;;  %3208 = vmatpush3.bf16.msra.mxu1 %v4093_v21 }
  0x48   : > { %3029 = vmatprep.subr.bf16.mxu0 %v3955_v1  ;;  %3209 = vmatprep.subr.bf16.mxu1 %v3955_v1 }
  0x4b   : > { %3030 = vmatpush3.bf16.msra.mxu0 %v4104_v22  ;;  %3210 = vmatpush3.bf16.msra.mxu1 %v4104_v22 }
  0x4c   : > { %3035 = vmatprep.subr.bf16.mxu0 %v3955_v1  ;;  %3215 = vmatprep.subr.bf16.mxu1 %v3955_v1 }
  0x4e   : > { %3032 = vmatmul.mubr.bf16.vlgmr.msra.gmra.mrb[0].mxu0 %v170_v23  ;;  %3212 = vmatmul.mubr.bf16.vlgmr.msra.gmra.mrb[0].mxu1 %v2440_v13  ;;  %v4469_v13 = vld [vmem:[%s5071_s1 + $0x198] sm:$0xff]   ;;  %v2599_v23 = vld [vmem:[%s4010_s23 + $0x8] sm:$0xe] }
  0x4f   : > { %3036 = vmatpush3.bf16.msra.mxu0 %v4114_v24  ;;  %3216 = vmatpush3.bf16.msra.mxu1 %v4114_v24  ;;  %v2617_v33 = vcombine.low %v2599_v23, %v4486_v29 }
  0x50   : > { %3037 = vmatprep.subr.bf16.mxu0 %v3955_v1  ;;  %3217 = vmatprep.subr.bf16.mxu1 %v3955_v1 }
  0x51   : > { %3051 = vmatprep.mubr.msk.bf16.mxu0 %vm3956_vm0, %v3955_v1  ;;  %3231 = vmatprep.mubr.msk.bf16.mxu1 %vm3956_vm0, %v3955_v1  ;;  %v981_v54 = vshrl.u32 %v2617_v33, 16  ;;  %v984_v56 = vshll.u32 %v2617_v33, 16  ;;  %v4528_v33 = vld [vmem:[%s5071_s1 + $0x1c0] sm:$0xff]  }
  0x53   : > { %3038 = vmatpush3.bf16.msra.mxu0 %v4121_v25  ;;  %3218 = vmatpush3.bf16.msra.mxu1 %v4121_v25  ;;  %v983_v6 = vrot.slane %v981_v54, 1  ;;  %v986_v7 = vrot.slane %v984_v56, 2  ;;  %v4561_v54 = vld [vmem:[%s5071_s1 + $0x1d8] sm:$0xff]   ;;  %v4570_v56 = vld [vmem:[%s5071_s1 + $0x1e0] sm:$0xff]  }
  0x54   : > { %3039 = vmatprep.subr.bf16.mxu0 %v3955_v1  ;;  %3219 = vmatprep.subr.bf16.mxu1 %v3955_v1  ;;  %5094 = vst [vmem:[#allocation2_spill] sm:$0xff] %v4570_v56 }
  0x57   : > { %3040 = vmatpush3.bf16.msra.mxu0 %v4136_v26  ;;  %3220 = vmatpush3.bf16.msra.mxu1 %v4136_v26 }
  0x58   : > { %3041 = vmatprep.subr.bf16.mxu0 %v3955_v1  ;;  %3221 = vmatprep.subr.bf16.mxu1 %v3955_v1 }
  0x5b   : > { %3042 = vmatpush3.bf16.msra.mxu0 %v4145_v27  ;;  %3222 = vmatpush3.bf16.msra.mxu1 %v4145_v27 }
  0x5c   : > { %3043 = vmatprep.subr.bf16.mxu0 %v3955_v1  ;;  %3223 = vmatprep.subr.bf16.mxu1 %v3955_v1 }
  0x5f   : > { %3044 = vmatpush3.bf16.msra.mxu0 %v4154_v28  ;;  %3224 = vmatpush3.bf16.msra.mxu1 %v4154_v28 }
  0x60   : > { %3045 = vmatprep.subr.bf16.mxu0 %v3955_v1  ;;  %3225 = vmatprep.subr.bf16.mxu1 %v3955_v1 }
  0x63   : > { %3046 = vmatpush3.bf16.msra.mxu0 %v4164_v30  ;;  %3226 = vmatpush3.bf16.msra.mxu1 %v4164_v30 }
  0x64   : > { %3047 = vmatprep.subr.bf16.mxu0 %v3955_v1  ;;  %3227 = vmatprep.subr.bf16.mxu1 %v3955_v1 }
  0x67   : > { %3048 = vmatpush3.bf16.msra.mxu0 %v4173_v32  ;;  %3228 = vmatpush3.bf16.msra.mxu1 %v4173_v32 }
  0x68   : > { %3049 = vmatprep.subr.bf16.mxu0 %v3955_v1  ;;  %3229 = vmatprep.subr.bf16.mxu1 %v3955_v1 }
  0x6b   : > { %3050 = vmatpush3.bf16.msra.mxu0 %v4182_v35  ;;  %3230 = vmatpush3.bf16.msra.mxu1 %v4182_v35 }
  0x6c   : > { %3055 = vmatprep.subr.bf16.mxu0 %v3955_v1  ;;  %3235 = vmatprep.subr.bf16.mxu1 %v3955_v1 }
  0x6e   : > { %3052 = vmatmul.mubr.bf16.vlgmr.msra.gmra.mrb[0].mxu0 %v4042_v15  ;;  %3232 = vmatmul.mubr.bf16.vlgmr.msra.gmra.mrb[0].mxu1 %v1280_v36  ;;  %v834_v15 = vld [vmem:[%s4010_s23] sm:$0xe] }
  0x6f   : > { %3056 = vmatpush3.bf16.msra.mxu0 %v4191_v37  ;;  %3236 = vmatpush3.bf16.msra.mxu1 %v4191_v37  ;;  %v2590_v31 = vcombine.low %v834_v15, %v4482_v16  ;;  %v4515_v15 = vld [vmem:[%s5071_s1 + $0x1b8] sm:$0xff]  }
  0x70   : > { %3057 = vmatprep.subr.bf16.mxu0 %v3955_v1  ;;  %3237 = vmatprep.subr.bf16.mxu1 %v3955_v1 }
  0x71   : > { %3071 = vmatprep.mubr.msk.bf16.mxu0 %vm3956_vm0, %v3955_v1  ;;  %3251 = vmatprep.mubr.msk.bf16.mxu1 %vm3956_vm0, %v3955_v1  ;;  %v859_v36 = vshrl.u32 %v2590_v31, 16  ;;  %v862_v52 = vshll.u32 %v2590_v31, 16  ;;  %v4521_v31 = vor.u32 %v986_v7, %v983_v6  ;;  %v1078_v6 = vld [vmem:[%s4010_s23] sm:$0xc] }
  0x72   : > { %v2642_v7 = vcombine.low %v1078_v6, %v4482_v16  ;;  %v4610_v16 = vld [vmem:[%s5071_s1 + $0x200] sm:$0xff]   ;;  %v4621_v6 = vld [vmem:[%s5071_s1 + $0x208] sm:$0xff]  }
  0x73   : > { %3058 = vmatpush3.bf16.msra.mxu0 %v4201_v38  ;;  %3238 = vmatpush3.bf16.msra.mxu1 %v4201_v38  ;;  %v861_v2 = vrot.slane %v859_v36, 1  ;;  %v864_v4 = vrot.slane %v862_v52, 2  ;;  %v4539_v36 = vld [vmem:[%s5071_s1 + $0x1c8] sm:$0xff]   ;;  %v4552_v52 = vld [vmem:[%s5071_s1 + $0x1d0] sm:$0xff]   ;;  %5098 = vst [vmem:[#allocation6_spill] sm:$0xff] %v4610_v16  ;;  %5099 = vst [vmem:[#allocation7_spill] sm:$0xff] %v4621_v6 }
  0x74   : > { %3059 = vmatprep.subr.bf16.mxu0 %v3955_v1  ;;  %3239 = vmatprep.subr.bf16.mxu1 %v3955_v1 }
  0x75   : > { %v4519_v23 = vor.u32 %v864_v4, %v861_v2  ;;  %v4579_v2 = vld [vmem:[%s5071_s1 + $0x1e8] sm:$0xff]   ;;  %v4588_v4 = vld [vmem:[%s5071_s1 + $0x1f0] sm:$0xff]  }
  0x76   : > { %5095 = vst [vmem:[#allocation3_spill] sm:$0xff] %v4579_v2  ;;  %5096 = vst [vmem:[#allocation4_spill] sm:$0xff] %v4588_v4 }
  0x77   : > { %3060 = vmatpush3.bf16.msra.mxu0 %v4214_v39  ;;  %3240 = vmatpush3.bf16.msra.mxu1 %v4214_v39 }
  0x78   : > { %3061 = vmatprep.subr.bf16.mxu0 %v3955_v1  ;;  %3241 = vmatprep.subr.bf16.mxu1 %v3955_v1 }
  0x7b   : > { %3062 = vmatpush3.bf16.msra.mxu0 %v4223_v40  ;;  %3242 = vmatpush3.bf16.msra.mxu1 %v4223_v40 }
  0x7c   : > { %3063 = vmatprep.subr.bf16.mxu0 %v3955_v1  ;;  %3243 = vmatprep.subr.bf16.mxu1 %v3955_v1 }
  0x7f   : > { %3064 = vmatpush3.bf16.msra.mxu0 %v4232_v41  ;;  %3244 = vmatpush3.bf16.msra.mxu1 %v4232_v41 }
  0x80   : > { %3065 = vmatprep.subr.bf16.mxu0 %v3955_v1  ;;  %3245 = vmatprep.subr.bf16.mxu1 %v3955_v1 }
  0x83   : > { %3066 = vmatpush3.bf16.msra.mxu0 %v4241_v42  ;;  %3246 = vmatpush3.bf16.msra.mxu1 %v4241_v42 }
  0x84   : > { %3067 = vmatprep.subr.bf16.mxu0 %v3955_v1  ;;  %3247 = vmatprep.subr.bf16.mxu1 %v3955_v1 }
  0x87   : > { %3068 = vmatpush3.bf16.msra.mxu0 %v4250_v43  ;;  %3248 = vmatpush3.bf16.msra.mxu1 %v4250_v43 }
  0x88   : > { %3069 = vmatprep.subr.bf16.mxu0 %v3955_v1  ;;  %3249 = vmatprep.subr.bf16.mxu1 %v3955_v1 }
  0x8b   : > { %3070 = vmatpush3.bf16.msra.mxu0 %v4259_v44  ;;  %3250 = vmatpush3.bf16.msra.mxu1 %v4259_v44 }
  0x8c   : > { %3075 = vmatprep.subr.bf16.mxu0 %v3955_v1  ;;  %3255 = vmatprep.subr.bf16.mxu1 %v3955_v1 }
  0x8e   : > { %3072 = vmatmul.mubr.bf16.vlgmr.msra.gmra.mrb[0].mxu0 %v4266_v45  ;;  %3252 = vmatmul.mubr.bf16.vlgmr.msra.gmra.mrb[0].mxu1 %v4274_v47 }
  0x8f   : > { %3076 = vmatpush3.bf16.msra.mxu0 %v4271_v46  ;;  %3256 = vmatpush3.bf16.msra.mxu1 %v4271_v46 }
  0x90   : > { %3077 = vmatprep.subr.bf16.mxu0 %v3955_v1  ;;  %3257 = vmatprep.subr.bf16.mxu1 %v3955_v1 }
  0x91   : > { %3091 = vmatprep.mubr.msk.bf16.mxu0 %vm3956_vm0, %v3955_v1  ;;  %3271 = vmatprep.mubr.msk.bf16.mxu1 %vm3956_vm0, %v3955_v1 }
  0x93   : > { %3078 = vmatpush3.bf16.msra.mxu0 %v4285_v48  ;;  %3258 = vmatpush3.bf16.msra.mxu1 %v4285_v48 }
  0x94   : > { %3079 = vmatprep.subr.bf16.mxu0 %v3955_v1  ;;  %3259 = vmatprep.subr.bf16.mxu1 %v3955_v1 }
  0x97   : > { %3080 = vmatpush3.bf16.msra.mxu0 %v4298_v49  ;;  %3260 = vmatpush3.bf16.msra.mxu1 %v4298_v49 }
  0x98   : > { %3081 = vmatprep.subr.bf16.mxu0 %v3955_v1  ;;  %3261 = vmatprep.subr.bf16.mxu1 %v3955_v1 }
  0x9b   : > { %3082 = vmatpush3.bf16.msra.mxu0 %v4307_v50  ;;  %3262 = vmatpush3.bf16.msra.mxu1 %v4307_v50 }
  0x9c   : > { %3083 = vmatprep.subr.bf16.mxu0 %v3955_v1  ;;  %3263 = vmatprep.subr.bf16.mxu1 %v3955_v1 }
  0x9f   : > { %3084 = vmatpush3.bf16.msra.mxu0 %v4316_v51  ;;  %3264 = vmatpush3.bf16.msra.mxu1 %v4316_v51 }
  0xa0   : > { %3085 = vmatprep.subr.bf16.mxu0 %v3955_v1  ;;  %3265 = vmatprep.subr.bf16.mxu1 %v3955_v1 }
  0xa3   : > { %3086 = vmatpush3.bf16.msra.mxu0 %v4326_v53  ;;  %3266 = vmatpush3.bf16.msra.mxu1 %v4326_v53 }
  0xa4   : > { %3087 = vmatprep.subr.bf16.mxu0 %v3955_v1  ;;  %3267 = vmatprep.subr.bf16.mxu1 %v3955_v1 }
  0xa7   : > { %3088 = vmatpush3.bf16.msra.mxu0 %v4335_v55  ;;  %3268 = vmatpush3.bf16.msra.mxu1 %v4335_v55 }
  0xa8   : > { %3089 = vmatprep.subr.bf16.mxu0 %v3955_v1  ;;  %3269 = vmatprep.subr.bf16.mxu1 %v3955_v1 }
  0xab   : > { %3090 = vmatpush3.bf16.msra.mxu0 %v4344_v58  ;;  %3270 = vmatpush3.bf16.msra.mxu1 %v4344_v58 }
  0xac   : > { %3095 = vmatprep.subr.bf16.mxu0 %v3955_v1  ;;  %3275 = vmatprep.subr.bf16.mxu1 %v3955_v1 }
  0xae   : > { %3092 = vmatmul.mubr.bf16.vlgmr.msra.gmra.mrb[0].mxu0 %v4274_v47  ;;  %3272 = vmatmul.mubr.bf16.vlgmr.msra.gmra.mrb[0].mxu1 %v4348_v59 }
  0xaf   : > { %3096 = vmatpush3.bf16.msra.mxu0 %v4355_v60  ;;  %3276 = vmatpush3.bf16.msra.mxu1 %v4355_v60 }
  0xb0   : > { %3097 = vmatprep.subr.bf16.mxu0 %v3955_v1  ;;  %3277 = vmatprep.subr.bf16.mxu1 %v3955_v1 }
  0xb1   : > { %3111 = vmatprep.mubr.msk.bf16.mxu0 %vm3956_vm0, %v3955_v1  ;;  %3291 = vmatprep.mubr.msk.bf16.mxu1 %vm3956_vm0, %v3955_v1 }
  0xb3   : > { %3098 = vmatpush3.bf16.msra.mxu0 %v4366_v61  ;;  %3278 = vmatpush3.bf16.msra.mxu1 %v4366_v61 }
  0xb4   : > { %3099 = vmatprep.subr.bf16.mxu0 %v3955_v1  ;;  %3279 = vmatprep.subr.bf16.mxu1 %v3955_v1 }
  0xb7   : > { %3100 = vmatpush3.bf16.msra.mxu0 %v4379_v62  ;;  %3280 = vmatpush3.bf16.msra.mxu1 %v4379_v62 }
  0xb8   : > { %3101 = vmatprep.subr.bf16.mxu0 %v3955_v1  ;;  %3281 = vmatprep.subr.bf16.mxu1 %v3955_v1 }
  0xbb   : > { %3102 = vmatpush3.bf16.msra.mxu0 %v4388_v63  ;;  %3282 = vmatpush3.bf16.msra.mxu1 %v4388_v63 }
  0xbc   : > { %3103 = vmatprep.subr.bf16.mxu0 %v3955_v1  ;;  %3283 = vmatprep.subr.bf16.mxu1 %v3955_v1 }
  0xbf   : > { %3104 = vmatpush3.bf16.msra.mxu0 %v4397_v0  ;;  %3284 = vmatpush3.bf16.msra.mxu1 %v4397_v0 }
  0xc0   : > { %3105 = vmatprep.subr.bf16.mxu0 %v3955_v1  ;;  %3285 = vmatprep.subr.bf16.mxu1 %v3955_v1 }
  0xc3   : > { %3106 = vmatpush3.bf16.msra.mxu0 %v4407_v3  ;;  %3286 = vmatpush3.bf16.msra.mxu1 %v4407_v3 }
  0xc4   : > { %3107 = vmatprep.subr.bf16.mxu0 %v3955_v1  ;;  %3287 = vmatprep.subr.bf16.mxu1 %v3955_v1 }
  0xc7   : > { %3108 = vmatpush3.bf16.msra.mxu0 %v4416_v5  ;;  %3288 = vmatpush3.bf16.msra.mxu1 %v4416_v5 }
  0xc8   : > { %3109 = vmatprep.subr.bf16.mxu0 %v3955_v1  ;;  %3289 = vmatprep.subr.bf16.mxu1 %v3955_v1 }
  0xcb   : > { %3110 = vmatpush3.bf16.msra.mxu0 %v4425_v8  ;;  %3290 = vmatpush3.bf16.msra.mxu1 %v4425_v8 }
  0xcc   : > { %3115 = vmatprep.subr.bf16.mxu0 %v3955_v1  ;;  %3295 = vmatprep.subr.bf16.mxu1 %v3955_v1 }
  0xce   : > { %3112 = vmatmul.mubr.bf16.vlgmr.msra.gmra.mrb[0].mxu0 %v4348_v59  ;;  %3292 = vmatmul.mubr.bf16.vlgmr.msra.gmra.mrb[0].mxu1 %v4429_v9 }
  0xcf   : > { %3116 = vmatpush3.bf16.msra.mxu0 %v4436_v10  ;;  %3296 = vmatpush3.bf16.msra.mxu1 %v4436_v10 }
  0xd0   : > { %3117 = vmatprep.subr.bf16.mxu0 %v3955_v1  ;;  %3297 = vmatprep.subr.bf16.mxu1 %v3955_v1 }
  0xd1   : > { %3131 = vmatprep.mubr.msk.bf16.mxu0 %vm3956_vm0, %v3955_v1  ;;  %3311 = vmatprep.mubr.msk.bf16.mxu1 %vm3956_vm0, %v3955_v1 }
  0xd3   : > { %3118 = vmatpush3.bf16.msra.mxu0 %v4447_v11  ;;  %3298 = vmatpush3.bf16.msra.mxu1 %v4447_v11 }
  0xd4   : > { %3119 = vmatprep.subr.bf16.mxu0 %v3955_v1  ;;  %3299 = vmatprep.subr.bf16.mxu1 %v3955_v1 }
  0xd7   : > { %3120 = vmatpush3.bf16.msra.mxu0 %v4460_v12  ;;  %3300 = vmatpush3.bf16.msra.mxu1 %v4460_v12 }
  0xd8   : > { %3121 = vmatprep.subr.bf16.mxu0 %v3955_v1  ;;  %3301 = vmatprep.subr.bf16.mxu1 %v3955_v1 }
  0xdb   : > { %3122 = vmatpush3.bf16.msra.mxu0 %v4469_v13  ;;  %3302 = vmatpush3.bf16.msra.mxu1 %v4469_v13 }
  0xdc   : > { %3123 = vmatprep.subr.bf16.mxu0 %v3955_v1  ;;  %3303 = vmatprep.subr.bf16.mxu1 %v3955_v1 }
  0xdf   : > { %3124 = vmatpush3.bf16.msra.mxu0 %v4476_v14  ;;  %3304 = vmatpush3.bf16.msra.mxu1 %v4476_v14 }
  0xe0   : > { %3125 = vmatprep.subr.bf16.mxu0 %v3955_v1  ;;  %3305 = vmatprep.subr.bf16.mxu1 %v3955_v1 }
  0xe3   : > { %3126 = vmatpush3.bf16.msra.mxu0 %v4497_v34  ;;  %3306 = vmatpush3.bf16.msra.mxu1 %v4497_v34 }
  0xe4   : > { %3127 = vmatprep.subr.bf16.mxu0 %v3955_v1  ;;  %3307 = vmatprep.subr.bf16.mxu1 %v3955_v1 }
  0xe7   : > { %3128 = vmatpush3.bf16.msra.mxu0 %v4506_v57  ;;  %3308 = vmatpush3.bf16.msra.mxu1 %v4506_v57 }
  0xe8   : > { %3129 = vmatprep.subr.bf16.mxu0 %v3955_v1  ;;  %3309 = vmatprep.subr.bf16.mxu1 %v3955_v1 }
  0xeb   : > { %3130 = vmatpush3.bf16.msra.mxu0 %v4515_v15  ;;  %3310 = vmatpush3.bf16.msra.mxu1 %v4515_v15 }
  0xec   : > { %3135 = vmatprep.subr.bf16.mxu0 %v3955_v1  ;;  %3315 = vmatprep.subr.bf16.mxu1 %v3955_v1 }
  0xee   : > { %3132 = vmatmul.mubr.bf16.vlgmr.msra.gmra.mrb[0].mxu0 %v4519_v23  ;;  %3312 = vmatmul.mubr.bf16.vlgmr.msra.gmra.mrb[0].mxu1 %v4521_v31 }
  0xef   : > { %3136 = vmatpush3.bf16.msra.mxu0 %v4528_v33  ;;  %3316 = vmatpush3.bf16.msra.mxu1 %v4528_v33 }
  0xf0   : > { %3137 = vmatprep.subr.bf16.mxu0 %v3955_v1  ;;  %3317 = vmatprep.subr.bf16.mxu1 %v3955_v1 }
  0xf1   : > { %3151 = vmatprep.mubr.msk.bf16.mxu0 %vm3956_vm0, %v3955_v1  ;;  %3331 = vmatprep.mubr.msk.bf16.mxu1 %vm3956_vm0, %v3955_v1 }
  0xf3   : > { %3138 = vmatpush3.bf16.msra.mxu0 %v4539_v36  ;;  %3318 = vmatpush3.bf16.msra.mxu1 %v4539_v36 }
  0xf4   : > { %3139 = vmatprep.subr.bf16.mxu0 %v3955_v1  ;;  %3319 = vmatprep.subr.bf16.mxu1 %v3955_v1 }
  0xf7   : > { %3140 = vmatpush3.bf16.msra.mxu0 %v4552_v52  ;;  %3320 = vmatpush3.bf16.msra.mxu1 %v4552_v52 }
  0xf8   : > { %3141 = vmatprep.subr.bf16.mxu0 %v3955_v1  ;;  %3321 = vmatprep.subr.bf16.mxu1 %v3955_v1 }
  0xfb   : > { %3142 = vmatpush3.bf16.msra.mxu0 %v4561_v54  ;;  %3322 = vmatpush3.bf16.msra.mxu1 %v4561_v54 }
  0xfc   : > { %3143 = vmatprep.subr.bf16.mxu0 %v3955_v1  ;;  %3323 = vmatprep.subr.bf16.mxu1 %v3955_v1 }
  0xff   : > { %3144 = vmatpush3.bf16.msra.mxu0 %v4570_v56  ;;  %3324 = vmatpush3.bf16.msra.mxu1 %v4570_v56  ;;  %v4603_v56 = vrot.slane %v2642_v7, 2  ;;  %v4634_v7 = vld [vmem:[%s5071_s1 + $0x210] sm:$0xff]  }
 0x100   : > { %3145 = vmatprep.subr.bf16.mxu0 %v3955_v1  ;;  %3325 = vmatprep.subr.bf16.mxu1 %v3955_v1  ;;  %5100 = vst [vmem:[#allocation8_spill] sm:$0xff] %v4634_v7 }
 0x103   : > { %3146 = vmatpush3.bf16.msra.mxu0 %v4579_v2  ;;  %3326 = vmatpush3.bf16.msra.mxu1 %v4579_v2  ;;  %v4599_v2 = vld [vmem:[%s5071_s1 + $0x1f8] sm:$0xff]  }
 0x104   : > { %3147 = vmatprep.subr.bf16.mxu0 %v3955_v1  ;;  %3327 = vmatprep.subr.bf16.mxu1 %v3955_v1  ;;  %5097 = vst [vmem:[#allocation5_spill] sm:$0xff] %v4599_v2 }
 0x107   : > { %3148 = vmatpush3.bf16.msra.mxu0 %v4588_v4  ;;  %3328 = vmatpush3.bf16.msra.mxu1 %v4588_v4 }
 0x108   : > { %3149 = vmatprep.subr.bf16.mxu0 %v3955_v1  ;;  %3329 = vmatprep.subr.bf16.mxu1 %v3955_v1 }
 0x10b   : > { %3150 = vmatpush3.bf16.msra.mxu0 %v4599_v2  ;;  %3330 = vmatpush3.bf16.msra.mxu1 %v4599_v2  ;;  %v2655_v2 = vld [vmem:[%s4010_s23 + $0x8] sm:$0xc] }
 0x10c   : > { %3155 = vmatprep.subr.bf16.mxu0 %v3955_v1  ;;  %3335 = vmatprep.subr.bf16.mxu1 %v3955_v1 }
 0x10e   : > { %3152 = vmatmul.mubr.bf16.vlgmr.msra.gmra.mrb[0].mxu0 %v4521_v31  ;;  %3332 = vmatmul.mubr.bf16.vlgmr.msra.gmra.mrb[0].mxu1 %v4603_v56 }
 0x10f   : > { %3156 = vmatpush3.bf16.msra.mxu0 %v4610_v16  ;;  %3336 = vmatpush3.bf16.msra.mxu1 %v4610_v16  ;;  %v4643_v16 = vld [vmem:[%s5071_s1 + $0x218] sm:$0xff]  }
 0x110   : > { %3157 = vmatprep.subr.bf16.mxu0 %v3955_v1  ;;  %3337 = vmatprep.subr.bf16.mxu1 %v3955_v1  ;;  %5101 = vst [vmem:[#allocation9_spill] sm:$0xff] %v4643_v16 }
 0x111   : > { %3171 = vmatprep.mubr.msk.bf16.mxu0 %vm3956_vm0, %v3955_v1  ;;  %3351 = vmatprep.mubr.msk.bf16.mxu1 %vm3956_vm0, %v3955_v1 }
 0x113   : > { %3158 = vmatpush3.bf16.msra.mxu0 %v4621_v6  ;;  %3338 = vmatpush3.bf16.msra.mxu1 %v4621_v6  ;;  %v4652_v6 = vld [vmem:[%s5071_s1 + $0x220] sm:$0xff]  }
 0x114   : > { %3159 = vmatprep.subr.bf16.mxu0 %v3955_v1  ;;  %3339 = vmatprep.subr.bf16.mxu1 %v3955_v1  ;;  %5102 = vst [vmem:[#allocation10_spill] sm:$0xff] %v4652_v6 }
 0x117   : > { %3160 = vmatpush3.bf16.msra.mxu0 %v4634_v7  ;;  %3340 = vmatpush3.bf16.msra.mxu1 %v4634_v7  ;;  %v4661_v7 = vld [vmem:[%s5071_s1 + $0x228] sm:$0xff]  }
 0x118   : > { %3161 = vmatprep.subr.bf16.mxu0 %v3955_v1  ;;  %3341 = vmatprep.subr.bf16.mxu1 %v3955_v1  ;;  %5103 = vst [vmem:[#allocation11_spill] sm:$0xff] %v4661_v7 }
 0x11b   : > { %3162 = vmatpush3.bf16.msra.mxu0 %v4643_v16  ;;  %3342 = vmatpush3.bf16.msra.mxu1 %v4643_v16  ;;  %v4670_v16 = vld [vmem:[%s5071_s1 + $0x230] sm:$0xff]  }
 0x11c   : > { %3163 = vmatprep.subr.bf16.mxu0 %v3955_v1  ;;  %3343 = vmatprep.subr.bf16.mxu1 %v3955_v1 }
 0x11f   : > { %3164 = vmatpush3.bf16.msra.mxu0 %v4652_v6  ;;  %3344 = vmatpush3.bf16.msra.mxu1 %v4652_v6  ;;  %v2656_v6 = vcombine.low %v2655_v2, %v4486_v29  ;;  %v3937_v29 = vld [vmem:[%s5071_s1 + $0x40] sm:$0xff]   ;;  %v3938_v2 = vld [vmem:[%s5071_s1 + $0x48] sm:$0xff]  }
 0x120   : > { %3165 = vmatprep.subr.bf16.mxu0 %v3955_v1  ;;  %3345 = vmatprep.subr.bf16.mxu1 %v3955_v1 }
 0x121   : > { %v4685_v4 = vrot.slane %v2656_v6, 2  ;;  %v3939_v6 = vld [vmem:[%s5071_s1 + $0x50] sm:$0xff]  }
 0x123   : > { %3166 = vmatpush3.bf16.msra.mxu0 %v4661_v7  ;;  %3346 = vmatpush3.bf16.msra.mxu1 %v4661_v7  ;;  %v4681_v7 = vld [vmem:[%s5071_s1 + $0x238] sm:$0xff]  }
 0x124   : > { %3167 = vmatprep.subr.bf16.mxu0 %v3955_v1  ;;  %3347 = vmatprep.subr.bf16.mxu1 %v3955_v1 }
 0x127   : > { %3168 = vmatpush3.bf16.msra.mxu0 %v4670_v16  ;;  %3348 = vmatpush3.bf16.msra.mxu1 %v4670_v16 }
 0x128   : > { %3169 = vmatprep.subr.bf16.mxu0 %v3955_v1  ;;  %3349 = vmatprep.subr.bf16.mxu1 %v3955_v1 }
 0x12b   : > { %3170 = vmatpush3.bf16.msra.mxu0 %v4681_v7  ;;  %3350 = vmatpush3.bf16.msra.mxu1 %v4681_v7 }
 0x12c   : > { %3355 = vmatprep.subr.bf16.mxu0 %v3955_v1  ;;  %3535 = vmatprep.subr.bf16.mxu1 %v3955_v1 }
 0x12e   : > { %3172 = vmatmul.mubr.bf16.vlgmr.msra.gmra.mrb[0].mxu0 %v4603_v56  ;;  %3352 = vmatmul.mubr.bf16.vlgmr.msra.gmra.mrb[0].mxu1 %v4685_v4 }
 0x12f   : > { %3356 = vmatpush3.bf16.msra.mxu0 %v3937_v29  ;;  %3536 = vmatpush3.bf16.msra.mxu1 %v3937_v29  ;;  %v3940_v29 = vld [vmem:[%s5071_s1 + $0x58] sm:$0xff]  }
 0x130   : > { %3357 = vmatprep.subr.bf16.mxu0 %v3955_v1  ;;  %3537 = vmatprep.subr.bf16.mxu1 %v3955_v1 }
 0x131   : > { %3371 = vmatprep.mubr.msk.bf16.mxu0 %vm3956_vm0, %v3955_v1  ;;  %3551 = vmatprep.mubr.msk.bf16.mxu1 %vm3956_vm0, %v3955_v1 }
 0x133   : > { %3358 = vmatpush3.bf16.msra.mxu0 %v3938_v2  ;;  %3538 = vmatpush3.bf16.msra.mxu1 %v3938_v2  ;;  %v3941_v2 = vld [vmem:[%s5071_s1 + $0x60] sm:$0xff]  }
 0x134   : > { %3359 = vmatprep.subr.bf16.mxu0 %v3955_v1  ;;  %3539 = vmatprep.subr.bf16.mxu1 %v3955_v1 }
 0x137   : > { %3360 = vmatpush3.bf16.msra.mxu0 %v3939_v6  ;;  %3540 = vmatpush3.bf16.msra.mxu1 %v3939_v6  ;;  %v3942_v6 = vld [vmem:[%s5071_s1 + $0x68] sm:$0xff]  }
 0x138   : > { %3361 = vmatprep.subr.bf16.mxu0 %v3955_v1  ;;  %3541 = vmatprep.subr.bf16.mxu1 %v3955_v1 }
 0x13b   : > { %3362 = vmatpush3.bf16.msra.mxu0 %v3940_v29  ;;  %3542 = vmatpush3.bf16.msra.mxu1 %v3940_v29  ;;  %v3943_v29 = vld [vmem:[%s5071_s1 + $0x70] sm:$0xff]  }
 0x13c   : > { %3363 = vmatprep.subr.bf16.mxu0 %v3955_v1  ;;  %3543 = vmatprep.subr.bf16.mxu1 %v3955_v1 }
 0x13f   : > { %3364 = vmatpush3.bf16.msra.mxu0 %v3941_v2  ;;  %3544 = vmatpush3.bf16.msra.mxu1 %v3941_v2  ;;  %v3944_v2 = vld [vmem:[%s5071_s1 + $0x78] sm:$0xff]  }
 0x140   : > { %3365 = vmatprep.subr.bf16.mxu0 %v3955_v1  ;;  %3545 = vmatprep.subr.bf16.mxu1 %v3955_v1 }
 0x143   : > { %3366 = vmatpush3.bf16.msra.mxu0 %v3942_v6  ;;  %3546 = vmatpush3.bf16.msra.mxu1 %v3942_v6  ;;  %v3945_v6 = vld [vmem:[%s5071_s1] sm:$0xff]  }
 0x144   : > { %3367 = vmatprep.subr.bf16.mxu0 %v3955_v1  ;;  %3547 = vmatprep.subr.bf16.mxu1 %v3955_v1 }
 0x147   : > { %3368 = vmatpush3.bf16.msra.mxu0 %v3943_v29  ;;  %3548 = vmatpush3.bf16.msra.mxu1 %v3943_v29  ;;  %v3946_v29 = vld [vmem:[%s5071_s1 + $0x8] sm:$0xff]  }
 0x148   : > { %3369 = vmatprep.subr.bf16.mxu0 %v3955_v1  ;;  %3549 = vmatprep.subr.bf16.mxu1 %v3955_v1 }
 0x14b   : > { %3370 = vmatpush3.bf16.msra.mxu0 %v3944_v2  ;;  %3550 = vmatpush3.bf16.msra.mxu1 %v3944_v2 }
 0x14c   : > { %3375 = vmatprep.subr.bf16.mxu0 %v3955_v1  ;;  %3555 = vmatprep.subr.bf16.mxu1 %v3955_v1 }
 0x14e   : > { %3372 = vmatmul.mubr.bf16.vlgmr.msra.gmra.mrb[4].mxu0 %v4274_v47  ;;  %3552 = vmatmul.mubr.bf16.vlgmr.msra.gmra.mrb[4].mxu1 %v4348_v59 }
 0x14f   : > { %3376 = vmatpush3.bf16.msra.mxu0 %v3945_v6  ;;  %3556 = vmatpush3.bf16.msra.mxu1 %v3945_v6 }
 0x150   : > { %3377 = vmatprep.subr.bf16.mxu0 %v3955_v1  ;;  %3557 = vmatprep.subr.bf16.mxu1 %v3955_v1 }
 0x151   : > { %3391 = vmatprep.mubr.msk.bf16.mxu0 %vm3956_vm0, %v3955_v1  ;;  %3571 = vmatprep.mubr.msk.bf16.mxu1 %vm3956_vm0, %v3955_v1 }
 0x153   : > { %3378 = vmatpush3.bf16.msra.mxu0 %v3946_v29  ;;  %3558 = vmatpush3.bf16.msra.mxu1 %v3946_v29 }
 0x154   : > { %3379 = vmatprep.subr.bf16.mxu0 %v3955_v1  ;;  %3559 = vmatprep.subr.bf16.mxu1 %v3955_v1 }
 0x157   : > { %3380 = vmatpush3.bf16.msra.mxu0 %v4059_v17  ;;  %3560 = vmatpush3.bf16.msra.mxu1 %v4059_v17  ;;  %v2657_v17 = vld [vmem:[%s4010_s23 + $0x10] sm:$0xe] }
 0x158   : > { %3381 = vmatprep.subr.bf16.mxu0 %v3955_v1  ;;  %3561 = vmatprep.subr.bf16.mxu1 %v3955_v1 }
 0x15b   : > { %3382 = vmatpush3.bf16.msra.mxu0 %v4068_v18  ;;  %3562 = vmatpush3.bf16.msra.mxu1 %v4068_v18  ;;  %v4949_v18 = vld [vmem:[%s4010_s23 + $0x14] sm:$0x1] }
 0x15c   : > { %3383 = vmatprep.subr.bf16.mxu0 %v3955_v1  ;;  %3563 = vmatprep.subr.bf16.mxu1 %v3955_v1 }
 0x15f   : > { %3384 = vmatpush3.bf16.msra.mxu0 %v4077_v19  ;;  %3564 = vmatpush3.bf16.msra.mxu1 %v4077_v19  ;;  %v2660_v19 = vld [vmem:[%s4010_s23 + $0x18] sm:$0xe] }
 0x160   : > { %3385 = vmatprep.subr.bf16.mxu0 %v3955_v1  ;;  %3565 = vmatprep.subr.bf16.mxu1 %v3955_v1 }
 0x163   : > { %3386 = vmatpush3.bf16.msra.mxu0 %v4084_v20  ;;  %3566 = vmatpush3.bf16.msra.mxu1 %v4084_v20  ;;  %v4955_v20 = vld [vmem:[%s4010_s23 + $0x1c] sm:$0x1] }
 0x164   : > { %3387 = vmatprep.subr.bf16.mxu0 %v3955_v1  ;;  %3567 = vmatprep.subr.bf16.mxu1 %v3955_v1 }
 0x167   : > { %3388 = vmatpush3.bf16.msra.mxu0 %v4093_v21  ;;  %3568 = vmatpush3.bf16.msra.mxu1 %v4093_v21  ;;  %v2659_v21 = vcombine.low %v2657_v17, %v4949_v18 }
 0x168   : > { %3389 = vmatprep.subr.bf16.mxu0 %v3955_v1  ;;  %3569 = vmatprep.subr.bf16.mxu1 %v3955_v1 }
 0x16b   : > { %3390 = vmatpush3.bf16.msra.mxu0 %v4104_v22  ;;  %3570 = vmatpush3.bf16.msra.mxu1 %v4104_v22  ;;  %v2662_v22 = vcombine.low %v2660_v19, %v4955_v20 }
 0x16c   : > { %3395 = vmatprep.subr.bf16.mxu0 %v3955_v1  ;;  %3575 = vmatprep.subr.bf16.mxu1 %v3955_v1 }
 0x16e   : > { %3392 = vmatmul.mubr.bf16.vlgmr.msra.gmra.mrb[4].mxu0 %v4266_v45  ;;  %3572 = vmatmul.mubr.bf16.vlgmr.msra.gmra.mrb[4].mxu1 %v4274_v47 }
 0x16f   : > { %3396 = vmatpush3.bf16.msra.mxu0 %v4114_v24  ;;  %3576 = vmatpush3.bf16.msra.mxu1 %v4114_v24 }
 0x170   : > { %3397 = vmatprep.subr.bf16.mxu0 %v3955_v1  ;;  %3577 = vmatprep.subr.bf16.mxu1 %v3955_v1 }
 0x171   : > { %3411 = vmatprep.mubr.msk.bf16.mxu0 %vm3956_vm0, %v3955_v1  ;;  %3591 = vmatprep.mubr.msk.bf16.mxu1 %vm3956_vm0, %v3955_v1 }
 0x173   : > { %3398 = vmatpush3.bf16.msra.mxu0 %v4121_v25  ;;  %3578 = vmatpush3.bf16.msra.mxu1 %v4121_v25 }
 0x174   : > { %3399 = vmatprep.subr.bf16.mxu0 %v3955_v1  ;;  %3579 = vmatprep.subr.bf16.mxu1 %v3955_v1 }
 0x177   : > { %3400 = vmatpush3.bf16.msra.mxu0 %v4136_v26  ;;  %3580 = vmatpush3.bf16.msra.mxu1 %v4136_v26  ;;  %v1840_v26 = vshrl.u32 %v2659_v21, 16 }
 0x178   : > { %3401 = vmatprep.subr.bf16.mxu0 %v3955_v1  ;;  %3581 = vmatprep.subr.bf16.mxu1 %v3955_v1 }
 0x17b   : > { %3402 = vmatpush3.bf16.msra.mxu0 %v4145_v27  ;;  %3582 = vmatpush3.bf16.msra.mxu1 %v4145_v27 }
 0x17c   : > { %3403 = vmatprep.subr.bf16.mxu0 %v3955_v1  ;;  %3583 = vmatprep.subr.bf16.mxu1 %v3955_v1 }
 0x17f   : > { %3404 = vmatpush3.bf16.msra.mxu0 %v4154_v28  ;;  %3584 = vmatpush3.bf16.msra.mxu1 %v4154_v28 }
 0x180   : > { %3405 = vmatprep.subr.bf16.mxu0 %v3955_v1  ;;  %3585 = vmatprep.subr.bf16.mxu1 %v3955_v1 }
 0x183   : > { %3406 = vmatpush3.bf16.msra.mxu0 %v4164_v30  ;;  %3586 = vmatpush3.bf16.msra.mxu1 %v4164_v30 }
 0x184   : > { %3407 = vmatprep.subr.bf16.mxu0 %v3955_v1  ;;  %3587 = vmatprep.subr.bf16.mxu1 %v3955_v1 }
 0x187   : > { %3408 = vmatpush3.bf16.msra.mxu0 %v4173_v32  ;;  %3588 = vmatpush3.bf16.msra.mxu1 %v4173_v32  ;;  %v1843_v32 = vshll.u32 %v2659_v21, 16 }
 0x188   : > { %3409 = vmatprep.subr.bf16.mxu0 %v3955_v1  ;;  %3589 = vmatprep.subr.bf16.mxu1 %v3955_v1 }
 0x18b   : > { %3410 = vmatpush3.bf16.msra.mxu0 %v4182_v35  ;;  %3590 = vmatpush3.bf16.msra.mxu1 %v4182_v35  ;;  %v1897_v35 = vshrl.u32 %v2662_v22, 16 }
 0x18c   : > { %3415 = vmatprep.subr.bf16.mxu0 %v3955_v1  ;;  %3595 = vmatprep.subr.bf16.mxu1 %v3955_v1 }
 0x18e   : > { %3412 = vmatmul.mubr.bf16.vlgmr.msra.gmra.mrb[4].mxu0 %v4348_v59  ;;  %3592 = vmatmul.mubr.bf16.vlgmr.msra.gmra.mrb[4].mxu1 %v4429_v9  ;;  %v5108_v59 = vld [vmem:[#allocation6_spill] sm:$0xff] }
 0x18f   : > { %3416 = vmatpush3.bf16.msra.mxu0 %v4191_v37  ;;  %3596 = vmatpush3.bf16.msra.mxu1 %v4191_v37  ;;  %v1900_v37 = vshll.u32 %v2662_v22, 16 }
 0x190   : > { %3417 = vmatprep.subr.bf16.mxu0 %v3955_v1  ;;  %3597 = vmatprep.subr.bf16.mxu1 %v3955_v1 }
 0x191   : > { %3431 = vmatprep.mubr.msk.bf16.mxu0 %vm3956_vm0, %v3955_v1  ;;  %3611 = vmatprep.mubr.msk.bf16.mxu1 %vm3956_vm0, %v3955_v1  ;;  %v1902_v45 = vrot.slane %v1900_v37, 2 }
 0x193   : > { %3418 = vmatpush3.bf16.msra.mxu0 %v4201_v38  ;;  %3598 = vmatpush3.bf16.msra.mxu1 %v4201_v38 }
 0x194   : > { %3419 = vmatprep.subr.bf16.mxu0 %v3955_v1  ;;  %3599 = vmatprep.subr.bf16.mxu1 %v3955_v1 }
 0x197   : > { %3420 = vmatpush3.bf16.msra.mxu0 %v4214_v39  ;;  %3600 = vmatpush3.bf16.msra.mxu1 %v4214_v39 }
 0x198   : > { %3421 = vmatprep.subr.bf16.mxu0 %v3955_v1  ;;  %3601 = vmatprep.subr.bf16.mxu1 %v3955_v1 }
 0x19b   : > { %3422 = vmatpush3.bf16.msra.mxu0 %v4223_v40  ;;  %3602 = vmatpush3.bf16.msra.mxu1 %v4223_v40 }
 0x19c   : > { %3423 = vmatprep.subr.bf16.mxu0 %v3955_v1  ;;  %3603 = vmatprep.subr.bf16.mxu1 %v3955_v1 }
 0x19f   : > { %3424 = vmatpush3.bf16.msra.mxu0 %v4232_v41  ;;  %3604 = vmatpush3.bf16.msra.mxu1 %v4232_v41 }
 0x1a0   : > { %3425 = vmatprep.subr.bf16.mxu0 %v3955_v1  ;;  %3605 = vmatprep.subr.bf16.mxu1 %v3955_v1 }
 0x1a3   : > { %3426 = vmatpush3.bf16.msra.mxu0 %v4241_v42  ;;  %3606 = vmatpush3.bf16.msra.mxu1 %v4241_v42  ;;  %v1842_v42 = vrot.slane %v1840_v26, 1 }
 0x1a4   : > { %3427 = vmatprep.subr.bf16.mxu0 %v3955_v1  ;;  %3607 = vmatprep.subr.bf16.mxu1 %v3955_v1 }
 0x1a7   : > { %3428 = vmatpush3.bf16.msra.mxu0 %v4250_v43  ;;  %3608 = vmatpush3.bf16.msra.mxu1 %v4250_v43  ;;  %v1845_v43 = vrot.slane %v1843_v32, 2 }
 0x1a8   : > { %3429 = vmatprep.subr.bf16.mxu0 %v3955_v1  ;;  %3609 = vmatprep.subr.bf16.mxu1 %v3955_v1 }
 0x1ab   : > { %3430 = vmatpush3.bf16.msra.mxu0 %v4259_v44  ;;  %3610 = vmatpush3.bf16.msra.mxu1 %v4259_v44  ;;  %v1899_v44 = vrot.slane %v1897_v35, 1 }
 0x1ac   : > { %3435 = vmatprep.subr.bf16.mxu0 %v3955_v1  ;;  %3615 = vmatprep.subr.bf16.mxu1 %v3955_v1 }
 0x1ad   : > { %v1903_v47 = vor.u32 %v1902_v45, %v1899_v44 }
 0x1ae   : > { %3432 = vmatmul.mubr.bf16.vlgmr.msra.gmra.mrb[4].mxu0 %v4519_v23  ;;  %3612 = vmatmul.mubr.bf16.vlgmr.msra.gmra.mrb[4].mxu1 %v4521_v31 }
 0x1af   : > { %3436 = vmatpush3.bf16.msra.mxu0 %v4271_v46  ;;  %3616 = vmatpush3.bf16.msra.mxu1 %v4271_v46  ;;  %v1846_v46 = vor.u32 %v1845_v43, %v1842_v42 }
 0x1b0   : > { %3437 = vmatprep.subr.bf16.mxu0 %v3955_v1  ;;  %3617 = vmatprep.subr.bf16.mxu1 %v3955_v1 }
 0x1b1   : > { %3451 = vmatprep.mubr.msk.bf16.mxu0 %vm3956_vm0, %v3955_v1  ;;  %3631 = vmatprep.mubr.msk.bf16.mxu1 %vm3956_vm0, %v3955_v1 }
 0x1b3   : > { %3438 = vmatpush3.bf16.msra.mxu0 %v4285_v48  ;;  %3618 = vmatpush3.bf16.msra.mxu1 %v4285_v48  ;;  %v5104_v48 = vld [vmem:[#allocation2_spill] sm:$0xff] }
 0x1b4   : > { %3439 = vmatprep.subr.bf16.mxu0 %v3955_v1  ;;  %3619 = vmatprep.subr.bf16.mxu1 %v3955_v1 }
 0x1b7   : > { %3440 = vmatpush3.bf16.msra.mxu0 %v4298_v49  ;;  %3620 = vmatpush3.bf16.msra.mxu1 %v4298_v49  ;;  %v5105_v49 = vld [vmem:[#allocation3_spill] sm:$0xff] }
 0x1b8   : > { %3441 = vmatprep.subr.bf16.mxu0 %v3955_v1  ;;  %3621 = vmatprep.subr.bf16.mxu1 %v3955_v1 }
 0x1bb   : > { %3442 = vmatpush3.bf16.msra.mxu0 %v4307_v50  ;;  %3622 = vmatpush3.bf16.msra.mxu1 %v4307_v50  ;;  %v2663_v50 = vld [vmem:[%s4010_s23 + $0x10] sm:$0xc] }
 0x1bc   : > { %3443 = vmatprep.subr.bf16.mxu0 %v3955_v1  ;;  %3623 = vmatprep.subr.bf16.mxu1 %v3955_v1 }
 0x1bf   : > { %3444 = vmatpush3.bf16.msra.mxu0 %v4316_v51  ;;  %3624 = vmatpush3.bf16.msra.mxu1 %v4316_v51  ;;  %v2664_v51 = vcombine.low %v2663_v50, %v4949_v18 }
 0x1c0   : > { %3445 = vmatprep.subr.bf16.mxu0 %v3955_v1  ;;  %3625 = vmatprep.subr.bf16.mxu1 %v3955_v1 }
 0x1c3   : > { %3446 = vmatpush3.bf16.msra.mxu0 %v4326_v53  ;;  %3626 = vmatpush3.bf16.msra.mxu1 %v4326_v53  ;;  %v5106_v53 = vld [vmem:[#allocation4_spill] sm:$0xff] }
 0x1c4   : > { %3447 = vmatprep.subr.bf16.mxu0 %v3955_v1  ;;  %3627 = vmatprep.subr.bf16.mxu1 %v3955_v1 }
 0x1c7   : > { %3448 = vmatpush3.bf16.msra.mxu0 %v4335_v55  ;;  %3628 = vmatpush3.bf16.msra.mxu1 %v4335_v55  ;;  %v1950_v55 = vrot.slane %v2664_v51, 2 }
 0x1c8   : > { %3449 = vmatprep.subr.bf16.mxu0 %v3955_v1  ;;  %3629 = vmatprep.subr.bf16.mxu1 %v3955_v1 }
 0x1cb   : > { %3450 = vmatpush3.bf16.msra.mxu0 %v4344_v58  ;;  %3630 = vmatpush3.bf16.msra.mxu1 %v4344_v58  ;;  %v5107_v58 = vld [vmem:[#allocation5_spill] sm:$0xff] }
 0x1cc   : > { %3455 = vmatprep.subr.bf16.mxu0 %v3955_v1  ;;  %3635 = vmatprep.subr.bf16.mxu1 %v3955_v1 }
 0x1ce   : > { %3452 = vmatmul.mubr.bf16.vlgmr.msra.gmra.mrb[4].mxu0 %v4521_v31  ;;  %3632 = vmatmul.mubr.bf16.vlgmr.msra.gmra.mrb[4].mxu1 %v4603_v56 }
 0x1cf   : > { %3456 = vmatpush3.bf16.msra.mxu0 %v4355_v60  ;;  %3636 = vmatpush3.bf16.msra.mxu1 %v4355_v60  ;;  %v5109_v60 = vld [vmem:[#allocation7_spill] sm:$0xff] }
 0x1d0   : > { %3457 = vmatprep.subr.bf16.mxu0 %v3955_v1  ;;  %3637 = vmatprep.subr.bf16.mxu1 %v3955_v1 }
 0x1d1   : > { %3471 = vmatprep.mubr.msk.bf16.mxu0 %vm3956_vm0, %v3955_v1  ;;  %3651 = vmatprep.mubr.msk.bf16.mxu1 %vm3956_vm0, %v3955_v1 }
 0x1d3   : > { %3458 = vmatpush3.bf16.msra.mxu0 %v4366_v61  ;;  %3638 = vmatpush3.bf16.msra.mxu1 %v4366_v61  ;;  %v5110_v61 = vld [vmem:[#allocation8_spill] sm:$0xff] }
 0x1d4   : > { %3459 = vmatprep.subr.bf16.mxu0 %v3955_v1  ;;  %3639 = vmatprep.subr.bf16.mxu1 %v3955_v1 }
 0x1d7   : > { %3460 = vmatpush3.bf16.msra.mxu0 %v4379_v62  ;;  %3640 = vmatpush3.bf16.msra.mxu1 %v4379_v62  ;;  %v5111_v62 = vld [vmem:[#allocation9_spill] sm:$0xff] }
 0x1d8   : > { %3461 = vmatprep.subr.bf16.mxu0 %v3955_v1  ;;  %3641 = vmatprep.subr.bf16.mxu1 %v3955_v1 }
 0x1db   : > { %3462 = vmatpush3.bf16.msra.mxu0 %v4388_v63  ;;  %3642 = vmatpush3.bf16.msra.mxu1 %v4388_v63  ;;  %v5112_v63 = vld [vmem:[#allocation10_spill] sm:$0xff] }
 0x1dc   : > { %3463 = vmatprep.subr.bf16.mxu0 %v3955_v1  ;;  %3643 = vmatprep.subr.bf16.mxu1 %v3955_v1 }
 0x1df   : > { %3464 = vmatpush3.bf16.msra.mxu0 %v4397_v0  ;;  %3644 = vmatpush3.bf16.msra.mxu1 %v4397_v0  ;;  %v5113_v0 = vld [vmem:[#allocation11_spill] sm:$0xff] }
 0x1e0   : > { %3465 = vmatprep.subr.bf16.mxu0 %v3955_v1  ;;  %3645 = vmatprep.subr.bf16.mxu1 %v3955_v1 }
 0x1e3   : > { %3466 = vmatpush3.bf16.msra.mxu0 %v4407_v3  ;;  %3646 = vmatpush3.bf16.msra.mxu1 %v4407_v3  ;;  %v2665_v3 = vld [vmem:[%s4010_s23 + $0x18] sm:$0xc] }
 0x1e4   : > { %3467 = vmatprep.subr.bf16.mxu0 %v3955_v1  ;;  %3647 = vmatprep.subr.bf16.mxu1 %v3955_v1 }
 0x1e7   : > { %3468 = vmatpush3.bf16.msra.mxu0 %v4416_v5  ;;  %3648 = vmatpush3.bf16.msra.mxu1 %v4416_v5  ;;  %v2666_v5 = vcombine.low %v2665_v3, %v4955_v20 }
 0x1e8   : > { %3469 = vmatprep.subr.bf16.mxu0 %v3955_v1  ;;  %3649 = vmatprep.subr.bf16.mxu1 %v3955_v1 }
 0x1eb   : > { %3470 = vmatpush3.bf16.msra.mxu0 %v4425_v8  ;;  %3650 = vmatpush3.bf16.msra.mxu1 %v4425_v8  ;;  %v2324_v8 = vrot.slane %v2666_v5, 2 }
 0x1ec   : > { %3475 = vmatprep.subr.bf16.mxu0 %v3955_v1  ;;  %3655 = vmatprep.subr.bf16.mxu1 %v3955_v1 }
 0x1ee   : > { %3472 = vmatmul.mubr.bf16.vlgmr.msra.gmra.mrb[4].mxu0 %v4603_v56  ;;  %3652 = vmatmul.mubr.bf16.vlgmr.msra.gmra.mrb[4].mxu1 %v4685_v4 }
 0x1ef   : > { %3476 = vmatpush3.bf16.msra.mxu0 %v4436_v10  ;;  %3656 = vmatpush3.bf16.msra.mxu1 %v4436_v10 }
 0x1f0   : > { %3477 = vmatprep.subr.bf16.mxu0 %v3955_v1  ;;  %3657 = vmatprep.subr.bf16.mxu1 %v3955_v1 }
 0x1f1   : > { %3491 = vmatprep.mubr.msk.bf16.mxu0 %vm3956_vm0, %v3955_v1  ;;  %3671 = vmatprep.mubr.msk.bf16.mxu1 %vm3956_vm0, %v3955_v1 }
 0x1f3   : > { %3478 = vmatpush3.bf16.msra.mxu0 %v4447_v11  ;;  %3658 = vmatpush3.bf16.msra.mxu1 %v4447_v11 }
 0x1f4   : > { %3479 = vmatprep.subr.bf16.mxu0 %v3955_v1  ;;  %3659 = vmatprep.subr.bf16.mxu1 %v3955_v1 }
 0x1f7   : > { %3480 = vmatpush3.bf16.msra.mxu0 %v4460_v12  ;;  %3660 = vmatpush3.bf16.msra.mxu1 %v4460_v12 }
 0x1f8   : > { %3481 = vmatprep.subr.bf16.mxu0 %v3955_v1  ;;  %3661 = vmatprep.subr.bf16.mxu1 %v3955_v1 }
 0x1fb   : > { %3482 = vmatpush3.bf16.msra.mxu0 %v4469_v13  ;;  %3662 = vmatpush3.bf16.msra.mxu1 %v4469_v13 }
 0x1fc   : > { %3483 = vmatprep.subr.bf16.mxu0 %v3955_v1  ;;  %3663 = vmatprep.subr.bf16.mxu1 %v3955_v1 }
 0x1ff   : > { %3484 = vmatpush3.bf16.msra.mxu0 %v4476_v14  ;;  %3664 = vmatpush3.bf16.msra.mxu1 %v4476_v14 }
 0x200   : > { %3485 = vmatprep.subr.bf16.mxu0 %v3955_v1  ;;  %3665 = vmatprep.subr.bf16.mxu1 %v3955_v1 }
 0x201   : > { %v4965_v24 = vpop.f32.mrb[0].mxu0  ;;  %v4967_v25 = vpop.f32.mrb[0].mxu1 }
 0x202   : > { %v1587_v27 = vmax.f32 %v4965_v24, %v4967_v25  ;;  %v3173_v28 = vpop.f32.mrb[1].mxu0  ;;  %v3353_v30 = vpop.f32.mrb[1].mxu1 }
 0x203   : > { %v1186_v38 = vpop.f32.mrb[2].mxu0  ;;  %v1583_v39 = vpop.f32.mrb[2].mxu1  ;;  %3486 = vmatpush3.bf16.msra.mxu0 %v4497_v34  ;;  %3666 = vmatpush3.bf16.msra.mxu1 %v4497_v34 }
 0x204   : > { %v3174_v40 = vpop.f32.mrb[3].mxu0  ;;  %v3354_v41 = vpop.f32.mrb[3].mxu1  ;;  %3487 = vmatprep.subr.bf16.mxu0 %v3955_v1  ;;  %3667 = vmatprep.subr.bf16.mxu1 %v3955_v1 }
 0x207   : > { %3488 = vmatpush3.bf16.msra.mxu0 %v4506_v57  ;;  %3668 = vmatpush3.bf16.msra.mxu1 %v4506_v57 }
 0x208   : > { %3489 = vmatprep.subr.bf16.mxu0 %v3955_v1  ;;  %3669 = vmatprep.subr.bf16.mxu1 %v3955_v1 }
 0x20b   : > { %3490 = vmatpush3.bf16.msra.mxu0 %v4515_v15  ;;  %3670 = vmatpush3.bf16.msra.mxu1 %v4515_v15 }
 0x20c   : > { %3495 = vmatprep.subr.bf16.mxu0 %v3955_v1  ;;  %3675 = vmatprep.subr.bf16.mxu1 %v3955_v1 }
 0x20e   : > { %3492 = vmatmul.mubr.bf16.vlgmr.msra.gmra.mrb[4].mxu0 %v1846_v46  ;;  %3672 = vmatmul.mubr.bf16.vlgmr.msra.gmra.mrb[4].mxu1 %v1903_v47 }
 0x20f   : > { %3496 = vmatpush3.bf16.msra.mxu0 %v4528_v33  ;;  %3676 = vmatpush3.bf16.msra.mxu1 %v4528_v33 }
 0x210   : > { %3497 = vmatprep.subr.bf16.mxu0 %v3955_v1  ;;  %3677 = vmatprep.subr.bf16.mxu1 %v3955_v1 }
 0x211   : > { %3511 = vmatprep.mubr.msk.bf16.mxu0 %vm3956_vm0, %v3955_v1  ;;  %3691 = vmatprep.mubr.msk.bf16.mxu1 %vm3956_vm0, %v3955_v1 }
 0x213   : > { %3498 = vmatpush3.bf16.msra.mxu0 %v4539_v36  ;;  %3678 = vmatpush3.bf16.msra.mxu1 %v4539_v36 }
 0x214   : > { %3499 = vmatprep.subr.bf16.mxu0 %v3955_v1  ;;  %3679 = vmatprep.subr.bf16.mxu1 %v3955_v1 }
 0x217   : > { %3500 = vmatpush3.bf16.msra.mxu0 %v4552_v52  ;;  %3680 = vmatpush3.bf16.msra.mxu1 %v4552_v52 }
 0x218   : > { %3501 = vmatprep.subr.bf16.mxu0 %v3955_v1  ;;  %3681 = vmatprep.subr.bf16.mxu1 %v3955_v1 }
 0x21b   : > { %3502 = vmatpush3.bf16.msra.mxu0 %v4561_v54  ;;  %3682 = vmatpush3.bf16.msra.mxu1 %v4561_v54 }
 0x21c   : > { %3503 = vmatprep.subr.bf16.mxu0 %v3955_v1  ;;  %3683 = vmatprep.subr.bf16.mxu1 %v3955_v1 }
 0x21f   : > { %3504 = vmatpush3.bf16.msra.mxu0 %v5104_v48  ;;  %3684 = vmatpush3.bf16.msra.mxu1 %v5104_v48 }
 0x220   : > { %3505 = vmatprep.subr.bf16.mxu0 %v3955_v1  ;;  %3685 = vmatprep.subr.bf16.mxu1 %v3955_v1 }
 0x223   : > { %3506 = vmatpush3.bf16.msra.mxu0 %v5105_v49  ;;  %3686 = vmatpush3.bf16.msra.mxu1 %v5105_v49 }
 0x224   : > { %3507 = vmatprep.subr.bf16.mxu0 %v3955_v1  ;;  %3687 = vmatprep.subr.bf16.mxu1 %v3955_v1 }
 0x227   : > { %3508 = vmatpush3.bf16.msra.mxu0 %v5106_v53  ;;  %3688 = vmatpush3.bf16.msra.mxu1 %v5106_v53 }
 0x228   : > { %3509 = vmatprep.subr.bf16.mxu0 %v3955_v1  ;;  %3689 = vmatprep.subr.bf16.mxu1 %v3955_v1 }
 0x22b   : > { %3510 = vmatpush3.bf16.msra.mxu0 %v5107_v58  ;;  %3690 = vmatpush3.bf16.msra.mxu1 %v5107_v58 }
 0x22c   : > { %3515 = vmatprep.subr.bf16.mxu0 %v3955_v1  ;;  %3695 = vmatprep.subr.bf16.mxu1 %v3955_v1 }
 0x22e   : > { %3512 = vmatmul.mubr.bf16.vlgmr.msra.gmra.mrb[4].mxu0 %v1903_v47  ;;  %3692 = vmatmul.mubr.bf16.vlgmr.msra.gmra.mrb[4].mxu1 %v1950_v55 }
 0x22f   : > { %3516 = vmatpush3.bf16.msra.mxu0 %v5108_v59  ;;  %3696 = vmatpush3.bf16.msra.mxu1 %v5108_v59 }
 0x230   : > { %3517 = vmatprep.subr.bf16.mxu0 %v3955_v1  ;;  %3697 = vmatprep.subr.bf16.mxu1 %v3955_v1 }
 0x231   : > { %3531 = vmatprep.mubr.msk.bf16.mxu0 %vm3956_vm0, %v3955_v1  ;;  %3711 = vmatprep.mubr.msk.bf16.mxu1 %vm3956_vm0, %v3955_v1 }
 0x233   : > { %3518 = vmatpush3.bf16.msra.mxu0 %v5109_v60  ;;  %3698 = vmatpush3.bf16.msra.mxu1 %v5109_v60 }
 0x234   : > { %3519 = vmatprep.subr.bf16.mxu0 %v3955_v1  ;;  %3699 = vmatprep.subr.bf16.mxu1 %v3955_v1 }
 0x237   : > { %3520 = vmatpush3.bf16.msra.mxu0 %v5110_v61  ;;  %3700 = vmatpush3.bf16.msra.mxu1 %v5110_v61 }
 0x238   : > { %3521 = vmatprep.subr.bf16.mxu0 %v3955_v1  ;;  %3701 = vmatprep.subr.bf16.mxu1 %v3955_v1 }
 0x23b   : > { %3522 = vmatpush3.bf16.msra.mxu0 %v5111_v62  ;;  %3702 = vmatpush3.bf16.msra.mxu1 %v5111_v62 }
 0x23c   : > { %3523 = vmatprep.subr.bf16.mxu0 %v3955_v1  ;;  %3703 = vmatprep.subr.bf16.mxu1 %v3955_v1 }
 0x23f   : > { %3524 = vmatpush3.bf16.msra.mxu0 %v5112_v63  ;;  %3704 = vmatpush3.bf16.msra.mxu1 %v5112_v63 }
 0x240   : > { %3525 = vmatprep.subr.bf16.mxu0 %v3955_v1  ;;  %3705 = vmatprep.subr.bf16.mxu1 %v3955_v1 }
 0x243   : > { %3526 = vmatpush3.bf16.msra.mxu0 %v5113_v0  ;;  %3706 = vmatpush3.bf16.msra.mxu1 %v5113_v0 }
 0x244   : > { %3527 = vmatprep.subr.bf16.mxu0 %v3955_v1  ;;  %3707 = vmatprep.subr.bf16.mxu1 %v3955_v1 }
 0x247   : > { %3528 = vmatpush3.bf16.msra.mxu0 %v4670_v16  ;;  %3708 = vmatpush3.bf16.msra.mxu1 %v4670_v16 }
 0x248   : > { %3529 = vmatprep.subr.bf16.mxu0 %v3955_v1  ;;  %3709 = vmatprep.subr.bf16.mxu1 %v3955_v1  ;;  %v2667_v1 = vld [vmem:[%s5072_s2] ss:$0 sm:$0xff] }
 0x24b   : > { %3530 = vmatpush3.bf16.msra.mxu0 %v4681_v7  ;;  %3710 = vmatpush3.bf16.msra.mxu1 %v4681_v7 }
 0x24e   : > { %3532 = vmatmul.mubr.bf16.vlgmr.msra.gmra.mrb[4].mxu0 %v1950_v55  ;;  %3712 = vmatmul.mubr.bf16.vlgmr.msra.gmra.mrb[4].mxu1 %v2324_v8 }
 0x321   : > { %v1986_v9 = vpop.f32.mrb[4].mxu0  ;;  %v2360_v10 = vpop.f32.mrb[4].mxu1 }
 0x322   : > { %v1993_v11 = vmax.f32 %v1587_v27, %v1986_v9  ;;  %v3533_v12 = vpop.f32.mrb[5].mxu0  ;;  %v3713_v13 = vpop.f32.mrb[5].mxu1 }
 0x323   : > { %v1989_v14 = vpop.f32.mrb[6].mxu0  ;;  %v2363_v34 = vpop.f32.mrb[6].mxu1 }
 0x324   : > { %v2367_v57 = vmax.f32 %v1993_v11, %v2360_v10  ;;  %v3534_v15 = vpop.f32.mrb[7].mxu0  ;;  %v3714_v23 = vpop.f32.mrb[7].mxu1 }
 0x326   : > { %v2375_v31 = vadd.f32 %v2667_v1, %v2367_v57 }
 0x328   : > { %v2376_v33 = vmax.f32 %v2375_v31, 0.0 }
 0x32a   : > { %v2377_v36 = vpack.c.bf16 %v2376_v33, %v2376_v33 }
 0x32c   : > { %2378 = vst [vmem:[%s168_s17] sm:$0x7] %v2377_v36 }
 0x32d PF: > { %s13_s12 = sadd.s32 1, %s3953_s12  }
 0x32e   : > { %p10_p4 = scmp.ge.s32.totalorder %s13_s12, 4  }
 0x330   :  { %12 = sbr.rel (!%p10_p4) target bundleno = 1 (0x1), region = 73 }

// kernel: diffusion_model_forward.7
= control target key start
LH: loop header
LB: loop body
LE: loop exit
PB: predicated region body
PF: predicated region fallthrough
CT: control target
= control target key end

     0   :  { %s3545_s12 = smov 0   ;;  %s4873_s0 = inlined_call_operand.vmem [shape: bf16[2,2,2,6,128], index: 0, kind: input, shape index: {}]   ;;  %s4874_s1 = inlined_call_operand.vmem [shape: bf16[3,3,128,256], index: 1, kind: input, shape index: {}]   ;;  %s4875_s2 = inlined_call_operand.vmem [shape: f32[1,256], index: 2, kind: input, shape index: {}]   ;;  %s4876_s3 = inlined_call_operand.vmem [shape: bf16[2,2,256], index: 3, kind: output, shape index: {}]  }
   0x1 LB: > { %s2801_s13 = sadd.s32 4294967295, %s3521_s12   ;;  %p2805_p0 = scmp.ge.s32.totalorder %s3521_s12, 1  ;;  %s3521_s12 = sphi %s3545_s12, %s13_s12  }
   0x2   : > { %p137_p1 = scmp.lt.s32.totalorder %s3521_s12, 3 }
   0x4   : > { %p138_p2 = pnand %p2805_p0, %p137_p1 }
   0x6   : > { %141 = sbr.rel (%p138_p2) target bundleno = 817 (0x331), region = 32 }
   0xd   : > { %v3248_v0 = vld [vmem:[%s4874_s1 + $0x84] ss:$8 sps:$4 sm:$0xff]   ;;  %p3556_p3 = scmp.lt.s32.totalorder %s2801_s13, 1  ;;  %v3250_v1 = vld [vmem:[%s4874_s1 + $0x80] ss:$8 sps:$4 sm:$0xff]   ;;  %v4877_v2 = vmov 0  }
   0xe   : > { %318 = vmatprep.mubr.bf16.mxu0 %v4877_v2  ;;  %1513 = vmatprep.mubr.bf16.mxu1 %v4877_v2  ;;  %v3251_v3 = vld [vmem:[%s4874_s1 + $0x94] ss:$8 sps:$4 sm:$0xff]   ;;  %v3253_v4 = vld [vmem:[%s4874_s1 + $0x90] ss:$8 sps:$4 sm:$0xff]   ;;  %v3254_v5 = vld [vmem:[%s4874_s1 + $0xa4] ss:$8 sps:$4 sm:$0xff]  }
   0xf   : > { %286 = vmatprep.subr.bf16.mxu0 %v3248_v0  ;;  %1481 = vmatprep.subr.bf16.mxu1 %v3248_v0  ;;  %s5100_s13 = smov (!%p3556_p3, %s2801_s13), 1  ;;  %v3256_v6 = vld [vmem:[%s4874_s1 + $0xa0] ss:$8 sps:$4 sm:$0xff]   ;;  %v3257_v7 = vld [vmem:[%s4874_s1 + $0xb4] ss:$8 sps:$4 sm:$0xff]  }
  0x10   : > { %287 = vmatpush1.bf16.msra.mxu0 %v3250_v1  ;;  %1482 = vmatpush1.bf16.msra.mxu1 %v3250_v1  ;;  %s3109_s29 = sshll.u32 %s5100_s13, 4  ;;  %v3259_v8 = vld [vmem:[%s4874_s1 + $0xb0] ss:$8 sps:$4 sm:$0xff]   ;;  %v3260_v9 = vld [vmem:[%s4874_s1 + $0xc4] ss:$8 sps:$4 sm:$0xff]   ;;  %s2808_s25 = sshll.u32 %s5100_s13, 1 }
  0x11   : > { %288 = vmatprep.subr.bf16.mxu0 %v3251_v3  ;;  %1483 = vmatprep.subr.bf16.mxu1 %v3251_v3  ;;  %s3591_s7 = scalar_lea.vmem %s4873_s0, %s3109_s29  ;;  %v3262_v10 = vld [vmem:[%s4874_s1 + $0xc0] ss:$8 sps:$4 sm:$0xff]   ;;  %v3263_v11 = vld [vmem:[%s4874_s1 + $0xd4] ss:$8 sps:$4 sm:$0xff]   ;;  %v3265_v13 = vld [vmem:[%s4874_s1 + $0xd0] ss:$8 sps:$4 sm:$0xff]   ;;  %s168_s28 = scalar_lea.vmem %s4876_s3, %s2808_s25 }
  0x12   : > { %v3275_v12 = vld [vmem:[%s3591_s7] ss:$0 sps:$4 sm:$0x33]   ;;  %v3266_v14 = vld [vmem:[%s4874_s1 + $0xe4] ss:$8 sps:$4 sm:$0xff]  }
  0x13   : > { %v472_v15 = vshll.u32 %v3275_v12, 16  ;;  %v3268_v16 = vld [vmem:[%s4874_s1 + $0xe0] ss:$8 sps:$4 sm:$0xff]   ;;  %v3269_v17 = vld [vmem:[%s4874_s1 + $0xf4] ss:$8 sps:$4 sm:$0xff]   ;;  %v470_v18 = vshrl.u32 %v3275_v12, 16 }
  0x14   : > { %289 = vmatpush1.bf16.msra.mxu0 %v3253_v4  ;;  %1484 = vmatpush1.bf16.msra.mxu1 %v3253_v4  ;;  %v3271_v20 = vld [vmem:[%s4874_s1 + $0xf0] ss:$8 sps:$4 sm:$0xff]   ;;  %v3272_v21 = vld [vmem:[%s4874_s1 + $0x4] ss:$8 sps:$4 sm:$0xff]   ;;  %v3274_v24 = vld [vmem:[%s4874_s1] ss:$8 sps:$4 sm:$0xff]  }
  0x15   : > { %290 = vmatprep.subr.bf16.mxu0 %v3254_v5  ;;  %1485 = vmatprep.subr.bf16.mxu1 %v3254_v5  ;;  %v474_v19 = vrot.slane %v472_v15, 1  ;;  %v2809_v22 = vld [vmem:[%s3591_s7 + $0x4] sm:$0x1]  ;;  %v3276_v25 = vld [vmem:[%s4874_s1 + $0x14] ss:$8 sps:$4 sm:$0xff]  }
  0x16   : > { %v3278_v26 = vld [vmem:[%s4874_s1 + $0x10] ss:$8 sps:$4 sm:$0xff]   ;;  %v3279_v27 = vld [vmem:[%s4874_s1 + $0x24] ss:$8 sps:$4 sm:$0xff]   ;;  %v3281_v28 = vld [vmem:[%s4874_s1 + $0x20] ss:$8 sps:$4 sm:$0xff]  }
  0x17   : > { %v3622_v23 = vor.u32 %v474_v19, %v470_v18  ;;  %v3282_v29 = vld [vmem:[%s4874_s1 + $0x34] ss:$8 sps:$4 sm:$0xff]   ;;  %v3284_v30 = vld [vmem:[%s4874_s1 + $0x30] ss:$8 sps:$4 sm:$0xff]   ;;  %v3285_v31 = vld [vmem:[%s4874_s1 + $0x44] ss:$8 sps:$4 sm:$0xff]  }
  0x18   : > { %291 = vmatpush1.bf16.msra.mxu0 %v3256_v6  ;;  %1486 = vmatpush1.bf16.msra.mxu1 %v3256_v6  ;;  %v3287_v32 = vld [vmem:[%s4874_s1 + $0x40] ss:$8 sps:$4 sm:$0xff]   ;;  %v3288_v33 = vld [vmem:[%s4874_s1 + $0x54] ss:$8 sps:$4 sm:$0xff]   ;;  %v3290_v34 = vld [vmem:[%s4874_s1 + $0x50] ss:$8 sps:$4 sm:$0xff]  }
  0x19   : > { %292 = vmatprep.subr.bf16.mxu0 %v3257_v7  ;;  %1487 = vmatprep.subr.bf16.mxu1 %v3257_v7  ;;  %v3291_v35 = vld [vmem:[%s4874_s1 + $0x64] ss:$8 sps:$4 sm:$0xff]   ;;  %v3293_v36 = vld [vmem:[%s4874_s1 + $0x60] ss:$8 sps:$4 sm:$0xff]   ;;  %v3294_v37 = vld [vmem:[%s4874_s1 + $0x74] ss:$8 sps:$4 sm:$0xff]  }
  0x1a   : > { %v3296_v38 = vld [vmem:[%s4874_s1 + $0x70] ss:$8 sps:$4 sm:$0xff]   ;;  %v3297_v39 = vld [vmem:[%s4874_s1 + $0x104] ss:$8 sps:$4 sm:$0xff]   ;;  %v170_v40 = vld [vmem:[%s3591_s7] sm:$0x1] }
  0x1b   : > { %v3299_v41 = vld [vmem:[%s4874_s1 + $0x100] ss:$8 sps:$4 sm:$0xff]   ;;  %v3300_v42 = vld [vmem:[%s4874_s1 + $0x114] ss:$8 sps:$4 sm:$0xff]   ;;  %v3302_v43 = vld [vmem:[%s4874_s1 + $0x110] ss:$8 sps:$4 sm:$0xff]  }
  0x1c   : > { %293 = vmatpush1.bf16.msra.mxu0 %v3259_v8  ;;  %1488 = vmatpush1.bf16.msra.mxu1 %v3259_v8  ;;  %v3303_v44 = vld [vmem:[%s4874_s1 + $0x124] ss:$8 sps:$4 sm:$0xff]   ;;  %v3305_v45 = vld [vmem:[%s4874_s1 + $0x120] ss:$8 sps:$4 sm:$0xff]   ;;  %v3306_v46 = vld [vmem:[%s4874_s1 + $0x134] ss:$8 sps:$4 sm:$0xff]  }
  0x1d   : > { %294 = vmatprep.subr.bf16.mxu0 %v3260_v9  ;;  %1489 = vmatprep.subr.bf16.mxu1 %v3260_v9  ;;  %v3699_v47 = vld [vmem:[%s4874_s1 + $0x130] ss:$8 sps:$4 sm:$0xff]   ;;  %v3704_v48 = vld [vmem:[%s4874_s1 + $0x144] ss:$8 sps:$4 sm:$0xff]   ;;  %v3709_v49 = vld [vmem:[%s4874_s1 + $0x140] ss:$8 sps:$4 sm:$0xff]  }
  0x1e   : > { %v3716_v50 = vld [vmem:[%s4874_s1 + $0x154] ss:$8 sps:$4 sm:$0xff]   ;;  %v3324_v51 = vld [vmem:[%s3591_s7 + $0x4] ss:$0 sps:$4 sm:$0x33]  }
  0x1f   : > { %v3726_v52 = vld [vmem:[%s4874_s1 + $0x150] ss:$8 sps:$4 sm:$0xff]   ;;  %v3733_v53 = vld [vmem:[%s4874_s1 + $0x164] ss:$8 sps:$4 sm:$0xff]   ;;  %v1570_v54 = vshll.u32 %v3324_v51, 16  ;;  %v1568_v57 = vshrl.u32 %v3324_v51, 16 }
  0x20   : > { %295 = vmatpush1.bf16.msra.mxu0 %v3262_v10  ;;  %1490 = vmatpush1.bf16.msra.mxu1 %v3262_v10  ;;  %v3740_v55 = vld [vmem:[%s4874_s1 + $0x160] ss:$8 sps:$4 sm:$0xff]   ;;  %v3747_v56 = vld [vmem:[%s4874_s1 + $0x174] ss:$8 sps:$4 sm:$0xff]   ;;  %v3754_v59 = vld [vmem:[%s4874_s1 + $0x170] ss:$8 sps:$4 sm:$0xff]  }
  0x21   : > { %296 = vmatprep.subr.bf16.mxu0 %v3263_v11  ;;  %1491 = vmatprep.subr.bf16.mxu1 %v3263_v11  ;;  %v1572_v58 = vrot.slane %v1570_v54, 1  ;;  %v3761_v60 = vld [vmem:[%s4874_s1 + $0x184] ss:$8 sps:$4 sm:$0xff]   ;;  %v3768_v62 = vld [vmem:[%s4874_s1 + $0x180] ss:$8 sps:$4 sm:$0xff]  }
  0x22   : > { %v3775_v63 = vld [vmem:[%s4874_s1 + $0x194] ss:$8 sps:$4 sm:$0xff]   ;;  %v3783_v0 = vld [vmem:[%s4874_s1 + $0x190] ss:$8 sps:$4 sm:$0xff]   ;;  %v3790_v1 = vld [vmem:[%s4874_s1 + $0x1a4] ss:$8 sps:$4 sm:$0xff]  }
  0x23   : > { %v1573_v61 = vor.u32 %v1572_v58, %v1568_v57  ;;  %v3799_v3 = vld [vmem:[%s4874_s1 + $0x1a0] ss:$8 sps:$4 sm:$0xff]   ;;  %v3806_v4 = vld [vmem:[%s4874_s1 + $0x1b4] ss:$8 sps:$4 sm:$0xff]   ;;  %v3813_v5 = vld [vmem:[%s4874_s1 + $0x1b0] ss:$8 sps:$4 sm:$0xff]  }
  0x24   : > { %297 = vmatpush1.bf16.msra.mxu0 %v3265_v13  ;;  %1492 = vmatpush1.bf16.msra.mxu1 %v3265_v13  ;;  %v3820_v6 = vld [vmem:[%s4874_s1 + $0x1c4] ss:$8 sps:$4 sm:$0xff]   ;;  %v3827_v7 = vld [vmem:[%s4874_s1 + $0x1c0] ss:$8 sps:$4 sm:$0xff]   ;;  %v3834_v8 = vld [vmem:[%s4874_s1 + $0x1d4] ss:$8 sps:$4 sm:$0xff]  }
  0x25   : > { %298 = vmatprep.subr.bf16.mxu0 %v3266_v14  ;;  %1493 = vmatprep.subr.bf16.mxu1 %v3266_v14  ;;  %v3841_v9 = vld [vmem:[%s4874_s1 + $0x1d0] ss:$8 sps:$4 sm:$0xff]   ;;  %v3848_v10 = vld [vmem:[%s4874_s1 + $0x1e4] ss:$8 sps:$4 sm:$0xff]   ;;  %v3855_v11 = vld [vmem:[%s4874_s1 + $0x1e0] ss:$8 sps:$4 sm:$0xff]  }
  0x26   : > { %v3862_v12 = vld [vmem:[%s4874_s1 + $0x1f4] ss:$8 sps:$4 sm:$0xff]   ;;  %v3869_v13 = vld [vmem:[%s4874_s1 + $0x1f0] ss:$8 sps:$4 sm:$0xff]   ;;  %v3876_v14 = vld [vmem:[%s4874_s1 + $0x204] ss:$8 sps:$4 sm:$0xff]  }
  0x27   : > { %v3881_v15 = vld [vmem:[%s3591_s7 + $0x8] sm:$0x1]  ;;  %v3896_v18 = vld [vmem:[%s4874_s1 + $0x214] ss:$8 sps:$4 sm:$0xff]   ;;  %v3905_v19 = vld [vmem:[%s4874_s1 + $0x210] ss:$8 sps:$4 sm:$0xff]  }
  0x28   : > { %299 = vmatpush1.bf16.msra.mxu0 %v3268_v16  ;;  %1494 = vmatpush1.bf16.msra.mxu1 %v3268_v16  ;;  %v3886_v16 = vld [vmem:[%s4874_s1 + $0x200] ss:$8 sps:$4 sm:$0xff]   ;;  %v4075_v51 = vld [vmem:[%s4874_s1 + $0x2d4] ss:$8 sps:$4 sm:$0xff]   ;;  %v4083_v57 = vld [vmem:[%s4874_s1 + $0x2d0] ss:$8 sps:$4 sm:$0xff]  }
  0x29   : > { %300 = vmatprep.subr.bf16.mxu0 %v3269_v17  ;;  %1495 = vmatprep.subr.bf16.mxu1 %v3269_v17  ;;  %v3889_v17 = vld [vmem:[%s3591_s7 + $0xc] sm:$0x1]  ;;  %4992 = vst [vmem:[#allocation5_spill] sm:$0xff] %v4075_v51  ;;  %4993 = vst [vmem:[#allocation6_spill] sm:$0xff] %v4083_v57 }
  0x2a   : > { %v3398_v54 = vld [vmem:[%s3591_s7 + $0xc] ss:$0 sps:$4 sm:$0x33]  }
  0x2b   : > { %v4090_v58 = vld [vmem:[%s4874_s1 + $0x2e4] ss:$8 sps:$4 sm:$0xff]  }
  0x2c   : > { %301 = vmatpush1.bf16.msra.mxu0 %v3271_v20  ;;  %1496 = vmatpush1.bf16.msra.mxu1 %v3271_v20  ;;  %v3912_v20 = vld [vmem:[%s4874_s1 + $0x224] ss:$8 sps:$4 sm:$0xff]   ;;  %4994 = vst [vmem:[#allocation7_spill] sm:$0xff] %v4090_v58 }
  0x2d   : > { %407 = vmatprep.subr.bf16.mxu0 %v3272_v21  ;;  %1522 = vmatprep.subr.bf16.mxu1 %v3272_v21  ;;  %v3921_v21 = vld [vmem:[%s4874_s1 + $0x220] ss:$8 sps:$4 sm:$0xff]  }
  0x2f   : > { %319 = vmatmul.mubr.bf16.vlgmr.msra.gmra.mrb[0].mxu0 %v2809_v22  ;;  %1514 = vmatmul.mubr.bf16.vlgmr.msra.gmra.mrb[0].mxu1 %v3622_v23 }
  0x30   : > { %408 = vmatpush1.bf16.msra.mxu0 %v3274_v24  ;;  %1523 = vmatpush1.bf16.msra.mxu1 %v3274_v24  ;;  %v3942_v24 = vld [vmem:[%s4874_s1 + $0x244] ss:$8 sps:$4 sm:$0xff]  }
  0x31   : > { %409 = vmatprep.subr.bf16.mxu0 %v3276_v25  ;;  %1524 = vmatprep.subr.bf16.mxu1 %v3276_v25  ;;  %v3949_v25 = vld [vmem:[%s4874_s1 + $0x240] ss:$8 sps:$4 sm:$0xff]  }
  0x32   : > { %439 = vmatprep.mubr.bf16.mxu0 %v4877_v2  ;;  %1554 = vmatprep.mubr.bf16.mxu1 %v4877_v2 }
  0x34   : > { %410 = vmatpush1.bf16.msra.mxu0 %v3278_v26  ;;  %1525 = vmatpush1.bf16.msra.mxu1 %v3278_v26  ;;  %v3956_v26 = vld [vmem:[%s4874_s1 + $0x254] ss:$8 sps:$4 sm:$0xff]  }
  0x35   : > { %411 = vmatprep.subr.bf16.mxu0 %v3279_v27  ;;  %1526 = vmatprep.subr.bf16.mxu1 %v3279_v27  ;;  %v3373_v27 = vld [vmem:[%s3591_s7 + $0x8] ss:$0 sps:$4 sm:$0x33]  }
  0x38   : > { %412 = vmatpush1.bf16.msra.mxu0 %v3281_v28  ;;  %1527 = vmatpush1.bf16.msra.mxu1 %v3281_v28  ;;  %v3964_v28 = vld [vmem:[%s4874_s1 + $0x250] ss:$8 sps:$4 sm:$0xff]  }
  0x39   : > { %413 = vmatprep.subr.bf16.mxu0 %v3282_v29  ;;  %1528 = vmatprep.subr.bf16.mxu1 %v3282_v29  ;;  %v3971_v29 = vld [vmem:[%s4874_s1 + $0x264] ss:$8 sps:$4 sm:$0xff]  }
  0x3c   : > { %414 = vmatpush1.bf16.msra.mxu0 %v3284_v30  ;;  %1529 = vmatpush1.bf16.msra.mxu1 %v3284_v30  ;;  %v908_v30 = vshll.u32 %v3373_v27, 16 }
  0x3d   : > { %415 = vmatprep.subr.bf16.mxu0 %v3285_v31  ;;  %1530 = vmatprep.subr.bf16.mxu1 %v3285_v31  ;;  %v3978_v31 = vld [vmem:[%s4874_s1 + $0x260] ss:$8 sps:$4 sm:$0xff]  }
  0x40   : > { %416 = vmatpush1.bf16.msra.mxu0 %v3287_v32  ;;  %1531 = vmatpush1.bf16.msra.mxu1 %v3287_v32  ;;  %v3985_v32 = vld [vmem:[%s4874_s1 + $0x274] ss:$8 sps:$4 sm:$0xff]  }
  0x41   : > { %417 = vmatprep.subr.bf16.mxu0 %v3288_v33  ;;  %1532 = vmatprep.subr.bf16.mxu1 %v3288_v33  ;;  %v906_v33 = vshrl.u32 %v3373_v27, 16  ;;  %v4097_v27 = vld [vmem:[%s4874_s1 + $0x2e0] ss:$8 sps:$4 sm:$0xff]  }
  0x42   : > { %4995 = vst [vmem:[#allocation8_spill] sm:$0xff] %v4097_v27 }
  0x44   : > { %418 = vmatpush1.bf16.msra.mxu0 %v3290_v34  ;;  %1533 = vmatpush1.bf16.msra.mxu1 %v3290_v34  ;;  %v910_v34 = vrot.slane %v908_v30, 1  ;;  %v4104_v30 = vld [vmem:[%s4874_s1 + $0x2f4] ss:$8 sps:$4 sm:$0xff]  }
  0x45   : > { %419 = vmatprep.subr.bf16.mxu0 %v3291_v35  ;;  %1534 = vmatprep.subr.bf16.mxu1 %v3291_v35  ;;  %v3992_v35 = vld [vmem:[%s4874_s1 + $0x270] ss:$8 sps:$4 sm:$0xff]   ;;  %4996 = vst [vmem:[#allocation9_spill] sm:$0xff] %v4104_v30 }
  0x48   : > { %420 = vmatpush1.bf16.msra.mxu0 %v3293_v36  ;;  %1535 = vmatpush1.bf16.msra.mxu1 %v3293_v36  ;;  %v3999_v36 = vld [vmem:[%s4874_s1 + $0x284] ss:$8 sps:$4 sm:$0xff]  }
  0x49   : > { %421 = vmatprep.subr.bf16.mxu0 %v3294_v37  ;;  %1536 = vmatprep.subr.bf16.mxu1 %v3294_v37  ;;  %v4001_v37 = vor.u32 %v910_v34, %v906_v33  ;;  %v1709_v33 = vshrl.u32 %v3398_v54, 16 }
  0x4c   : > { %422 = vmatpush1.bf16.msra.mxu0 %v3296_v38  ;;  %1537 = vmatpush1.bf16.msra.mxu1 %v3296_v38  ;;  %v4008_v38 = vld [vmem:[%s4874_s1 + $0x280] ss:$8 sps:$4 sm:$0xff]  }
  0x4d   : > { %557 = vmatprep.subr.bf16.mxu0 %v3297_v39  ;;  %1575 = vmatprep.subr.bf16.mxu1 %v3297_v39  ;;  %v4015_v39 = vld [vmem:[%s4874_s1 + $0x294] ss:$8 sps:$4 sm:$0xff]  }
  0x4f   : > { %440 = vmatmul.mubr.bf16.vlgmr.msra.gmra.mrb[0].mxu0 %v170_v40  ;;  %1555 = vmatmul.mubr.bf16.vlgmr.msra.gmra.mrb[0].mxu1 %v2809_v22  ;;  %v3928_v22 = vld [vmem:[%s4874_s1 + $0x234] ss:$8 sps:$4 sm:$0xff]   ;;  %v4024_v40 = vld [vmem:[%s4874_s1 + $0x290] ss:$8 sps:$4 sm:$0xff]  }
  0x50   : > { %558 = vmatpush1.bf16.msra.mxu0 %v3299_v41  ;;  %1576 = vmatpush1.bf16.msra.mxu1 %v3299_v41  ;;  %v4031_v41 = vld [vmem:[%s4874_s1 + $0x2a4] ss:$8 sps:$4 sm:$0xff]  }
  0x51   : > { %559 = vmatprep.subr.bf16.mxu0 %v3300_v42  ;;  %1577 = vmatprep.subr.bf16.mxu1 %v3300_v42  ;;  %v4040_v42 = vld [vmem:[%s4874_s1 + $0x2a0] ss:$8 sps:$4 sm:$0xff]  }
  0x52   : > { %589 = vmatprep.mubr.bf16.mxu0 %v4877_v2  ;;  %1607 = vmatprep.mubr.bf16.mxu1 %v4877_v2 }
  0x54   : > { %560 = vmatpush1.bf16.msra.mxu0 %v3302_v43  ;;  %1578 = vmatpush1.bf16.msra.mxu1 %v3302_v43  ;;  %v4047_v43 = vld [vmem:[%s4874_s1 + $0x2b4] ss:$8 sps:$4 sm:$0xff]  }
  0x55   : > { %561 = vmatprep.subr.bf16.mxu0 %v3303_v44  ;;  %1579 = vmatprep.subr.bf16.mxu1 %v3303_v44  ;;  %v4054_v44 = vld [vmem:[%s4874_s1 + $0x2b0] ss:$8 sps:$4 sm:$0xff]  }
  0x56   : > { %4989 = vst [vmem:[#allocation2_spill] sm:$0xff] %v4054_v44 }
  0x58   : > { %562 = vmatpush1.bf16.msra.mxu0 %v3305_v45  ;;  %1580 = vmatpush1.bf16.msra.mxu1 %v3305_v45  ;;  %v4061_v45 = vld [vmem:[%s4874_s1 + $0x2c4] ss:$8 sps:$4 sm:$0xff]  }
  0x59   : > { %563 = vmatprep.subr.bf16.mxu0 %v3306_v46  ;;  %1581 = vmatprep.subr.bf16.mxu1 %v3306_v46  ;;  %4990 = vst [vmem:[#allocation3_spill] sm:$0xff] %v4061_v45  ;;  %v4068_v46 = vld [vmem:[%s4874_s1 + $0x2c0] ss:$8 sps:$4 sm:$0xff]  }
  0x5a   : > { %4991 = vst [vmem:[#allocation4_spill] sm:$0xff] %v4068_v46 }
  0x5c   : > { %564 = vmatpush1.bf16.msra.mxu0 %v3699_v47  ;;  %1582 = vmatpush1.bf16.msra.mxu1 %v3699_v47 }
  0x5d   : > { %565 = vmatprep.subr.bf16.mxu0 %v3704_v48  ;;  %1583 = vmatprep.subr.bf16.mxu1 %v3704_v48 }
  0x60   : > { %566 = vmatpush1.bf16.msra.mxu0 %v3709_v49  ;;  %1584 = vmatpush1.bf16.msra.mxu1 %v3709_v49 }
  0x61   : > { %567 = vmatprep.subr.bf16.mxu0 %v3716_v50  ;;  %1585 = vmatprep.subr.bf16.mxu1 %v3716_v50 }
  0x64   : > { %568 = vmatpush1.bf16.msra.mxu0 %v3726_v52  ;;  %1586 = vmatpush1.bf16.msra.mxu1 %v3726_v52 }
  0x65   : > { %569 = vmatprep.subr.bf16.mxu0 %v3733_v53  ;;  %1587 = vmatprep.subr.bf16.mxu1 %v3733_v53 }
  0x68   : > { %570 = vmatpush1.bf16.msra.mxu0 %v3740_v55  ;;  %1588 = vmatpush1.bf16.msra.mxu1 %v3740_v55 }
  0x69   : > { %571 = vmatprep.subr.bf16.mxu0 %v3747_v56  ;;  %1589 = vmatprep.subr.bf16.mxu1 %v3747_v56 }
  0x6c   : > { %572 = vmatpush1.bf16.msra.mxu0 %v3754_v59  ;;  %1590 = vmatpush1.bf16.msra.mxu1 %v3754_v59 }
  0x6d   : > { %699 = vmatprep.subr.bf16.mxu0 %v3761_v60  ;;  %1618 = vmatprep.subr.bf16.mxu1 %v3761_v60 }
  0x6f   : > { %590 = vmatmul.mubr.bf16.vlgmr.msra.gmra.mrb[0].mxu0 %v3622_v23  ;;  %1608 = vmatmul.mubr.bf16.vlgmr.msra.gmra.mrb[0].mxu1 %v1573_v61  ;;  %v3935_v23 = vld [vmem:[%s4874_s1 + $0x230] ss:$8 sps:$4 sm:$0xff]   ;;  %v1711_v61 = vshll.u32 %v3398_v54, 16 }
  0x70   : > { %700 = vmatpush1.bf16.msra.mxu0 %v3768_v62  ;;  %1619 = vmatpush1.bf16.msra.mxu1 %v3768_v62 }
  0x71   : > { %701 = vmatprep.subr.bf16.mxu0 %v3775_v63  ;;  %1620 = vmatprep.subr.bf16.mxu1 %v3775_v63  ;;  %v1713_v34 = vrot.slane %v1711_v61, 1  ;;  %v4127_v61 = vld [vmem:[%s4874_s1 + $0x300] ss:$8 sps:$4 sm:$0xff]  }
  0x72   : > { %731 = vmatprep.mubr.bf16.mxu0 %v4877_v2  ;;  %1650 = vmatprep.mubr.bf16.mxu1 %v4877_v2  ;;  %4999 = vst [vmem:[#allocation12_spill] sm:$0xff] %v4127_v61 }
  0x73   : > { %v4120_v54 = vor.u32 %v1713_v34, %v1709_v33  ;;  %v4143_v33 = vld [vmem:[%s4874_s1 + $0x310] ss:$8 sps:$4 sm:$0xff]   ;;  %v4150_v34 = vld [vmem:[%s4874_s1 + $0x324] ss:$8 sps:$4 sm:$0xff]  }
  0x74   : > { %702 = vmatpush1.bf16.msra.mxu0 %v3783_v0  ;;  %1621 = vmatpush1.bf16.msra.mxu1 %v3783_v0  ;;  %5001 = vst [vmem:[#allocation14_spill] sm:$0xff] %v4143_v33  ;;  %5002 = vst [vmem:[#allocation15_spill] sm:$0xff] %v4150_v34 }
  0x75   : > { %703 = vmatprep.subr.bf16.mxu0 %v3790_v1  ;;  %1622 = vmatprep.subr.bf16.mxu1 %v3790_v1 }
  0x78   : > { %704 = vmatpush1.bf16.msra.mxu0 %v3799_v3  ;;  %1623 = vmatpush1.bf16.msra.mxu1 %v3799_v3 }
  0x79   : > { %705 = vmatprep.subr.bf16.mxu0 %v3806_v4  ;;  %1624 = vmatprep.subr.bf16.mxu1 %v3806_v4 }
  0x7c   : > { %706 = vmatpush1.bf16.msra.mxu0 %v3813_v5  ;;  %1625 = vmatpush1.bf16.msra.mxu1 %v3813_v5 }
  0x7d   : > { %707 = vmatprep.subr.bf16.mxu0 %v3820_v6  ;;  %1626 = vmatprep.subr.bf16.mxu1 %v3820_v6 }
  0x80   : > { %708 = vmatpush1.bf16.msra.mxu0 %v3827_v7  ;;  %1627 = vmatpush1.bf16.msra.mxu1 %v3827_v7 }
  0x81   : > { %709 = vmatprep.subr.bf16.mxu0 %v3834_v8  ;;  %1628 = vmatprep.subr.bf16.mxu1 %v3834_v8 }
  0x84   : > { %710 = vmatpush1.bf16.msra.mxu0 %v3841_v9  ;;  %1629 = vmatpush1.bf16.msra.mxu1 %v3841_v9 }
  0x85   : > { %711 = vmatprep.subr.bf16.mxu0 %v3848_v10  ;;  %1630 = vmatprep.subr.bf16.mxu1 %v3848_v10 }
  0x88   : > { %712 = vmatpush1.bf16.msra.mxu0 %v3855_v11  ;;  %1631 = vmatpush1.bf16.msra.mxu1 %v3855_v11 }
  0x89   : > { %713 = vmatprep.subr.bf16.mxu0 %v3862_v12  ;;  %1632 = vmatprep.subr.bf16.mxu1 %v3862_v12 }
  0x8c   : > { %714 = vmatpush1.bf16.msra.mxu0 %v3869_v13  ;;  %1633 = vmatpush1.bf16.msra.mxu1 %v3869_v13 }
  0x8d   : > { %841 = vmatprep.subr.bf16.mxu0 %v3876_v14  ;;  %1661 = vmatprep.subr.bf16.mxu1 %v3876_v14 }
  0x8f   : > { %732 = vmatmul.mubr.bf16.vlgmr.msra.gmra.mrb[0].mxu0 %v3881_v15  ;;  %1651 = vmatmul.mubr.bf16.vlgmr.msra.gmra.mrb[0].mxu1 %v3889_v17 }
  0x90   : > { %842 = vmatpush1.bf16.msra.mxu0 %v3886_v16  ;;  %1662 = vmatpush1.bf16.msra.mxu1 %v3886_v16 }
  0x91   : > { %843 = vmatprep.subr.bf16.mxu0 %v3896_v18  ;;  %1663 = vmatprep.subr.bf16.mxu1 %v3896_v18 }
  0x92   : > { %873 = vmatprep.mubr.bf16.mxu0 %v4877_v2  ;;  %1693 = vmatprep.mubr.bf16.mxu1 %v4877_v2 }
  0x94   : > { %844 = vmatpush1.bf16.msra.mxu0 %v3905_v19  ;;  %1664 = vmatpush1.bf16.msra.mxu1 %v3905_v19 }
  0x95   : > { %845 = vmatprep.subr.bf16.mxu0 %v3912_v20  ;;  %1665 = vmatprep.subr.bf16.mxu1 %v3912_v20 }
  0x98   : > { %846 = vmatpush1.bf16.msra.mxu0 %v3921_v21  ;;  %1666 = vmatpush1.bf16.msra.mxu1 %v3921_v21 }
  0x99   : > { %847 = vmatprep.subr.bf16.mxu0 %v3928_v22  ;;  %1667 = vmatprep.subr.bf16.mxu1 %v3928_v22 }
  0x9c   : > { %848 = vmatpush1.bf16.msra.mxu0 %v3935_v23  ;;  %1668 = vmatpush1.bf16.msra.mxu1 %v3935_v23 }
  0x9d   : > { %849 = vmatprep.subr.bf16.mxu0 %v3942_v24  ;;  %1669 = vmatprep.subr.bf16.mxu1 %v3942_v24 }
  0xa0   : > { %850 = vmatpush1.bf16.msra.mxu0 %v3949_v25  ;;  %1670 = vmatpush1.bf16.msra.mxu1 %v3949_v25 }
  0xa1   : > { %851 = vmatprep.subr.bf16.mxu0 %v3956_v26  ;;  %1671 = vmatprep.subr.bf16.mxu1 %v3956_v26 }
  0xa4   : > { %852 = vmatpush1.bf16.msra.mxu0 %v3964_v28  ;;  %1672 = vmatpush1.bf16.msra.mxu1 %v3964_v28 }
  0xa5   : > { %853 = vmatprep.subr.bf16.mxu0 %v3971_v29  ;;  %1673 = vmatprep.subr.bf16.mxu1 %v3971_v29 }
  0xa8   : > { %854 = vmatpush1.bf16.msra.mxu0 %v3978_v31  ;;  %1674 = vmatpush1.bf16.msra.mxu1 %v3978_v31 }
  0xa9   : > { %855 = vmatprep.subr.bf16.mxu0 %v3985_v32  ;;  %1675 = vmatprep.subr.bf16.mxu1 %v3985_v32 }
  0xac   : > { %856 = vmatpush1.bf16.msra.mxu0 %v3992_v35  ;;  %1676 = vmatpush1.bf16.msra.mxu1 %v3992_v35 }
  0xad   : > { %993 = vmatprep.subr.bf16.mxu0 %v3999_v36  ;;  %1716 = vmatprep.subr.bf16.mxu1 %v3999_v36 }
  0xaf   : > { %874 = vmatmul.mubr.bf16.vlgmr.msra.gmra.mrb[0].mxu0 %v3889_v17  ;;  %1694 = vmatmul.mubr.bf16.vlgmr.msra.gmra.mrb[0].mxu1 %v4001_v37 }
  0xb0   : > { %994 = vmatpush1.bf16.msra.mxu0 %v4008_v38  ;;  %1717 = vmatpush1.bf16.msra.mxu1 %v4008_v38 }
  0xb1   : > { %995 = vmatprep.subr.bf16.mxu0 %v4015_v39  ;;  %1718 = vmatprep.subr.bf16.mxu1 %v4015_v39 }
  0xb2   : > { %1025 = vmatprep.mubr.bf16.mxu0 %v4877_v2  ;;  %1748 = vmatprep.mubr.bf16.mxu1 %v4877_v2  ;;  %v4111_v2 = vld [vmem:[%s4874_s1 + $0x2f0] ss:$8 sps:$4 sm:$0xff]  }
  0xb3   : > { %4997 = vst [vmem:[#allocation10_spill] sm:$0xff] %v4111_v2 }
  0xb4   : > { %996 = vmatpush1.bf16.msra.mxu0 %v4024_v40  ;;  %1719 = vmatpush1.bf16.msra.mxu1 %v4024_v40 }
  0xb5   : > { %997 = vmatprep.subr.bf16.mxu0 %v4031_v41  ;;  %1720 = vmatprep.subr.bf16.mxu1 %v4031_v41 }
  0xb8   : > { %998 = vmatpush1.bf16.msra.mxu0 %v4040_v42  ;;  %1721 = vmatpush1.bf16.msra.mxu1 %v4040_v42 }
  0xb9   : > { %999 = vmatprep.subr.bf16.mxu0 %v4047_v43  ;;  %1722 = vmatprep.subr.bf16.mxu1 %v4047_v43 }
  0xbc   : > { %1000 = vmatpush1.bf16.msra.mxu0 %v4054_v44  ;;  %1723 = vmatpush1.bf16.msra.mxu1 %v4054_v44 }
  0xbd   : > { %1001 = vmatprep.subr.bf16.mxu0 %v4061_v45  ;;  %1724 = vmatprep.subr.bf16.mxu1 %v4061_v45 }
  0xc0   : > { %1002 = vmatpush1.bf16.msra.mxu0 %v4068_v46  ;;  %1725 = vmatpush1.bf16.msra.mxu1 %v4068_v46 }
  0xc1   : > { %1003 = vmatprep.subr.bf16.mxu0 %v4075_v51  ;;  %1726 = vmatprep.subr.bf16.mxu1 %v4075_v51 }
  0xc4   : > { %1004 = vmatpush1.bf16.msra.mxu0 %v4083_v57  ;;  %1727 = vmatpush1.bf16.msra.mxu1 %v4083_v57 }
  0xc5   : > { %1005 = vmatprep.subr.bf16.mxu0 %v4090_v58  ;;  %1728 = vmatprep.subr.bf16.mxu1 %v4090_v58  ;;  %v4118_v58 = vld [vmem:[%s4874_s1 + $0x304] ss:$8 sps:$4 sm:$0xff]  }
  0xc6   : > { %4998 = vst [vmem:[#allocation11_spill] sm:$0xff] %v4118_v58 }
  0xc8   : > { %1006 = vmatpush1.bf16.msra.mxu0 %v4097_v27  ;;  %1729 = vmatpush1.bf16.msra.mxu1 %v4097_v27  ;;  %v3424_v27 = vld [vmem:[%s3591_s7 + $0x4] ss:$0 sps:$4 sm:$0x22]  }
  0xc9   : > { %1007 = vmatprep.subr.bf16.mxu0 %v4104_v30  ;;  %1730 = vmatprep.subr.bf16.mxu1 %v4104_v30  ;;  %v4134_v30 = vld [vmem:[%s4874_s1 + $0x314] ss:$8 sps:$4 sm:$0xff]   ;;  %v4243_v51 = vrot.slane %v3424_v27, 1  ;;  %v4267_v27 = vld [vmem:[%s4874_s1 + $0x390] ss:$8 sps:$4 sm:$0xff]  }
  0xca   : > { %5000 = vst [vmem:[#allocation13_spill] sm:$0xff] %v4134_v30  ;;  %5018 = vst [vmem:[#allocation30_spill] sm:$0xff] %v4267_v27 }
  0xcc   : > { %1008 = vmatpush1.bf16.msra.mxu0 %v4111_v2  ;;  %1731 = vmatpush1.bf16.msra.mxu1 %v4111_v2  ;;  %v4225_v2 = vld [vmem:[%s3591_s7] ss:$0 sps:$4 sm:$0x22]  }
  0xcd   : > { %1139 = vmatprep.subr.bf16.mxu0 %v4118_v58  ;;  %1759 = vmatprep.subr.bf16.mxu1 %v4118_v58  ;;  %v5003_v58 = vmov 0   ;;  %v4923_v57 = vrot.slane %v4225_v2, 1 }
  0xcf   : > { %1026 = vmatmul.mubr.bf16.vlgmr.msra.gmra.mrb[0].mxu0 %v4001_v37  ;;  %1749 = vmatmul.mubr.bf16.vlgmr.msra.gmra.mrb[0].mxu1 %v4120_v54 }
  0xd0   : > { %1140 = vmatpush1.bf16.msra.mxu0 %v4127_v61  ;;  %1760 = vmatpush1.bf16.msra.mxu1 %v4127_v61  ;;  %v4159_v61 = vld [vmem:[%s4874_s1 + $0x320] ss:$8 sps:$4 sm:$0xff]  }
  0xd1   : > { %1141 = vmatprep.subr.bf16.mxu0 %v4134_v30  ;;  %1761 = vmatprep.subr.bf16.mxu1 %v4134_v30  ;;  %5004 = vst [vmem:[#allocation16_spill] sm:$0xff] %v4159_v61  ;;  %v4166_v30 = vld [vmem:[%s4874_s1 + $0x334] ss:$8 sps:$4 sm:$0xff]  }
  0xd2   : > { %1171 = vmatprep.mubr.bf16.mxu0 %v5003_v58  ;;  %1791 = vmatprep.mubr.bf16.mxu1 %v5003_v58  ;;  %5005 = vst [vmem:[#allocation17_spill] sm:$0xff] %v4166_v30 }
  0xd4   : > { %1142 = vmatpush1.bf16.msra.mxu0 %v4143_v33  ;;  %1762 = vmatpush1.bf16.msra.mxu1 %v4143_v33  ;;  %v4173_v33 = vld [vmem:[%s4874_s1 + $0x330] ss:$8 sps:$4 sm:$0xff]  }
  0xd5   : > { %1143 = vmatprep.subr.bf16.mxu0 %v4150_v34  ;;  %1763 = vmatprep.subr.bf16.mxu1 %v4150_v34  ;;  %5006 = vst [vmem:[#allocation18_spill] sm:$0xff] %v4173_v33  ;;  %v4180_v34 = vld [vmem:[%s4874_s1 + $0x344] ss:$8 sps:$4 sm:$0xff]  }
  0xd6   : > { %5007 = vst [vmem:[#allocation19_spill] sm:$0xff] %v4180_v34 }
  0xd8   : > { %1144 = vmatpush1.bf16.msra.mxu0 %v4159_v61  ;;  %1764 = vmatpush1.bf16.msra.mxu1 %v4159_v61  ;;  %v4187_v61 = vld [vmem:[%s4874_s1 + $0x340] ss:$8 sps:$4 sm:$0xff]  }
  0xd9   : > { %1145 = vmatprep.subr.bf16.mxu0 %v4166_v30  ;;  %1765 = vmatprep.subr.bf16.mxu1 %v4166_v30  ;;  %5008 = vst [vmem:[#allocation20_spill] sm:$0xff] %v4187_v61  ;;  %v4194_v30 = vld [vmem:[%s4874_s1 + $0x354] ss:$8 sps:$4 sm:$0xff]  }
  0xda   : > { %5009 = vst [vmem:[#allocation21_spill] sm:$0xff] %v4194_v30 }
  0xdc   : > { %1146 = vmatpush1.bf16.msra.mxu0 %v4173_v33  ;;  %1766 = vmatpush1.bf16.msra.mxu1 %v4173_v33  ;;  %v4201_v33 = vld [vmem:[%s4874_s1 + $0x350] ss:$8 sps:$4 sm:$0xff]  }
  0xdd   : > { %1147 = vmatprep.subr.bf16.mxu0 %v4180_v34  ;;  %1767 = vmatprep.subr.bf16.mxu1 %v4180_v34  ;;  %5010 = vst [vmem:[#allocation22_spill] sm:$0xff] %v4201_v33  ;;  %v4208_v34 = vld [vmem:[%s4874_s1 + $0x364] ss:$8 sps:$4 sm:$0xff]  }
  0xde   : > { %5011 = vst [vmem:[#allocation23_spill] sm:$0xff] %v4208_v34 }
  0xe0   : > { %1148 = vmatpush1.bf16.msra.mxu0 %v4187_v61  ;;  %1768 = vmatpush1.bf16.msra.mxu1 %v4187_v61  ;;  %v4215_v61 = vld [vmem:[%s4874_s1 + $0x360] ss:$8 sps:$4 sm:$0xff]  }
  0xe1   : > { %1149 = vmatprep.subr.bf16.mxu0 %v4194_v30  ;;  %1769 = vmatprep.subr.bf16.mxu1 %v4194_v30  ;;  %5012 = vst [vmem:[#allocation24_spill] sm:$0xff] %v4215_v61  ;;  %v4222_v30 = vld [vmem:[%s4874_s1 + $0x374] ss:$8 sps:$4 sm:$0xff]  }
  0xe2   : > { %5013 = vst [vmem:[#allocation25_spill] sm:$0xff] %v4222_v30 }
  0xe4   : > { %1150 = vmatpush1.bf16.msra.mxu0 %v4201_v33  ;;  %1770 = vmatpush1.bf16.msra.mxu1 %v4201_v33  ;;  %v4233_v33 = vld [vmem:[%s4874_s1 + $0x370] ss:$8 sps:$4 sm:$0xff]  }
  0xe5   : > { %1151 = vmatprep.subr.bf16.mxu0 %v4208_v34  ;;  %1771 = vmatprep.subr.bf16.mxu1 %v4208_v34  ;;  %5014 = vst [vmem:[#allocation26_spill] sm:$0xff] %v4233_v33  ;;  %v4240_v34 = vld [vmem:[%s4874_s1 + $0x384] ss:$8 sps:$4 sm:$0xff]  }
  0xe6   : > { %5015 = vst [vmem:[#allocation27_spill] sm:$0xff] %v4240_v34 }
  0xe8   : > { %1152 = vmatpush1.bf16.msra.mxu0 %v4215_v61  ;;  %1772 = vmatpush1.bf16.msra.mxu1 %v4215_v61  ;;  %v4250_v61 = vld [vmem:[%s4874_s1 + $0x380] ss:$8 sps:$4 sm:$0xff]  }
  0xe9   : > { %1153 = vmatprep.subr.bf16.mxu0 %v4222_v30  ;;  %1773 = vmatprep.subr.bf16.mxu1 %v4222_v30  ;;  %5016 = vst [vmem:[#allocation28_spill] sm:$0xff] %v4250_v61  ;;  %v4257_v30 = vld [vmem:[%s4874_s1 + $0x394] ss:$8 sps:$4 sm:$0xff]  }
  0xea   : > { %5017 = vst [vmem:[#allocation29_spill] sm:$0xff] %v4257_v30 }
  0xec   : > { %1154 = vmatpush1.bf16.msra.mxu0 %v4233_v33  ;;  %1774 = vmatpush1.bf16.msra.mxu1 %v4233_v33 }
  0xed   : > { %1285 = vmatprep.subr.bf16.mxu0 %v4240_v34  ;;  %1802 = vmatprep.subr.bf16.mxu1 %v4240_v34  ;;  %v4274_v34 = vld [vmem:[%s4874_s1 + $0x3a4] ss:$8 sps:$4 sm:$0xff]  }
  0xee   : > { %5019 = vst [vmem:[#allocation31_spill] sm:$0xff] %v4274_v34 }
  0xef   : > { %1172 = vmatmul.mubr.bf16.vlgmr.msra.gmra.mrb[0].mxu0 %v4923_v57  ;;  %1792 = vmatmul.mubr.bf16.vlgmr.msra.gmra.mrb[0].mxu1 %v4243_v51  ;;  %v4283_v57 = vld [vmem:[%s4874_s1 + $0x3a0] ss:$8 sps:$4 sm:$0xff]  }
  0xf0   : > { %1286 = vmatpush1.bf16.msra.mxu0 %v4250_v61  ;;  %1803 = vmatpush1.bf16.msra.mxu1 %v4250_v61  ;;  %5020 = vst [vmem:[#allocation32_spill] sm:$0xff] %v4283_v57  ;;  %v3449_v61 = vld [vmem:[%s3591_s7] ss:$0 sps:$4 sm:$0x66]  }
  0xf1   : > { %1287 = vmatprep.subr.bf16.mxu0 %v4257_v30  ;;  %1804 = vmatprep.subr.bf16.mxu1 %v4257_v30  ;;  %v4290_v30 = vld [vmem:[%s4874_s1 + $0x3b4] ss:$8 sps:$4 sm:$0xff]   ;;  %v1350_v33 = vshrl.u32 %v3449_v61, 16  ;;  %v1353_v46 = vshll.u32 %v3449_v61, 16 }
  0xf2   : > { %1317 = vmatprep.mubr.bf16.mxu0 %v5003_v58  ;;  %1834 = vmatprep.mubr.bf16.mxu1 %v5003_v58  ;;  %5021 = vst [vmem:[#allocation33_spill] sm:$0xff] %v4290_v30 }
  0xf3   : > { %v1352_v45 = vrot.slane %v1350_v33, 1  ;;  %v1355_v61 = vrot.slane %v1353_v46, 2  ;;  %v4370_v46 = vld [vmem:[%s4874_s1 + $0x400] ss:$8 sps:$4 sm:$0xff]  }
  0xf4   : > { %1288 = vmatpush1.bf16.msra.mxu0 %v4267_v27  ;;  %1805 = vmatpush1.bf16.msra.mxu1 %v4267_v27  ;;  %v4297_v27 = vld [vmem:[%s4874_s1 + $0x3b0] ss:$8 sps:$4 sm:$0xff]   ;;  %5032 = vst [vmem:[#allocation44_spill] sm:$0xff] %v4370_v46 }
  0xf5   : > { %1289 = vmatprep.subr.bf16.mxu0 %v4274_v34  ;;  %1806 = vmatprep.subr.bf16.mxu1 %v4274_v34  ;;  %5022 = vst [vmem:[#allocation34_spill] sm:$0xff] %v4297_v27  ;;  %v4304_v34 = vld [vmem:[%s4874_s1 + $0x3c4] ss:$8 sps:$4 sm:$0xff]   ;;  %v4363_v33 = vor.u32 %v1355_v61, %v1352_v45  ;;  %v4386_v45 = vld [vmem:[%s4874_s1 + $0x410] ss:$8 sps:$4 sm:$0xff]  }
  0xf6   : > { %5023 = vst [vmem:[#allocation35_spill] sm:$0xff] %v4304_v34  ;;  %5034 = vst [vmem:[#allocation46_spill] sm:$0xff] %v4386_v45  ;;  %v4393_v61 = vld [vmem:[%s4874_s1 + $0x424] ss:$8 sps:$4 sm:$0xff]  }
  0xf7   : > { %5035 = vst [vmem:[#allocation47_spill] sm:$0xff] %v4393_v61 }
  0xf8   : > { %1290 = vmatpush1.bf16.msra.mxu0 %v4283_v57  ;;  %1807 = vmatpush1.bf16.msra.mxu1 %v4283_v57  ;;  %v4311_v57 = vld [vmem:[%s4874_s1 + $0x3c0] ss:$8 sps:$4 sm:$0xff]  }
  0xf9   : > { %1291 = vmatprep.subr.bf16.mxu0 %v4290_v30  ;;  %1808 = vmatprep.subr.bf16.mxu1 %v4290_v30  ;;  %5024 = vst [vmem:[#allocation36_spill] sm:$0xff] %v4311_v57  ;;  %v4318_v30 = vld [vmem:[%s4874_s1 + $0x3d4] ss:$8 sps:$4 sm:$0xff]  }
  0xfa   : > { %5025 = vst [vmem:[#allocation37_spill] sm:$0xff] %v4318_v30 }
  0xfc   : > { %1292 = vmatpush1.bf16.msra.mxu0 %v4297_v27  ;;  %1809 = vmatpush1.bf16.msra.mxu1 %v4297_v27  ;;  %v4326_v27 = vld [vmem:[%s4874_s1 + $0x3d0] ss:$8 sps:$4 sm:$0xff]  }
  0xfd   : > { %1293 = vmatprep.subr.bf16.mxu0 %v4304_v34  ;;  %1810 = vmatprep.subr.bf16.mxu1 %v4304_v34  ;;  %5026 = vst [vmem:[#allocation38_spill] sm:$0xff] %v4326_v27  ;;  %v4333_v34 = vld [vmem:[%s4874_s1 + $0x3e4] ss:$8 sps:$4 sm:$0xff]  }
  0xfe   : > { %5027 = vst [vmem:[#allocation39_spill] sm:$0xff] %v4333_v34 }
 0x100   : > { %1294 = vmatpush1.bf16.msra.mxu0 %v4311_v57  ;;  %1811 = vmatpush1.bf16.msra.mxu1 %v4311_v57  ;;  %v4340_v57 = vld [vmem:[%s4874_s1 + $0x3e0] ss:$8 sps:$4 sm:$0xff]  }
 0x101   : > { %1295 = vmatprep.subr.bf16.mxu0 %v4318_v30  ;;  %1812 = vmatprep.subr.bf16.mxu1 %v4318_v30  ;;  %5028 = vst [vmem:[#allocation40_spill] sm:$0xff] %v4340_v57  ;;  %v4347_v30 = vld [vmem:[%s4874_s1 + $0x3f4] ss:$8 sps:$4 sm:$0xff]  }
 0x102   : > { %5029 = vst [vmem:[#allocation41_spill] sm:$0xff] %v4347_v30 }
 0x104   : > { %1296 = vmatpush1.bf16.msra.mxu0 %v4326_v27  ;;  %1813 = vmatpush1.bf16.msra.mxu1 %v4326_v27  ;;  %v4354_v27 = vld [vmem:[%s4874_s1 + $0x3f0] ss:$8 sps:$4 sm:$0xff]  }
 0x105   : > { %1297 = vmatprep.subr.bf16.mxu0 %v4333_v34  ;;  %1814 = vmatprep.subr.bf16.mxu1 %v4333_v34  ;;  %5030 = vst [vmem:[#allocation42_spill] sm:$0xff] %v4354_v27  ;;  %v4361_v34 = vld [vmem:[%s4874_s1 + $0x404] ss:$8 sps:$4 sm:$0xff]  }
 0x106   : > { %5031 = vst [vmem:[#allocation43_spill] sm:$0xff] %v4361_v34 }
 0x108   : > { %1298 = vmatpush1.bf16.msra.mxu0 %v4340_v57  ;;  %1815 = vmatpush1.bf16.msra.mxu1 %v4340_v57 }
 0x109   : > { %1299 = vmatprep.subr.bf16.mxu0 %v4347_v30  ;;  %1816 = vmatprep.subr.bf16.mxu1 %v4347_v30  ;;  %v4377_v30 = vld [vmem:[%s4874_s1 + $0x414] ss:$8 sps:$4 sm:$0xff]  }
 0x10a   : > { %5033 = vst [vmem:[#allocation45_spill] sm:$0xff] %v4377_v30 }
 0x10c   : > { %1300 = vmatpush1.bf16.msra.mxu0 %v4354_v27  ;;  %1817 = vmatpush1.bf16.msra.mxu1 %v4354_v27 }
 0x10d   : > { %1438 = vmatprep.subr.bf16.mxu0 %v4361_v34  ;;  %1858 = vmatprep.subr.bf16.mxu1 %v4361_v34  ;;  %v3471_v34 = vld [vmem:[%s3591_s7 + $0x4] ss:$0 sps:$4 sm:$0x66]  }
 0x10e   : > { %v1850_v27 = vshrl.u32 %v3471_v34, 16  ;;  %v1853_v57 = vshll.u32 %v3471_v34, 16 }
 0x10f   : > { %1318 = vmatmul.mubr.bf16.vlgmr.msra.gmra.mrb[0].mxu0 %v4243_v51  ;;  %1835 = vmatmul.mubr.bf16.vlgmr.msra.gmra.mrb[0].mxu1 %v4363_v33 }
 0x110   : > { %1439 = vmatpush1.bf16.msra.mxu0 %v4370_v46  ;;  %1859 = vmatpush1.bf16.msra.mxu1 %v4370_v46  ;;  %v4402_v46 = vld [vmem:[%s4874_s1 + $0x420] ss:$8 sps:$4 sm:$0xff]   ;;  %v1852_v44 = vrot.slane %v1850_v27, 1  ;;  %v1855_v34 = vrot.slane %v1853_v57, 2  ;;  %v3476_v57 = vld [vmem:[%s4874_s1 + $0x84] ss:$8 sps:$4 sm:$0xff]  }
 0x111   : > { %1440 = vmatprep.subr.bf16.mxu0 %v4377_v30  ;;  %1860 = vmatprep.subr.bf16.mxu1 %v4377_v30  ;;  %5036 = vst [vmem:[#allocation48_spill] sm:$0xff] %v4402_v46  ;;  %v4409_v30 = vld [vmem:[%s4874_s1 + $0x434] ss:$8 sps:$4 sm:$0xff]   ;;  %v3477_v27 = vld [vmem:[%s4874_s1 + $0x80] ss:$8 sps:$4 sm:$0xff]  }
 0x112   : > { %1470 = vmatprep.mubr.bf16.mxu0 %v5003_v58  ;;  %1890 = vmatprep.mubr.bf16.mxu1 %v5003_v58  ;;  %5037 = vst [vmem:[#allocation49_spill] sm:$0xff] %v4409_v30 }
 0x114   : > { %1441 = vmatpush1.bf16.msra.mxu0 %v4386_v45  ;;  %1861 = vmatpush1.bf16.msra.mxu1 %v4386_v45  ;;  %v4416_v45 = vld [vmem:[%s4874_s1 + $0x430] ss:$8 sps:$4 sm:$0xff]  }
 0x115   : > { %1442 = vmatprep.subr.bf16.mxu0 %v4393_v61  ;;  %1862 = vmatprep.subr.bf16.mxu1 %v4393_v61  ;;  %5038 = vst [vmem:[#allocation50_spill] sm:$0xff] %v4416_v45  ;;  %v4423_v61 = vld [vmem:[%s4874_s1 + $0x444] ss:$8 sps:$4 sm:$0xff]  }
 0x116   : > { %5039 = vst [vmem:[#allocation51_spill] sm:$0xff] %v4423_v61 }
 0x118   : > { %1443 = vmatpush1.bf16.msra.mxu0 %v4402_v46  ;;  %1863 = vmatpush1.bf16.msra.mxu1 %v4402_v46  ;;  %v4430_v46 = vld [vmem:[%s4874_s1 + $0x440] ss:$8 sps:$4 sm:$0xff]  }
 0x119   : > { %1444 = vmatprep.subr.bf16.mxu0 %v4409_v30  ;;  %1864 = vmatprep.subr.bf16.mxu1 %v4409_v30  ;;  %5040 = vst [vmem:[#allocation52_spill] sm:$0xff] %v4430_v46  ;;  %v4437_v30 = vld [vmem:[%s4874_s1 + $0x454] ss:$8 sps:$4 sm:$0xff]  }
 0x11a   : > { %5041 = vst [vmem:[#allocation53_spill] sm:$0xff] %v4437_v30 }
 0x11c   : > { %1445 = vmatpush1.bf16.msra.mxu0 %v4416_v45  ;;  %1865 = vmatpush1.bf16.msra.mxu1 %v4416_v45  ;;  %v4445_v45 = vld [vmem:[%s4874_s1 + $0x450] ss:$8 sps:$4 sm:$0xff]  }
 0x11d   : > { %1446 = vmatprep.subr.bf16.mxu0 %v4423_v61  ;;  %1866 = vmatprep.subr.bf16.mxu1 %v4423_v61  ;;  %5042 = vst [vmem:[#allocation54_spill] sm:$0xff] %v4445_v45  ;;  %v4452_v61 = vld [vmem:[%s4874_s1 + $0x464] ss:$8 sps:$4 sm:$0xff]  }
 0x11e   : > { %5043 = vst [vmem:[#allocation55_spill] sm:$0xff] %v4452_v61 }
 0x120   : > { %1447 = vmatpush1.bf16.msra.mxu0 %v4430_v46  ;;  %1867 = vmatpush1.bf16.msra.mxu1 %v4430_v46  ;;  %v4459_v46 = vld [vmem:[%s4874_s1 + $0x460] ss:$8 sps:$4 sm:$0xff]  }
 0x121   : > { %1448 = vmatprep.subr.bf16.mxu0 %v4437_v30  ;;  %1868 = vmatprep.subr.bf16.mxu1 %v4437_v30  ;;  %v4466_v30 = vld [vmem:[%s4874_s1 + $0x474] ss:$8 sps:$4 sm:$0xff]  }
 0x124   : > { %1449 = vmatpush1.bf16.msra.mxu0 %v4445_v45  ;;  %1869 = vmatpush1.bf16.msra.mxu1 %v4445_v45  ;;  %v4473_v45 = vld [vmem:[%s4874_s1 + $0x470] ss:$8 sps:$4 sm:$0xff]  }
 0x125   : > { %1450 = vmatprep.subr.bf16.mxu0 %v4452_v61  ;;  %1870 = vmatprep.subr.bf16.mxu1 %v4452_v61  ;;  %v4477_v61 = vor.u32 %v1855_v34, %v1852_v44  ;;  %v3478_v44 = vld [vmem:[%s4874_s1 + $0x94] ss:$8 sps:$4 sm:$0xff]   ;;  %v3479_v34 = vld [vmem:[%s4874_s1 + $0x90] ss:$8 sps:$4 sm:$0xff]  }
 0x128   : > { %1451 = vmatpush1.bf16.msra.mxu0 %v4459_v46  ;;  %1871 = vmatpush1.bf16.msra.mxu1 %v4459_v46 }
 0x129   : > { %1452 = vmatprep.subr.bf16.mxu0 %v4466_v30  ;;  %1872 = vmatprep.subr.bf16.mxu1 %v4466_v30 }
 0x12c   : > { %1453 = vmatpush1.bf16.msra.mxu0 %v4473_v45  ;;  %1873 = vmatpush1.bf16.msra.mxu1 %v4473_v45 }
 0x12d   : > { %1903 = vmatprep.subr.bf16.mxu0 %v3476_v57  ;;  %2313 = vmatprep.subr.bf16.mxu1 %v3476_v57  ;;  %v3480_v57 = vld [vmem:[%s4874_s1 + $0xa4] ss:$8 sps:$4 sm:$0xff]  }
 0x12f   : > { %1471 = vmatmul.mubr.bf16.vlgmr.msra.gmra.mrb[0].mxu0 %v4363_v33  ;;  %1891 = vmatmul.mubr.bf16.vlgmr.msra.gmra.mrb[0].mxu1 %v4477_v61 }
 0x130   : > { %1904 = vmatpush1.bf16.msra.mxu0 %v3477_v27  ;;  %2314 = vmatpush1.bf16.msra.mxu1 %v3477_v27  ;;  %v3481_v27 = vld [vmem:[%s4874_s1 + $0xa0] ss:$8 sps:$4 sm:$0xff]  }
 0x131   : > { %1905 = vmatprep.subr.bf16.mxu0 %v3478_v44  ;;  %2315 = vmatprep.subr.bf16.mxu1 %v3478_v44  ;;  %v3482_v44 = vld [vmem:[%s4874_s1 + $0xb4] ss:$8 sps:$4 sm:$0xff]  }
 0x132   : > { %1935 = vmatprep.mubr.bf16.mxu0 %v5003_v58  ;;  %2345 = vmatprep.mubr.bf16.mxu1 %v5003_v58 }
 0x134   : > { %1906 = vmatpush1.bf16.msra.mxu0 %v3479_v34  ;;  %2316 = vmatpush1.bf16.msra.mxu1 %v3479_v34  ;;  %v3483_v34 = vld [vmem:[%s4874_s1 + $0xb0] ss:$8 sps:$4 sm:$0xff]  }
 0x135   : > { %1907 = vmatprep.subr.bf16.mxu0 %v3480_v57  ;;  %2317 = vmatprep.subr.bf16.mxu1 %v3480_v57  ;;  %v3484_v57 = vld [vmem:[%s4874_s1 + $0xc4] ss:$8 sps:$4 sm:$0xff]  }
 0x138   : > { %1908 = vmatpush1.bf16.msra.mxu0 %v3481_v27  ;;  %2318 = vmatpush1.bf16.msra.mxu1 %v3481_v27  ;;  %v3485_v27 = vld [vmem:[%s4874_s1 + $0xc0] ss:$8 sps:$4 sm:$0xff]  }
 0x139   : > { %1909 = vmatprep.subr.bf16.mxu0 %v3482_v44  ;;  %2319 = vmatprep.subr.bf16.mxu1 %v3482_v44  ;;  %v3486_v44 = vld [vmem:[%s4874_s1 + $0xd4] ss:$8 sps:$4 sm:$0xff]  }
 0x13c   : > { %1910 = vmatpush1.bf16.msra.mxu0 %v3483_v34  ;;  %2320 = vmatpush1.bf16.msra.mxu1 %v3483_v34  ;;  %v3487_v34 = vld [vmem:[%s4874_s1 + $0xd0] ss:$8 sps:$4 sm:$0xff]  }
 0x13d   : > { %1911 = vmatprep.subr.bf16.mxu0 %v3484_v57  ;;  %2321 = vmatprep.subr.bf16.mxu1 %v3484_v57  ;;  %v3488_v57 = vld [vmem:[%s4874_s1 + $0xe4] ss:$8 sps:$4 sm:$0xff]  }
 0x140   : > { %1912 = vmatpush1.bf16.msra.mxu0 %v3485_v27  ;;  %2322 = vmatpush1.bf16.msra.mxu1 %v3485_v27  ;;  %v3489_v27 = vld [vmem:[%s4874_s1 + $0xe0] ss:$8 sps:$4 sm:$0xff]  }
 0x141   : > { %1913 = vmatprep.subr.bf16.mxu0 %v3486_v44  ;;  %2323 = vmatprep.subr.bf16.mxu1 %v3486_v44  ;;  %v3490_v44 = vld [vmem:[%s4874_s1 + $0xf4] ss:$8 sps:$4 sm:$0xff]  }
 0x144   : > { %1914 = vmatpush1.bf16.msra.mxu0 %v3487_v34  ;;  %2324 = vmatpush1.bf16.msra.mxu1 %v3487_v34  ;;  %v3491_v34 = vld [vmem:[%s4874_s1 + $0xf0] ss:$8 sps:$4 sm:$0xff]  }
 0x145   : > { %1915 = vmatprep.subr.bf16.mxu0 %v3488_v57  ;;  %2325 = vmatprep.subr.bf16.mxu1 %v3488_v57  ;;  %v3492_v57 = vld [vmem:[%s4874_s1 + $0x4] ss:$8 sps:$4 sm:$0xff]  }
 0x148   : > { %1916 = vmatpush1.bf16.msra.mxu0 %v3489_v27  ;;  %2326 = vmatpush1.bf16.msra.mxu1 %v3489_v27  ;;  %v3493_v27 = vld [vmem:[%s4874_s1] ss:$8 sps:$4 sm:$0xff]  }
 0x149   : > { %1917 = vmatprep.subr.bf16.mxu0 %v3490_v44  ;;  %2327 = vmatprep.subr.bf16.mxu1 %v3490_v44  ;;  %v3494_v44 = vld [vmem:[%s4874_s1 + $0x14] ss:$8 sps:$4 sm:$0xff]  }
 0x14c   : > { %1918 = vmatpush1.bf16.msra.mxu0 %v3491_v34  ;;  %2328 = vmatpush1.bf16.msra.mxu1 %v3491_v34  ;;  %v3495_v34 = vld [vmem:[%s4874_s1 + $0x10] ss:$8 sps:$4 sm:$0xff]  }
 0x14d   : > { %1944 = vmatprep.subr.bf16.mxu0 %v3492_v57  ;;  %2354 = vmatprep.subr.bf16.mxu1 %v3492_v57  ;;  %v3496_v57 = vld [vmem:[%s4874_s1 + $0x24] ss:$8 sps:$4 sm:$0xff]  }
 0x14f   : > { %1936 = vmatmul.mubr.bf16.vlgmr.msra.gmra.mrb[4].mxu0 %v3889_v17  ;;  %2346 = vmatmul.mubr.bf16.vlgmr.msra.gmra.mrb[4].mxu1 %v4001_v37 }
 0x150   : > { %1945 = vmatpush1.bf16.msra.mxu0 %v3493_v27  ;;  %2355 = vmatpush1.bf16.msra.mxu1 %v3493_v27  ;;  %v3497_v27 = vld [vmem:[%s4874_s1 + $0x20] ss:$8 sps:$4 sm:$0xff]  }
 0x151   : > { %1946 = vmatprep.subr.bf16.mxu0 %v3494_v44  ;;  %2356 = vmatprep.subr.bf16.mxu1 %v3494_v44  ;;  %v3498_v44 = vld [vmem:[%s4874_s1 + $0x34] ss:$8 sps:$4 sm:$0xff]  }
 0x152   : > { %1976 = vmatprep.mubr.bf16.mxu0 %v5003_v58  ;;  %2386 = vmatprep.mubr.bf16.mxu1 %v5003_v58 }
 0x154   : > { %1947 = vmatpush1.bf16.msra.mxu0 %v3495_v34  ;;  %2357 = vmatpush1.bf16.msra.mxu1 %v3495_v34  ;;  %v3499_v34 = vld [vmem:[%s4874_s1 + $0x30] ss:$8 sps:$4 sm:$0xff]  }
 0x155   : > { %1948 = vmatprep.subr.bf16.mxu0 %v3496_v57  ;;  %2358 = vmatprep.subr.bf16.mxu1 %v3496_v57  ;;  %v3500_v57 = vld [vmem:[%s4874_s1 + $0x44] ss:$8 sps:$4 sm:$0xff]  }
 0x158   : > { %1949 = vmatpush1.bf16.msra.mxu0 %v3497_v27  ;;  %2359 = vmatpush1.bf16.msra.mxu1 %v3497_v27  ;;  %v3501_v27 = vld [vmem:[%s4874_s1 + $0x40] ss:$8 sps:$4 sm:$0xff]  }
 0x159   : > { %1950 = vmatprep.subr.bf16.mxu0 %v3498_v44  ;;  %2360 = vmatprep.subr.bf16.mxu1 %v3498_v44  ;;  %v3502_v44 = vld [vmem:[%s4874_s1 + $0x54] ss:$8 sps:$4 sm:$0xff]  }
 0x15c   : > { %1951 = vmatpush1.bf16.msra.mxu0 %v3499_v34  ;;  %2361 = vmatpush1.bf16.msra.mxu1 %v3499_v34  ;;  %v3503_v34 = vld [vmem:[%s4874_s1 + $0x50] ss:$8 sps:$4 sm:$0xff]  }
 0x15d   : > { %1952 = vmatprep.subr.bf16.mxu0 %v3500_v57  ;;  %2362 = vmatprep.subr.bf16.mxu1 %v3500_v57  ;;  %v3504_v57 = vld [vmem:[%s4874_s1 + $0x64] ss:$8 sps:$4 sm:$0xff]  }
 0x160   : > { %1953 = vmatpush1.bf16.msra.mxu0 %v3501_v27  ;;  %2363 = vmatpush1.bf16.msra.mxu1 %v3501_v27  ;;  %v3505_v27 = vld [vmem:[%s4874_s1 + $0x60] ss:$8 sps:$4 sm:$0xff]  }
 0x161   : > { %1954 = vmatprep.subr.bf16.mxu0 %v3502_v44  ;;  %2364 = vmatprep.subr.bf16.mxu1 %v3502_v44  ;;  %v3506_v44 = vld [vmem:[%s4874_s1 + $0x74] ss:$8 sps:$4 sm:$0xff]  }
 0x164   : > { %1955 = vmatpush1.bf16.msra.mxu0 %v3503_v34  ;;  %2365 = vmatpush1.bf16.msra.mxu1 %v3503_v34  ;;  %v3507_v34 = vld [vmem:[%s4874_s1 + $0x70] ss:$8 sps:$4 sm:$0xff]  }
 0x165   : > { %1956 = vmatprep.subr.bf16.mxu0 %v3504_v57  ;;  %2366 = vmatprep.subr.bf16.mxu1 %v3504_v57  ;;  %v3508_v57 = vld [vmem:[%s4874_s1 + $0x104] ss:$8 sps:$4 sm:$0xff]  }
 0x168   : > { %1957 = vmatpush1.bf16.msra.mxu0 %v3505_v27  ;;  %2367 = vmatpush1.bf16.msra.mxu1 %v3505_v27  ;;  %v3509_v27 = vld [vmem:[%s4874_s1 + $0x100] ss:$8 sps:$4 sm:$0xff]  }
 0x169   : > { %1958 = vmatprep.subr.bf16.mxu0 %v3506_v44  ;;  %2368 = vmatprep.subr.bf16.mxu1 %v3506_v44  ;;  %v3510_v44 = vld [vmem:[%s4874_s1 + $0x114] ss:$8 sps:$4 sm:$0xff]  }
 0x16c   : > { %1959 = vmatpush1.bf16.msra.mxu0 %v3507_v34  ;;  %2369 = vmatpush1.bf16.msra.mxu1 %v3507_v34  ;;  %v3513_v34 = vld [vmem:[%s4874_s1 + $0x120] ss:$8 sps:$4 sm:$0xff]  }
 0x16d   : > { %1985 = vmatprep.subr.bf16.mxu0 %v3508_v57  ;;  %2395 = vmatprep.subr.bf16.mxu1 %v3508_v57  ;;  %v3514_v57 = vld [vmem:[%s4874_s1 + $0x134] ss:$8 sps:$4 sm:$0xff]  }
 0x16f   : > { %1977 = vmatmul.mubr.bf16.vlgmr.msra.gmra.mrb[4].mxu0 %v3881_v15  ;;  %2387 = vmatmul.mubr.bf16.vlgmr.msra.gmra.mrb[4].mxu1 %v3889_v17  ;;  %v3511_v15 = vld [vmem:[%s4874_s1 + $0x110] ss:$8 sps:$4 sm:$0xff]   ;;  %v3512_v17 = vld [vmem:[%s4874_s1 + $0x124] ss:$8 sps:$4 sm:$0xff]  }
 0x170   : > { %1986 = vmatpush1.bf16.msra.mxu0 %v3509_v27  ;;  %2396 = vmatpush1.bf16.msra.mxu1 %v3509_v27  ;;  %v5081_v27 = vld [vmem:[#allocation38_spill] sm:$0xff] }
 0x171   : > { %1987 = vmatprep.subr.bf16.mxu0 %v3510_v44  ;;  %2397 = vmatprep.subr.bf16.mxu1 %v3510_v44  ;;  %v5082_v44 = vld [vmem:[#allocation39_spill] sm:$0xff] }
 0x172   : > { %2017 = vmatprep.mubr.bf16.mxu0 %v5003_v58  ;;  %2427 = vmatprep.mubr.bf16.mxu1 %v5003_v58 }
 0x174   : > { %1988 = vmatpush1.bf16.msra.mxu0 %v3511_v15  ;;  %2398 = vmatpush1.bf16.msra.mxu1 %v3511_v15 }
 0x175   : > { %1989 = vmatprep.subr.bf16.mxu0 %v3512_v17  ;;  %2399 = vmatprep.subr.bf16.mxu1 %v3512_v17 }
 0x178   : > { %1990 = vmatpush1.bf16.msra.mxu0 %v3513_v34  ;;  %2400 = vmatpush1.bf16.msra.mxu1 %v3513_v34  ;;  %v5083_v34 = vld [vmem:[#allocation40_spill] sm:$0xff] }
 0x179   : > { %1991 = vmatprep.subr.bf16.mxu0 %v3514_v57  ;;  %2401 = vmatprep.subr.bf16.mxu1 %v3514_v57  ;;  %v5084_v57 = vld [vmem:[#allocation41_spill] sm:$0xff] }
 0x17c   : > { %1992 = vmatpush1.bf16.msra.mxu0 %v3699_v47  ;;  %2402 = vmatpush1.bf16.msra.mxu1 %v3699_v47  ;;  %v5044_v47 = vrot.slane %v4225_v2, 1  ;;  %v5045_v2 = vld [vmem:[#allocation2_spill] sm:$0xff] }
 0x17d   : > { %1993 = vmatprep.subr.bf16.mxu0 %v3704_v48  ;;  %2403 = vmatprep.subr.bf16.mxu1 %v3704_v48  ;;  %v5046_v48 = vld [vmem:[#allocation3_spill] sm:$0xff] }
 0x180   : > { %1994 = vmatpush1.bf16.msra.mxu0 %v3709_v49  ;;  %2404 = vmatpush1.bf16.msra.mxu1 %v3709_v49  ;;  %v5047_v49 = vld [vmem:[#allocation4_spill] sm:$0xff] }
 0x181   : > { %1995 = vmatprep.subr.bf16.mxu0 %v3716_v50  ;;  %2405 = vmatprep.subr.bf16.mxu1 %v3716_v50  ;;  %v5048_v50 = vld [vmem:[#allocation5_spill] sm:$0xff] }
 0x184   : > { %1996 = vmatpush1.bf16.msra.mxu0 %v3726_v52  ;;  %2406 = vmatpush1.bf16.msra.mxu1 %v3726_v52  ;;  %v5049_v52 = vld [vmem:[#allocation6_spill] sm:$0xff] }
 0x185   : > { %1997 = vmatprep.subr.bf16.mxu0 %v3733_v53  ;;  %2407 = vmatprep.subr.bf16.mxu1 %v3733_v53  ;;  %v5050_v53 = vld [vmem:[#allocation7_spill] sm:$0xff] }
 0x188   : > { %1998 = vmatpush1.bf16.msra.mxu0 %v3740_v55  ;;  %2408 = vmatpush1.bf16.msra.mxu1 %v3740_v55  ;;  %v5051_v55 = vld [vmem:[#allocation8_spill] sm:$0xff] }
 0x189   : > { %1999 = vmatprep.subr.bf16.mxu0 %v3747_v56  ;;  %2409 = vmatprep.subr.bf16.mxu1 %v3747_v56  ;;  %v5052_v56 = vld [vmem:[#allocation9_spill] sm:$0xff] }
 0x18c   : > { %2000 = vmatpush1.bf16.msra.mxu0 %v3754_v59  ;;  %2410 = vmatpush1.bf16.msra.mxu1 %v3754_v59  ;;  %v5053_v59 = vld [vmem:[#allocation10_spill] sm:$0xff] }
 0x18d   : > { %2028 = vmatprep.subr.bf16.mxu0 %v3761_v60  ;;  %2438 = vmatprep.subr.bf16.mxu1 %v3761_v60  ;;  %v5054_v60 = vld [vmem:[#allocation11_spill] sm:$0xff] }
 0x18f   : > { %2018 = vmatmul.mubr.bf16.vlgmr.msra.gmra.mrb[4].mxu0 %v4001_v37  ;;  %2428 = vmatmul.mubr.bf16.vlgmr.msra.gmra.mrb[4].mxu1 %v4120_v54  ;;  %v5073_v37 = vld [vmem:[#allocation30_spill] sm:$0xff]  ;;  %v5080_v54 = vld [vmem:[#allocation37_spill] sm:$0xff] }
 0x190   : > { %2029 = vmatpush1.bf16.msra.mxu0 %v3768_v62  ;;  %2439 = vmatpush1.bf16.msra.mxu1 %v3768_v62  ;;  %v5055_v62 = vld [vmem:[#allocation12_spill] sm:$0xff] }
 0x191   : > { %2030 = vmatprep.subr.bf16.mxu0 %v3775_v63  ;;  %2440 = vmatprep.subr.bf16.mxu1 %v3775_v63  ;;  %v5056_v63 = vld [vmem:[#allocation13_spill] sm:$0xff] }
 0x192   : > { %2060 = vmatprep.mubr.bf16.mxu0 %v5003_v58  ;;  %2470 = vmatprep.mubr.bf16.mxu1 %v5003_v58 }
 0x194   : > { %2031 = vmatpush1.bf16.msra.mxu0 %v3783_v0  ;;  %2441 = vmatpush1.bf16.msra.mxu1 %v3783_v0  ;;  %v5057_v0 = vld [vmem:[#allocation14_spill] sm:$0xff] }
 0x195   : > { %2032 = vmatprep.subr.bf16.mxu0 %v3790_v1  ;;  %2442 = vmatprep.subr.bf16.mxu1 %v3790_v1  ;;  %v5058_v1 = vld [vmem:[#allocation15_spill] sm:$0xff] }
 0x198   : > { %2033 = vmatpush1.bf16.msra.mxu0 %v3799_v3  ;;  %2443 = vmatpush1.bf16.msra.mxu1 %v3799_v3  ;;  %v5059_v3 = vld [vmem:[#allocation16_spill] sm:$0xff] }
 0x199   : > { %2034 = vmatprep.subr.bf16.mxu0 %v3806_v4  ;;  %2444 = vmatprep.subr.bf16.mxu1 %v3806_v4  ;;  %v5060_v4 = vld [vmem:[#allocation17_spill] sm:$0xff] }
 0x19c   : > { %2035 = vmatpush1.bf16.msra.mxu0 %v3813_v5  ;;  %2445 = vmatpush1.bf16.msra.mxu1 %v3813_v5  ;;  %v5061_v5 = vld [vmem:[#allocation18_spill] sm:$0xff] }
 0x19d   : > { %2036 = vmatprep.subr.bf16.mxu0 %v3820_v6  ;;  %2446 = vmatprep.subr.bf16.mxu1 %v3820_v6  ;;  %v5062_v6 = vld [vmem:[#allocation19_spill] sm:$0xff] }
 0x1a0   : > { %2037 = vmatpush1.bf16.msra.mxu0 %v3827_v7  ;;  %2447 = vmatpush1.bf16.msra.mxu1 %v3827_v7  ;;  %v5063_v7 = vld [vmem:[#allocation20_spill] sm:$0xff] }
 0x1a1   : > { %2038 = vmatprep.subr.bf16.mxu0 %v3834_v8  ;;  %2448 = vmatprep.subr.bf16.mxu1 %v3834_v8  ;;  %v5064_v8 = vld [vmem:[#allocation21_spill] sm:$0xff] }
 0x1a4   : > { %2039 = vmatpush1.bf16.msra.mxu0 %v3841_v9  ;;  %2449 = vmatpush1.bf16.msra.mxu1 %v3841_v9 }
 0x1a5   : > { %2040 = vmatprep.subr.bf16.mxu0 %v3848_v10  ;;  %2450 = vmatprep.subr.bf16.mxu1 %v3848_v10 }
 0x1a8   : > { %2041 = vmatpush1.bf16.msra.mxu0 %v3855_v11  ;;  %2451 = vmatpush1.bf16.msra.mxu1 %v3855_v11 }
 0x1a9   : > { %2042 = vmatprep.subr.bf16.mxu0 %v3862_v12  ;;  %2452 = vmatprep.subr.bf16.mxu1 %v3862_v12 }
 0x1ac   : > { %2043 = vmatpush1.bf16.msra.mxu0 %v3869_v13  ;;  %2453 = vmatpush1.bf16.msra.mxu1 %v3869_v13 }
 0x1ad   : > { %2071 = vmatprep.subr.bf16.mxu0 %v3876_v14  ;;  %2481 = vmatprep.subr.bf16.mxu1 %v3876_v14 }
 0x1af   : > { %2061 = vmatmul.mubr.bf16.vlgmr.msra.gmra.mrb[4].mxu0 %v5044_v47  ;;  %2471 = vmatmul.mubr.bf16.vlgmr.msra.gmra.mrb[4].mxu1 %v4243_v51 }
 0x1b0   : > { %2072 = vmatpush1.bf16.msra.mxu0 %v3886_v16  ;;  %2482 = vmatpush1.bf16.msra.mxu1 %v3886_v16 }
 0x1b1   : > { %2073 = vmatprep.subr.bf16.mxu0 %v3896_v18  ;;  %2483 = vmatprep.subr.bf16.mxu1 %v3896_v18 }
 0x1b2   : > { %2103 = vmatprep.mubr.bf16.mxu0 %v5003_v58  ;;  %2513 = vmatprep.mubr.bf16.mxu1 %v5003_v58 }
 0x1b4   : > { %2074 = vmatpush1.bf16.msra.mxu0 %v3905_v19  ;;  %2484 = vmatpush1.bf16.msra.mxu1 %v3905_v19  ;;  %v5065_v19 = vld [vmem:[#allocation22_spill] sm:$0xff] }
 0x1b5   : > { %2075 = vmatprep.subr.bf16.mxu0 %v3912_v20  ;;  %2485 = vmatprep.subr.bf16.mxu1 %v3912_v20 }
 0x1b8   : > { %2076 = vmatpush1.bf16.msra.mxu0 %v3921_v21  ;;  %2486 = vmatpush1.bf16.msra.mxu1 %v3921_v21 }
 0x1b9   : > { %2077 = vmatprep.subr.bf16.mxu0 %v3928_v22  ;;  %2487 = vmatprep.subr.bf16.mxu1 %v3928_v22  ;;  %v5066_v22 = vld [vmem:[#allocation23_spill] sm:$0xff] }
 0x1bc   : > { %2078 = vmatpush1.bf16.msra.mxu0 %v3935_v23  ;;  %2488 = vmatpush1.bf16.msra.mxu1 %v3935_v23  ;;  %v3472_v23 = vld [vmem:[%s3591_s7 + $0x8] ss:$0 sps:$4 sm:$0x22]  }
 0x1bd   : > { %2079 = vmatprep.subr.bf16.mxu0 %v3942_v24  ;;  %2489 = vmatprep.subr.bf16.mxu1 %v3942_v24  ;;  %v3473_v24 = vld [vmem:[%s3591_s7 + $0xc] ss:$0 sps:$4 sm:$0x22]  }
 0x1c0   : > { %2080 = vmatpush1.bf16.msra.mxu0 %v3949_v25  ;;  %2490 = vmatpush1.bf16.msra.mxu1 %v3949_v25  ;;  %v5067_v25 = vld [vmem:[#allocation24_spill] sm:$0xff] }
 0x1c1   : > { %2081 = vmatprep.subr.bf16.mxu0 %v3956_v26  ;;  %2491 = vmatprep.subr.bf16.mxu1 %v3956_v26  ;;  %v5068_v26 = vld [vmem:[#allocation25_spill] sm:$0xff] }
 0x1c4   : > { %2082 = vmatpush1.bf16.msra.mxu0 %v3964_v28  ;;  %2492 = vmatpush1.bf16.msra.mxu1 %v3964_v28  ;;  %v2161_v28 = vrot.slane %v3472_v23, 1 }
 0x1c5   : > { %2083 = vmatprep.subr.bf16.mxu0 %v3971_v29  ;;  %2493 = vmatprep.subr.bf16.mxu1 %v3971_v29  ;;  %v2210_v29 = vrot.slane %v3473_v24, 1 }
 0x1c8   : > { %2084 = vmatpush1.bf16.msra.mxu0 %v3978_v31  ;;  %2494 = vmatpush1.bf16.msra.mxu1 %v3978_v31  ;;  %v5069_v31 = vld [vmem:[#allocation26_spill] sm:$0xff] }
 0x1c9   : > { %2085 = vmatprep.subr.bf16.mxu0 %v3985_v32  ;;  %2495 = vmatprep.subr.bf16.mxu1 %v3985_v32  ;;  %v5070_v32 = vld [vmem:[#allocation27_spill] sm:$0xff] }
 0x1cc   : > { %2086 = vmatpush1.bf16.msra.mxu0 %v3992_v35  ;;  %2496 = vmatpush1.bf16.msra.mxu1 %v3992_v35  ;;  %v5071_v35 = vld [vmem:[#allocation28_spill] sm:$0xff] }
 0x1cd   : > { %2114 = vmatprep.subr.bf16.mxu0 %v3999_v36  ;;  %2524 = vmatprep.subr.bf16.mxu1 %v3999_v36  ;;  %v5072_v36 = vld [vmem:[#allocation29_spill] sm:$0xff] }
 0x1cf   : > { %2104 = vmatmul.mubr.bf16.vlgmr.msra.gmra.mrb[4].mxu0 %v4243_v51  ;;  %2514 = vmatmul.mubr.bf16.vlgmr.msra.gmra.mrb[4].mxu1 %v4363_v33  ;;  %v5079_v51 = vld [vmem:[#allocation36_spill] sm:$0xff] }
 0x1d0   : > { %2115 = vmatpush1.bf16.msra.mxu0 %v4008_v38  ;;  %2525 = vmatpush1.bf16.msra.mxu1 %v4008_v38  ;;  %v5074_v38 = vld [vmem:[#allocation31_spill] sm:$0xff] }
 0x1d1   : > { %2116 = vmatprep.subr.bf16.mxu0 %v4015_v39  ;;  %2526 = vmatprep.subr.bf16.mxu1 %v4015_v39  ;;  %v5075_v39 = vld [vmem:[#allocation32_spill] sm:$0xff] }
 0x1d2   : > { %2146 = vmatprep.mubr.bf16.mxu0 %v5003_v58  ;;  %2556 = vmatprep.mubr.bf16.mxu1 %v5003_v58 }
 0x1d4   : > { %2117 = vmatpush1.bf16.msra.mxu0 %v4024_v40  ;;  %2527 = vmatpush1.bf16.msra.mxu1 %v4024_v40  ;;  %v5076_v40 = vld [vmem:[#allocation33_spill] sm:$0xff] }
 0x1d5   : > { %2118 = vmatprep.subr.bf16.mxu0 %v4031_v41  ;;  %2528 = vmatprep.subr.bf16.mxu1 %v4031_v41  ;;  %v5077_v41 = vld [vmem:[#allocation34_spill] sm:$0xff] }
 0x1d8   : > { %2119 = vmatpush1.bf16.msra.mxu0 %v4040_v42  ;;  %2529 = vmatpush1.bf16.msra.mxu1 %v4040_v42  ;;  %v5078_v42 = vld [vmem:[#allocation35_spill] sm:$0xff] }
 0x1d9   : > { %2120 = vmatprep.subr.bf16.mxu0 %v4047_v43  ;;  %2530 = vmatprep.subr.bf16.mxu1 %v4047_v43  ;;  %v3474_v43 = vld [vmem:[%s3591_s7 + $0x8] ss:$0 sps:$4 sm:$0x66]  }
 0x1dc   : > { %2121 = vmatpush1.bf16.msra.mxu0 %v5045_v2  ;;  %2531 = vmatpush1.bf16.msra.mxu1 %v5045_v2  ;;  %v5085_v2 = vld [vmem:[#allocation42_spill] sm:$0xff] }
 0x1dd   : > { %2122 = vmatprep.subr.bf16.mxu0 %v5046_v48  ;;  %2532 = vmatprep.subr.bf16.mxu1 %v5046_v48  ;;  %v5086_v48 = vld [vmem:[#allocation43_spill] sm:$0xff] }
 0x1e0   : > { %2123 = vmatpush1.bf16.msra.mxu0 %v5047_v49  ;;  %2533 = vmatpush1.bf16.msra.mxu1 %v5047_v49  ;;  %v5087_v49 = vld [vmem:[#allocation44_spill] sm:$0xff] }
 0x1e1   : > { %2124 = vmatprep.subr.bf16.mxu0 %v5048_v50  ;;  %2534 = vmatprep.subr.bf16.mxu1 %v5048_v50  ;;  %v5088_v50 = vld [vmem:[#allocation45_spill] sm:$0xff] }
 0x1e4   : > { %2125 = vmatpush1.bf16.msra.mxu0 %v5049_v52  ;;  %2535 = vmatpush1.bf16.msra.mxu1 %v5049_v52  ;;  %v5089_v52 = vld [vmem:[#allocation46_spill] sm:$0xff] }
 0x1e5   : > { %2126 = vmatprep.subr.bf16.mxu0 %v5050_v53  ;;  %2536 = vmatprep.subr.bf16.mxu1 %v5050_v53  ;;  %v5090_v53 = vld [vmem:[#allocation47_spill] sm:$0xff] }
 0x1e8   : > { %2127 = vmatpush1.bf16.msra.mxu0 %v5051_v55  ;;  %2537 = vmatpush1.bf16.msra.mxu1 %v5051_v55  ;;  %v5091_v55 = vld [vmem:[#allocation48_spill] sm:$0xff] }
 0x1e9   : > { %2128 = vmatprep.subr.bf16.mxu0 %v5052_v56  ;;  %2538 = vmatprep.subr.bf16.mxu1 %v5052_v56  ;;  %v5092_v56 = vld [vmem:[#allocation49_spill] sm:$0xff] }
 0x1ec   : > { %2129 = vmatpush1.bf16.msra.mxu0 %v5053_v59  ;;  %2539 = vmatpush1.bf16.msra.mxu1 %v5053_v59  ;;  %v5093_v59 = vld [vmem:[#allocation50_spill] sm:$0xff] }
 0x1ed   : > { %2163 = vmatprep.subr.bf16.mxu0 %v5054_v60  ;;  %2567 = vmatprep.subr.bf16.mxu1 %v5054_v60  ;;  %v3475_v60 = vld [vmem:[%s3591_s7 + $0xc] ss:$0 sps:$4 sm:$0x66]  }
 0x1ef   : > { %2147 = vmatmul.mubr.bf16.vlgmr.msra.gmra.mrb[4].mxu0 %v4363_v33  ;;  %2557 = vmatmul.mubr.bf16.vlgmr.msra.gmra.mrb[4].mxu1 %v4477_v61  ;;  %v2260_v33 = vshrl.u32 %v3474_v43, 16  ;;  %v2263_v61 = vshll.u32 %v3474_v43, 16 }
 0x1f0   : > { %2164 = vmatpush1.bf16.msra.mxu0 %v5055_v62  ;;  %2568 = vmatpush1.bf16.msra.mxu1 %v5055_v62  ;;  %v5095_v62 = vld [vmem:[#allocation52_spill] sm:$0xff] }
 0x1f1   : > { %2165 = vmatprep.subr.bf16.mxu0 %v5056_v63  ;;  %2569 = vmatprep.subr.bf16.mxu1 %v5056_v63  ;;  %v2262_v15 = vrot.slane %v2260_v33, 1  ;;  %v2265_v17 = vrot.slane %v2263_v61, 2  ;;  %v5096_v63 = vld [vmem:[#allocation53_spill] sm:$0xff] }
 0x1f2   : > { %2195 = vmatprep.mubr.bf16.mxu0 %v5003_v58  ;;  %2599 = vmatprep.mubr.bf16.mxu1 %v5003_v58 }
 0x1f3   : > { %v2266_v47 = vor.u32 %v2265_v17, %v2262_v15 }
 0x1f4   : > { %2166 = vmatpush1.bf16.msra.mxu0 %v5057_v0  ;;  %2570 = vmatpush1.bf16.msra.mxu1 %v5057_v0  ;;  %v2658_v0 = vshrl.u32 %v3475_v60, 16 }
 0x1f5   : > { %2167 = vmatprep.subr.bf16.mxu0 %v5058_v1  ;;  %2571 = vmatprep.subr.bf16.mxu1 %v5058_v1  ;;  %v2661_v1 = vshll.u32 %v3475_v60, 16 }
 0x1f8   : > { %2168 = vmatpush1.bf16.msra.mxu0 %v5059_v3  ;;  %2572 = vmatpush1.bf16.msra.mxu1 %v5059_v3  ;;  %v5097_v3 = vld [vmem:[#allocation54_spill] sm:$0xff] }
 0x1f9   : > { %2169 = vmatprep.subr.bf16.mxu0 %v5060_v4  ;;  %2573 = vmatprep.subr.bf16.mxu1 %v5060_v4  ;;  %v5098_v4 = vld [vmem:[#allocation55_spill] sm:$0xff] }
 0x1fc   : > { %2170 = vmatpush1.bf16.msra.mxu0 %v5061_v5  ;;  %2574 = vmatpush1.bf16.msra.mxu1 %v5061_v5  ;;  %v2660_v5 = vrot.slane %v2658_v0, 1 }
 0x1fd   : > { %2171 = vmatprep.subr.bf16.mxu0 %v5062_v6  ;;  %2575 = vmatprep.subr.bf16.mxu1 %v5062_v6  ;;  %v2663_v6 = vrot.slane %v2661_v1, 2 }
 0x200   : > { %2172 = vmatpush1.bf16.msra.mxu0 %v5063_v7  ;;  %2576 = vmatpush1.bf16.msra.mxu1 %v5063_v7  ;;  %v2664_v7 = vor.u32 %v2663_v6, %v2660_v5 }
 0x201   : > { %2173 = vmatprep.subr.bf16.mxu0 %v5064_v8  ;;  %2577 = vmatprep.subr.bf16.mxu1 %v5064_v8  ;;  %v2713_v8 = vlaneseq }
 0x202   : > { %v4763_v9 = vpop.f32.mrb[0].mxu0  ;;  %v4765_v10 = vpop.f32.mrb[0].mxu1 }
 0x203   : > { %v1901_v11 = vmax.f32 %v4763_v9, %v4765_v10  ;;  %v4769_v12 = vpop.f32.mrb[1].mxu0  ;;  %v4771_v13 = vpop.f32.mrb[1].mxu1 }
 0x204   : > { %v1902_v14 = vmax.f32 %v4769_v12, %v4771_v13  ;;  %v1476_v16 = vpop.f32.mrb[2].mxu0  ;;  %v1896_v18 = vpop.f32.mrb[2].mxu1  ;;  %2174 = vmatpush1.bf16.msra.mxu0 %v5065_v19  ;;  %2578 = vmatpush1.bf16.msra.mxu1 %v5065_v19  ;;  %v2711_v19 = vld [vmem:[%s4875_s2] sm:$0x3] }
 0x205   : > { %v1477_v20 = vpop.f32.mrb[3].mxu0  ;;  %v1897_v21 = vpop.f32.mrb[3].mxu1  ;;  %2175 = vmatprep.subr.bf16.mxu0 %v5066_v22  ;;  %2579 = vmatprep.subr.bf16.mxu1 %v5066_v22  ;;  %v2714_v16 = vshrl.u32 %v2713_v8, 7  ;;  %v3524_v22 = vmov 1966171168  }
 0x206   : > { %v2733_v23 = vunpack.c.l.s4 %v3524_v22 }
 0x207   : > { %v2715_v18 = vsub.s32 0, %v2714_v16  ;;  %v2719_v20 = vsub.s32 1, %v2714_v16 }
 0x208   : > { %2176 = vmatpush1.bf16.msra.mxu0 %v5067_v25  ;;  %2580 = vmatpush1.bf16.msra.mxu1 %v5067_v25 }
 0x209   : > { %2177 = vmatprep.subr.bf16.mxu0 %v5068_v26  ;;  %2581 = vmatprep.subr.bf16.mxu1 %v5068_v26 }
 0x20c   : > { %2178 = vmatpush1.bf16.msra.mxu0 %v5069_v31  ;;  %2582 = vmatpush1.bf16.msra.mxu1 %v5069_v31 }
 0x20d   : > { %2212 = vmatprep.subr.bf16.mxu0 %v5070_v32  ;;  %2610 = vmatprep.subr.bf16.mxu1 %v5070_v32 }
 0x20f   : > { %2196 = vmatmul.mubr.bf16.vlgmr.msra.gmra.mrb[4].mxu0 %v2161_v28  ;;  %2600 = vmatmul.mubr.bf16.vlgmr.msra.gmra.mrb[4].mxu1 %v2210_v29  ;;  %v2720_v28 = vrot.slane %v2711_v19, %v2719_v20 }
 0x210   : > { %2213 = vmatpush1.bf16.msra.mxu0 %v5071_v35  ;;  %2611 = vmatpush1.bf16.msra.mxu1 %v5071_v35 }
 0x211   : > { %2214 = vmatprep.subr.bf16.mxu0 %v5072_v36  ;;  %2612 = vmatprep.subr.bf16.mxu1 %v5072_v36 }
 0x212   : > { %2244 = vmatprep.mubr.bf16.mxu0 %v5003_v58  ;;  %2642 = vmatprep.mubr.bf16.mxu1 %v5003_v58 }
 0x214   : > { %2215 = vmatpush1.bf16.msra.mxu0 %v5073_v37  ;;  %2613 = vmatpush1.bf16.msra.mxu1 %v5073_v37 }
 0x215   : > { %2216 = vmatprep.subr.bf16.mxu0 %v5074_v38  ;;  %2614 = vmatprep.subr.bf16.mxu1 %v5074_v38  ;;  %v2734_v38 = vunpack.c.0.s8 %v2733_v23 }
 0x218   : > { %2217 = vmatpush1.bf16.msra.mxu0 %v5075_v39  ;;  %2615 = vmatpush1.bf16.msra.mxu1 %v5075_v39 }
 0x219   : > { %2218 = vmatprep.subr.bf16.mxu0 %v5076_v40  ;;  %2616 = vmatprep.subr.bf16.mxu1 %v5076_v40 }
 0x21c   : > { %2219 = vmatpush1.bf16.msra.mxu0 %v5077_v41  ;;  %2617 = vmatpush1.bf16.msra.mxu1 %v5077_v41 }
 0x21d   : > { %2220 = vmatprep.subr.bf16.mxu0 %v5078_v42  ;;  %2618 = vmatprep.subr.bf16.mxu1 %v5078_v42 }
 0x220   : > { %2221 = vmatpush1.bf16.msra.mxu0 %v5079_v51  ;;  %2619 = vmatpush1.bf16.msra.mxu1 %v5079_v51 }
 0x221   : > { %2222 = vmatprep.subr.bf16.mxu0 %v5080_v54  ;;  %2620 = vmatprep.subr.bf16.mxu1 %v5080_v54 }
 0x224   : > { %2223 = vmatpush1.bf16.msra.mxu0 %v5081_v27  ;;  %2621 = vmatpush1.bf16.msra.mxu1 %v5081_v27 }
 0x225   : > { %2224 = vmatprep.subr.bf16.mxu0 %v5082_v44  ;;  %2622 = vmatprep.subr.bf16.mxu1 %v5082_v44 }
 0x228   : > { %2225 = vmatpush1.bf16.msra.mxu0 %v5083_v34  ;;  %2623 = vmatpush1.bf16.msra.mxu1 %v5083_v34 }
 0x229   : > { %2226 = vmatprep.subr.bf16.mxu0 %v5084_v57  ;;  %2624 = vmatprep.subr.bf16.mxu1 %v5084_v57 }
 0x22c   : > { %2227 = vmatpush1.bf16.msra.mxu0 %v5085_v2  ;;  %2625 = vmatpush1.bf16.msra.mxu1 %v5085_v2 }
 0x22d   : > { %2268 = vmatprep.subr.bf16.mxu0 %v5086_v48  ;;  %2666 = vmatprep.subr.bf16.mxu1 %v5086_v48 }
 0x22f   : > { %2245 = vmatmul.mubr.bf16.vlgmr.msra.gmra.mrb[4].mxu0 %v2210_v29  ;;  %2643 = vmatmul.mubr.bf16.vlgmr.msra.gmra.mrb[4].mxu1 %v2266_v47 }
 0x230   : > { %2269 = vmatpush1.bf16.msra.mxu0 %v5087_v49  ;;  %2667 = vmatpush1.bf16.msra.mxu1 %v5087_v49 }
 0x231   : > { %2270 = vmatprep.subr.bf16.mxu0 %v5088_v50  ;;  %2668 = vmatprep.subr.bf16.mxu1 %v5088_v50 }
 0x232   : > { %2300 = vmatprep.mubr.bf16.mxu0 %v5003_v58  ;;  %2698 = vmatprep.mubr.bf16.mxu1 %v5003_v58  ;;  %v5094_v58 = vld [vmem:[#allocation51_spill] sm:$0xff] }
 0x234   : > { %2271 = vmatpush1.bf16.msra.mxu0 %v5089_v52  ;;  %2669 = vmatpush1.bf16.msra.mxu1 %v5089_v52 }
 0x235   : > { %2272 = vmatprep.subr.bf16.mxu0 %v5090_v53  ;;  %2670 = vmatprep.subr.bf16.mxu1 %v5090_v53 }
 0x238   : > { %2273 = vmatpush1.bf16.msra.mxu0 %v5091_v55  ;;  %2671 = vmatpush1.bf16.msra.mxu1 %v5091_v55 }
 0x239   : > { %2274 = vmatprep.subr.bf16.mxu0 %v5092_v56  ;;  %2672 = vmatprep.subr.bf16.mxu1 %v5092_v56 }
 0x23c   : > { %2275 = vmatpush1.bf16.msra.mxu0 %v5093_v59  ;;  %2673 = vmatpush1.bf16.msra.mxu1 %v5093_v59 }
 0x23d   : > { %2276 = vmatprep.subr.bf16.mxu0 %v5094_v58  ;;  %2674 = vmatprep.subr.bf16.mxu1 %v5094_v58 }
 0x240   : > { %2277 = vmatpush1.bf16.msra.mxu0 %v5095_v62  ;;  %2675 = vmatpush1.bf16.msra.mxu1 %v5095_v62 }
 0x241   : > { %2278 = vmatprep.subr.bf16.mxu0 %v5096_v63  ;;  %2676 = vmatprep.subr.bf16.mxu1 %v5096_v63 }
 0x244   : > { %2279 = vmatpush1.bf16.msra.mxu0 %v5097_v3  ;;  %2677 = vmatpush1.bf16.msra.mxu1 %v5097_v3 }
 0x245   : > { %2280 = vmatprep.subr.bf16.mxu0 %v5098_v4  ;;  %2678 = vmatprep.subr.bf16.mxu1 %v5098_v4 }
 0x248   : > { %2281 = vmatpush1.bf16.msra.mxu0 %v4459_v46  ;;  %2679 = vmatpush1.bf16.msra.mxu1 %v4459_v46 }
 0x249   : > { %2282 = vmatprep.subr.bf16.mxu0 %v4466_v30  ;;  %2680 = vmatprep.subr.bf16.mxu1 %v4466_v30 }
 0x24c   : > { %2283 = vmatpush1.bf16.msra.mxu0 %v4473_v45  ;;  %2681 = vmatpush1.bf16.msra.mxu1 %v4473_v45  ;;  %v2716_v45 = vrot.slane %v2711_v19, %v2715_v18 }
 0x24f   : > { %2301 = vmatmul.mubr.bf16.vlgmr.msra.gmra.mrb[4].mxu0 %v2266_v47  ;;  %2699 = vmatmul.mubr.bf16.vlgmr.msra.gmra.mrb[4].mxu1 %v2664_v7 }
 0x322   : > { %v2302_v46 = vpop.f32.mrb[4].mxu0  ;;  %v2700_v21 = vpop.f32.mrb[4].mxu1 }
 0x323   : > { %v2311_v30 = vmax.f32 %v1901_v11, %v2302_v46  ;;  %v2304_v24 = vpop.f32.mrb[5].mxu0  ;;  %v2702_v25 = vpop.f32.mrb[5].mxu1  ;;  %v2737_v11 = vsub.s32 %v2734_v38, %v2714_v16 }
 0x324   : > { %v2312_v26 = vmax.f32 %v1902_v14, %v2304_v24  ;;  %v2306_v29 = vpop.f32.mrb[6].mxu0  ;;  %v2704_v31 = vpop.f32.mrb[6].mxu1 }
 0x325   : > { %v2709_v32 = vmax.f32 %v2311_v30, %v2700_v21  ;;  %v2307_v35 = vpop.f32.mrb[7].mxu0  ;;  %v2705_v36 = vpop.f32.mrb[7].mxu1 }
 0x326   : > { %v2710_v37 = vmax.f32 %v2312_v26, %v2702_v25 }
 0x327   : > { %v2723_v39 = vadd.f32 %v2716_v45, %v2709_v32 }
 0x328   : > { %v2724_v40 = vadd.f32 %v2720_v28, %v2710_v37 }
 0x329   : > { %v2725_v9 = vmax.f32 %v2723_v39, 0.0 }
 0x32a   : > { %v2726_v10 = vmax.f32 %v2724_v40, 0.0 }
 0x32c   : > { %v3105_v41 = vpack.c.bf16 %v2726_v10, %v2725_v9 }
 0x32e   : > { %v2738_v12 = vrot.slane %v3105_v41, %v2737_v11 }
 0x330   : > { %3106 = vst.sshfl [vmem:[%s168_s28] sm:$0x5 pattern:$0x73625140] %v2738_v12 }
 0x331 PF: > { %s13_s12 = sadd.s32 1, %s3521_s12  }
 0x332   : > { %p10_p4 = scmp.ge.s32.totalorder %s13_s12, 4  }
 0x334   :  { %12 = sbr.rel (!%p10_p4) target bundleno = 1 (0x1), region = 73 }

</bundles_post_ra>
